<compile_context>
chip_gen: v7x
topology: tpu7x:2x2x1
jax: 0.10.0
libtpu: 0.0.40
codegen_flags: <defaults>
</compile_context>

<pallas_src>
import jax
import jax.numpy as jnp
from jax.experimental import pallas as pl
from jax.experimental.pallas import tpu as pltpu

LANE = 128
TM_MAX = 256   # matmul row tile cap
TN_MAX = 256   # matmul output-column tile cap
TK_MAX = 256   # matmul contraction tile cap
TR_MAX = 512   # row tile cap for elementwise / pooling kernels

LAYER_CFG = [(64, 64, 1), (64, 128, 2), (128, 256, 2), (256, 512, 2)]


def _rup(x, m):
    return ((x + m - 1) // m) * m


def _pick_row_tile(mp):
    """Row tile for elementwise kernels; mp is already 16-aligned."""
    if mp % 512 == 0:
        return 512
    if mp % 256 == 0:
        return 256
    return mp


# ----------------- conv GEMM with fused BN-statistics epilogue --------------
def _conv_bn_matmul_kernel(a_ref, b_ref, o_ref, sum_ref, sq_ref, acc_ref):
    @pl.when(pl.program_id(2) == 0)
    def _():
        acc_ref[...] = jnp.zeros_like(acc_ref)

    acc_ref[...] += jnp.dot(a_ref[...], b_ref[...],
                            preferred_element_type=jnp.float32)

    @pl.when(pl.program_id(2) == pl.num_programs(2) - 1)
    def _():
        acc = acc_ref[...]
        o_ref[...] = acc.astype(o_ref.dtype)
        # Per-(row-tile, col-tile) partial BN statistics in f32.
        sum_ref[...] = jnp.sum(acc, axis=0, keepdims=True)[None, :, :]
        sq_ref[...] = jnp.sum(acc * acc, axis=0, keepdims=True)[None, :, :]


def conv_matmul_bn_stats(a, b):
    """a: (M, K), b: (K, N).  Returns (y_padded (Mp, Np) bf16,
    col_sum (N,) f32, col_sumsq (N,) f32)."""
    M, K = a.shape
    _, N = b.shape
    tm = min(TM_MAX, _rup(M, 16))
    tk = min(TK_MAX, _rup(K, LANE))
    tn = min(TN_MAX, _rup(N, LANE))
    Mp, Kp, Np = _rup(M, tm), _rup(K, tk), _rup(N, tn)
    # Keep explicit zero padding: padded K columns / M rows must be exactly
    # zero so they contribute nothing to the accumulation or the BN sums.
    ap = jnp.pad(a.astype(jnp.bfloat16), ((0, Mp - M), (0, Kp - K)))
    bp = jnp.pad(b.astype(jnp.bfloat16), ((0, Kp - K), (0, Np - N)))
    mt = Mp // tm
    y, s, q = pl.pallas_call(
        _conv_bn_matmul_kernel,
        out_shape=(jax.ShapeDtypeStruct((Mp, Np), jnp.bfloat16),
                   jax.ShapeDtypeStruct((mt, 1, Np), jnp.float32),
                   jax.ShapeDtypeStruct((mt, 1, Np), jnp.float32)),
        grid_spec=pltpu.PrefetchScalarGridSpec(
            num_scalar_prefetch=0,
            grid=(mt, Np // tn, Kp // tk),
            in_specs=[pl.BlockSpec((tm, tk), lambda i, j, k: (i, k)),
                      pl.BlockSpec((tk, tn), lambda i, j, k: (k, j))],
            out_specs=(pl.BlockSpec((tm, tn), lambda i, j, k: (i, j)),
                       pl.BlockSpec((1, 1, tn), lambda i, j, k: (i, 0, j)),
                       pl.BlockSpec((1, 1, tn), lambda i, j, k: (i, 0, j))),
            scratch_shapes=[pltpu.VMEM((tm, tn), jnp.float32)]),
        compiler_params=pltpu.CompilerParams(
            dimension_semantics=("parallel", "parallel", "arbitrary")),
    )(ap, bp)
    col_sum = jnp.sum(s[:, 0, :N], axis=0)
    col_sq = jnp.sum(q[:, 0, :N], axis=0)
    return y, col_sum, col_sq


# ------------- fused BN-apply (+ optional residual, + optional ReLU) --------
def _make_affine_kernel(relu, has_res):
    if has_res:
        def kern(x_ref, s_ref, b_ref, r_ref, o_ref):
            y = x_ref[...].astype(jnp.float32) * s_ref[...] + b_ref[...]
            y = y + r_ref[...].astype(jnp.float32)
            if relu:
                y = jnp.maximum(y, 0.0)
            o_ref[...] = y.astype(o_ref.dtype)
    else:
        def kern(x_ref, s_ref, b_ref, o_ref):
            y = x_ref[...].astype(jnp.float32) * s_ref[...] + b_ref[...]
            if relu:
                y = jnp.maximum(y, 0.0)
            o_ref[...] = y.astype(o_ref.dtype)
    return kern


def affine_apply(x_padded, M, C, scale, shift, residual=None, relu=True):
    """x_padded: (Mp, Cp) bf16 conv-GEMM output (zero padded).  Applies the
    BN affine (+ optional residual, + optional ReLU); returns (M, C) bf16."""
    Mp, Cp = x_padded.shape
    tr = _pick_row_tile(Mp)
    sp = jnp.pad(scale.reshape(1, C).astype(jnp.float32), ((0, 0), (0, Cp - C)))
    bp = jnp.pad(shift.reshape(1, C).astype(jnp.float32), ((0, 0), (0, Cp - C)))
    ins = [x_padded, sp, bp]
    in_specs = [pl.BlockSpec((tr, Cp), lambda i: (i, 0)),
                pl.BlockSpec((1, Cp), lambda i: (0, 0)),
                pl.BlockSpec((1, Cp), lambda i: (0, 0))]
    if residual is not None:
        rp = jnp.pad(residual.astype(jnp.bfloat16), ((0, Mp - M), (0, Cp - C)))
        ins.append(rp)
        in_specs.append(pl.BlockSpec((tr, Cp), lambda i: (i, 0)))
    out = pl.pallas_call(
        _make_affine_kernel(relu, residual is not None),
        out_shape=jax.ShapeDtypeStruct((Mp, Cp), jnp.bfloat16),
        grid=(Mp // tr,),
        in_specs=in_specs,
        out_specs=pl.BlockSpec((tr, Cp), lambda i: (i, 0)),
        compiler_params=pltpu.CompilerParams(
            dimension_semantics=("parallel",)),
    )(*ins)
    return out[:M, :C]


# ------------------------------- max pool -----------------------------------
def _maxpool_kernel(p_ref, o_ref):
    m = p_ref[0].astype(jnp.float32)
    for k in range(1, 9):
        m = jnp.maximum(m, p_ref[k].astype(jnp.float32))
    o_ref[...] = m.astype(o_ref.dtype)


def maxpool_3x3_s2_p1(x):
    N, H, W, C = x.shape
    xp = jnp.pad(x, ((0, 0), (1, 1), (1, 1), (0, 0)),
                 constant_values=-jnp.inf)
    oh = (H + 2 - 3) // 2 + 1
    ow = (W + 2 - 3) // 2 + 1
    taps = [xp[:, i:i + 2 * oh:2, j:j + 2 * ow:2, :]
            for i in range(3) for j in range(3)]
    M = N * oh * ow
    # Tap-major layout: each tap is a contiguous, lane-dense (M, C) slab.
    p = jnp.stack(taps, axis=0).reshape(9, M, C)
    tr = min(TR_MAX, _rup(M, 16))
    Mp, Cp = _rup(M, tr), _rup(C, LANE)
    pp = jnp.pad(p, ((0, 0), (0, Mp - M), (0, Cp - C)))
    out = pl.pallas_call(
        _maxpool_kernel,
        out_shape=jax.ShapeDtypeStruct((Mp, Cp), x.dtype),
        grid=(Mp // tr,),
        in_specs=[pl.BlockSpec((9, tr, Cp), lambda i: (0, i, 0))],
        out_specs=pl.BlockSpec((tr, Cp), lambda i: (i, 0)),
        compiler_params=pltpu.CompilerParams(
            dimension_semantics=("parallel",)),
    )(pp)
    return out[:M, :C].reshape(N, oh, ow, C)


# --------------------------- global average pool ----------------------------
def _avgpool_kernel(x_ref, o_ref):
    o_ref[...] = jnp.mean(x_ref[...].astype(jnp.float32), axis=1,
                          keepdims=True)


def global_avgpool(x):
    N, H, W, C = x.shape
    HW = H * W
    Cp = _rup(C, LANE)
    xr = jnp.pad(x.reshape(N, HW, C), ((0, 0), (0, 0), (0, Cp - C)))
    out = pl.pallas_call(
        _avgpool_kernel,
        out_shape=jax.ShapeDtypeStruct((N, 1, Cp), jnp.float32),
        grid=(N,),
        in_specs=[pl.BlockSpec((1, HW, Cp), lambda n: (n, 0, 0))],
        out_specs=pl.BlockSpec((1, 1, Cp), lambda n: (n, 0, 0)),
        compiler_params=pltpu.CompilerParams(
            dimension_semantics=("parallel",)),
    )(xr)
    return out[:, 0, :C]


# --------------------------- conv via im2col + MXU --------------------------
def _im2col(x, kh, kw, stride, pad):
    N, H, W, C = x.shape
    xp = jnp.pad(x, ((0, 0), (pad, pad), (pad, pad), (0, 0)))
    oh = (H + 2 * pad - kh) // stride + 1
    ow = (W + 2 * pad - kw) // stride + 1
    cols = [xp[:, i:i + stride * oh:stride, j:j + stride * ow:stride, :]
            for i in range(kh) for j in range(kw)]
    cols = jnp.stack(cols, axis=3)            # (N, oh, ow, kh*kw, C)
    return cols.reshape(N * oh * ow, kh * kw * C), oh, ow


def conv_bn(x, w, gamma, beta, stride, pad, relu=True, residual=None,
            eps=1e-5):
    """Conv (no bias) -> training-mode BN -> (+ residual) -> (ReLU).
    x: NHWC bf16, w: PyTorch layout (Cout, Cin, KH, KW)."""
    Nb = x.shape[0]
    Cout, Cin, KH, KW = w.shape
    cols, oh, ow = _im2col(x, KH, KW, stride, pad)
    w2 = jnp.transpose(w, (2, 3, 1, 0)).reshape(KH * KW * Cin, Cout)
    M = Nb * oh * ow
    yp, col_sum, col_sq = conv_matmul_bn_stats(cols, w2)
    mean = col_sum / M
    var = jnp.maximum(col_sq / M - mean * mean, 0.0)   # biased (training) BN
    scale = gamma / jnp.sqrt(var + eps)
    shift = beta - mean * scale
    r2 = None if residual is None else residual.reshape(M, Cout)
    o2 = affine_apply(yp, M, Cout, scale, shift, residual=r2, relu=relu)
    return o2.reshape(Nb, oh, ow, Cout)


# -------------------------------- ResNet-18 ---------------------------------
def basic_block(x, blk, stride):
    if "down_w" in blk:
        identity = conv_bn(x, blk["down_w"], blk["down_g"], blk["down_b"],
                           stride=stride, pad=0, relu=False)
    else:
        identity = x
    out = conv_bn(x, blk["w1"], blk["g1"], blk["b1"],
                  stride=stride, pad=1, relu=True)
    out = conv_bn(out, blk["w2"], blk["g2"], blk["b2"],
                  stride=1, pad=1, relu=True, residual=identity)
    return out


def resnet18_forward(params, x_nchw):
    x = jnp.transpose(x_nchw, (0, 2, 3, 1)).astype(jnp.bfloat16)  # NCHW->NHWC
    x = conv_bn(x, params["conv1_w"], params["bn1_g"], params["bn1_b"],
                stride=2, pad=3, relu=True)
    x = maxpool_3x3_s2_p1(x)
    for (cin, cout, stride), blocks in zip(LAYER_CFG, params["layers"]):
        for bi, blk in enumerate(blocks):
            x = basic_block(x, blk, stride if bi == 0 else 1)
    feats = global_avgpool(x)                                     # (N, 512) f32
    # fc head (batch x 512 x num_classes) is far below an MXU tile; keep in XLA.
    logits = jnp.dot(feats, params["fc_w"].T) + params["fc_b"][None, :]
    return logits


# ---------------------- deterministic synthetic params ----------------------
def init_params(key, num_classes):
    kit = iter(jax.random.split(key, 128))

    def conv_w(shape):
        fan_in = shape[1] * shape[2] * shape[3]
        return (jax.random.normal(next(kit), shape, jnp.float32)
                * jnp.sqrt(2.0 / fan_in))

    def bn_pair(c):
        g = jax.random.uniform(next(kit), (c,), jnp.float32, 0.5, 1.5)
        b = jax.random.normal(next(kit), (c,), jnp.float32) * 0.1
        return g, b

    params = {"conv1_w": conv_w((64, 3, 7, 7))}
    params["bn1_g"], params["bn1_b"] = bn_pair(64)
    layers = []
    for cin, cout, stride in LAYER_CFG:
        blocks = []
        for b in range(2):
            ci = cin if b == 0 else cout
            s = stride if b == 0 else 1
            blk = {"w1": conv_w((cout, ci, 3, 3)),
                   "w2": conv_w((cout, cout, 3, 3))}
            blk["g1"], blk["b1"] = bn_pair(cout)
            blk["g2"], blk["b2"] = bn_pair(cout)
            if s != 1 or ci != cout:
                blk["down_w"] = conv_w((cout, ci, 1, 1))
                blk["down_g"], blk["down_b"] = bn_pair(cout)
            blocks.append(blk)
        layers.append(blocks)
    params["layers"] = layers
    params["fc_w"] = jax.random.normal(next(kit), (num_classes, 512),
                                       jnp.float32) * 0.02
    params["fc_b"] = jax.random.normal(next(kit), (num_classes,),
                                       jnp.float32) * 0.01
    return params


if __name__ == "__main__":
    # TODO(synk): torchvision pretrained weights are not loadable here;
    # parameters are synthetic deterministic inits with identical shapes.
    key = jax.random.PRNGKey(0)
    pkey, xkey = jax.random.split(key)
    num_classes = 10
    params = init_params(pkey, num_classes)
    x = jax.random.normal(xkey, (2, 3, 32, 32), jnp.float32)  # NCHW like torch

    fwd = jax.jit(resnet18_forward)
    y = fwd(params, x)
    y = jax.block_until_ready(y)
    assert y.shape == (2, num_classes)
    assert bool(jnp.all(jnp.isfinite(y)))
    print("KERNEL_OK")
</pallas_src>

<mosaic_0001>
module attributes {stable_mosaic.version = 11 : i64} {
  func.func @_conv_bn_matmul_kernel(%arg0: i32, %arg1: i32, %arg2: i32, %arg3: memref<256x256xbf16, #tpu.memory_space<vmem>>, %arg4: memref<256x128xbf16, #tpu.memory_space<vmem>>, %arg5: memref<256x128xbf16, #tpu.memory_space<vmem>>, %arg6: memref<1x1x128xf32, #tpu.memory_space<vmem>>, %arg7: memref<1x1x128xf32, #tpu.memory_space<vmem>>, %arg8: memref<256x128xf32, #tpu.memory_space<vmem>>) attributes {dimension_semantics = [#tpu.dimension_semantics<parallel>, #tpu.dimension_semantics<parallel>, #tpu.dimension_semantics<arbitrary>], iteration_bounds = array<i64: 2, 1, 1>, scalar_prefetch = 0 : i64, scratch_operands = 1 : i64, tpu.core_type = #tpu.core_type<tc>, window_params = [{transform_indices = @transform_0, window_bounds = array<i64: 256, 256>}, {transform_indices = @transform_1, window_bounds = array<i64: 256, 128>}, {transform_indices = @transform_2, window_bounds = array<i64: 256, 128>}, {transform_indices = @transform_3, window_bounds = array<i64: 1, 1, 128>}, {transform_indices = @transform_4, window_bounds = array<i64: 1, 1, 128>}]} {
    %c0_i32 = arith.constant 0 : i32
    %0 = arith.cmpi eq, %arg2, %c0_i32 : i32
    %1 = arith.extui %0 : i1 to i32
    %c0_i32_0 = arith.constant 0 : i32
    %2 = arith.cmpi ne, %1, %c0_i32_0 : i32
    scf.if %2 {
      %cst_10 = arith.constant 0.000000e+00 : f32
      %12 = vector.broadcast %cst_10 : f32 to vector<256x128xf32>
      %c0_11 = arith.constant 0 : index
      %c0_12 = arith.constant 0 : index
      %13 = vector.load %arg8[%c0_11, %c0_12] : memref<256x128xf32, #tpu.memory_space<vmem>>, vector<256x128xf32>
      tpu.vector_store %arg8[%c0_11, %c0_12], %12 {strides = array<i32>} : memref<256x128xf32, #tpu.memory_space<vmem>>, vector<256x128xf32>,
    } else {
    }
    %c0 = arith.constant 0 : index
    %c0_1 = arith.constant 0 : index
    %3 = vector.load %arg8[%c0, %c0_1] : memref<256x128xf32, #tpu.memory_space<vmem>>, vector<256x128xf32>
    %c0_2 = arith.constant 0 : index
    %c0_3 = arith.constant 0 : index
    %4 = vector.load %arg3[%c0_2, %c0_3] : memref<256x256xbf16, #tpu.memory_space<vmem>>, vector<256x256xbf16>
    %c0_4 = arith.constant 0 : index
    %c0_5 = arith.constant 0 : index
    %5 = vector.load %arg4[%c0_4, %c0_5] : memref<256x128xbf16, #tpu.memory_space<vmem>>, vector<256x128xbf16>
    %cst = arith.constant dense<0.000000e+00> : vector<256x128xf32>
    %6 = tpu.matmul %4, %5, %cst {dimension_numbers = #tpu.dot_dimension_numbers<[1], [0], [0], [1], [0, 0, 1, 1], [], []>} : vector<256x256xbf16>, vector<256x128xbf16>, vector<256x128xf32> -> vector<256x128xf32>
    %7 = arith.addf %3, %6 : vector<256x128xf32>
    %c0_6 = arith.constant 0 : index
    %c0_7 = arith.constant 0 : index
    %8 = vector.load %arg8[%c0_6, %c0_7] : memref<256x128xf32, #tpu.memory_space<vmem>>, vector<256x128xf32>
    tpu.vector_store %arg8[%c0_6, %c0_7], %7 {strides = array<i32>} : memref<256x128xf32, #tpu.memory_space<vmem>>, vector<256x128xf32>,
    %c0_i32_8 = arith.constant 0 : i32
    %9 = arith.cmpi eq, %arg2, %c0_i32_8 : i32
    %10 = arith.extui %9 : i1 to i32
    %c0_i32_9 = arith.constant 0 : i32
    %11 = arith.cmpi ne, %10, %c0_i32_9 : i32
    scf.if %11 {
      %c0_10 = arith.constant 0 : index
      %c0_11 = arith.constant 0 : index
      %12 = vector.load %arg8[%c0_10, %c0_11] : memref<256x128xf32, #tpu.memory_space<vmem>>, vector<256x128xf32>
      %13 = arith.truncf %12 : vector<256x128xf32> to vector<256x128xbf16>
      %c0_12 = arith.constant 0 : index
      %c0_13 = arith.constant 0 : index
      %14 = vector.load %arg5[%c0_12, %c0_13] : memref<256x128xbf16, #tpu.memory_space<vmem>>, vector<256x128xbf16>
      tpu.vector_store %arg5[%c0_12, %c0_13], %13 {strides = array<i32>} : memref<256x128xbf16, #tpu.memory_space<vmem>>, vector<256x128xbf16>,
      %cst_14 = arith.constant dense<0.000000e+00> : vector<128xf32>
      %15 = vector.multi_reduction <add>, %12, %cst_14 [0] : vector<256x128xf32> to vector<128xf32>
      %16 = vector.shape_cast %15 : vector<128xf32> to vector<1x128xf32>
      %17 = vector.shape_cast %16 : vector<1x128xf32> to vector<1x1x128xf32>
      %c0_15 = arith.constant 0 : index
      %c0_16 = arith.constant 0 : index
      %c0_17 = arith.constant 0 : index
      %18 = vector.load %arg6[%c0_15, %c0_16, %c0_17] : memref<1x1x128xf32, #tpu.memory_space<vmem>>, vector<1x1x128xf32>
      tpu.vector_store %arg6[%c0_15, %c0_16, %c0_17], %17 {strides = array<i32>} : memref<1x1x128xf32, #tpu.memory_space<vmem>>, vector<1x1x128xf32>,
      %19 = arith.mulf %12, %12 : vector<256x128xf32>
      %cst_18 = arith.constant dense<0.000000e+00> : vector<128xf32>
      %20 = vector.multi_reduction <add>, %19, %cst_18 [0] : vector<256x128xf32> to vector<128xf32>
      %21 = vector.shape_cast %20 : vector<128xf32> to vector<1x128xf32>
      %22 = vector.shape_cast %21 : vector<1x128xf32> to vector<1x1x128xf32>
      %c0_19 = arith.constant 0 : index
      %c0_20 = arith.constant 0 : index
      %c0_21 = arith.constant 0 : index
      %23 = vector.load %arg7[%c0_19, %c0_20, %c0_21] : memref<1x1x128xf32, #tpu.memory_space<vmem>>, vector<1x1x128xf32>
      tpu.vector_store %arg7[%c0_19, %c0_20, %c0_21], %22 {strides = array<i32>} : memref<1x1x128xf32, #tpu.memory_space<vmem>>, vector<1x1x128xf32>,
    } else {
    }
    return
  }
  func.func @transform_0(%arg0: i32, %arg1: i32, %arg2: i32) -> (i32, i32) {
    %c0_i32 = arith.constant 0 : i32
    return %arg0, %arg2 : i32, i32
  }
  func.func @transform_1(%arg0: i32, %arg1: i32, %arg2: i32) -> (i32, i32) {
    %c0_i32 = arith.constant 0 : i32
    return %arg2, %arg1 : i32, i32
  }
  func.func @transform_2(%arg0: i32, %arg1: i32, %arg2: i32) -> (i32, i32) {
    %c0_i32 = arith.constant 0 : i32
    return %arg0, %arg1 : i32, i32
  }
  func.func @transform_3(%arg0: i32, %arg1: i32, %arg2: i32) -> (i32, i32, i32) {
    %c0_i32 = arith.constant 0 : i32
    %c0_i32_0 = arith.constant 0 : i32
    return %arg0, %c0_i32, %arg1 : i32, i32, i32
  }
  func.func @transform_4(%arg0: i32, %arg1: i32, %arg2: i32) -> (i32, i32, i32) {
    %c0_i32 = arith.constant 0 : i32
    %c0_i32_0 = arith.constant 0 : i32
    return %arg0, %c0_i32, %arg1 : i32, i32, i32
  }
}

module attributes {stable_mosaic.version = 11 : i64} {
  func.func @kern(%arg0: i32, %arg1: memref<512x128xbf16, #tpu.memory_space<vmem>>, %arg2: memref<1x128xf32, #tpu.memory_space<vmem>>, %arg3: memref<1x128xf32, #tpu.memory_space<vmem>>, %arg4: memref<512x128xbf16, #tpu.memory_space<vmem>>) attributes {dimension_semantics = [#tpu.dimension_semantics<parallel>], iteration_bounds = array<i64: 1>, scalar_prefetch = 0 : i64, scratch_operands = 0 : i64, tpu.core_type = #tpu.core_type<tc>, window_params = [{transform_indices = @transform_0, window_bounds = array<i64: 512, 128>}, {pipeline_mode = #tpu.pipeline_mode<synchronous>, transform_indices = @transform_1, window_bounds = array<i64: 1, 128>}, {pipeline_mode = #tpu.pipeline_mode<synchronous>, transform_indices = @transform_2, window_bounds = array<i64: 1, 128>}, {transform_indices = @transform_3, window_bounds = array<i64: 512, 128>}]} {
    %c0 = arith.constant 0 : index
    %c0_0 = arith.constant 0 : index
    %0 = vector.load %arg1[%c0, %c0_0] : memref<512x128xbf16, #tpu.memory_space<vmem>>, vector<512x128xbf16>
    %1 = arith.extf %0 : vector<512x128xbf16> to vector<512x128xf32>
    %c0_1 = arith.constant 0 : index
    %c0_2 = arith.constant 0 : index
    %2 = vector.load %arg2[%c0_1, %c0_2] : memref<1x128xf32, #tpu.memory_space<vmem>>, vector<1x128xf32>
    %3 = vector.broadcast %2 : vector<1x128xf32> to vector<512x128xf32>
    %4 = arith.mulf %1, %3 : vector<512x128xf32>
    %c0_3 = arith.constant 0 : index
    %c0_4 = arith.constant 0 : index
    %5 = vector.load %arg3[%c0_3, %c0_4] : memref<1x128xf32, #tpu.memory_space<vmem>>, vector<1x128xf32>
    %6 = vector.broadcast %5 : vector<1x128xf32> to vector<512x128xf32>
    %7 = arith.addf %4, %6 : vector<512x128xf32>
    %cst = arith.constant 0.000000e+00 : f32
    %8 = vector.broadcast %cst : f32 to vector<512x128xf32>
    %9 = arith.maximumf %7, %8 : vector<512x128xf32>
    %10 = arith.truncf %9 : vector<512x128xf32> to vector<512x128xbf16>
    %c0_5 = arith.constant 0 : index
    %c0_6 = arith.constant 0 : index
    %11 = vector.load %arg4[%c0_5, %c0_6] : memref<512x128xbf16, #tpu.memory_space<vmem>>, vector<512x128xbf16>
    tpu.vector_store %arg4[%c0_5, %c0_6], %10 {strides = array<i32>} : memref<512x128xbf16, #tpu.memory_space<vmem>>, vector<512x128xbf16>,
    return
  }
  func.func @transform_0(%arg0: i32) -> (i32, i32) {
    %c0_i32 = arith.constant 0 : i32
    %c0_i32_0 = arith.constant 0 : i32
    return %arg0, %c0_i32 : i32, i32
  }
  func.func @transform_1(%arg0: i32) -> (i32, i32) {
    %c0_i32 = arith.constant 0 : i32
    %c0_i32_0 = arith.constant 0 : i32
    %c0_i32_1 = arith.constant 0 : i32
    return %c0_i32, %c0_i32_0 : i32, i32
  }
  func.func @transform_2(%arg0: i32) -> (i32, i32) {
    %c0_i32 = arith.constant 0 : i32
    %c0_i32_0 = arith.constant 0 : i32
    %c0_i32_1 = arith.constant 0 : i32
    return %c0_i32, %c0_i32_0 : i32, i32
  }
  func.func @transform_3(%arg0: i32) -> (i32, i32) {
    %c0_i32 = arith.constant 0 : i32
    %c0_i32_0 = arith.constant 0 : i32
    return %arg0, %c0_i32 : i32, i32
  }
}

module attributes {stable_mosaic.version = 11 : i64} {
  func.func @_maxpool_kernel(%arg0: i32, %arg1: memref<9x128x128xbf16, #tpu.memory_space<vmem>>, %arg2: memref<128x128xbf16, #tpu.memory_space<vmem>>) attributes {dimension_semantics = [#tpu.dimension_semantics<parallel>], iteration_bounds = array<i64: 1>, scalar_prefetch = 0 : i64, scratch_operands = 0 : i64, tpu.core_type = #tpu.core_type<tc>, window_params = [{transform_indices = @transform_0, window_bounds = array<i64: 9, 128, 128>}, {transform_indices = @transform_1, window_bounds = array<i64: 128, 128>}]} {
    %c0 = arith.constant 0 : index
    %c0_0 = arith.constant 0 : index
    %c0_1 = arith.constant 0 : index
    %0 = vector.load %arg1[%c0, %c0_0, %c0_1] : memref<9x128x128xbf16, #tpu.memory_space<vmem>>, vector<1x128x128xbf16>
    %1 = vector.shape_cast %0 : vector<1x128x128xbf16> to vector<128x128xbf16>
    %2 = arith.extf %1 : vector<128x128xbf16> to vector<128x128xf32>
    %c1 = arith.constant 1 : index
    %c0_2 = arith.constant 0 : index
    %c0_3 = arith.constant 0 : index
    %3 = vector.load %arg1[%c1, %c0_2, %c0_3] : memref<9x128x128xbf16, #tpu.memory_space<vmem>>, vector<1x128x128xbf16>
    %4 = vector.shape_cast %3 : vector<1x128x128xbf16> to vector<128x128xbf16>
    %5 = arith.extf %4 : vector<128x128xbf16> to vector<128x128xf32>
    %6 = arith.maximumf %2, %5 : vector<128x128xf32>
    %c2 = arith.constant 2 : index
    %c0_4 = arith.constant 0 : index
    %c0_5 = arith.constant 0 : index
    %7 = vector.load %arg1[%c2, %c0_4, %c0_5] : memref<9x128x128xbf16, #tpu.memory_space<vmem>>, vector<1x128x128xbf16>
    %8 = vector.shape_cast %7 : vector<1x128x128xbf16> to vector<128x128xbf16>
    %9 = arith.extf %8 : vector<128x128xbf16> to vector<128x128xf32>
    %10 = arith.maximumf %6, %9 : vector<128x128xf32>
    %c3 = arith.constant 3 : index
    %c0_6 = arith.constant 0 : index
    %c0_7 = arith.constant 0 : index
    %11 = vector.load %arg1[%c3, %c0_6, %c0_7] : memref<9x128x128xbf16, #tpu.memory_space<vmem>>, vector<1x128x128xbf16>
    %12 = vector.shape_cast %11 : vector<1x128x128xbf16> to vector<128x128xbf16>
    %13 = arith.extf %12 : vector<128x128xbf16> to vector<128x128xf32>
    %14 = arith.maximumf %10, %13 : vector<128x128xf32>
    %c4 = arith.constant 4 : index
    %c0_8 = arith.constant 0 : index
    %c0_9 = arith.constant 0 : index
    %15 = vector.load %arg1[%c4, %c0_8, %c0_9] : memref<9x128x128xbf16, #tpu.memory_space<vmem>>, vector<1x128x128xbf16>
    %16 = vector.shape_cast %15 : vector<1x128x128xbf16> to vector<128x128xbf16>
    %17 = arith.extf %16 : vector<128x128xbf16> to vector<128x128xf32>
    %18 = arith.maximumf %14, %17 : vector<128x128xf32>
    %c5 = arith.constant 5 : index
    %c0_10 = arith.constant 0 : index
    %c0_11 = arith.constant 0 : index
    %19 = vector.load %arg1[%c5, %c0_10, %c0_11] : memref<9x128x128xbf16, #tpu.memory_space<vmem>>, vector<1x128x128xbf16>
    %20 = vector.shape_cast %19 : vector<1x128x128xbf16> to vector<128x128xbf16>
    %21 = arith.extf %20 : vector<128x128xbf16> to vector<128x128xf32>
    %22 = arith.maximumf %18, %21 : vector<128x128xf32>
    %c6 = arith.constant 6 : index
    %c0_12 = arith.constant 0 : index
    %c0_13 = arith.constant 0 : index
    %23 = vector.load %arg1[%c6, %c0_12, %c0_13] : memref<9x128x128xbf16, #tpu.memory_space<vmem>>, vector<1x128x128xbf16>
    %24 = vector.shape_cast %23 : vector<1x128x128xbf16> to vector<128x128xbf16>
    %25 = arith.extf %24 : vector<128x128xbf16> to vector<128x128xf32>
    %26 = arith.maximumf %22, %25 : vector<128x128xf32>
    %c7 = arith.constant 7 : index
    %c0_14 = arith.constant 0 : index
    %c0_15 = arith.constant 0 : index
    %27 = vector.load %arg1[%c7, %c0_14, %c0_15] : memref<9x128x128xbf16, #tpu.memory_space<vmem>>, vector<1x128x128xbf16>
    %28 = vector.shape_cast %27 : vector<1x128x128xbf16> to vector<128x128xbf16>
    %29 = arith.extf %28 : vector<128x128xbf16> to vector<128x128xf32>
    %30 = arith.maximumf %26, %29 : vector<128x128xf32>
    %c8 = arith.constant 8 : index
    %c0_16 = arith.constant 0 : index
    %c0_17 = arith.constant 0 : index
    %31 = vector.load %arg1[%c8, %c0_16, %c0_17] : memref<9x128x128xbf16, #tpu.memory_space<vmem>>, vector<1x128x128xbf16>
    %32 = vector.shape_cast %31 : vector<1x128x128xbf16> to vector<128x128xbf16>
    %33 = arith.extf %32 : vector<128x128xbf16> to vector<128x128xf32>
    %34 = arith.maximumf %30, %33 : vector<128x128xf32>
    %35 = arith.truncf %34 : vector<128x128xf32> to vector<128x128xbf16>
    %c0_18 = arith.constant 0 : index
    %c0_19 = arith.constant 0 : index
    %36 = vector.load %arg2[%c0_18, %c0_19] : memref<128x128xbf16, #tpu.memory_space<vmem>>, vector<128x128xbf16>
    tpu.vector_store %arg2[%c0_18, %c0_19], %35 {strides = array<i32>} : memref<128x128xbf16, #tpu.memory_space<vmem>>, vector<128x128xbf16>,
    return
  }
  func.func @transform_0(%arg0: i32) -> (i32, i32, i32) {
    %c0_i32 = arith.constant 0 : i32
    %c0_i32_0 = arith.constant 0 : i32
    %c0_i32_1 = arith.constant 0 : i32
    return %c0_i32, %arg0, %c0_i32_0 : i32, i32, i32
  }
  func.func @transform_1(%arg0: i32) -> (i32, i32) {
    %c0_i32 = arith.constant 0 : i32
    %c0_i32_0 = arith.constant 0 : i32
    return %arg0, %c0_i32 : i32, i32
  }
}

module attributes {stable_mosaic.version = 11 : i64} {
  func.func @_conv_bn_matmul_kernel(%arg0: i32, %arg1: i32, %arg2: i32, %arg3: memref<128x256xbf16, #tpu.memory_space<vmem>>, %arg4: memref<256x128xbf16, #tpu.memory_space<vmem>>, %arg5: memref<128x128xbf16, #tpu.memory_space<vmem>>, %arg6: memref<1x1x128xf32, #tpu.memory_space<vmem>>, %arg7: memref<1x1x128xf32, #tpu.memory_space<vmem>>, %arg8: memref<128x128xf32, #tpu.memory_space<vmem>>) attributes {dimension_semantics = [#tpu.dimension_semantics<parallel>, #tpu.dimension_semantics<parallel>, #tpu.dimension_semantics<arbitrary>], iteration_bounds = array<i64: 1, 1, 3>, scalar_prefetch = 0 : i64, scratch_operands = 1 : i64, tpu.core_type = #tpu.core_type<tc>, window_params = [{transform_indices = @transform_0, window_bounds = array<i64: 128, 256>}, {transform_indices = @transform_1, window_bounds = array<i64: 256, 128>}, {transform_indices = @transform_2, window_bounds = array<i64: 128, 128>}, {transform_indices = @transform_3, window_bounds = array<i64: 1, 1, 128>}, {transform_indices = @transform_4, window_bounds = array<i64: 1, 1, 128>}]} {
    %c0_i32 = arith.constant 0 : i32
    %0 = arith.cmpi eq, %arg2, %c0_i32 : i32
    %1 = arith.extui %0 : i1 to i32
    %c0_i32_0 = arith.constant 0 : i32
    %2 = arith.cmpi ne, %1, %c0_i32_0 : i32
    scf.if %2 {
      %cst_9 = arith.constant 0.000000e+00 : f32
      %12 = vector.broadcast %cst_9 : f32 to vector<128x128xf32>
      %c0_10 = arith.constant 0 : index
      %c0_11 = arith.constant 0 : index
      %13 = vector.load %arg8[%c0_10, %c0_11] : memref<128x128xf32, #tpu.memory_space<vmem>>, vector<128x128xf32>
      tpu.vector_store %arg8[%c0_10, %c0_11], %12 {strides = array<i32>} : memref<128x128xf32, #tpu.memory_space<vmem>>, vector<128x128xf32>,
    } else {
    }
    %c0 = arith.constant 0 : index
    %c0_1 = arith.constant 0 : index
    %3 = vector.load %arg8[%c0, %c0_1] : memref<128x128xf32, #tpu.memory_space<vmem>>, vector<128x128xf32>
    %c0_2 = arith.constant 0 : index
    %c0_3 = arith.constant 0 : index
    %4 = vector.load %arg3[%c0_2, %c0_3] : memref<128x256xbf16, #tpu.memory_space<vmem>>, vector<128x256xbf16>
    %c0_4 = arith.constant 0 : index
    %c0_5 = arith.constant 0 : index
    %5 = vector.load %arg4[%c0_4, %c0_5] : memref<256x128xbf16, #tpu.memory_space<vmem>>, vector<256x128xbf16>
    %cst = arith.constant dense<0.000000e+00> : vector<128x128xf32>
    %6 = tpu.matmul %4, %5, %cst {dimension_numbers = #tpu.dot_dimension_numbers<[1], [0], [0], [1], [0, 0, 1, 1], [], []>} : vector<128x256xbf16>, vector<256x128xbf16>, vector<128x128xf32> -> vector<128x128xf32>
    %7 = arith.addf %3, %6 : vector<128x128xf32>
    %c0_6 = arith.constant 0 : index
    %c0_7 = arith.constant 0 : index
    %8 = vector.load %arg8[%c0_6, %c0_7] : memref<128x128xf32, #tpu.memory_space<vmem>>, vector<128x128xf32>
    tpu.vector_store %arg8[%c0_6, %c0_7], %7 {strides = array<i32>} : memref<128x128xf32, #tpu.memory_space<vmem>>, vector<128x128xf32>,
    %c2_i32 = arith.constant 2 : i32
    %9 = arith.cmpi eq, %arg2, %c2_i32 : i32
    %10 = arith.extui %9 : i1 to i32
    %c0_i32_8 = arith.constant 0 : i32
    %11 = arith.cmpi ne, %10, %c0_i32_8 : i32
    scf.if %11 {
      %c0_9 = arith.constant 0 : index
      %c0_10 = arith.constant 0 : index
      %12 = vector.load %arg8[%c0_9, %c0_10] : memref<128x128xf32, #tpu.memory_space<vmem>>, vector<128x128xf32>
      %13 = arith.truncf %12 : vector<128x128xf32> to vector<128x128xbf16>
      %c0_11 = arith.constant 0 : index
      %c0_12 = arith.constant 0 : index
      %14 = vector.load %arg5[%c0_11, %c0_12] : memref<128x128xbf16, #tpu.memory_space<vmem>>, vector<128x128xbf16>
      tpu.vector_store %arg5[%c0_11, %c0_12], %13 {strides = array<i32>} : memref<128x128xbf16, #tpu.memory_space<vmem>>, vector<128x128xbf16>,
      %cst_13 = arith.constant dense<0.000000e+00> : vector<128xf32>
      %15 = vector.multi_reduction <add>, %12, %cst_13 [0] : vector<128x128xf32> to vector<128xf32>
      %16 = vector.shape_cast %15 : vector<128xf32> to vector<1x128xf32>
      %17 = vector.shape_cast %16 : vector<1x128xf32> to vector<1x1x128xf32>
      %c0_14 = arith.constant 0 : index
      %c0_15 = arith.constant 0 : index
      %c0_16 = arith.constant 0 : index
      %18 = vector.load %arg6[%c0_14, %c0_15, %c0_16] : memref<1x1x128xf32, #tpu.memory_space<vmem>>, vector<1x1x128xf32>
      tpu.vector_store %arg6[%c0_14, %c0_15, %c0_16], %17 {strides = array<i32>} : memref<1x1x128xf32, #tpu.memory_space<vmem>>, vector<1x1x128xf32>,
      %19 = arith.mulf %12, %12 : vector<128x128xf32>
      %cst_17 = arith.constant dense<0.000000e+00> : vector<128xf32>
      %20 = vector.multi_reduction <add>, %19, %cst_17 [0] : vector<128x128xf32> to vector<128xf32>
      %21 = vector.shape_cast %20 : vector<128xf32> to vector<1x128xf32>
      %22 = vector.shape_cast %21 : vector<1x128xf32> to vector<1x1x128xf32>
      %c0_18 = arith.constant 0 : index
      %c0_19 = arith.constant 0 : index
      %c0_20 = arith.constant 0 : index
      %23 = vector.load %arg7[%c0_18, %c0_19, %c0_20] : memref<1x1x128xf32, #tpu.memory_space<vmem>>, vector<1x1x128xf32>
      tpu.vector_store %arg7[%c0_18, %c0_19, %c0_20], %22 {strides = array<i32>} : memref<1x1x128xf32, #tpu.memory_space<vmem>>, vector<1x1x128xf32>,
    } else {
    }
    return
  }
  func.func @transform_0(%arg0: i32, %arg1: i32, %arg2: i32) -> (i32, i32) {
    %c0_i32 = arith.constant 0 : i32
    return %arg0, %arg2 : i32, i32
  }
  func.func @transform_1(%arg0: i32, %arg1: i32, %arg2: i32) -> (i32, i32) {
    %c0_i32 = arith.constant 0 : i32
    return %arg2, %arg1 : i32, i32
  }
  func.func @transform_2(%arg0: i32, %arg1: i32, %arg2: i32) -> (i32, i32) {
    %c0_i32 = arith.constant 0 : i32
    return %arg0, %arg1 : i32, i32
  }
  func.func @transform_3(%arg0: i32, %arg1: i32, %arg2: i32) -> (i32, i32, i32) {
    %c0_i32 = arith.constant 0 : i32
    %c0_i32_0 = arith.constant 0 : i32
    return %arg0, %c0_i32, %arg1 : i32, i32, i32
  }
  func.func @transform_4(%arg0: i32, %arg1: i32, %arg2: i32) -> (i32, i32, i32) {
    %c0_i32 = arith.constant 0 : i32
    %c0_i32_0 = arith.constant 0 : i32
    return %arg0, %c0_i32, %arg1 : i32, i32, i32
  }
}

module attributes {stable_mosaic.version = 11 : i64} {
  func.func @kern(%arg0: i32, %arg1: memref<128x128xbf16, #tpu.memory_space<vmem>>, %arg2: memref<1x128xf32, #tpu.memory_space<vmem>>, %arg3: memref<1x128xf32, #tpu.memory_space<vmem>>, %arg4: memref<128x128xbf16, #tpu.memory_space<vmem>>) attributes {dimension_semantics = [#tpu.dimension_semantics<parallel>], iteration_bounds = array<i64: 1>, scalar_prefetch = 0 : i64, scratch_operands = 0 : i64, tpu.core_type = #tpu.core_type<tc>, window_params = [{transform_indices = @transform_0, window_bounds = array<i64: 128, 128>}, {pipeline_mode = #tpu.pipeline_mode<synchronous>, transform_indices = @transform_1, window_bounds = array<i64: 1, 128>}, {pipeline_mode = #tpu.pipeline_mode<synchronous>, transform_indices = @transform_2, window_bounds = array<i64: 1, 128>}, {transform_indices = @transform_3, window_bounds = array<i64: 128, 128>}]} {
    %c0 = arith.constant 0 : index
    %c0_0 = arith.constant 0 : index
    %0 = vector.load %arg1[%c0, %c0_0] : memref<128x128xbf16, #tpu.memory_space<vmem>>, vector<128x128xbf16>
    %1 = arith.extf %0 : vector<128x128xbf16> to vector<128x128xf32>
    %c0_1 = arith.constant 0 : index
    %c0_2 = arith.constant 0 : index
    %2 = vector.load %arg2[%c0_1, %c0_2] : memref<1x128xf32, #tpu.memory_space<vmem>>, vector<1x128xf32>
    %3 = vector.broadcast %2 : vector<1x128xf32> to vector<128x128xf32>
    %4 = arith.mulf %1, %3 : vector<128x128xf32>
    %c0_3 = arith.constant 0 : index
    %c0_4 = arith.constant 0 : index
    %5 = vector.load %arg3[%c0_3, %c0_4] : memref<1x128xf32, #tpu.memory_space<vmem>>, vector<1x128xf32>
    %6 = vector.broadcast %5 : vector<1x128xf32> to vector<128x128xf32>
    %7 = arith.addf %4, %6 : vector<128x128xf32>
    %cst = arith.constant 0.000000e+00 : f32
    %8 = vector.broadcast %cst : f32 to vector<128x128xf32>
    %9 = arith.maximumf %7, %8 : vector<128x128xf32>
    %10 = arith.truncf %9 : vector<128x128xf32> to vector<128x128xbf16>
    %c0_5 = arith.constant 0 : index
    %c0_6 = arith.constant 0 : index
    %11 = vector.load %arg4[%c0_5, %c0_6] : memref<128x128xbf16, #tpu.memory_space<vmem>>, vector<128x128xbf16>
    tpu.vector_store %arg4[%c0_5, %c0_6], %10 {strides = array<i32>} : memref<128x128xbf16, #tpu.memory_space<vmem>>, vector<128x128xbf16>,
    return
  }
  func.func @transform_0(%arg0: i32) -> (i32, i32) {
    %c0_i32 = arith.constant 0 : i32
    %c0_i32_0 = arith.constant 0 : i32
    return %arg0, %c0_i32 : i32, i32
  }
  func.func @transform_1(%arg0: i32) -> (i32, i32) {
    %c0_i32 = arith.constant 0 : i32
    %c0_i32_0 = arith.constant 0 : i32
    %c0_i32_1 = arith.constant 0 : i32
    return %c0_i32, %c0_i32_0 : i32, i32
  }
  func.func @transform_2(%arg0: i32) -> (i32, i32) {
    %c0_i32 = arith.constant 0 : i32
    %c0_i32_0 = arith.constant 0 : i32
    %c0_i32_1 = arith.constant 0 : i32
    return %c0_i32, %c0_i32_0 : i32, i32
  }
  func.func @transform_3(%arg0: i32) -> (i32, i32) {
    %c0_i32 = arith.constant 0 : i32
    %c0_i32_0 = arith.constant 0 : i32
    return %arg0, %c0_i32 : i32, i32
  }
}

module attributes {stable_mosaic.version = 11 : i64} {
  func.func @kern(%arg0: i32, %arg1: memref<128x128xbf16, #tpu.memory_space<vmem>>, %arg2: memref<1x128xf32, #tpu.memory_space<vmem>>, %arg3: memref<1x128xf32, #tpu.memory_space<vmem>>, %arg4: memref<128x128xbf16, #tpu.memory_space<vmem>>, %arg5: memref<128x128xbf16, #tpu.memory_space<vmem>>) attributes {dimension_semantics = [#tpu.dimension_semantics<parallel>], iteration_bounds = array<i64: 1>, scalar_prefetch = 0 : i64, scratch_operands = 0 : i64, tpu.core_type = #tpu.core_type<tc>, window_params = [{transform_indices = @transform_0, window_bounds = array<i64: 128, 128>}, {pipeline_mode = #tpu.pipeline_mode<synchronous>, transform_indices = @transform_1, window_bounds = array<i64: 1, 128>}, {pipeline_mode = #tpu.pipeline_mode<synchronous>, transform_indices = @transform_2, window_bounds = array<i64: 1, 128>}, {transform_indices = @transform_3, window_bounds = array<i64: 128, 128>}, {transform_indices = @transform_4, window_bounds = array<i64: 128, 128>}]} {
    %c0 = arith.constant 0 : index
    %c0_0 = arith.constant 0 : index
    %0 = vector.load %arg1[%c0, %c0_0] : memref<128x128xbf16, #tpu.memory_space<vmem>>, vector<128x128xbf16>
    %1 = arith.extf %0 : vector<128x128xbf16> to vector<128x128xf32>
    %c0_1 = arith.constant 0 : index
    %c0_2 = arith.constant 0 : index
    %2 = vector.load %arg2[%c0_1, %c0_2] : memref<1x128xf32, #tpu.memory_space<vmem>>, vector<1x128xf32>
    %3 = vector.broadcast %2 : vector<1x128xf32> to vector<128x128xf32>
    %4 = arith.mulf %1, %3 : vector<128x128xf32>
    %c0_3 = arith.constant 0 : index
    %c0_4 = arith.constant 0 : index
    %5 = vector.load %arg3[%c0_3, %c0_4] : memref<1x128xf32, #tpu.memory_space<vmem>>, vector<1x128xf32>
    %6 = vector.broadcast %5 : vector<1x128xf32> to vector<128x128xf32>
    %7 = arith.addf %4, %6 : vector<128x128xf32>
    %c0_5 = arith.constant 0 : index
    %c0_6 = arith.constant 0 : index
    %8 = vector.load %arg4[%c0_5, %c0_6] : memref<128x128xbf16, #tpu.memory_space<vmem>>, vector<128x128xbf16>
    %9 = arith.extf %8 : vector<128x128xbf16> to vector<128x128xf32>
    %10 = arith.addf %7, %9 : vector<128x128xf32>
    %cst = arith.constant 0.000000e+00 : f32
    %11 = vector.broadcast %cst : f32 to vector<128x128xf32>
    %12 = arith.maximumf %10, %11 : vector<128x128xf32>
    %13 = arith.truncf %12 : vector<128x128xf32> to vector<128x128xbf16>
    %c0_7 = arith.constant 0 : index
    %c0_8 = arith.constant 0 : index
    %14 = vector.load %arg5[%c0_7, %c0_8] : memref<128x128xbf16, #tpu.memory_space<vmem>>, vector<128x128xbf16>
    tpu.vector_store %arg5[%c0_7, %c0_8], %13 {strides = array<i32>} : memref<128x128xbf16, #tpu.memory_space<vmem>>, vector<128x128xbf16>,
    return
  }
  func.func @transform_0(%arg0: i32) -> (i32, i32) {
    %c0_i32 = arith.constant 0 : i32
    %c0_i32_0 = arith.constant 0 : i32
    return %arg0, %c0_i32 : i32, i32
  }
  func.func @transform_1(%arg0: i32) -> (i32, i32) {
    %c0_i32 = arith.constant 0 : i32
    %c0_i32_0 = arith.constant 0 : i32
    %c0_i32_1 = arith.constant 0 : i32
    return %c0_i32, %c0_i32_0 : i32, i32
  }
  func.func @transform_2(%arg0: i32) -> (i32, i32) {
    %c0_i32 = arith.constant 0 : i32
    %c0_i32_0 = arith.constant 0 : i32
    %c0_i32_1 = arith.constant 0 : i32
    return %c0_i32, %c0_i32_0 : i32, i32
  }
  func.func @transform_3(%arg0: i32) -> (i32, i32) {
    %c0_i32 = arith.constant 0 : i32
    %c0_i32_0 = arith.constant 0 : i32
    return %arg0, %c0_i32 : i32, i32
  }
  func.func @transform_4(%arg0: i32) -> (i32, i32) {
    %c0_i32 = arith.constant 0 : i32
    %c0_i32_0 = arith.constant 0 : i32
    return %arg0, %c0_i32 : i32, i32
  }
}

module attributes {stable_mosaic.version = 11 : i64} {
  func.func @_conv_bn_matmul_kernel(%arg0: i32, %arg1: i32, %arg2: i32, %arg3: memref<32x128xbf16, #tpu.memory_space<vmem>>, %arg4: memref<128x128xbf16, #tpu.memory_space<vmem>>, %arg5: memref<32x128xbf16, #tpu.memory_space<vmem>>, %arg6: memref<1x1x128xf32, #tpu.memory_space<vmem>>, %arg7: memref<1x1x128xf32, #tpu.memory_space<vmem>>, %arg8: memref<32x128xf32, #tpu.memory_space<vmem>>) attributes {dimension_semantics = [#tpu.dimension_semantics<parallel>, #tpu.dimension_semantics<parallel>, #tpu.dimension_semantics<arbitrary>], iteration_bounds = array<i64: 1, 1, 1>, scalar_prefetch = 0 : i64, scratch_operands = 1 : i64, tpu.core_type = #tpu.core_type<tc>, window_params = [{transform_indices = @transform_0, window_bounds = array<i64: 32, 128>}, {transform_indices = @transform_1, window_bounds = array<i64: 128, 128>}, {transform_indices = @transform_2, window_bounds = array<i64: 32, 128>}, {transform_indices = @transform_3, window_bounds = array<i64: 1, 1, 128>}, {transform_indices = @transform_4, window_bounds = array<i64: 1, 1, 128>}]} {
    %c0_i32 = arith.constant 0 : i32
    %0 = arith.cmpi eq, %arg2, %c0_i32 : i32
    %1 = arith.extui %0 : i1 to i32
    %c0_i32_0 = arith.constant 0 : i32
    %2 = arith.cmpi ne, %1, %c0_i32_0 : i32
    scf.if %2 {
      %cst_10 = arith.constant 0.000000e+00 : f32
      %12 = vector.broadcast %cst_10 : f32 to vector<32x128xf32>
      %c0_11 = arith.constant 0 : index
      %c0_12 = arith.constant 0 : index
      %13 = vector.load %arg8[%c0_11, %c0_12] : memref<32x128xf32, #tpu.memory_space<vmem>>, vector<32x128xf32>
      tpu.vector_store %arg8[%c0_11, %c0_12], %12 {strides = array<i32>} : memref<32x128xf32, #tpu.memory_space<vmem>>, vector<32x128xf32>,
    } else {
    }
    %c0 = arith.constant 0 : index
    %c0_1 = arith.constant 0 : index
    %3 = vector.load %arg8[%c0, %c0_1] : memref<32x128xf32, #tpu.memory_space<vmem>>, vector<32x128xf32>
    %c0_2 = arith.constant 0 : index
    %c0_3 = arith.constant 0 : index
    %4 = vector.load %arg3[%c0_2, %c0_3] : memref<32x128xbf16, #tpu.memory_space<vmem>>, vector<32x128xbf16>
    %c0_4 = arith.constant 0 : index
    %c0_5 = arith.constant 0 : index
    %5 = vector.load %arg4[%c0_4, %c0_5] : memref<128x128xbf16, #tpu.memory_space<vmem>>, vector<128x128xbf16>
    %cst = arith.constant dense<0.000000e+00> : vector<32x128xf32>
    %6 = tpu.matmul %4, %5, %cst {dimension_numbers = #tpu.dot_dimension_numbers<[1], [0], [0], [1], [0, 0, 1, 1], [], []>} : vector<32x128xbf16>, vector<128x128xbf16>, vector<32x128xf32> -> vector<32x128xf32>
    %7 = arith.addf %3, %6 : vector<32x128xf32>
    %c0_6 = arith.constant 0 : index
    %c0_7 = arith.constant 0 : index
    %8 = vector.load %arg8[%c0_6, %c0_7] : memref<32x128xf32, #tpu.memory_space<vmem>>, vector<32x128xf32>
    tpu.vector_store %arg8[%c0_6, %c0_7], %7 {strides = array<i32>} : memref<32x128xf32, #tpu.memory_space<vmem>>, vector<32x128xf32>,
    %c0_i32_8 = arith.constant 0 : i32
    %9 = arith.cmpi eq, %arg2, %c0_i32_8 : i32
    %10 = arith.extui %9 : i1 to i32
    %c0_i32_9 = arith.constant 0 : i32
    %11 = arith.cmpi ne, %10, %c0_i32_9 : i32
    scf.if %11 {
      %c0_10 = arith.constant 0 : index
      %c0_11 = arith.constant 0 : index
      %12 = vector.load %arg8[%c0_10, %c0_11] : memref<32x128xf32, #tpu.memory_space<vmem>>, vector<32x128xf32>
      %13 = arith.truncf %12 : vector<32x128xf32> to vector<32x128xbf16>
      %c0_12 = arith.constant 0 : index
      %c0_13 = arith.constant 0 : index
      %14 = vector.load %arg5[%c0_12, %c0_13] : memref<32x128xbf16, #tpu.memory_space<vmem>>, vector<32x128xbf16>
      tpu.vector_store %arg5[%c0_12, %c0_13], %13 {strides = array<i32>} : memref<32x128xbf16, #tpu.memory_space<vmem>>, vector<32x128xbf16>,
      %cst_14 = arith.constant dense<0.000000e+00> : vector<128xf32>
      %15 = vector.multi_reduction <add>, %12, %cst_14 [0] : vector<32x128xf32> to vector<128xf32>
      %16 = vector.shape_cast %15 : vector<128xf32> to vector<1x128xf32>
      %17 = vector.shape_cast %16 : vector<1x128xf32> to vector<1x1x128xf32>
      %c0_15 = arith.constant 0 : index
      %c0_16 = arith.constant 0 : index
      %c0_17 = arith.constant 0 : index
      %18 = vector.load %arg6[%c0_15, %c0_16, %c0_17] : memref<1x1x128xf32, #tpu.memory_space<vmem>>, vector<1x1x128xf32>
      tpu.vector_store %arg6[%c0_15, %c0_16, %c0_17], %17 {strides = array<i32>} : memref<1x1x128xf32, #tpu.memory_space<vmem>>, vector<1x1x128xf32>,
      %19 = arith.mulf %12, %12 : vector<32x128xf32>
      %cst_18 = arith.constant dense<0.000000e+00> : vector<128xf32>
      %20 = vector.multi_reduction <add>, %19, %cst_18 [0] : vector<32x128xf32> to vector<128xf32>
      %21 = vector.shape_cast %20 : vector<128xf32> to vector<1x128xf32>
      %22 = vector.shape_cast %21 : vector<1x128xf32> to vector<1x1x128xf32>
      %c0_19 = arith.constant 0 : index
      %c0_20 = arith.constant 0 : index
      %c0_21 = arith.constant 0 : index
      %23 = vector.load %arg7[%c0_19, %c0_20, %c0_21] : memref<1x1x128xf32, #tpu.memory_space<vmem>>, vector<1x1x128xf32>
      tpu.vector_store %arg7[%c0_19, %c0_20, %c0_21], %22 {strides = array<i32>} : memref<1x1x128xf32, #tpu.memory_space<vmem>>, vector<1x1x128xf32>,
    } else {
    }
    return
  }
  func.func @transform_0(%arg0: i32, %arg1: i32, %arg2: i32) -> (i32, i32) {
    %c0_i32 = arith.constant 0 : i32
    return %arg0, %arg2 : i32, i32
  }
  func.func @transform_1(%arg0: i32, %arg1: i32, %arg2: i32) -> (i32, i32) {
    %c0_i32 = arith.constant 0 : i32
    return %arg2, %arg1 : i32, i32
  }
  func.func @transform_2(%arg0: i32, %arg1: i32, %arg2: i32) -> (i32, i32) {
    %c0_i32 = arith.constant 0 : i32
    return %arg0, %arg1 : i32, i32
  }
  func.func @transform_3(%arg0: i32, %arg1: i32, %arg2: i32) -> (i32, i32, i32) {
    %c0_i32 = arith.constant 0 : i32
    %c0_i32_0 = arith.constant 0 : i32
    return %arg0, %c0_i32, %arg1 : i32, i32, i32
  }
  func.func @transform_4(%arg0: i32, %arg1: i32, %arg2: i32) -> (i32, i32, i32) {
    %c0_i32 = arith.constant 0 : i32
    %c0_i32_0 = arith.constant 0 : i32
    return %arg0, %c0_i32, %arg1 : i32, i32, i32
  }
}

module attributes {stable_mosaic.version = 11 : i64} {
  func.func @kern(%arg0: i32, %arg1: memref<32x128xbf16, #tpu.memory_space<vmem>>, %arg2: memref<1x128xf32, #tpu.memory_space<vmem>>, %arg3: memref<1x128xf32, #tpu.memory_space<vmem>>, %arg4: memref<32x128xbf16, #tpu.memory_space<vmem>>) attributes {dimension_semantics = [#tpu.dimension_semantics<parallel>], iteration_bounds = array<i64: 1>, scalar_prefetch = 0 : i64, scratch_operands = 0 : i64, tpu.core_type = #tpu.core_type<tc>, window_params = [{transform_indices = @transform_0, window_bounds = array<i64: 32, 128>}, {pipeline_mode = #tpu.pipeline_mode<synchronous>, transform_indices = @transform_1, window_bounds = array<i64: 1, 128>}, {pipeline_mode = #tpu.pipeline_mode<synchronous>, transform_indices = @transform_2, window_bounds = array<i64: 1, 128>}, {transform_indices = @transform_3, window_bounds = array<i64: 32, 128>}]} {
    %c0 = arith.constant 0 : index
    %c0_0 = arith.constant 0 : index
    %0 = vector.load %arg1[%c0, %c0_0] : memref<32x128xbf16, #tpu.memory_space<vmem>>, vector<32x128xbf16>
    %1 = arith.extf %0 : vector<32x128xbf16> to vector<32x128xf32>
    %c0_1 = arith.constant 0 : index
    %c0_2 = arith.constant 0 : index
    %2 = vector.load %arg2[%c0_1, %c0_2] : memref<1x128xf32, #tpu.memory_space<vmem>>, vector<1x128xf32>
    %3 = vector.broadcast %2 : vector<1x128xf32> to vector<32x128xf32>
    %4 = arith.mulf %1, %3 : vector<32x128xf32>
    %c0_3 = arith.constant 0 : index
    %c0_4 = arith.constant 0 : index
    %5 = vector.load %arg3[%c0_3, %c0_4] : memref<1x128xf32, #tpu.memory_space<vmem>>, vector<1x128xf32>
    %6 = vector.broadcast %5 : vector<1x128xf32> to vector<32x128xf32>
    %7 = arith.addf %4, %6 : vector<32x128xf32>
    %8 = arith.truncf %7 : vector<32x128xf32> to vector<32x128xbf16>
    %c0_5 = arith.constant 0 : index
    %c0_6 = arith.constant 0 : index
    %9 = vector.load %arg4[%c0_5, %c0_6] : memref<32x128xbf16, #tpu.memory_space<vmem>>, vector<32x128xbf16>
    tpu.vector_store %arg4[%c0_5, %c0_6], %8 {strides = array<i32>} : memref<32x128xbf16, #tpu.memory_space<vmem>>, vector<32x128xbf16>,
    return
  }
  func.func @transform_0(%arg0: i32) -> (i32, i32) {
    %c0_i32 = arith.constant 0 : i32
    %c0_i32_0 = arith.constant 0 : i32
    return %arg0, %c0_i32 : i32, i32
  }
  func.func @transform_1(%arg0: i32) -> (i32, i32) {
    %c0_i32 = arith.constant 0 : i32
    %c0_i32_0 = arith.constant 0 : i32
    %c0_i32_1 = arith.constant 0 : i32
    return %c0_i32, %c0_i32_0 : i32, i32
  }
  func.func @transform_2(%arg0: i32) -> (i32, i32) {
    %c0_i32 = arith.constant 0 : i32
    %c0_i32_0 = arith.constant 0 : i32
    %c0_i32_1 = arith.constant 0 : i32
    return %c0_i32, %c0_i32_0 : i32, i32
  }
  func.func @transform_3(%arg0: i32) -> (i32, i32) {
    %c0_i32 = arith.constant 0 : i32
    %c0_i32_0 = arith.constant 0 : i32
    return %arg0, %c0_i32 : i32, i32
  }
}

module attributes {stable_mosaic.version = 11 : i64} {
  func.func @_conv_bn_matmul_kernel(%arg0: i32, %arg1: i32, %arg2: i32, %arg3: memref<32x256xbf16, #tpu.memory_space<vmem>>, %arg4: memref<256x128xbf16, #tpu.memory_space<vmem>>, %arg5: memref<32x128xbf16, #tpu.memory_space<vmem>>, %arg6: memref<1x1x128xf32, #tpu.memory_space<vmem>>, %arg7: memref<1x1x128xf32, #tpu.memory_space<vmem>>, %arg8: memref<32x128xf32, #tpu.memory_space<vmem>>) attributes {dimension_semantics = [#tpu.dimension_semantics<parallel>, #tpu.dimension_semantics<parallel>, #tpu.dimension_semantics<arbitrary>], iteration_bounds = array<i64: 1, 1, 3>, scalar_prefetch = 0 : i64, scratch_operands = 1 : i64, tpu.core_type = #tpu.core_type<tc>, window_params = [{transform_indices = @transform_0, window_bounds = array<i64: 32, 256>}, {transform_indices = @transform_1, window_bounds = array<i64: 256, 128>}, {transform_indices = @transform_2, window_bounds = array<i64: 32, 128>}, {transform_indices = @transform_3, window_bounds = array<i64: 1, 1, 128>}, {transform_indices = @transform_4, window_bounds = array<i64: 1, 1, 128>}]} {
    %c0_i32 = arith.constant 0 : i32
    %0 = arith.cmpi eq, %arg2, %c0_i32 : i32
    %1 = arith.extui %0 : i1 to i32
    %c0_i32_0 = arith.constant 0 : i32
    %2 = arith.cmpi ne, %1, %c0_i32_0 : i32
    scf.if %2 {
      %cst_9 = arith.constant 0.000000e+00 : f32
      %12 = vector.broadcast %cst_9 : f32 to vector<32x128xf32>
      %c0_10 = arith.constant 0 : index
      %c0_11 = arith.constant 0 : index
      %13 = vector.load %arg8[%c0_10, %c0_11] : memref<32x128xf32, #tpu.memory_space<vmem>>, vector<32x128xf32>
      tpu.vector_store %arg8[%c0_10, %c0_11], %12 {strides = array<i32>} : memref<32x128xf32, #tpu.memory_space<vmem>>, vector<32x128xf32>,
    } else {
    }
    %c0 = arith.constant 0 : index
    %c0_1 = arith.constant 0 : index
    %3 = vector.load %arg8[%c0, %c0_1] : memref<32x128xf32, #tpu.memory_space<vmem>>, vector<32x128xf32>
    %c0_2 = arith.constant 0 : index
    %c0_3 = arith.constant 0 : index
    %4 = vector.load %arg3[%c0_2, %c0_3] : memref<32x256xbf16, #tpu.memory_space<vmem>>, vector<32x256xbf16>
    %c0_4 = arith.constant 0 : index
    %c0_5 = arith.constant 0 : index
    %5 = vector.load %arg4[%c0_4, %c0_5] : memref<256x128xbf16, #tpu.memory_space<vmem>>, vector<256x128xbf16>
    %cst = arith.constant dense<0.000000e+00> : vector<32x128xf32>
    %6 = tpu.matmul %4, %5, %cst {dimension_numbers = #tpu.dot_dimension_numbers<[1], [0], [0], [1], [0, 0, 1, 1], [], []>} : vector<32x256xbf16>, vector<256x128xbf16>, vector<32x128xf32> -> vector<32x128xf32>
    %7 = arith.addf %3, %6 : vector<32x128xf32>
    %c0_6 = arith.constant 0 : index
    %c0_7 = arith.constant 0 : index
    %8 = vector.load %arg8[%c0_6, %c0_7] : memref<32x128xf32, #tpu.memory_space<vmem>>, vector<32x128xf32>
    tpu.vector_store %arg8[%c0_6, %c0_7], %7 {strides = array<i32>} : memref<32x128xf32, #tpu.memory_space<vmem>>, vector<32x128xf32>,
    %c2_i32 = arith.constant 2 : i32
    %9 = arith.cmpi eq, %arg2, %c2_i32 : i32
    %10 = arith.extui %9 : i1 to i32
    %c0_i32_8 = arith.constant 0 : i32
    %11 = arith.cmpi ne, %10, %c0_i32_8 : i32
    scf.if %11 {
      %c0_9 = arith.constant 0 : index
      %c0_10 = arith.constant 0 : index
      %12 = vector.load %arg8[%c0_9, %c0_10] : memref<32x128xf32, #tpu.memory_space<vmem>>, vector<32x128xf32>
      %13 = arith.truncf %12 : vector<32x128xf32> to vector<32x128xbf16>
      %c0_11 = arith.constant 0 : index
      %c0_12 = arith.constant 0 : index
      %14 = vector.load %arg5[%c0_11, %c0_12] : memref<32x128xbf16, #tpu.memory_space<vmem>>, vector<32x128xbf16>
      tpu.vector_store %arg5[%c0_11, %c0_12], %13 {strides = array<i32>} : memref<32x128xbf16, #tpu.memory_space<vmem>>, vector<32x128xbf16>,
      %cst_13 = arith.constant dense<0.000000e+00> : vector<128xf32>
      %15 = vector.multi_reduction <add>, %12, %cst_13 [0] : vector<32x128xf32> to vector<128xf32>
      %16 = vector.shape_cast %15 : vector<128xf32> to vector<1x128xf32>
      %17 = vector.shape_cast %16 : vector<1x128xf32> to vector<1x1x128xf32>
      %c0_14 = arith.constant 0 : index
      %c0_15 = arith.constant 0 : index
      %c0_16 = arith.constant 0 : index
      %18 = vector.load %arg6[%c0_14, %c0_15, %c0_16] : memref<1x1x128xf32, #tpu.memory_space<vmem>>, vector<1x1x128xf32>
      tpu.vector_store %arg6[%c0_14, %c0_15, %c0_16], %17 {strides = array<i32>} : memref<1x1x128xf32, #tpu.memory_space<vmem>>, vector<1x1x128xf32>,
      %19 = arith.mulf %12, %12 : vector<32x128xf32>
      %cst_17 = arith.constant dense<0.000000e+00> : vector<128xf32>
      %20 = vector.multi_reduction <add>, %19, %cst_17 [0] : vector<32x128xf32> to vector<128xf32>
      %21 = vector.shape_cast %20 : vector<128xf32> to vector<1x128xf32>
      %22 = vector.shape_cast %21 : vector<1x128xf32> to vector<1x1x128xf32>
      %c0_18 = arith.constant 0 : index
      %c0_19 = arith.constant 0 : index
      %c0_20 = arith.constant 0 : index
      %23 = vector.load %arg7[%c0_18, %c0_19, %c0_20] : memref<1x1x128xf32, #tpu.memory_space<vmem>>, vector<1x1x128xf32>
      tpu.vector_store %arg7[%c0_18, %c0_19, %c0_20], %22 {strides = array<i32>} : memref<1x1x128xf32, #tpu.memory_space<vmem>>, vector<1x1x128xf32>,
    } else {
    }
    return
  }
  func.func @transform_0(%arg0: i32, %arg1: i32, %arg2: i32) -> (i32, i32) {
    %c0_i32 = arith.constant 0 : i32
    return %arg0, %arg2 : i32, i32
  }
  func.func @transform_1(%arg0: i32, %arg1: i32, %arg2: i32) -> (i32, i32) {
    %c0_i32 = arith.constant 0 : i32
    return %arg2, %arg1 : i32, i32
  }
  func.func @transform_2(%arg0: i32, %arg1: i32, %arg2: i32) -> (i32, i32) {
    %c0_i32 = arith.constant 0 : i32
    return %arg0, %arg1 : i32, i32
  }
  func.func @transform_3(%arg0: i32, %arg1: i32, %arg2: i32) -> (i32, i32, i32) {
    %c0_i32 = arith.constant 0 : i32
    %c0_i32_0 = arith.constant 0 : i32
    return %arg0, %c0_i32, %arg1 : i32, i32, i32
  }
  func.func @transform_4(%arg0: i32, %arg1: i32, %arg2: i32) -> (i32, i32, i32) {
    %c0_i32 = arith.constant 0 : i32
    %c0_i32_0 = arith.constant 0 : i32
    return %arg0, %c0_i32, %arg1 : i32, i32, i32
  }
}

module attributes {stable_mosaic.version = 11 : i64} {
  func.func @kern(%arg0: i32, %arg1: memref<32x128xbf16, #tpu.memory_space<vmem>>, %arg2: memref<1x128xf32, #tpu.memory_space<vmem>>, %arg3: memref<1x128xf32, #tpu.memory_space<vmem>>, %arg4: memref<32x128xbf16, #tpu.memory_space<vmem>>) attributes {dimension_semantics = [#tpu.dimension_semantics<parallel>], iteration_bounds = array<i64: 1>, scalar_prefetch = 0 : i64, scratch_operands = 0 : i64, tpu.core_type = #tpu.core_type<tc>, window_params = [{transform_indices = @transform_0, window_bounds = array<i64: 32, 128>}, {pipeline_mode = #tpu.pipeline_mode<synchronous>, transform_indices = @transform_1, window_bounds = array<i64: 1, 128>}, {pipeline_mode = #tpu.pipeline_mode<synchronous>, transform_indices = @transform_2, window_bounds = array<i64: 1, 128>}, {transform_indices = @transform_3, window_bounds = array<i64: 32, 128>}]} {
    %c0 = arith.constant 0 : index
    %c0_0 = arith.constant 0 : index
    %0 = vector.load %arg1[%c0, %c0_0] : memref<32x128xbf16, #tpu.memory_space<vmem>>, vector<32x128xbf16>
    %1 = arith.extf %0 : vector<32x128xbf16> to vector<32x128xf32>
    %c0_1 = arith.constant 0 : index
    %c0_2 = arith.constant 0 : index
    %2 = vector.load %arg2[%c0_1, %c0_2] : memref<1x128xf32, #tpu.memory_space<vmem>>, vector<1x128xf32>
    %3 = vector.broadcast %2 : vector<1x128xf32> to vector<32x128xf32>
    %4 = arith.mulf %1, %3 : vector<32x128xf32>
    %c0_3 = arith.constant 0 : index
    %c0_4 = arith.constant 0 : index
    %5 = vector.load %arg3[%c0_3, %c0_4] : memref<1x128xf32, #tpu.memory_space<vmem>>, vector<1x128xf32>
    %6 = vector.broadcast %5 : vector<1x128xf32> to vector<32x128xf32>
    %7 = arith.addf %4, %6 : vector<32x128xf32>
    %cst = arith.constant 0.000000e+00 : f32
    %8 = vector.broadcast %cst : f32 to vector<32x128xf32>
    %9 = arith.maximumf %7, %8 : vector<32x128xf32>
    %10 = arith.truncf %9 : vector<32x128xf32> to vector<32x128xbf16>
    %c0_5 = arith.constant 0 : index
    %c0_6 = arith.constant 0 : index
    %11 = vector.load %arg4[%c0_5, %c0_6] : memref<32x128xbf16, #tpu.memory_space<vmem>>, vector<32x128xbf16>
    tpu.vector_store %arg4[%c0_5, %c0_6], %10 {strides = array<i32>} : memref<32x128xbf16, #tpu.memory_space<vmem>>, vector<32x128xbf16>,
    return
  }
  func.func @transform_0(%arg0: i32) -> (i32, i32) {
    %c0_i32 = arith.constant 0 : i32
    %c0_i32_0 = arith.constant 0 : i32
    return %arg0, %c0_i32 : i32, i32
  }
  func.func @transform_1(%arg0: i32) -> (i32, i32) {
    %c0_i32 = arith.constant 0 : i32
    %c0_i32_0 = arith.constant 0 : i32
    %c0_i32_1 = arith.constant 0 : i32
    return %c0_i32, %c0_i32_0 : i32, i32
  }
  func.func @transform_2(%arg0: i32) -> (i32, i32) {
    %c0_i32 = arith.constant 0 : i32
    %c0_i32_0 = arith.constant 0 : i32
    %c0_i32_1 = arith.constant 0 : i32
    return %c0_i32, %c0_i32_0 : i32, i32
  }
  func.func @transform_3(%arg0: i32) -> (i32, i32) {
    %c0_i32 = arith.constant 0 : i32
    %c0_i32_0 = arith.constant 0 : i32
    return %arg0, %c0_i32 : i32, i32
  }
}

module attributes {stable_mosaic.version = 11 : i64} {
  func.func @_conv_bn_matmul_kernel(%arg0: i32, %arg1: i32, %arg2: i32, %arg3: memref<32x256xbf16, #tpu.memory_space<vmem>>, %arg4: memref<256x128xbf16, #tpu.memory_space<vmem>>, %arg5: memref<32x128xbf16, #tpu.memory_space<vmem>>, %arg6: memref<1x1x128xf32, #tpu.memory_space<vmem>>, %arg7: memref<1x1x128xf32, #tpu.memory_space<vmem>>, %arg8: memref<32x128xf32, #tpu.memory_space<vmem>>) attributes {dimension_semantics = [#tpu.dimension_semantics<parallel>, #tpu.dimension_semantics<parallel>, #tpu.dimension_semantics<arbitrary>], iteration_bounds = array<i64: 1, 1, 5>, scalar_prefetch = 0 : i64, scratch_operands = 1 : i64, tpu.core_type = #tpu.core_type<tc>, window_params = [{transform_indices = @transform_0, window_bounds = array<i64: 32, 256>}, {transform_indices = @transform_1, window_bounds = array<i64: 256, 128>}, {transform_indices = @transform_2, window_bounds = array<i64: 32, 128>}, {transform_indices = @transform_3, window_bounds = array<i64: 1, 1, 128>}, {transform_indices = @transform_4, window_bounds = array<i64: 1, 1, 128>}]} {
    %c0_i32 = arith.constant 0 : i32
    %0 = arith.cmpi eq, %arg2, %c0_i32 : i32
    %1 = arith.extui %0 : i1 to i32
    %c0_i32_0 = arith.constant 0 : i32
    %2 = arith.cmpi ne, %1, %c0_i32_0 : i32
    scf.if %2 {
      %cst_9 = arith.constant 0.000000e+00 : f32
      %12 = vector.broadcast %cst_9 : f32 to vector<32x128xf32>
      %c0_10 = arith.constant 0 : index
      %c0_11 = arith.constant 0 : index
      %13 = vector.load %arg8[%c0_10, %c0_11] : memref<32x128xf32, #tpu.memory_space<vmem>>, vector<32x128xf32>
      tpu.vector_store %arg8[%c0_10, %c0_11], %12 {strides = array<i32>} : memref<32x128xf32, #tpu.memory_space<vmem>>, vector<32x128xf32>,
    } else {
    }
    %c0 = arith.constant 0 : index
    %c0_1 = arith.constant 0 : index
    %3 = vector.load %arg8[%c0, %c0_1] : memref<32x128xf32, #tpu.memory_space<vmem>>, vector<32x128xf32>
    %c0_2 = arith.constant 0 : index
    %c0_3 = arith.constant 0 : index
    %4 = vector.load %arg3[%c0_2, %c0_3] : memref<32x256xbf16, #tpu.memory_space<vmem>>, vector<32x256xbf16>
    %c0_4 = arith.constant 0 : index
    %c0_5 = arith.constant 0 : index
    %5 = vector.load %arg4[%c0_4, %c0_5] : memref<256x128xbf16, #tpu.memory_space<vmem>>, vector<256x128xbf16>
    %cst = arith.constant dense<0.000000e+00> : vector<32x128xf32>
    %6 = tpu.matmul %4, %5, %cst {dimension_numbers = #tpu.dot_dimension_numbers<[1], [0], [0], [1], [0, 0, 1, 1], [], []>} : vector<32x256xbf16>, vector<256x128xbf16>, vector<32x128xf32> -> vector<32x128xf32>
    %7 = arith.addf %3, %6 : vector<32x128xf32>
    %c0_6 = arith.constant 0 : index
    %c0_7 = arith.constant 0 : index
    %8 = vector.load %arg8[%c0_6, %c0_7] : memref<32x128xf32, #tpu.memory_space<vmem>>, vector<32x128xf32>
    tpu.vector_store %arg8[%c0_6, %c0_7], %7 {strides = array<i32>} : memref<32x128xf32, #tpu.memory_space<vmem>>, vector<32x128xf32>,
    %c4_i32 = arith.constant 4 : i32
    %9 = arith.cmpi eq, %arg2, %c4_i32 : i32
    %10 = arith.extui %9 : i1 to i32
    %c0_i32_8 = arith.constant 0 : i32
    %11 = arith.cmpi ne, %10, %c0_i32_8 : i32
    scf.if %11 {
      %c0_9 = arith.constant 0 : index
      %c0_10 = arith.constant 0 : index
      %12 = vector.load %arg8[%c0_9, %c0_10] : memref<32x128xf32, #tpu.memory_space<vmem>>, vector<32x128xf32>
      %13 = arith.truncf %12 : vector<32x128xf32> to vector<32x128xbf16>
      %c0_11 = arith.constant 0 : index
      %c0_12 = arith.constant 0 : index
      %14 = vector.load %arg5[%c0_11, %c0_12] : memref<32x128xbf16, #tpu.memory_space<vmem>>, vector<32x128xbf16>
      tpu.vector_store %arg5[%c0_11, %c0_12], %13 {strides = array<i32>} : memref<32x128xbf16, #tpu.memory_space<vmem>>, vector<32x128xbf16>,
      %cst_13 = arith.constant dense<0.000000e+00> : vector<128xf32>
      %15 = vector.multi_reduction <add>, %12, %cst_13 [0] : vector<32x128xf32> to vector<128xf32>
      %16 = vector.shape_cast %15 : vector<128xf32> to vector<1x128xf32>
      %17 = vector.shape_cast %16 : vector<1x128xf32> to vector<1x1x128xf32>
      %c0_14 = arith.constant 0 : index
      %c0_15 = arith.constant 0 : index
      %c0_16 = arith.constant 0 : index
      %18 = vector.load %arg6[%c0_14, %c0_15, %c0_16] : memref<1x1x128xf32, #tpu.memory_space<vmem>>, vector<1x1x128xf32>
      tpu.vector_store %arg6[%c0_14, %c0_15, %c0_16], %17 {strides = array<i32>} : memref<1x1x128xf32, #tpu.memory_space<vmem>>, vector<1x1x128xf32>,
      %19 = arith.mulf %12, %12 : vector<32x128xf32>
      %cst_17 = arith.constant dense<0.000000e+00> : vector<128xf32>
      %20 = vector.multi_reduction <add>, %19, %cst_17 [0] : vector<32x128xf32> to vector<128xf32>
      %21 = vector.shape_cast %20 : vector<128xf32> to vector<1x128xf32>
      %22 = vector.shape_cast %21 : vector<1x128xf32> to vector<1x1x128xf32>
      %c0_18 = arith.constant 0 : index
      %c0_19 = arith.constant 0 : index
      %c0_20 = arith.constant 0 : index
      %23 = vector.load %arg7[%c0_18, %c0_19, %c0_20] : memref<1x1x128xf32, #tpu.memory_space<vmem>>, vector<1x1x128xf32>
      tpu.vector_store %arg7[%c0_18, %c0_19, %c0_20], %22 {strides = array<i32>} : memref<1x1x128xf32, #tpu.memory_space<vmem>>, vector<1x1x128xf32>,
    } else {
    }
    return
  }
  func.func @transform_0(%arg0: i32, %arg1: i32, %arg2: i32) -> (i32, i32) {
    %c0_i32 = arith.constant 0 : i32
    return %arg0, %arg2 : i32, i32
  }
  func.func @transform_1(%arg0: i32, %arg1: i32, %arg2: i32) -> (i32, i32) {
    %c0_i32 = arith.constant 0 : i32
    return %arg2, %arg1 : i32, i32
  }
  func.func @transform_2(%arg0: i32, %arg1: i32, %arg2: i32) -> (i32, i32) {
    %c0_i32 = arith.constant 0 : i32
    return %arg0, %arg1 : i32, i32
  }
  func.func @transform_3(%arg0: i32, %arg1: i32, %arg2: i32) -> (i32, i32, i32) {
    %c0_i32 = arith.constant 0 : i32
    %c0_i32_0 = arith.constant 0 : i32
    return %arg0, %c0_i32, %arg1 : i32, i32, i32
  }
  func.func @transform_4(%arg0: i32, %arg1: i32, %arg2: i32) -> (i32, i32, i32) {
    %c0_i32 = arith.constant 0 : i32
    %c0_i32_0 = arith.constant 0 : i32
    return %arg0, %c0_i32, %arg1 : i32, i32, i32
  }
}

module attributes {stable_mosaic.version = 11 : i64} {
  func.func @kern(%arg0: i32, %arg1: memref<32x128xbf16, #tpu.memory_space<vmem>>, %arg2: memref<1x128xf32, #tpu.memory_space<vmem>>, %arg3: memref<1x128xf32, #tpu.memory_space<vmem>>, %arg4: memref<32x128xbf16, #tpu.memory_space<vmem>>, %arg5: memref<32x128xbf16, #tpu.memory_space<vmem>>) attributes {dimension_semantics = [#tpu.dimension_semantics<parallel>], iteration_bounds = array<i64: 1>, scalar_prefetch = 0 : i64, scratch_operands = 0 : i64, tpu.core_type = #tpu.core_type<tc>, window_params = [{transform_indices = @transform_0, window_bounds = array<i64: 32, 128>}, {pipeline_mode = #tpu.pipeline_mode<synchronous>, transform_indices = @transform_1, window_bounds = array<i64: 1, 128>}, {pipeline_mode = #tpu.pipeline_mode<synchronous>, transform_indices = @transform_2, window_bounds = array<i64: 1, 128>}, {transform_indices = @transform_3, window_bounds = array<i64: 32, 128>}, {transform_indices = @transform_4, window_bounds = array<i64: 32, 128>}]} {
    %c0 = arith.constant 0 : index
    %c0_0 = arith.constant 0 : index
    %0 = vector.load %arg1[%c0, %c0_0] : memref<32x128xbf16, #tpu.memory_space<vmem>>, vector<32x128xbf16>
    %1 = arith.extf %0 : vector<32x128xbf16> to vector<32x128xf32>
    %c0_1 = arith.constant 0 : index
    %c0_2 = arith.constant 0 : index
    %2 = vector.load %arg2[%c0_1, %c0_2] : memref<1x128xf32, #tpu.memory_space<vmem>>, vector<1x128xf32>
    %3 = vector.broadcast %2 : vector<1x128xf32> to vector<32x128xf32>
    %4 = arith.mulf %1, %3 : vector<32x128xf32>
    %c0_3 = arith.constant 0 : index
    %c0_4 = arith.constant 0 : index
    %5 = vector.load %arg3[%c0_3, %c0_4] : memref<1x128xf32, #tpu.memory_space<vmem>>, vector<1x128xf32>
    %6 = vector.broadcast %5 : vector<1x128xf32> to vector<32x128xf32>
    %7 = arith.addf %4, %6 : vector<32x128xf32>
    %c0_5 = arith.constant 0 : index
    %c0_6 = arith.constant 0 : index
    %8 = vector.load %arg4[%c0_5, %c0_6] : memref<32x128xbf16, #tpu.memory_space<vmem>>, vector<32x128xbf16>
    %9 = arith.extf %8 : vector<32x128xbf16> to vector<32x128xf32>
    %10 = arith.addf %7, %9 : vector<32x128xf32>
    %cst = arith.constant 0.000000e+00 : f32
    %11 = vector.broadcast %cst : f32 to vector<32x128xf32>
    %12 = arith.maximumf %10, %11 : vector<32x128xf32>
    %13 = arith.truncf %12 : vector<32x128xf32> to vector<32x128xbf16>
    %c0_7 = arith.constant 0 : index
    %c0_8 = arith.constant 0 : index
    %14 = vector.load %arg5[%c0_7, %c0_8] : memref<32x128xbf16, #tpu.memory_space<vmem>>, vector<32x128xbf16>
    tpu.vector_store %arg5[%c0_7, %c0_8], %13 {strides = array<i32>} : memref<32x128xbf16, #tpu.memory_space<vmem>>, vector<32x128xbf16>,
    return
  }
  func.func @transform_0(%arg0: i32) -> (i32, i32) {
    %c0_i32 = arith.constant 0 : i32
    %c0_i32_0 = arith.constant 0 : i32
    return %arg0, %c0_i32 : i32, i32
  }
  func.func @transform_1(%arg0: i32) -> (i32, i32) {
    %c0_i32 = arith.constant 0 : i32
    %c0_i32_0 = arith.constant 0 : i32
    %c0_i32_1 = arith.constant 0 : i32
    return %c0_i32, %c0_i32_0 : i32, i32
  }
  func.func @transform_2(%arg0: i32) -> (i32, i32) {
    %c0_i32 = arith.constant 0 : i32
    %c0_i32_0 = arith.constant 0 : i32
    %c0_i32_1 = arith.constant 0 : i32
    return %c0_i32, %c0_i32_0 : i32, i32
  }
  func.func @transform_3(%arg0: i32) -> (i32, i32) {
    %c0_i32 = arith.constant 0 : i32
    %c0_i32_0 = arith.constant 0 : i32
    return %arg0, %c0_i32 : i32, i32
  }
  func.func @transform_4(%arg0: i32) -> (i32, i32) {
    %c0_i32 = arith.constant 0 : i32
    %c0_i32_0 = arith.constant 0 : i32
    return %arg0, %c0_i32 : i32, i32
  }
}

module attributes {stable_mosaic.version = 11 : i64} {
  func.func @_conv_bn_matmul_kernel(%arg0: i32, %arg1: i32, %arg2: i32, %arg3: memref<16x128xbf16, #tpu.memory_space<vmem>>, %arg4: memref<128x256xbf16, #tpu.memory_space<vmem>>, %arg5: memref<16x256xbf16, #tpu.memory_space<vmem>>, %arg6: memref<1x1x256xf32, #tpu.memory_space<vmem>>, %arg7: memref<1x1x256xf32, #tpu.memory_space<vmem>>, %arg8: memref<16x256xf32, #tpu.memory_space<vmem>>) attributes {dimension_semantics = [#tpu.dimension_semantics<parallel>, #tpu.dimension_semantics<parallel>, #tpu.dimension_semantics<arbitrary>], iteration_bounds = array<i64: 1, 1, 1>, scalar_prefetch = 0 : i64, scratch_operands = 1 : i64, tpu.core_type = #tpu.core_type<tc>, window_params = [{transform_indices = @transform_0, window_bounds = array<i64: 16, 128>}, {transform_indices = @transform_1, window_bounds = array<i64: 128, 256>}, {transform_indices = @transform_2, window_bounds = array<i64: 16, 256>}, {transform_indices = @transform_3, window_bounds = array<i64: 1, 1, 256>}, {transform_indices = @transform_4, window_bounds = array<i64: 1, 1, 256>}]} {
    %c0_i32 = arith.constant 0 : i32
    %0 = arith.cmpi eq, %arg2, %c0_i32 : i32
    %1 = arith.extui %0 : i1 to i32
    %c0_i32_0 = arith.constant 0 : i32
    %2 = arith.cmpi ne, %1, %c0_i32_0 : i32
    scf.if %2 {
      %cst_10 = arith.constant 0.000000e+00 : f32
      %12 = vector.broadcast %cst_10 : f32 to vector<16x256xf32>
      %c0_11 = arith.constant 0 : index
      %c0_12 = arith.constant 0 : index
      %13 = vector.load %arg8[%c0_11, %c0_12] : memref<16x256xf32, #tpu.memory_space<vmem>>, vector<16x256xf32>
      tpu.vector_store %arg8[%c0_11, %c0_12], %12 {strides = array<i32>} : memref<16x256xf32, #tpu.memory_space<vmem>>, vector<16x256xf32>,
    } else {
    }
    %c0 = arith.constant 0 : index
    %c0_1 = arith.constant 0 : index
    %3 = vector.load %arg8[%c0, %c0_1] : memref<16x256xf32, #tpu.memory_space<vmem>>, vector<16x256xf32>
    %c0_2 = arith.constant 0 : index
    %c0_3 = arith.constant 0 : index
    %4 = vector.load %arg3[%c0_2, %c0_3] : memref<16x128xbf16, #tpu.memory_space<vmem>>, vector<16x128xbf16>
    %c0_4 = arith.constant 0 : index
    %c0_5 = arith.constant 0 : index
    %5 = vector.load %arg4[%c0_4, %c0_5] : memref<128x256xbf16, #tpu.memory_space<vmem>>, vector<128x256xbf16>
    %cst = arith.constant dense<0.000000e+00> : vector<16x256xf32>
    %6 = tpu.matmul %4, %5, %cst {dimension_numbers = #tpu.dot_dimension_numbers<[1], [0], [0], [1], [0, 0, 1, 1], [], []>} : vector<16x128xbf16>, vector<128x256xbf16>, vector<16x256xf32> -> vector<16x256xf32>
    %7 = arith.addf %3, %6 : vector<16x256xf32>
    %c0_6 = arith.constant 0 : index
    %c0_7 = arith.constant 0 : index
    %8 = vector.load %arg8[%c0_6, %c0_7] : memref<16x256xf32, #tpu.memory_space<vmem>>, vector<16x256xf32>
    tpu.vector_store %arg8[%c0_6, %c0_7], %7 {strides = array<i32>} : memref<16x256xf32, #tpu.memory_space<vmem>>, vector<16x256xf32>,
    %c0_i32_8 = arith.constant 0 : i32
    %9 = arith.cmpi eq, %arg2, %c0_i32_8 : i32
    %10 = arith.extui %9 : i1 to i32
    %c0_i32_9 = arith.constant 0 : i32
    %11 = arith.cmpi ne, %10, %c0_i32_9 : i32
    scf.if %11 {
      %c0_10 = arith.constant 0 : index
      %c0_11 = arith.constant 0 : index
      %12 = vector.load %arg8[%c0_10, %c0_11] : memref<16x256xf32, #tpu.memory_space<vmem>>, vector<16x256xf32>
      %13 = arith.truncf %12 : vector<16x256xf32> to vector<16x256xbf16>
      %c0_12 = arith.constant 0 : index
      %c0_13 = arith.constant 0 : index
      %14 = vector.load %arg5[%c0_12, %c0_13] : memref<16x256xbf16, #tpu.memory_space<vmem>>, vector<16x256xbf16>
      tpu.vector_store %arg5[%c0_12, %c0_13], %13 {strides = array<i32>} : memref<16x256xbf16, #tpu.memory_space<vmem>>, vector<16x256xbf16>,
      %cst_14 = arith.constant dense<0.000000e+00> : vector<256xf32>
      %15 = vector.multi_reduction <add>, %12, %cst_14 [0] : vector<16x256xf32> to vector<256xf32>
      %16 = vector.shape_cast %15 : vector<256xf32> to vector<1x256xf32>
      %17 = vector.shape_cast %16 : vector<1x256xf32> to vector<1x1x256xf32>
      %c0_15 = arith.constant 0 : index
      %c0_16 = arith.constant 0 : index
      %c0_17 = arith.constant 0 : index
      %18 = vector.load %arg6[%c0_15, %c0_16, %c0_17] : memref<1x1x256xf32, #tpu.memory_space<vmem>>, vector<1x1x256xf32>
      tpu.vector_store %arg6[%c0_15, %c0_16, %c0_17], %17 {strides = array<i32>} : memref<1x1x256xf32, #tpu.memory_space<vmem>>, vector<1x1x256xf32>,
      %19 = arith.mulf %12, %12 : vector<16x256xf32>
      %cst_18 = arith.constant dense<0.000000e+00> : vector<256xf32>
      %20 = vector.multi_reduction <add>, %19, %cst_18 [0] : vector<16x256xf32> to vector<256xf32>
      %21 = vector.shape_cast %20 : vector<256xf32> to vector<1x256xf32>
      %22 = vector.shape_cast %21 : vector<1x256xf32> to vector<1x1x256xf32>
      %c0_19 = arith.constant 0 : index
      %c0_20 = arith.constant 0 : index
      %c0_21 = arith.constant 0 : index
      %23 = vector.load %arg7[%c0_19, %c0_20, %c0_21] : memref<1x1x256xf32, #tpu.memory_space<vmem>>, vector<1x1x256xf32>
      tpu.vector_store %arg7[%c0_19, %c0_20, %c0_21], %22 {strides = array<i32>} : memref<1x1x256xf32, #tpu.memory_space<vmem>>, vector<1x1x256xf32>,
    } else {
    }
    return
  }
  func.func @transform_0(%arg0: i32, %arg1: i32, %arg2: i32) -> (i32, i32) {
    %c0_i32 = arith.constant 0 : i32
    return %arg0, %arg2 : i32, i32
  }
  func.func @transform_1(%arg0: i32, %arg1: i32, %arg2: i32) -> (i32, i32) {
    %c0_i32 = arith.constant 0 : i32
    return %arg2, %arg1 : i32, i32
  }
  func.func @transform_2(%arg0: i32, %arg1: i32, %arg2: i32) -> (i32, i32) {
    %c0_i32 = arith.constant 0 : i32
    return %arg0, %arg1 : i32, i32
  }
  func.func @transform_3(%arg0: i32, %arg1: i32, %arg2: i32) -> (i32, i32, i32) {
    %c0_i32 = arith.constant 0 : i32
    %c0_i32_0 = arith.constant 0 : i32
    return %arg0, %c0_i32, %arg1 : i32, i32, i32
  }
  func.func @transform_4(%arg0: i32, %arg1: i32, %arg2: i32) -> (i32, i32, i32) {
    %c0_i32 = arith.constant 0 : i32
    %c0_i32_0 = arith.constant 0 : i32
    return %arg0, %c0_i32, %arg1 : i32, i32, i32
  }
}

module attributes {stable_mosaic.version = 11 : i64} {
  func.func @kern(%arg0: i32, %arg1: memref<16x256xbf16, #tpu.memory_space<vmem>>, %arg2: memref<1x256xf32, #tpu.memory_space<vmem>>, %arg3: memref<1x256xf32, #tpu.memory_space<vmem>>, %arg4: memref<16x256xbf16, #tpu.memory_space<vmem>>) attributes {dimension_semantics = [#tpu.dimension_semantics<parallel>], iteration_bounds = array<i64: 1>, scalar_prefetch = 0 : i64, scratch_operands = 0 : i64, tpu.core_type = #tpu.core_type<tc>, window_params = [{transform_indices = @transform_0, window_bounds = array<i64: 16, 256>}, {pipeline_mode = #tpu.pipeline_mode<synchronous>, transform_indices = @transform_1, window_bounds = array<i64: 1, 256>}, {pipeline_mode = #tpu.pipeline_mode<synchronous>, transform_indices = @transform_2, window_bounds = array<i64: 1, 256>}, {transform_indices = @transform_3, window_bounds = array<i64: 16, 256>}]} {
    %c0 = arith.constant 0 : index
    %c0_0 = arith.constant 0 : index
    %0 = vector.load %arg1[%c0, %c0_0] : memref<16x256xbf16, #tpu.memory_space<vmem>>, vector<16x256xbf16>
    %1 = arith.extf %0 : vector<16x256xbf16> to vector<16x256xf32>
    %c0_1 = arith.constant 0 : index
    %c0_2 = arith.constant 0 : index
    %2 = vector.load %arg2[%c0_1, %c0_2] : memref<1x256xf32, #tpu.memory_space<vmem>>, vector<1x256xf32>
    %3 = vector.broadcast %2 : vector<1x256xf32> to vector<16x256xf32>
    %4 = arith.mulf %1, %3 : vector<16x256xf32>
    %c0_3 = arith.constant 0 : index
    %c0_4 = arith.constant 0 : index
    %5 = vector.load %arg3[%c0_3, %c0_4] : memref<1x256xf32, #tpu.memory_space<vmem>>, vector<1x256xf32>
    %6 = vector.broadcast %5 : vector<1x256xf32> to vector<16x256xf32>
    %7 = arith.addf %4, %6 : vector<16x256xf32>
    %8 = arith.truncf %7 : vector<16x256xf32> to vector<16x256xbf16>
    %c0_5 = arith.constant 0 : index
    %c0_6 = arith.constant 0 : index
    %9 = vector.load %arg4[%c0_5, %c0_6] : memref<16x256xbf16, #tpu.memory_space<vmem>>, vector<16x256xbf16>
    tpu.vector_store %arg4[%c0_5, %c0_6], %8 {strides = array<i32>} : memref<16x256xbf16, #tpu.memory_space<vmem>>, vector<16x256xbf16>,
    return
  }
  func.func @transform_0(%arg0: i32) -> (i32, i32) {
    %c0_i32 = arith.constant 0 : i32
    %c0_i32_0 = arith.constant 0 : i32
    return %arg0, %c0_i32 : i32, i32
  }
  func.func @transform_1(%arg0: i32) -> (i32, i32) {
    %c0_i32 = arith.constant 0 : i32
    %c0_i32_0 = arith.constant 0 : i32
    %c0_i32_1 = arith.constant 0 : i32
    return %c0_i32, %c0_i32_0 : i32, i32
  }
  func.func @transform_2(%arg0: i32) -> (i32, i32) {
    %c0_i32 = arith.constant 0 : i32
    %c0_i32_0 = arith.constant 0 : i32
    %c0_i32_1 = arith.constant 0 : i32
    return %c0_i32, %c0_i32_0 : i32, i32
  }
  func.func @transform_3(%arg0: i32) -> (i32, i32) {
    %c0_i32 = arith.constant 0 : i32
    %c0_i32_0 = arith.constant 0 : i32
    return %arg0, %c0_i32 : i32, i32
  }
}

module attributes {stable_mosaic.version = 11 : i64} {
  func.func @kern(%arg0: i32, %arg1: memref<16x256xbf16, #tpu.memory_space<vmem>>, %arg2: memref<1x256xf32, #tpu.memory_space<vmem>>, %arg3: memref<1x256xf32, #tpu.memory_space<vmem>>, %arg4: memref<16x256xbf16, #tpu.memory_space<vmem>>) attributes {dimension_semantics = [#tpu.dimension_semantics<parallel>], iteration_bounds = array<i64: 1>, scalar_prefetch = 0 : i64, scratch_operands = 0 : i64, tpu.core_type = #tpu.core_type<tc>, window_params = [{transform_indices = @transform_0, window_bounds = array<i64: 16, 256>}, {pipeline_mode = #tpu.pipeline_mode<synchronous>, transform_indices = @transform_1, window_bounds = array<i64: 1, 256>}, {pipeline_mode = #tpu.pipeline_mode<synchronous>, transform_indices = @transform_2, window_bounds = array<i64: 1, 256>}, {transform_indices = @transform_3, window_bounds = array<i64: 16, 256>}]} {
    %c0 = arith.constant 0 : index
    %c0_0 = arith.constant 0 : index
    %0 = vector.load %arg1[%c0, %c0_0] : memref<16x256xbf16, #tpu.memory_space<vmem>>, vector<16x256xbf16>
    %1 = arith.extf %0 : vector<16x256xbf16> to vector<16x256xf32>
    %c0_1 = arith.constant 0 : index
    %c0_2 = arith.constant 0 : index
    %2 = vector.load %arg2[%c0_1, %c0_2] : memref<1x256xf32, #tpu.memory_space<vmem>>, vector<1x256xf32>
    %3 = vector.broadcast %2 : vector<1x256xf32> to vector<16x256xf32>
    %4 = arith.mulf %1, %3 : vector<16x256xf32>
    %c0_3 = arith.constant 0 : index
    %c0_4 = arith.constant 0 : index
    %5 = vector.load %arg3[%c0_3, %c0_4] : memref<1x256xf32, #tpu.memory_space<vmem>>, vector<1x256xf32>
    %6 = vector.broadcast %5 : vector<1x256xf32> to vector<16x256xf32>
    %7 = arith.addf %4, %6 : vector<16x256xf32>
    %cst = arith.constant 0.000000e+00 : f32
    %8 = vector.broadcast %cst : f32 to vector<16x256xf32>
    %9 = arith.maximumf %7, %8 : vector<16x256xf32>
    %10 = arith.truncf %9 : vector<16x256xf32> to vector<16x256xbf16>
    %c0_5 = arith.constant 0 : index
    %c0_6 = arith.constant 0 : index
    %11 = vector.load %arg4[%c0_5, %c0_6] : memref<16x256xbf16, #tpu.memory_space<vmem>>, vector<16x256xbf16>
    tpu.vector_store %arg4[%c0_5, %c0_6], %10 {strides = array<i32>} : memref<16x256xbf16, #tpu.memory_space<vmem>>, vector<16x256xbf16>,
    return
  }
  func.func @transform_0(%arg0: i32) -> (i32, i32) {
    %c0_i32 = arith.constant 0 : i32
    %c0_i32_0 = arith.constant 0 : i32
    return %arg0, %c0_i32 : i32, i32
  }
  func.func @transform_1(%arg0: i32) -> (i32, i32) {
    %c0_i32 = arith.constant 0 : i32
    %c0_i32_0 = arith.constant 0 : i32
    %c0_i32_1 = arith.constant 0 : i32
    return %c0_i32, %c0_i32_0 : i32, i32
  }
  func.func @transform_2(%arg0: i32) -> (i32, i32) {
    %c0_i32 = arith.constant 0 : i32
    %c0_i32_0 = arith.constant 0 : i32
    %c0_i32_1 = arith.constant 0 : i32
    return %c0_i32, %c0_i32_0 : i32, i32
  }
  func.func @transform_3(%arg0: i32) -> (i32, i32) {
    %c0_i32 = arith.constant 0 : i32
    %c0_i32_0 = arith.constant 0 : i32
    return %arg0, %c0_i32 : i32, i32
  }
}

module attributes {stable_mosaic.version = 11 : i64} {
  func.func @_conv_bn_matmul_kernel(%arg0: i32, %arg1: i32, %arg2: i32, %arg3: memref<16x256xbf16, #tpu.memory_space<vmem>>, %arg4: memref<256x256xbf16, #tpu.memory_space<vmem>>, %arg5: memref<16x256xbf16, #tpu.memory_space<vmem>>, %arg6: memref<1x1x256xf32, #tpu.memory_space<vmem>>, %arg7: memref<1x1x256xf32, #tpu.memory_space<vmem>>, %arg8: memref<16x256xf32, #tpu.memory_space<vmem>>) attributes {dimension_semantics = [#tpu.dimension_semantics<parallel>, #tpu.dimension_semantics<parallel>, #tpu.dimension_semantics<arbitrary>], iteration_bounds = array<i64: 1, 1, 5>, scalar_prefetch = 0 : i64, scratch_operands = 1 : i64, tpu.core_type = #tpu.core_type<tc>, window_params = [{transform_indices = @transform_0, window_bounds = array<i64: 16, 256>}, {transform_indices = @transform_1, window_bounds = array<i64: 256, 256>}, {transform_indices = @transform_2, window_bounds = array<i64: 16, 256>}, {transform_indices = @transform_3, window_bounds = array<i64: 1, 1, 256>}, {transform_indices = @transform_4, window_bounds = array<i64: 1, 1, 256>}]} {
    %c0_i32 = arith.constant 0 : i32
    %0 = arith.cmpi eq, %arg2, %c0_i32 : i32
    %1 = arith.extui %0 : i1 to i32
    %c0_i32_0 = arith.constant 0 : i32
    %2 = arith.cmpi ne, %1, %c0_i32_0 : i32
    scf.if %2 {
      %cst_9 = arith.constant 0.000000e+00 : f32
      %12 = vector.broadcast %cst_9 : f32 to vector<16x256xf32>
      %c0_10 = arith.constant 0 : index
      %c0_11 = arith.constant 0 : index
      %13 = vector.load %arg8[%c0_10, %c0_11] : memref<16x256xf32, #tpu.memory_space<vmem>>, vector<16x256xf32>
      tpu.vector_store %arg8[%c0_10, %c0_11], %12 {strides = array<i32>} : memref<16x256xf32, #tpu.memory_space<vmem>>, vector<16x256xf32>,
    } else {
    }
    %c0 = arith.constant 0 : index
    %c0_1 = arith.constant 0 : index
    %3 = vector.load %arg8[%c0, %c0_1] : memref<16x256xf32, #tpu.memory_space<vmem>>, vector<16x256xf32>
    %c0_2 = arith.constant 0 : index
    %c0_3 = arith.constant 0 : index
    %4 = vector.load %arg3[%c0_2, %c0_3] : memref<16x256xbf16, #tpu.memory_space<vmem>>, vector<16x256xbf16>
    %c0_4 = arith.constant 0 : index
    %c0_5 = arith.constant 0 : index
    %5 = vector.load %arg4[%c0_4, %c0_5] : memref<256x256xbf16, #tpu.memory_space<vmem>>, vector<256x256xbf16>
    %cst = arith.constant dense<0.000000e+00> : vector<16x256xf32>
    %6 = tpu.matmul %4, %5, %cst {dimension_numbers = #tpu.dot_dimension_numbers<[1], [0], [0], [1], [0, 0, 1, 1], [], []>} : vector<16x256xbf16>, vector<256x256xbf16>, vector<16x256xf32> -> vector<16x256xf32>
    %7 = arith.addf %3, %6 : vector<16x256xf32>
    %c0_6 = arith.constant 0 : index
    %c0_7 = arith.constant 0 : index
    %8 = vector.load %arg8[%c0_6, %c0_7] : memref<16x256xf32, #tpu.memory_space<vmem>>, vector<16x256xf32>
    tpu.vector_store %arg8[%c0_6, %c0_7], %7 {strides = array<i32>} : memref<16x256xf32, #tpu.memory_space<vmem>>, vector<16x256xf32>,
    %c4_i32 = arith.constant 4 : i32
    %9 = arith.cmpi eq, %arg2, %c4_i32 : i32
    %10 = arith.extui %9 : i1 to i32
    %c0_i32_8 = arith.constant 0 : i32
    %11 = arith.cmpi ne, %10, %c0_i32_8 : i32
    scf.if %11 {
      %c0_9 = arith.constant 0 : index
      %c0_10 = arith.constant 0 : index
      %12 = vector.load %arg8[%c0_9, %c0_10] : memref<16x256xf32, #tpu.memory_space<vmem>>, vector<16x256xf32>
      %13 = arith.truncf %12 : vector<16x256xf32> to vector<16x256xbf16>
      %c0_11 = arith.constant 0 : index
      %c0_12 = arith.constant 0 : index
      %14 = vector.load %arg5[%c0_11, %c0_12] : memref<16x256xbf16, #tpu.memory_space<vmem>>, vector<16x256xbf16>
      tpu.vector_store %arg5[%c0_11, %c0_12], %13 {strides = array<i32>} : memref<16x256xbf16, #tpu.memory_space<vmem>>, vector<16x256xbf16>,
      %cst_13 = arith.constant dense<0.000000e+00> : vector<256xf32>
      %15 = vector.multi_reduction <add>, %12, %cst_13 [0] : vector<16x256xf32> to vector<256xf32>
      %16 = vector.shape_cast %15 : vector<256xf32> to vector<1x256xf32>
      %17 = vector.shape_cast %16 : vector<1x256xf32> to vector<1x1x256xf32>
      %c0_14 = arith.constant 0 : index
      %c0_15 = arith.constant 0 : index
      %c0_16 = arith.constant 0 : index
      %18 = vector.load %arg6[%c0_14, %c0_15, %c0_16] : memref<1x1x256xf32, #tpu.memory_space<vmem>>, vector<1x1x256xf32>
      tpu.vector_store %arg6[%c0_14, %c0_15, %c0_16], %17 {strides = array<i32>} : memref<1x1x256xf32, #tpu.memory_space<vmem>>, vector<1x1x256xf32>,
      %19 = arith.mulf %12, %12 : vector<16x256xf32>
      %cst_17 = arith.constant dense<0.000000e+00> : vector<256xf32>
      %20 = vector.multi_reduction <add>, %19, %cst_17 [0] : vector<16x256xf32> to vector<256xf32>
      %21 = vector.shape_cast %20 : vector<256xf32> to vector<1x256xf32>
      %22 = vector.shape_cast %21 : vector<1x256xf32> to vector<1x1x256xf32>
      %c0_18 = arith.constant 0 : index
      %c0_19 = arith.constant 0 : index
      %c0_20 = arith.constant 0 : index
      %23 = vector.load %arg7[%c0_18, %c0_19, %c0_20] : memref<1x1x256xf32, #tpu.memory_space<vmem>>, vector<1x1x256xf32>
      tpu.vector_store %arg7[%c0_18, %c0_19, %c0_20], %22 {strides = array<i32>} : memref<1x1x256xf32, #tpu.memory_space<vmem>>, vector<1x1x256xf32>,
    } else {
    }
    return
  }
  func.func @transform_0(%arg0: i32, %arg1: i32, %arg2: i32) -> (i32, i32) {
    %c0_i32 = arith.constant 0 : i32
    return %arg0, %arg2 : i32, i32
  }
  func.func @transform_1(%arg0: i32, %arg1: i32, %arg2: i32) -> (i32, i32) {
    %c0_i32 = arith.constant 0 : i32
    return %arg2, %arg1 : i32, i32
  }
  func.func @transform_2(%arg0: i32, %arg1: i32, %arg2: i32) -> (i32, i32) {
    %c0_i32 = arith.constant 0 : i32
    return %arg0, %arg1 : i32, i32
  }
  func.func @transform_3(%arg0: i32, %arg1: i32, %arg2: i32) -> (i32, i32, i32) {
    %c0_i32 = arith.constant 0 : i32
    %c0_i32_0 = arith.constant 0 : i32
    return %arg0, %c0_i32, %arg1 : i32, i32, i32
  }
  func.func @transform_4(%arg0: i32, %arg1: i32, %arg2: i32) -> (i32, i32, i32) {
    %c0_i32 = arith.constant 0 : i32
    %c0_i32_0 = arith.constant 0 : i32
    return %arg0, %c0_i32, %arg1 : i32, i32, i32
  }
}

module attributes {stable_mosaic.version = 11 : i64} {
  func.func @_conv_bn_matmul_kernel(%arg0: i32, %arg1: i32, %arg2: i32, %arg3: memref<16x256xbf16, #tpu.memory_space<vmem>>, %arg4: memref<256x256xbf16, #tpu.memory_space<vmem>>, %arg5: memref<16x256xbf16, #tpu.memory_space<vmem>>, %arg6: memref<1x1x256xf32, #tpu.memory_space<vmem>>, %arg7: memref<1x1x256xf32, #tpu.memory_space<vmem>>, %arg8: memref<16x256xf32, #tpu.memory_space<vmem>>) attributes {dimension_semantics = [#tpu.dimension_semantics<parallel>, #tpu.dimension_semantics<parallel>, #tpu.dimension_semantics<arbitrary>], iteration_bounds = array<i64: 1, 1, 9>, scalar_prefetch = 0 : i64, scratch_operands = 1 : i64, tpu.core_type = #tpu.core_type<tc>, window_params = [{transform_indices = @transform_0, window_bounds = array<i64: 16, 256>}, {transform_indices = @transform_1, window_bounds = array<i64: 256, 256>}, {transform_indices = @transform_2, window_bounds = array<i64: 16, 256>}, {transform_indices = @transform_3, window_bounds = array<i64: 1, 1, 256>}, {transform_indices = @transform_4, window_bounds = array<i64: 1, 1, 256>}]} {
    %c0_i32 = arith.constant 0 : i32
    %0 = arith.cmpi eq, %arg2, %c0_i32 : i32
    %1 = arith.extui %0 : i1 to i32
    %c0_i32_0 = arith.constant 0 : i32
    %2 = arith.cmpi ne, %1, %c0_i32_0 : i32
    scf.if %2 {
      %cst_9 = arith.constant 0.000000e+00 : f32
      %12 = vector.broadcast %cst_9 : f32 to vector<16x256xf32>
      %c0_10 = arith.constant 0 : index
      %c0_11 = arith.constant 0 : index
      %13 = vector.load %arg8[%c0_10, %c0_11] : memref<16x256xf32, #tpu.memory_space<vmem>>, vector<16x256xf32>
      tpu.vector_store %arg8[%c0_10, %c0_11], %12 {strides = array<i32>} : memref<16x256xf32, #tpu.memory_space<vmem>>, vector<16x256xf32>,
    } else {
    }
    %c0 = arith.constant 0 : index
    %c0_1 = arith.constant 0 : index
    %3 = vector.load %arg8[%c0, %c0_1] : memref<16x256xf32, #tpu.memory_space<vmem>>, vector<16x256xf32>
    %c0_2 = arith.constant 0 : index
    %c0_3 = arith.constant 0 : index
    %4 = vector.load %arg3[%c0_2, %c0_3] : memref<16x256xbf16, #tpu.memory_space<vmem>>, vector<16x256xbf16>
    %c0_4 = arith.constant 0 : index
    %c0_5 = arith.constant 0 : index
    %5 = vector.load %arg4[%c0_4, %c0_5] : memref<256x256xbf16, #tpu.memory_space<vmem>>, vector<256x256xbf16>
    %cst = arith.constant dense<0.000000e+00> : vector<16x256xf32>
    %6 = tpu.matmul %4, %5, %cst {dimension_numbers = #tpu.dot_dimension_numbers<[1], [0], [0], [1], [0, 0, 1, 1], [], []>} : vector<16x256xbf16>, vector<256x256xbf16>, vector<16x256xf32> -> vector<16x256xf32>
    %7 = arith.addf %3, %6 : vector<16x256xf32>
    %c0_6 = arith.constant 0 : index
    %c0_7 = arith.constant 0 : index
    %8 = vector.load %arg8[%c0_6, %c0_7] : memref<16x256xf32, #tpu.memory_space<vmem>>, vector<16x256xf32>
    tpu.vector_store %arg8[%c0_6, %c0_7], %7 {strides = array<i32>} : memref<16x256xf32, #tpu.memory_space<vmem>>, vector<16x256xf32>,
    %c8_i32 = arith.constant 8 : i32
    %9 = arith.cmpi eq, %arg2, %c8_i32 : i32
    %10 = arith.extui %9 : i1 to i32
    %c0_i32_8 = arith.constant 0 : i32
    %11 = arith.cmpi ne, %10, %c0_i32_8 : i32
    scf.if %11 {
      %c0_9 = arith.constant 0 : index
      %c0_10 = arith.constant 0 : index
      %12 = vector.load %arg8[%c0_9, %c0_10] : memref<16x256xf32, #tpu.memory_space<vmem>>, vector<16x256xf32>
      %13 = arith.truncf %12 : vector<16x256xf32> to vector<16x256xbf16>
      %c0_11 = arith.constant 0 : index
      %c0_12 = arith.constant 0 : index
      %14 = vector.load %arg5[%c0_11, %c0_12] : memref<16x256xbf16, #tpu.memory_space<vmem>>, vector<16x256xbf16>
      tpu.vector_store %arg5[%c0_11, %c0_12], %13 {strides = array<i32>} : memref<16x256xbf16, #tpu.memory_space<vmem>>, vector<16x256xbf16>,
      %cst_13 = arith.constant dense<0.000000e+00> : vector<256xf32>
      %15 = vector.multi_reduction <add>, %12, %cst_13 [0] : vector<16x256xf32> to vector<256xf32>
      %16 = vector.shape_cast %15 : vector<256xf32> to vector<1x256xf32>
      %17 = vector.shape_cast %16 : vector<1x256xf32> to vector<1x1x256xf32>
      %c0_14 = arith.constant 0 : index
      %c0_15 = arith.constant 0 : index
      %c0_16 = arith.constant 0 : index
      %18 = vector.load %arg6[%c0_14, %c0_15, %c0_16] : memref<1x1x256xf32, #tpu.memory_space<vmem>>, vector<1x1x256xf32>
      tpu.vector_store %arg6[%c0_14, %c0_15, %c0_16], %17 {strides = array<i32>} : memref<1x1x256xf32, #tpu.memory_space<vmem>>, vector<1x1x256xf32>,
      %19 = arith.mulf %12, %12 : vector<16x256xf32>
      %cst_17 = arith.constant dense<0.000000e+00> : vector<256xf32>
      %20 = vector.multi_reduction <add>, %19, %cst_17 [0] : vector<16x256xf32> to vector<256xf32>
      %21 = vector.shape_cast %20 : vector<256xf32> to vector<1x256xf32>
      %22 = vector.shape_cast %21 : vector<1x256xf32> to vector<1x1x256xf32>
      %c0_18 = arith.constant 0 : index
      %c0_19 = arith.constant 0 : index
      %c0_20 = arith.constant 0 : index
      %23 = vector.load %arg7[%c0_18, %c0_19, %c0_20] : memref<1x1x256xf32, #tpu.memory_space<vmem>>, vector<1x1x256xf32>
      tpu.vector_store %arg7[%c0_18, %c0_19, %c0_20], %22 {strides = array<i32>} : memref<1x1x256xf32, #tpu.memory_space<vmem>>, vector<1x1x256xf32>,
    } else {
    }
    return
  }
  func.func @transform_0(%arg0: i32, %arg1: i32, %arg2: i32) -> (i32, i32) {
    %c0_i32 = arith.constant 0 : i32
    return %arg0, %arg2 : i32, i32
  }
  func.func @transform_1(%arg0: i32, %arg1: i32, %arg2: i32) -> (i32, i32) {
    %c0_i32 = arith.constant 0 : i32
    return %arg2, %arg1 : i32, i32
  }
  func.func @transform_2(%arg0: i32, %arg1: i32, %arg2: i32) -> (i32, i32) {
    %c0_i32 = arith.constant 0 : i32
    return %arg0, %arg1 : i32, i32
  }
  func.func @transform_3(%arg0: i32, %arg1: i32, %arg2: i32) -> (i32, i32, i32) {
    %c0_i32 = arith.constant 0 : i32
    %c0_i32_0 = arith.constant 0 : i32
    return %arg0, %c0_i32, %arg1 : i32, i32, i32
  }
  func.func @transform_4(%arg0: i32, %arg1: i32, %arg2: i32) -> (i32, i32, i32) {
    %c0_i32 = arith.constant 0 : i32
    %c0_i32_0 = arith.constant 0 : i32
    return %arg0, %c0_i32, %arg1 : i32, i32, i32
  }
}

module attributes {stable_mosaic.version = 11 : i64} {
  func.func @kern(%arg0: i32, %arg1: memref<16x256xbf16, #tpu.memory_space<vmem>>, %arg2: memref<1x256xf32, #tpu.memory_space<vmem>>, %arg3: memref<1x256xf32, #tpu.memory_space<vmem>>, %arg4: memref<16x256xbf16, #tpu.memory_space<vmem>>, %arg5: memref<16x256xbf16, #tpu.memory_space<vmem>>) attributes {dimension_semantics = [#tpu.dimension_semantics<parallel>], iteration_bounds = array<i64: 1>, scalar_prefetch = 0 : i64, scratch_operands = 0 : i64, tpu.core_type = #tpu.core_type<tc>, window_params = [{transform_indices = @transform_0, window_bounds = array<i64: 16, 256>}, {pipeline_mode = #tpu.pipeline_mode<synchronous>, transform_indices = @transform_1, window_bounds = array<i64: 1, 256>}, {pipeline_mode = #tpu.pipeline_mode<synchronous>, transform_indices = @transform_2, window_bounds = array<i64: 1, 256>}, {transform_indices = @transform_3, window_bounds = array<i64: 16, 256>}, {transform_indices = @transform_4, window_bounds = array<i64: 16, 256>}]} {
    %c0 = arith.constant 0 : index
    %c0_0 = arith.constant 0 : index
    %0 = vector.load %arg1[%c0, %c0_0] : memref<16x256xbf16, #tpu.memory_space<vmem>>, vector<16x256xbf16>
    %1 = arith.extf %0 : vector<16x256xbf16> to vector<16x256xf32>
    %c0_1 = arith.constant 0 : index
    %c0_2 = arith.constant 0 : index
    %2 = vector.load %arg2[%c0_1, %c0_2] : memref<1x256xf32, #tpu.memory_space<vmem>>, vector<1x256xf32>
    %3 = vector.broadcast %2 : vector<1x256xf32> to vector<16x256xf32>
    %4 = arith.mulf %1, %3 : vector<16x256xf32>
    %c0_3 = arith.constant 0 : index
    %c0_4 = arith.constant 0 : index
    %5 = vector.load %arg3[%c0_3, %c0_4] : memref<1x256xf32, #tpu.memory_space<vmem>>, vector<1x256xf32>
    %6 = vector.broadcast %5 : vector<1x256xf32> to vector<16x256xf32>
    %7 = arith.addf %4, %6 : vector<16x256xf32>
    %c0_5 = arith.constant 0 : index
    %c0_6 = arith.constant 0 : index
    %8 = vector.load %arg4[%c0_5, %c0_6] : memref<16x256xbf16, #tpu.memory_space<vmem>>, vector<16x256xbf16>
    %9 = arith.extf %8 : vector<16x256xbf16> to vector<16x256xf32>
    %10 = arith.addf %7, %9 : vector<16x256xf32>
    %cst = arith.constant 0.000000e+00 : f32
    %11 = vector.broadcast %cst : f32 to vector<16x256xf32>
    %12 = arith.maximumf %10, %11 : vector<16x256xf32>
    %13 = arith.truncf %12 : vector<16x256xf32> to vector<16x256xbf16>
    %c0_7 = arith.constant 0 : index
    %c0_8 = arith.constant 0 : index
    %14 = vector.load %arg5[%c0_7, %c0_8] : memref<16x256xbf16, #tpu.memory_space<vmem>>, vector<16x256xbf16>
    tpu.vector_store %arg5[%c0_7, %c0_8], %13 {strides = array<i32>} : memref<16x256xbf16, #tpu.memory_space<vmem>>, vector<16x256xbf16>,
    return
  }
  func.func @transform_0(%arg0: i32) -> (i32, i32) {
    %c0_i32 = arith.constant 0 : i32
    %c0_i32_0 = arith.constant 0 : i32
    return %arg0, %c0_i32 : i32, i32
  }
  func.func @transform_1(%arg0: i32) -> (i32, i32) {
    %c0_i32 = arith.constant 0 : i32
    %c0_i32_0 = arith.constant 0 : i32
    %c0_i32_1 = arith.constant 0 : i32
    return %c0_i32, %c0_i32_0 : i32, i32
  }
  func.func @transform_2(%arg0: i32) -> (i32, i32) {
    %c0_i32 = arith.constant 0 : i32
    %c0_i32_0 = arith.constant 0 : i32
    %c0_i32_1 = arith.constant 0 : i32
    return %c0_i32, %c0_i32_0 : i32, i32
  }
  func.func @transform_3(%arg0: i32) -> (i32, i32) {
    %c0_i32 = arith.constant 0 : i32
    %c0_i32_0 = arith.constant 0 : i32
    return %arg0, %c0_i32 : i32, i32
  }
  func.func @transform_4(%arg0: i32) -> (i32, i32) {
    %c0_i32 = arith.constant 0 : i32
    %c0_i32_0 = arith.constant 0 : i32
    return %arg0, %c0_i32 : i32, i32
  }
}

module attributes {stable_mosaic.version = 11 : i64} {
  func.func @_conv_bn_matmul_kernel(%arg0: i32, %arg1: i32, %arg2: i32, %arg3: memref<16x256xbf16, #tpu.memory_space<vmem>>, %arg4: memref<256x256xbf16, #tpu.memory_space<vmem>>, %arg5: memref<16x256xbf16, #tpu.memory_space<vmem>>, %arg6: memref<1x1x256xf32, #tpu.memory_space<vmem>>, %arg7: memref<1x1x256xf32, #tpu.memory_space<vmem>>, %arg8: memref<16x256xf32, #tpu.memory_space<vmem>>) attributes {dimension_semantics = [#tpu.dimension_semantics<parallel>, #tpu.dimension_semantics<parallel>, #tpu.dimension_semantics<arbitrary>], iteration_bounds = array<i64: 1, 2, 1>, scalar_prefetch = 0 : i64, scratch_operands = 1 : i64, tpu.core_type = #tpu.core_type<tc>, window_params = [{transform_indices = @transform_0, window_bounds = array<i64: 16, 256>}, {transform_indices = @transform_1, window_bounds = array<i64: 256, 256>}, {transform_indices = @transform_2, window_bounds = array<i64: 16, 256>}, {transform_indices = @transform_3, window_bounds = array<i64: 1, 1, 256>}, {transform_indices = @transform_4, window_bounds = array<i64: 1, 1, 256>}]} {
    %c0_i32 = arith.constant 0 : i32
    %0 = arith.cmpi eq, %arg2, %c0_i32 : i32
    %1 = arith.extui %0 : i1 to i32
    %c0_i32_0 = arith.constant 0 : i32
    %2 = arith.cmpi ne, %1, %c0_i32_0 : i32
    scf.if %2 {
      %cst_10 = arith.constant 0.000000e+00 : f32
      %12 = vector.broadcast %cst_10 : f32 to vector<16x256xf32>
      %c0_11 = arith.constant 0 : index
      %c0_12 = arith.constant 0 : index
      %13 = vector.load %arg8[%c0_11, %c0_12] : memref<16x256xf32, #tpu.memory_space<vmem>>, vector<16x256xf32>
      tpu.vector_store %arg8[%c0_11, %c0_12], %12 {strides = array<i32>} : memref<16x256xf32, #tpu.memory_space<vmem>>, vector<16x256xf32>,
    } else {
    }
    %c0 = arith.constant 0 : index
    %c0_1 = arith.constant 0 : index
    %3 = vector.load %arg8[%c0, %c0_1] : memref<16x256xf32, #tpu.memory_space<vmem>>, vector<16x256xf32>
    %c0_2 = arith.constant 0 : index
    %c0_3 = arith.constant 0 : index
    %4 = vector.load %arg3[%c0_2, %c0_3] : memref<16x256xbf16, #tpu.memory_space<vmem>>, vector<16x256xbf16>
    %c0_4 = arith.constant 0 : index
    %c0_5 = arith.constant 0 : index
    %5 = vector.load %arg4[%c0_4, %c0_5] : memref<256x256xbf16, #tpu.memory_space<vmem>>, vector<256x256xbf16>
    %cst = arith.constant dense<0.000000e+00> : vector<16x256xf32>
    %6 = tpu.matmul %4, %5, %cst {dimension_numbers = #tpu.dot_dimension_numbers<[1], [0], [0], [1], [0, 0, 1, 1], [], []>} : vector<16x256xbf16>, vector<256x256xbf16>, vector<16x256xf32> -> vector<16x256xf32>
    %7 = arith.addf %3, %6 : vector<16x256xf32>
    %c0_6 = arith.constant 0 : index
    %c0_7 = arith.constant 0 : index
    %8 = vector.load %arg8[%c0_6, %c0_7] : memref<16x256xf32, #tpu.memory_space<vmem>>, vector<16x256xf32>
    tpu.vector_store %arg8[%c0_6, %c0_7], %7 {strides = array<i32>} : memref<16x256xf32, #tpu.memory_space<vmem>>, vector<16x256xf32>,
    %c0_i32_8 = arith.constant 0 : i32
    %9 = arith.cmpi eq, %arg2, %c0_i32_8 : i32
    %10 = arith.extui %9 : i1 to i32
    %c0_i32_9 = arith.constant 0 : i32
    %11 = arith.cmpi ne, %10, %c0_i32_9 : i32
    scf.if %11 {
      %c0_10 = arith.constant 0 : index
      %c0_11 = arith.constant 0 : index
      %12 = vector.load %arg8[%c0_10, %c0_11] : memref<16x256xf32, #tpu.memory_space<vmem>>, vector<16x256xf32>
      %13 = arith.truncf %12 : vector<16x256xf32> to vector<16x256xbf16>
      %c0_12 = arith.constant 0 : index
      %c0_13 = arith.constant 0 : index
      %14 = vector.load %arg5[%c0_12, %c0_13] : memref<16x256xbf16, #tpu.memory_space<vmem>>, vector<16x256xbf16>
      tpu.vector_store %arg5[%c0_12, %c0_13], %13 {strides = array<i32>} : memref<16x256xbf16, #tpu.memory_space<vmem>>, vector<16x256xbf16>,
      %cst_14 = arith.constant dense<0.000000e+00> : vector<256xf32>
      %15 = vector.multi_reduction <add>, %12, %cst_14 [0] : vector<16x256xf32> to vector<256xf32>
      %16 = vector.shape_cast %15 : vector<256xf32> to vector<1x256xf32>
      %17 = vector.shape_cast %16 : vector<1x256xf32> to vector<1x1x256xf32>
      %c0_15 = arith.constant 0 : index
      %c0_16 = arith.constant 0 : index
      %c0_17 = arith.constant 0 : index
      %18 = vector.load %arg6[%c0_15, %c0_16, %c0_17] : memref<1x1x256xf32, #tpu.memory_space<vmem>>, vector<1x1x256xf32>
      tpu.vector_store %arg6[%c0_15, %c0_16, %c0_17], %17 {strides = array<i32>} : memref<1x1x256xf32, #tpu.memory_space<vmem>>, vector<1x1x256xf32>,
      %19 = arith.mulf %12, %12 : vector<16x256xf32>
      %cst_18 = arith.constant dense<0.000000e+00> : vector<256xf32>
      %20 = vector.multi_reduction <add>, %19, %cst_18 [0] : vector<16x256xf32> to vector<256xf32>
      %21 = vector.shape_cast %20 : vector<256xf32> to vector<1x256xf32>
      %22 = vector.shape_cast %21 : vector<1x256xf32> to vector<1x1x256xf32>
      %c0_19 = arith.constant 0 : index
      %c0_20 = arith.constant 0 : index
      %c0_21 = arith.constant 0 : index
      %23 = vector.load %arg7[%c0_19, %c0_20, %c0_21] : memref<1x1x256xf32, #tpu.memory_space<vmem>>, vector<1x1x256xf32>
      tpu.vector_store %arg7[%c0_19, %c0_20, %c0_21], %22 {strides = array<i32>} : memref<1x1x256xf32, #tpu.memory_space<vmem>>, vector<1x1x256xf32>,
    } else {
    }
    return
  }
  func.func @transform_0(%arg0: i32, %arg1: i32, %arg2: i32) -> (i32, i32) {
    %c0_i32 = arith.constant 0 : i32
    return %arg0, %arg2 : i32, i32
  }
  func.func @transform_1(%arg0: i32, %arg1: i32, %arg2: i32) -> (i32, i32) {
    %c0_i32 = arith.constant 0 : i32
    return %arg2, %arg1 : i32, i32
  }
  func.func @transform_2(%arg0: i32, %arg1: i32, %arg2: i32) -> (i32, i32) {
    %c0_i32 = arith.constant 0 : i32
    return %arg0, %arg1 : i32, i32
  }
  func.func @transform_3(%arg0: i32, %arg1: i32, %arg2: i32) -> (i32, i32, i32) {
    %c0_i32 = arith.constant 0 : i32
    %c0_i32_0 = arith.constant 0 : i32
    return %arg0, %c0_i32, %arg1 : i32, i32, i32
  }
  func.func @transform_4(%arg0: i32, %arg1: i32, %arg2: i32) -> (i32, i32, i32) {
    %c0_i32 = arith.constant 0 : i32
    %c0_i32_0 = arith.constant 0 : i32
    return %arg0, %c0_i32, %arg1 : i32, i32, i32
  }
}

module attributes {stable_mosaic.version = 11 : i64} {
  func.func @kern(%arg0: i32, %arg1: memref<16x512xbf16, #tpu.memory_space<vmem>>, %arg2: memref<1x512xf32, #tpu.memory_space<vmem>>, %arg3: memref<1x512xf32, #tpu.memory_space<vmem>>, %arg4: memref<16x512xbf16, #tpu.memory_space<vmem>>) attributes {dimension_semantics = [#tpu.dimension_semantics<parallel>], iteration_bounds = array<i64: 1>, scalar_prefetch = 0 : i64, scratch_operands = 0 : i64, tpu.core_type = #tpu.core_type<tc>, window_params = [{transform_indices = @transform_0, window_bounds = array<i64: 16, 512>}, {pipeline_mode = #tpu.pipeline_mode<synchronous>, transform_indices = @transform_1, window_bounds = array<i64: 1, 512>}, {pipeline_mode = #tpu.pipeline_mode<synchronous>, transform_indices = @transform_2, window_bounds = array<i64: 1, 512>}, {transform_indices = @transform_3, window_bounds = array<i64: 16, 512>}]} {
    %c0 = arith.constant 0 : index
    %c0_0 = arith.constant 0 : index
    %0 = vector.load %arg1[%c0, %c0_0] : memref<16x512xbf16, #tpu.memory_space<vmem>>, vector<16x512xbf16>
    %1 = arith.extf %0 : vector<16x512xbf16> to vector<16x512xf32>
    %c0_1 = arith.constant 0 : index
    %c0_2 = arith.constant 0 : index
    %2 = vector.load %arg2[%c0_1, %c0_2] : memref<1x512xf32, #tpu.memory_space<vmem>>, vector<1x512xf32>
    %3 = vector.broadcast %2 : vector<1x512xf32> to vector<16x512xf32>
    %4 = arith.mulf %1, %3 : vector<16x512xf32>
    %c0_3 = arith.constant 0 : index
    %c0_4 = arith.constant 0 : index
    %5 = vector.load %arg3[%c0_3, %c0_4] : memref<1x512xf32, #tpu.memory_space<vmem>>, vector<1x512xf32>
    %6 = vector.broadcast %5 : vector<1x512xf32> to vector<16x512xf32>
    %7 = arith.addf %4, %6 : vector<16x512xf32>
    %8 = arith.truncf %7 : vector<16x512xf32> to vector<16x512xbf16>
    %c0_5 = arith.constant 0 : index
    %c0_6 = arith.constant 0 : index
    %9 = vector.load %arg4[%c0_5, %c0_6] : memref<16x512xbf16, #tpu.memory_space<vmem>>, vector<16x512xbf16>
    tpu.vector_store %arg4[%c0_5, %c0_6], %8 {strides = array<i32>} : memref<16x512xbf16, #tpu.memory_space<vmem>>, vector<16x512xbf16>,
    return
  }
  func.func @transform_0(%arg0: i32) -> (i32, i32) {
    %c0_i32 = arith.constant 0 : i32
    %c0_i32_0 = arith.constant 0 : i32
    return %arg0, %c0_i32 : i32, i32
  }
  func.func @transform_1(%arg0: i32) -> (i32, i32) {
    %c0_i32 = arith.constant 0 : i32
    %c0_i32_0 = arith.constant 0 : i32
    %c0_i32_1 = arith.constant 0 : i32
    return %c0_i32, %c0_i32_0 : i32, i32
  }
  func.func @transform_2(%arg0: i32) -> (i32, i32) {
    %c0_i32 = arith.constant 0 : i32
    %c0_i32_0 = arith.constant 0 : i32
    %c0_i32_1 = arith.constant 0 : i32
    return %c0_i32, %c0_i32_0 : i32, i32
  }
  func.func @transform_3(%arg0: i32) -> (i32, i32) {
    %c0_i32 = arith.constant 0 : i32
    %c0_i32_0 = arith.constant 0 : i32
    return %arg0, %c0_i32 : i32, i32
  }
}

module attributes {stable_mosaic.version = 11 : i64} {
  func.func @_conv_bn_matmul_kernel(%arg0: i32, %arg1: i32, %arg2: i32, %arg3: memref<16x256xbf16, #tpu.memory_space<vmem>>, %arg4: memref<256x256xbf16, #tpu.memory_space<vmem>>, %arg5: memref<16x256xbf16, #tpu.memory_space<vmem>>, %arg6: memref<1x1x256xf32, #tpu.memory_space<vmem>>, %arg7: memref<1x1x256xf32, #tpu.memory_space<vmem>>, %arg8: memref<16x256xf32, #tpu.memory_space<vmem>>) attributes {dimension_semantics = [#tpu.dimension_semantics<parallel>, #tpu.dimension_semantics<parallel>, #tpu.dimension_semantics<arbitrary>], iteration_bounds = array<i64: 1, 2, 9>, scalar_prefetch = 0 : i64, scratch_operands = 1 : i64, tpu.core_type = #tpu.core_type<tc>, window_params = [{transform_indices = @transform_0, window_bounds = array<i64: 16, 256>}, {transform_indices = @transform_1, window_bounds = array<i64: 256, 256>}, {transform_indices = @transform_2, window_bounds = array<i64: 16, 256>}, {transform_indices = @transform_3, window_bounds = array<i64: 1, 1, 256>}, {transform_indices = @transform_4, window_bounds = array<i64: 1, 1, 256>}]} {
    %c0_i32 = arith.constant 0 : i32
    %0 = arith.cmpi eq, %arg2, %c0_i32 : i32
    %1 = arith.extui %0 : i1 to i32
    %c0_i32_0 = arith.constant 0 : i32
    %2 = arith.cmpi ne, %1, %c0_i32_0 : i32
    scf.if %2 {
      %cst_9 = arith.constant 0.000000e+00 : f32
      %12 = vector.broadcast %cst_9 : f32 to vector<16x256xf32>
      %c0_10 = arith.constant 0 : index
      %c0_11 = arith.constant 0 : index
      %13 = vector.load %arg8[%c0_10, %c0_11] : memref<16x256xf32, #tpu.memory_space<vmem>>, vector<16x256xf32>
      tpu.vector_store %arg8[%c0_10, %c0_11], %12 {strides = array<i32>} : memref<16x256xf32, #tpu.memory_space<vmem>>, vector<16x256xf32>,
    } else {
    }
    %c0 = arith.constant 0 : index
    %c0_1 = arith.constant 0 : index
    %3 = vector.load %arg8[%c0, %c0_1] : memref<16x256xf32, #tpu.memory_space<vmem>>, vector<16x256xf32>
    %c0_2 = arith.constant 0 : index
    %c0_3 = arith.constant 0 : index
    %4 = vector.load %arg3[%c0_2, %c0_3] : memref<16x256xbf16, #tpu.memory_space<vmem>>, vector<16x256xbf16>
    %c0_4 = arith.constant 0 : index
    %c0_5 = arith.constant 0 : index
    %5 = vector.load %arg4[%c0_4, %c0_5] : memref<256x256xbf16, #tpu.memory_space<vmem>>, vector<256x256xbf16>
    %cst = arith.constant dense<0.000000e+00> : vector<16x256xf32>
    %6 = tpu.matmul %4, %5, %cst {dimension_numbers = #tpu.dot_dimension_numbers<[1], [0], [0], [1], [0, 0, 1, 1], [], []>} : vector<16x256xbf16>, vector<256x256xbf16>, vector<16x256xf32> -> vector<16x256xf32>
    %7 = arith.addf %3, %6 : vector<16x256xf32>
    %c0_6 = arith.constant 0 : index
    %c0_7 = arith.constant 0 : index
    %8 = vector.load %arg8[%c0_6, %c0_7] : memref<16x256xf32, #tpu.memory_space<vmem>>, vector<16x256xf32>
    tpu.vector_store %arg8[%c0_6, %c0_7], %7 {strides = array<i32>} : memref<16x256xf32, #tpu.memory_space<vmem>>, vector<16x256xf32>,
    %c8_i32 = arith.constant 8 : i32
    %9 = arith.cmpi eq, %arg2, %c8_i32 : i32
    %10 = arith.extui %9 : i1 to i32
    %c0_i32_8 = arith.constant 0 : i32
    %11 = arith.cmpi ne, %10, %c0_i32_8 : i32
    scf.if %11 {
      %c0_9 = arith.constant 0 : index
      %c0_10 = arith.constant 0 : index
      %12 = vector.load %arg8[%c0_9, %c0_10] : memref<16x256xf32, #tpu.memory_space<vmem>>, vector<16x256xf32>
      %13 = arith.truncf %12 : vector<16x256xf32> to vector<16x256xbf16>
      %c0_11 = arith.constant 0 : index
      %c0_12 = arith.constant 0 : index
      %14 = vector.load %arg5[%c0_11, %c0_12] : memref<16x256xbf16, #tpu.memory_space<vmem>>, vector<16x256xbf16>
      tpu.vector_store %arg5[%c0_11, %c0_12], %13 {strides = array<i32>} : memref<16x256xbf16, #tpu.memory_space<vmem>>, vector<16x256xbf16>,
      %cst_13 = arith.constant dense<0.000000e+00> : vector<256xf32>
      %15 = vector.multi_reduction <add>, %12, %cst_13 [0] : vector<16x256xf32> to vector<256xf32>
      %16 = vector.shape_cast %15 : vector<256xf32> to vector<1x256xf32>
      %17 = vector.shape_cast %16 : vector<1x256xf32> to vector<1x1x256xf32>
      %c0_14 = arith.constant 0 : index
      %c0_15 = arith.constant 0 : index
      %c0_16 = arith.constant 0 : index
      %18 = vector.load %arg6[%c0_14, %c0_15, %c0_16] : memref<1x1x256xf32, #tpu.memory_space<vmem>>, vector<1x1x256xf32>
      tpu.vector_store %arg6[%c0_14, %c0_15, %c0_16], %17 {strides = array<i32>} : memref<1x1x256xf32, #tpu.memory_space<vmem>>, vector<1x1x256xf32>,
      %19 = arith.mulf %12, %12 : vector<16x256xf32>
      %cst_17 = arith.constant dense<0.000000e+00> : vector<256xf32>
      %20 = vector.multi_reduction <add>, %19, %cst_17 [0] : vector<16x256xf32> to vector<256xf32>
      %21 = vector.shape_cast %20 : vector<256xf32> to vector<1x256xf32>
      %22 = vector.shape_cast %21 : vector<1x256xf32> to vector<1x1x256xf32>
      %c0_18 = arith.constant 0 : index
      %c0_19 = arith.constant 0 : index
      %c0_20 = arith.constant 0 : index
      %23 = vector.load %arg7[%c0_18, %c0_19, %c0_20] : memref<1x1x256xf32, #tpu.memory_space<vmem>>, vector<1x1x256xf32>
      tpu.vector_store %arg7[%c0_18, %c0_19, %c0_20], %22 {strides = array<i32>} : memref<1x1x256xf32, #tpu.memory_space<vmem>>, vector<1x1x256xf32>,
    } else {
    }
    return
  }
  func.func @transform_0(%arg0: i32, %arg1: i32, %arg2: i32) -> (i32, i32) {
    %c0_i32 = arith.constant 0 : i32
    return %arg0, %arg2 : i32, i32
  }
  func.func @transform_1(%arg0: i32, %arg1: i32, %arg2: i32) -> (i32, i32) {
    %c0_i32 = arith.constant 0 : i32
    return %arg2, %arg1 : i32, i32
  }
  func.func @transform_2(%arg0: i32, %arg1: i32, %arg2: i32) -> (i32, i32) {
    %c0_i32 = arith.constant 0 : i32
    return %arg0, %arg1 : i32, i32
  }
  func.func @transform_3(%arg0: i32, %arg1: i32, %arg2: i32) -> (i32, i32, i32) {
    %c0_i32 = arith.constant 0 : i32
    %c0_i32_0 = arith.constant 0 : i32
    return %arg0, %c0_i32, %arg1 : i32, i32, i32
  }
  func.func @transform_4(%arg0: i32, %arg1: i32, %arg2: i32) -> (i32, i32, i32) {
    %c0_i32 = arith.constant 0 : i32
    %c0_i32_0 = arith.constant 0 : i32
    return %arg0, %c0_i32, %arg1 : i32, i32, i32
  }
}

module attributes {stable_mosaic.version = 11 : i64} {
  func.func @kern(%arg0: i32, %arg1: memref<16x512xbf16, #tpu.memory_space<vmem>>, %arg2: memref<1x512xf32, #tpu.memory_space<vmem>>, %arg3: memref<1x512xf32, #tpu.memory_space<vmem>>, %arg4: memref<16x512xbf16, #tpu.memory_space<vmem>>) attributes {dimension_semantics = [#tpu.dimension_semantics<parallel>], iteration_bounds = array<i64: 1>, scalar_prefetch = 0 : i64, scratch_operands = 0 : i64, tpu.core_type = #tpu.core_type<tc>, window_params = [{transform_indices = @transform_0, window_bounds = array<i64: 16, 512>}, {pipeline_mode = #tpu.pipeline_mode<synchronous>, transform_indices = @transform_1, window_bounds = array<i64: 1, 512>}, {pipeline_mode = #tpu.pipeline_mode<synchronous>, transform_indices = @transform_2, window_bounds = array<i64: 1, 512>}, {transform_indices = @transform_3, window_bounds = array<i64: 16, 512>}]} {
    %c0 = arith.constant 0 : index
    %c0_0 = arith.constant 0 : index
    %0 = vector.load %arg1[%c0, %c0_0] : memref<16x512xbf16, #tpu.memory_space<vmem>>, vector<16x512xbf16>
    %1 = arith.extf %0 : vector<16x512xbf16> to vector<16x512xf32>
    %c0_1 = arith.constant 0 : index
    %c0_2 = arith.constant 0 : index
    %2 = vector.load %arg2[%c0_1, %c0_2] : memref<1x512xf32, #tpu.memory_space<vmem>>, vector<1x512xf32>
    %3 = vector.broadcast %2 : vector<1x512xf32> to vector<16x512xf32>
    %4 = arith.mulf %1, %3 : vector<16x512xf32>
    %c0_3 = arith.constant 0 : index
    %c0_4 = arith.constant 0 : index
    %5 = vector.load %arg3[%c0_3, %c0_4] : memref<1x512xf32, #tpu.memory_space<vmem>>, vector<1x512xf32>
    %6 = vector.broadcast %5 : vector<1x512xf32> to vector<16x512xf32>
    %7 = arith.addf %4, %6 : vector<16x512xf32>
    %cst = arith.constant 0.000000e+00 : f32
    %8 = vector.broadcast %cst : f32 to vector<16x512xf32>
    %9 = arith.maximumf %7, %8 : vector<16x512xf32>
    %10 = arith.truncf %9 : vector<16x512xf32> to vector<16x512xbf16>
    %c0_5 = arith.constant 0 : index
    %c0_6 = arith.constant 0 : index
    %11 = vector.load %arg4[%c0_5, %c0_6] : memref<16x512xbf16, #tpu.memory_space<vmem>>, vector<16x512xbf16>
    tpu.vector_store %arg4[%c0_5, %c0_6], %10 {strides = array<i32>} : memref<16x512xbf16, #tpu.memory_space<vmem>>, vector<16x512xbf16>,
    return
  }
  func.func @transform_0(%arg0: i32) -> (i32, i32) {
    %c0_i32 = arith.constant 0 : i32
    %c0_i32_0 = arith.constant 0 : i32
    return %arg0, %c0_i32 : i32, i32
  }
  func.func @transform_1(%arg0: i32) -> (i32, i32) {
    %c0_i32 = arith.constant 0 : i32
    %c0_i32_0 = arith.constant 0 : i32
    %c0_i32_1 = arith.constant 0 : i32
    return %c0_i32, %c0_i32_0 : i32, i32
  }
  func.func @transform_2(%arg0: i32) -> (i32, i32) {
    %c0_i32 = arith.constant 0 : i32
    %c0_i32_0 = arith.constant 0 : i32
    %c0_i32_1 = arith.constant 0 : i32
    return %c0_i32, %c0_i32_0 : i32, i32
  }
  func.func @transform_3(%arg0: i32) -> (i32, i32) {
    %c0_i32 = arith.constant 0 : i32
    %c0_i32_0 = arith.constant 0 : i32
    return %arg0, %c0_i32 : i32, i32
  }
}

module attributes {stable_mosaic.version = 11 : i64} {
  func.func @_conv_bn_matmul_kernel(%arg0: i32, %arg1: i32, %arg2: i32, %arg3: memref<16x256xbf16, #tpu.memory_space<vmem>>, %arg4: memref<256x256xbf16, #tpu.memory_space<vmem>>, %arg5: memref<16x256xbf16, #tpu.memory_space<vmem>>, %arg6: memref<1x1x256xf32, #tpu.memory_space<vmem>>, %arg7: memref<1x1x256xf32, #tpu.memory_space<vmem>>, %arg8: memref<16x256xf32, #tpu.memory_space<vmem>>) attributes {dimension_semantics = [#tpu.dimension_semantics<parallel>, #tpu.dimension_semantics<parallel>, #tpu.dimension_semantics<arbitrary>], iteration_bounds = array<i64: 1, 2, 18>, scalar_prefetch = 0 : i64, scratch_operands = 1 : i64, tpu.core_type = #tpu.core_type<tc>, window_params = [{transform_indices = @transform_0, window_bounds = array<i64: 16, 256>}, {transform_indices = @transform_1, window_bounds = array<i64: 256, 256>}, {transform_indices = @transform_2, window_bounds = array<i64: 16, 256>}, {transform_indices = @transform_3, window_bounds = array<i64: 1, 1, 256>}, {transform_indices = @transform_4, window_bounds = array<i64: 1, 1, 256>}]} {
    %c0_i32 = arith.constant 0 : i32
    %0 = arith.cmpi eq, %arg2, %c0_i32 : i32
    %1 = arith.extui %0 : i1 to i32
    %c0_i32_0 = arith.constant 0 : i32
    %2 = arith.cmpi ne, %1, %c0_i32_0 : i32
    scf.if %2 {
      %cst_9 = arith.constant 0.000000e+00 : f32
      %12 = vector.broadcast %cst_9 : f32 to vector<16x256xf32>
      %c0_10 = arith.constant 0 : index
      %c0_11 = arith.constant 0 : index
      %13 = vector.load %arg8[%c0_10, %c0_11] : memref<16x256xf32, #tpu.memory_space<vmem>>, vector<16x256xf32>
      tpu.vector_store %arg8[%c0_10, %c0_11], %12 {strides = array<i32>} : memref<16x256xf32, #tpu.memory_space<vmem>>, vector<16x256xf32>,
    } else {
    }
    %c0 = arith.constant 0 : index
    %c0_1 = arith.constant 0 : index
    %3 = vector.load %arg8[%c0, %c0_1] : memref<16x256xf32, #tpu.memory_space<vmem>>, vector<16x256xf32>
    %c0_2 = arith.constant 0 : index
    %c0_3 = arith.constant 0 : index
    %4 = vector.load %arg3[%c0_2, %c0_3] : memref<16x256xbf16, #tpu.memory_space<vmem>>, vector<16x256xbf16>
    %c0_4 = arith.constant 0 : index
    %c0_5 = arith.constant 0 : index
    %5 = vector.load %arg4[%c0_4, %c0_5] : memref<256x256xbf16, #tpu.memory_space<vmem>>, vector<256x256xbf16>
    %cst = arith.constant dense<0.000000e+00> : vector<16x256xf32>
    %6 = tpu.matmul %4, %5, %cst {dimension_numbers = #tpu.dot_dimension_numbers<[1], [0], [0], [1], [0, 0, 1, 1], [], []>} : vector<16x256xbf16>, vector<256x256xbf16>, vector<16x256xf32> -> vector<16x256xf32>
    %7 = arith.addf %3, %6 : vector<16x256xf32>
    %c0_6 = arith.constant 0 : index
    %c0_7 = arith.constant 0 : index
    %8 = vector.load %arg8[%c0_6, %c0_7] : memref<16x256xf32, #tpu.memory_space<vmem>>, vector<16x256xf32>
    tpu.vector_store %arg8[%c0_6, %c0_7], %7 {strides = array<i32>} : memref<16x256xf32, #tpu.memory_space<vmem>>, vector<16x256xf32>,
    %c17_i32 = arith.constant 17 : i32
    %9 = arith.cmpi eq, %arg2, %c17_i32 : i32
    %10 = arith.extui %9 : i1 to i32
    %c0_i32_8 = arith.constant 0 : i32
    %11 = arith.cmpi ne, %10, %c0_i32_8 : i32
    scf.if %11 {
      %c0_9 = arith.constant 0 : index
      %c0_10 = arith.constant 0 : index
      %12 = vector.load %arg8[%c0_9, %c0_10] : memref<16x256xf32, #tpu.memory_space<vmem>>, vector<16x256xf32>
      %13 = arith.truncf %12 : vector<16x256xf32> to vector<16x256xbf16>
      %c0_11 = arith.constant 0 : index
      %c0_12 = arith.constant 0 : index
      %14 = vector.load %arg5[%c0_11, %c0_12] : memref<16x256xbf16, #tpu.memory_space<vmem>>, vector<16x256xbf16>
      tpu.vector_store %arg5[%c0_11, %c0_12], %13 {strides = array<i32>} : memref<16x256xbf16, #tpu.memory_space<vmem>>, vector<16x256xbf16>,
      %cst_13 = arith.constant dense<0.000000e+00> : vector<256xf32>
      %15 = vector.multi_reduction <add>, %12, %cst_13 [0] : vector<16x256xf32> to vector<256xf32>
      %16 = vector.shape_cast %15 : vector<256xf32> to vector<1x256xf32>
      %17 = vector.shape_cast %16 : vector<1x256xf32> to vector<1x1x256xf32>
      %c0_14 = arith.constant 0 : index
      %c0_15 = arith.constant 0 : index
      %c0_16 = arith.constant 0 : index
      %18 = vector.load %arg6[%c0_14, %c0_15, %c0_16] : memref<1x1x256xf32, #tpu.memory_space<vmem>>, vector<1x1x256xf32>
      tpu.vector_store %arg6[%c0_14, %c0_15, %c0_16], %17 {strides = array<i32>} : memref<1x1x256xf32, #tpu.memory_space<vmem>>, vector<1x1x256xf32>,
      %19 = arith.mulf %12, %12 : vector<16x256xf32>
      %cst_17 = arith.constant dense<0.000000e+00> : vector<256xf32>
      %20 = vector.multi_reduction <add>, %19, %cst_17 [0] : vector<16x256xf32> to vector<256xf32>
      %21 = vector.shape_cast %20 : vector<256xf32> to vector<1x256xf32>
      %22 = vector.shape_cast %21 : vector<1x256xf32> to vector<1x1x256xf32>
      %c0_18 = arith.constant 0 : index
      %c0_19 = arith.constant 0 : index
      %c0_20 = arith.constant 0 : index
      %23 = vector.load %arg7[%c0_18, %c0_19, %c0_20] : memref<1x1x256xf32, #tpu.memory_space<vmem>>, vector<1x1x256xf32>
      tpu.vector_store %arg7[%c0_18, %c0_19, %c0_20], %22 {strides = array<i32>} : memref<1x1x256xf32, #tpu.memory_space<vmem>>, vector<1x1x256xf32>,
    } else {
    }
    return
  }
  func.func @transform_0(%arg0: i32, %arg1: i32, %arg2: i32) -> (i32, i32) {
    %c0_i32 = arith.constant 0 : i32
    return %arg0, %arg2 : i32, i32
  }
  func.func @transform_1(%arg0: i32, %arg1: i32, %arg2: i32) -> (i32, i32) {
    %c0_i32 = arith.constant 0 : i32
    return %arg2, %arg1 : i32, i32
  }
  func.func @transform_2(%arg0: i32, %arg1: i32, %arg2: i32) -> (i32, i32) {
    %c0_i32 = arith.constant 0 : i32
    return %arg0, %arg1 : i32, i32
  }
  func.func @transform_3(%arg0: i32, %arg1: i32, %arg2: i32) -> (i32, i32, i32) {
    %c0_i32 = arith.constant 0 : i32
    %c0_i32_0 = arith.constant 0 : i32
    return %arg0, %c0_i32, %arg1 : i32, i32, i32
  }
  func.func @transform_4(%arg0: i32, %arg1: i32, %arg2: i32) -> (i32, i32, i32) {
    %c0_i32 = arith.constant 0 : i32
    %c0_i32_0 = arith.constant 0 : i32
    return %arg0, %c0_i32, %arg1 : i32, i32, i32
  }
}

module attributes {stable_mosaic.version = 11 : i64} {
  func.func @kern(%arg0: i32, %arg1: memref<16x512xbf16, #tpu.memory_space<vmem>>, %arg2: memref<1x512xf32, #tpu.memory_space<vmem>>, %arg3: memref<1x512xf32, #tpu.memory_space<vmem>>, %arg4: memref<16x512xbf16, #tpu.memory_space<vmem>>, %arg5: memref<16x512xbf16, #tpu.memory_space<vmem>>) attributes {dimension_semantics = [#tpu.dimension_semantics<parallel>], iteration_bounds = array<i64: 1>, scalar_prefetch = 0 : i64, scratch_operands = 0 : i64, tpu.core_type = #tpu.core_type<tc>, window_params = [{transform_indices = @transform_0, window_bounds = array<i64: 16, 512>}, {pipeline_mode = #tpu.pipeline_mode<synchronous>, transform_indices = @transform_1, window_bounds = array<i64: 1, 512>}, {pipeline_mode = #tpu.pipeline_mode<synchronous>, transform_indices = @transform_2, window_bounds = array<i64: 1, 512>}, {transform_indices = @transform_3, window_bounds = array<i64: 16, 512>}, {transform_indices = @transform_4, window_bounds = array<i64: 16, 512>}]} {
    %c0 = arith.constant 0 : index
    %c0_0 = arith.constant 0 : index
    %0 = vector.load %arg1[%c0, %c0_0] : memref<16x512xbf16, #tpu.memory_space<vmem>>, vector<16x512xbf16>
    %1 = arith.extf %0 : vector<16x512xbf16> to vector<16x512xf32>
    %c0_1 = arith.constant 0 : index
    %c0_2 = arith.constant 0 : index
    %2 = vector.load %arg2[%c0_1, %c0_2] : memref<1x512xf32, #tpu.memory_space<vmem>>, vector<1x512xf32>
    %3 = vector.broadcast %2 : vector<1x512xf32> to vector<16x512xf32>
    %4 = arith.mulf %1, %3 : vector<16x512xf32>
    %c0_3 = arith.constant 0 : index
    %c0_4 = arith.constant 0 : index
    %5 = vector.load %arg3[%c0_3, %c0_4] : memref<1x512xf32, #tpu.memory_space<vmem>>, vector<1x512xf32>
    %6 = vector.broadcast %5 : vector<1x512xf32> to vector<16x512xf32>
    %7 = arith.addf %4, %6 : vector<16x512xf32>
    %c0_5 = arith.constant 0 : index
    %c0_6 = arith.constant 0 : index
    %8 = vector.load %arg4[%c0_5, %c0_6] : memref<16x512xbf16, #tpu.memory_space<vmem>>, vector<16x512xbf16>
    %9 = arith.extf %8 : vector<16x512xbf16> to vector<16x512xf32>
    %10 = arith.addf %7, %9 : vector<16x512xf32>
    %cst = arith.constant 0.000000e+00 : f32
    %11 = vector.broadcast %cst : f32 to vector<16x512xf32>
    %12 = arith.maximumf %10, %11 : vector<16x512xf32>
    %13 = arith.truncf %12 : vector<16x512xf32> to vector<16x512xbf16>
    %c0_7 = arith.constant 0 : index
    %c0_8 = arith.constant 0 : index
    %14 = vector.load %arg5[%c0_7, %c0_8] : memref<16x512xbf16, #tpu.memory_space<vmem>>, vector<16x512xbf16>
    tpu.vector_store %arg5[%c0_7, %c0_8], %13 {strides = array<i32>} : memref<16x512xbf16, #tpu.memory_space<vmem>>, vector<16x512xbf16>,
    return
  }
  func.func @transform_0(%arg0: i32) -> (i32, i32) {
    %c0_i32 = arith.constant 0 : i32
    %c0_i32_0 = arith.constant 0 : i32
    return %arg0, %c0_i32 : i32, i32
  }
  func.func @transform_1(%arg0: i32) -> (i32, i32) {
    %c0_i32 = arith.constant 0 : i32
    %c0_i32_0 = arith.constant 0 : i32
    %c0_i32_1 = arith.constant 0 : i32
    return %c0_i32, %c0_i32_0 : i32, i32
  }
  func.func @transform_2(%arg0: i32) -> (i32, i32) {
    %c0_i32 = arith.constant 0 : i32
    %c0_i32_0 = arith.constant 0 : i32
    %c0_i32_1 = arith.constant 0 : i32
    return %c0_i32, %c0_i32_0 : i32, i32
  }
  func.func @transform_3(%arg0: i32) -> (i32, i32) {
    %c0_i32 = arith.constant 0 : i32
    %c0_i32_0 = arith.constant 0 : i32
    return %arg0, %c0_i32 : i32, i32
  }
  func.func @transform_4(%arg0: i32) -> (i32, i32) {
    %c0_i32 = arith.constant 0 : i32
    %c0_i32_0 = arith.constant 0 : i32
    return %arg0, %c0_i32 : i32, i32
  }
}

module attributes {stable_mosaic.version = 11 : i64} {
  func.func @_avgpool_kernel(%arg0: i32, %arg1: memref<1x1x512xbf16, #tpu.memory_space<vmem>>, %arg2: memref<1x1x512xf32, #tpu.memory_space<vmem>>) attributes {dimension_semantics = [#tpu.dimension_semantics<parallel>], iteration_bounds = array<i64: 2>, scalar_prefetch = 0 : i64, scratch_operands = 0 : i64, tpu.core_type = #tpu.core_type<tc>, window_params = [{transform_indices = @transform_0, window_bounds = array<i64: 1, 1, 512>}, {transform_indices = @transform_1, window_bounds = array<i64: 1, 1, 512>}]} {
    %c0 = arith.constant 0 : index
    %c0_0 = arith.constant 0 : index
    %c0_1 = arith.constant 0 : index
    %0 = vector.load %arg1[%c0, %c0_0, %c0_1] : memref<1x1x512xbf16, #tpu.memory_space<vmem>>, vector<1x1x512xbf16>
    %1 = arith.extf %0 : vector<1x1x512xbf16> to vector<1x1x512xf32>
    %cst = arith.constant dense<0.000000e+00> : vector<1x512xf32>
    %2 = vector.multi_reduction <add>, %1, %cst [1] : vector<1x1x512xf32> to vector<1x512xf32>
    %3 = vector.shape_cast %2 : vector<1x512xf32> to vector<1x1x512xf32>
    %cst_2 = arith.constant 1.000000e+00 : f32
    %4 = vector.broadcast %cst_2 : f32 to vector<1x1x512xf32>
    %5 = arith.divf %3, %4 : vector<1x1x512xf32>
    %c0_3 = arith.constant 0 : index
    %c0_4 = arith.constant 0 : index
    %c0_5 = arith.constant 0 : index
    %6 = vector.load %arg2[%c0_3, %c0_4, %c0_5] : memref<1x1x512xf32, #tpu.memory_space<vmem>>, vector<1x1x512xf32>
    tpu.vector_store %arg2[%c0_3, %c0_4, %c0_5], %5 {strides = array<i32>} : memref<1x1x512xf32, #tpu.memory_space<vmem>>, vector<1x1x512xf32>,
    return
  }
  func.func @transform_0(%arg0: i32) -> (i32, i32, i32) {
    %c0_i32 = arith.constant 0 : i32
    %c0_i32_0 = arith.constant 0 : i32
    %c0_i32_1 = arith.constant 0 : i32
    return %arg0, %c0_i32, %c0_i32_0 : i32, i32, i32
  }
  func.func @transform_1(%arg0: i32) -> (i32, i32, i32) {
    %c0_i32 = arith.constant 0 : i32
    %c0_i32_0 = arith.constant 0 : i32
    %c0_i32_1 = arith.constant 0 : i32
    return %arg0, %c0_i32, %c0_i32_0 : i32, i32, i32
  }
}

</mosaic_0001>

<bundles_post_ra>
// kernel: resnet18_forward.42
= control target key start
LH: loop header
LB: loop body
LE: loop exit
PB: predicated region body
PF: predicated region fallthrough
CT: control target
= control target key end

     0   :  { %s1888_s15 = smov 0   ;;  %s1890_s16 = smov 0   ;;  %s2120_s0 = inlined_call_operand.vmem [shape: bf16[512,256], index: 0, kind: input, shape index: {}]   ;;  %s2121_s1 = inlined_call_operand.vmem [shape: bf16[256,128], index: 1, kind: input, shape index: {}]   ;;  %s2122_s2 = inlined_call_operand.vmem [shape: bf16[512,128], index: 2, kind: output, shape index: {0}]   ;;  %s2123_s3 = inlined_call_operand.vmem [shape: f32[2,1,128], index: 3, kind: output, shape index: {1}]   ;;  %s2124_s4 = inlined_call_operand.vmem [shape: f32[2,1,128], index: 4, kind: output, shape index: {2}]  }
   0x1   :  { %s1892_s17 = smov 0  }
   0x2 LB: > { %s34_s18 = sadd.s32 1, %s1857_s16  ;;  %p1407_p0 = scmp.ge.s32.totalorder %s1861_s17, 1  ;;  %s1861_s17 = sphi %s1892_s17, %s15_s17   ;;  %s1857_s16 = sphi %s1890_s16, %s2126_s16   ;;  %s1853_s15 = sphi %s1888_s15, %s2125_s15  }
   0x3   : > { %p36_p1 = scmp.ge.s32.totalorder %s34_s18, 2  ;;  %p217_p2 = scmp.lt.s32.totalorder %s1861_s17, 3 }
   0x5   : > { %s2128_s18 = smov (%p36_p1, %s34_s18), 0  ;;  %p218_p3 = pnand %p1407_p0, %p217_p2 }
   0x6   : > { %v1775_v0 = vld [vmem:[%s2121_s1 + $0x40] sm:$0xff] (!%p218_p3)   ;;  %s1408_s21 = sshll.u32 (!%p218_p3), %s1853_s15, 5  ;;  %v1777_v2 = vld [vmem:[%s2121_s1 + $0x48] sm:$0xff] (!%p218_p3)   ;;  %v1779_v4 = vld [vmem:[%s2121_s1 + $0x50] sm:$0xff] (!%p218_p3)   ;;  %p301_p5 = scmp.lt.s32.totalorder (!%p218_p3), %s1853_s15, 1 }
   0x7   : > { %221 = sbr.rel (%p218_p3) target bundleno = 361 (0x169), region = 28  ;;  %v1776_v1 = vld [vmem:[%s2121_s1] sm:$0xff] (!%p218_p3)   ;;  %1623 = vmatprep.subr.bf16.mxu0 (!%p218_p3), %v1775_v0  ;;  %1735 = vmatprep.subr.bf16.mxu1 (!%p218_p3), %v1775_v0  ;;  %v1778_v3 = vld [vmem:[%s2121_s1 + $0x8] sm:$0xff] (!%p218_p3)   ;;  %p273_p4 = scmp.lt.s32.totalorder (!%p218_p3), %s1408_s21, 63  ;;  %v1780_v5 = vld [vmem:[%s2121_s1 + $0x10] sm:$0xff] (!%p218_p3)  }
   0x8   : > { %1624 = vmatpush3.bf16.msra.mxu0 (!%p218_p3), %v1776_v1  ;;  %1743 = vmatpush3.bf16.msra.mxu1 (!%p218_p3), %v1776_v1  ;;  %v1781_v6 = vld [vmem:[%s2121_s1 + $0x58] sm:$0xff] (!%p218_p3)   ;;  %v1783_v8 = vld [vmem:[%s2121_s1 + $0x60] sm:$0xff] (!%p218_p3)   ;;  %v1785_v10 = vld [vmem:[%s2121_s1 + $0x68] sm:$0xff] (!%p218_p3)  }
   0x9   : > { %1625 = vmatprep.subr.bf16.mxu0 (!%p218_p3), %v1777_v2  ;;  %1736 = vmatprep.subr.bf16.mxu1 (!%p218_p3), %v1777_v2  ;;  %v1782_v7 = vld [vmem:[%s2121_s1 + $0x18] sm:$0xff] (!%p218_p3)   ;;  %v1784_v9 = vld [vmem:[%s2121_s1 + $0x20] sm:$0xff] (!%p218_p3)   ;;  %v1786_v12 = vld [vmem:[%s2121_s1 + $0x28] sm:$0xff] (!%p218_p3)  }
   0xa   : > { %v1787_v13 = vld [vmem:[%s2121_s1 + $0x70] sm:$0xff] (!%p218_p3)   ;;  %v1789_v16 = vld [vmem:[%s2121_s1 + $0x78] sm:$0xff] (!%p218_p3)  }
   0xb   : > { %v1788_v15 = vld [vmem:[%s2121_s1 + $0x30] sm:$0xff] (!%p218_p3)   ;;  %v1790_v17 = vld [vmem:[%s2121_s1 + $0x38] sm:$0xff] (!%p218_p3)  }
   0xc   : > { %1626 = vmatpush3.bf16.msra.mxu0 (!%p218_p3), %v1778_v3  ;;  %1744 = vmatpush3.bf16.msra.mxu1 (!%p218_p3), %v1778_v3 }
   0xd   : > { %1627 = vmatprep.subr.bf16.mxu0 (!%p218_p3), %v1779_v4  ;;  %1737 = vmatprep.subr.bf16.mxu1 (!%p218_p3), %v1779_v4 }
   0xe   : > { %s2130_s21 = smov (!%p273_p4, %s1408_s21), 63  ;;  %s2132_s15 = smov (!%p301_p5, %s1853_s15), 1 }
   0xf   : > { %s1495_s10 = sshll.u32 %s2130_s21, 3  ;;  %s1412_s9 = sshll.u32 %s2130_s21, 2 }
  0x10   : > { %1628 = vmatpush3.bf16.msra.mxu0 %v1780_v5  ;;  %1745 = vmatpush3.bf16.msra.mxu1 %v1780_v5  ;;  %s1942_s19 = scalar_lea.vmem %s2120_s0, %s1495_s10  ;;  %s2003_s12 = scalar_lea.vmem %s2122_s2, %s1412_s9 }
  0x11   : > { %1629 = vmatprep.subr.bf16.mxu0 %v1781_v6  ;;  %1738 = vmatprep.subr.bf16.mxu1 %v1781_v6  ;;  %v1793_v11 = vld [vmem:[%s1942_s19 + $0x4] ss:$8 sps:$4 sm:$0xff]   ;;  %v1791_v18 = vld [vmem:[%s1942_s19] ss:$8 sps:$4 sm:$0xff]   ;;  %v1794_v19 = vld [vmem:[%s1942_s19 + $0x14] ss:$8 sps:$4 sm:$0xff]   ;;  %s306_s14 = scalar_lea.vmem %s2123_s3, %s2132_s15  ;;  %s312_s22 = scalar_lea.vmem %s2124_s4, %s2132_s15 }
  0x12   : > { %734 = vmatprep.mubr.bf16.mxu0 %v1793_v11  ;;  %v1805_v14 = vld [vmem:[%s1942_s19 + $0x84] ss:$8 sps:$4 sm:$0xff]   ;;  %v1803_v20 = vld [vmem:[%s1942_s19 + $0x80] ss:$8 sps:$4 sm:$0xff]   ;;  %v1809_v21 = vld [vmem:[%s1942_s19 + $0x94] ss:$8 sps:$4 sm:$0xff]  }
  0x13   : > { %798 = vmatprep.mubr.bf16.mxu1 %v1805_v14  ;;  %v1796_v22 = vld [vmem:[%s1942_s19 + $0x10] ss:$8 sps:$4 sm:$0xff]   ;;  %v1797_v23 = vld [vmem:[%s1942_s19 + $0x24] ss:$8 sps:$4 sm:$0xff]   ;;  %v1799_v26 = vld [vmem:[%s1942_s19 + $0x20] ss:$8 sps:$4 sm:$0xff]  }
  0x14   : > { %1630 = vmatpush3.bf16.msra.mxu0 %v1782_v7  ;;  %1746 = vmatpush3.bf16.msra.mxu1 %v1782_v7  ;;  %v1811_v24 = vld [vmem:[%s1942_s19 + $0x90] ss:$8 sps:$4 sm:$0xff]   ;;  %v1815_v25 = vld [vmem:[%s1942_s19 + $0xa4] ss:$8 sps:$4 sm:$0xff]   ;;  %v1800_v27 = vld [vmem:[%s1942_s19 + $0x34] ss:$8 sps:$4 sm:$0xff]  }
  0x15   : > { %1631 = vmatprep.subr.bf16.mxu0 %v1783_v8  ;;  %1739 = vmatprep.subr.bf16.mxu1 %v1783_v8  ;;  %v1817_v28 = vld [vmem:[%s1942_s19 + $0xa0] ss:$8 sps:$4 sm:$0xff]   ;;  %v1821_v29 = vld [vmem:[%s1942_s19 + $0xb4] ss:$8 sps:$4 sm:$0xff]   ;;  %v1802_v30 = vld [vmem:[%s1942_s19 + $0x30] ss:$8 sps:$4 sm:$0xff]  }
  0x16   : > { %v1806_v31 = vld [vmem:[%s1942_s19 + $0x44] ss:$8 sps:$4 sm:$0xff]   ;;  %v1823_v32 = vld [vmem:[%s1942_s19 + $0xb0] ss:$8 sps:$4 sm:$0xff]   ;;  %v1808_v34 = vld [vmem:[%s1942_s19 + $0x40] ss:$8 sps:$4 sm:$0xff]  }
  0x17   : > { %v1827_v33 = vld [vmem:[%s1942_s19 + $0xc4] ss:$8 sps:$4 sm:$0xff]   ;;  %v1812_v35 = vld [vmem:[%s1942_s19 + $0x54] ss:$8 sps:$4 sm:$0xff]   ;;  %v1829_v36 = vld [vmem:[%s1942_s19 + $0xc0] ss:$8 sps:$4 sm:$0xff]  }
  0x18   : > { %1632 = vmatpush3.bf16.msra.mxu0 %v1784_v9  ;;  %1747 = vmatpush3.bf16.msra.mxu1 %v1784_v9  ;;  %v1830_v37 = vld [vmem:[%s1942_s19 + $0xd4] ss:$8 sps:$4 sm:$0xff]   ;;  %v1814_v38 = vld [vmem:[%s1942_s19 + $0x50] ss:$8 sps:$4 sm:$0xff]   ;;  %v1818_v39 = vld [vmem:[%s1942_s19 + $0x64] ss:$8 sps:$4 sm:$0xff]  }
  0x19   : > { %1633 = vmatprep.subr.bf16.mxu0 %v1785_v10  ;;  %1740 = vmatprep.subr.bf16.mxu1 %v1785_v10  ;;  %v1832_v40 = vld [vmem:[%s1942_s19 + $0xd0] ss:$8 sps:$4 sm:$0xff]   ;;  %v1833_v41 = vld [vmem:[%s1942_s19 + $0xe4] ss:$8 sps:$4 sm:$0xff]   ;;  %v1820_v42 = vld [vmem:[%s1942_s19 + $0x60] ss:$8 sps:$4 sm:$0xff]  }
  0x1a   : > { %v1824_v43 = vld [vmem:[%s1942_s19 + $0x74] ss:$8 sps:$4 sm:$0xff]   ;;  %v1835_v44 = vld [vmem:[%s1942_s19 + $0xe0] ss:$8 sps:$4 sm:$0xff]   ;;  %v1826_v46 = vld [vmem:[%s1942_s19 + $0x70] ss:$8 sps:$4 sm:$0xff]  }
  0x1b   : > { %v1836_v45 = vld [vmem:[%s1942_s19 + $0xf4] ss:$8 sps:$4 sm:$0xff]   ;;  %v1838_v47 = vld [vmem:[%s1942_s19 + $0xf0] ss:$8 sps:$4 sm:$0xff]  }
  0x1c   : > { %1634 = vmatpush3.bf16.msra.mxu0 %v1786_v12  ;;  %1748 = vmatpush3.bf16.msra.mxu1 %v1786_v12 }
  0x1d   : > { %1635 = vmatprep.subr.bf16.mxu0 %v1787_v13  ;;  %1741 = vmatprep.subr.bf16.mxu1 %v1787_v13 }
  0x20   : > { %1636 = vmatpush3.bf16.msra.mxu0 %v1788_v15  ;;  %1749 = vmatpush3.bf16.msra.mxu1 %v1788_v15 }
  0x21   : > { %1637 = vmatprep.subr.bf16.mxu0 %v1789_v16  ;;  %1742 = vmatprep.subr.bf16.mxu1 %v1789_v16 }
  0x24   : > { %1638 = vmatpush3.bf16.msra.mxu0 %v1790_v17  ;;  %1750 = vmatpush3.bf16.msra.mxu1 %v1790_v17 }
  0x27   : > { %735 = vmatmul.mubr.bf16.vlgmr.msra.gmra.mrb[0].mxu0 %v1791_v18  ;;  %799 = vmatmul.mubr.bf16.vlgmr.msra.gmra.mrb[0].mxu1 %v1803_v20 }
  0x28   : > { %742 = vmatprep.mubr.bf16.mxu0 %v1794_v19  ;;  %806 = vmatprep.mubr.bf16.mxu1 %v1809_v21 }
  0x2f   : > { %743 = vmatmul.mubr.bf16.gmra.mrb[4].mxu0 %v1796_v22  ;;  %807 = vmatmul.mubr.bf16.gmra.mrb[4].mxu1 %v1811_v24 }
  0x30   : > { %750 = vmatprep.mubr.bf16.mxu0 %v1797_v23  ;;  %814 = vmatprep.mubr.bf16.mxu1 %v1815_v25 }
  0x37   : > { %751 = vmatmul.mubr.bf16.gmra.mrb[8].mxu0 %v1799_v26  ;;  %815 = vmatmul.mubr.bf16.gmra.mrb[8].mxu1 %v1817_v28 }
  0x38   : > { %758 = vmatprep.mubr.bf16.mxu0 %v1800_v27  ;;  %822 = vmatprep.mubr.bf16.mxu1 %v1821_v29 }
  0x3f   : > { %759 = vmatmul.mubr.bf16.gmra.mrb[12].mxu0 %v1802_v30  ;;  %823 = vmatmul.mubr.bf16.gmra.mrb[12].mxu1 %v1823_v32 }
  0x40   : > { %766 = vmatprep.mubr.bf16.mxu0 %v1806_v31  ;;  %830 = vmatprep.mubr.bf16.mxu1 %v1827_v33 }
  0x47   : > { %767 = vmatmul.mubr.bf16.gmra.mrb[16].mxu0 %v1808_v34  ;;  %831 = vmatmul.mubr.bf16.gmra.mrb[16].mxu1 %v1829_v36 }
  0x48   : > { %774 = vmatprep.mubr.bf16.mxu0 %v1812_v35  ;;  %838 = vmatprep.mubr.bf16.mxu1 %v1830_v37 }
  0x4f   : > { %775 = vmatmul.mubr.bf16.gmra.mrb[20].mxu0 %v1814_v38  ;;  %839 = vmatmul.mubr.bf16.gmra.mrb[20].mxu1 %v1832_v40 }
  0x50   : > { %782 = vmatprep.mubr.bf16.mxu0 %v1818_v39  ;;  %846 = vmatprep.mubr.bf16.mxu1 %v1833_v41 }
  0x57   : > { %783 = vmatmul.mubr.bf16.gmra.mrb[24].mxu0 %v1820_v42  ;;  %847 = vmatmul.mubr.bf16.gmra.mrb[24].mxu1 %v1835_v44 }
  0x58   : > { %790 = vmatprep.mubr.bf16.mxu0 %v1824_v43  ;;  %854 = vmatprep.mubr.bf16.mxu1 %v1836_v45 }
  0x5f   : > { %791 = vmatmul.mubr.bf16.gmra.mrb[28].mxu0 %v1826_v46  ;;  %855 = vmatmul.mubr.bf16.gmra.mrb[28].mxu1 %v1838_v47 }
  0xfa   : > { %v1639_v48 = vpop.f32.mrb[0].mxu0  ;;  %v1687_v50 = vpop.f32.mrb[0].mxu1 }
  0xfb   : > { %v1640_v49 = vpop.f32.mrb[1].mxu0  ;;  %v1688_v53 = vpop.f32.mrb[1].mxu1 }
  0xfc   : > { %v1641_v51 = vadd.f32 %v1640_v49, %v1639_v48  ;;  %v1642_v52 = vpop.f32.mrb[2].mxu0  ;;  %v1998_v55 = vadd.f32 %v1688_v53, %v1687_v50  ;;  %v1690_v56 = vpop.f32.mrb[2].mxu1 }
  0xfd   : > { %v1643_v54 = vpop.f32.mrb[3].mxu0  ;;  %v1691_v58 = vpop.f32.mrb[3].mxu1 }
  0xfe   : > { %v1644_v57 = vadd.f32 %v1643_v54, %v1642_v52  ;;  %v2005_v59 = vadd.f32 %v1691_v58, %v1690_v56  ;;  %v1160_v60 = vmul.f32 %v1641_v51, %v1641_v51 }
 0x100   : > { %v1531_v61 = vpack.c.bf16 %v1644_v57, %v1641_v51  ;;  %v1122_v62 = vadd.f32 %v1644_v57, %v1641_v51  ;;  %v1161_v63 = vmul.f32 %v1644_v57, %v1644_v57  ;;  %v1571_v0 = vpack.c.bf16 %v2005_v59, %v1998_v55 }
 0x102   : > { %1532 = vst [vmem:[%s2003_s12] sm:$0xff] %v1531_v61   ;;  %v1192_v1 = vadd.f32 %v1161_v63, %v1160_v60  ;;  %v1645_v2 = vpop.f32.mrb[4].mxu0  ;;  %1615 = vst [vmem:[%s2003_s12 + $0x40] sm:$0xff] %v1571_v0   ;;  %v1693_v4 = vpop.f32.mrb[4].mxu1 }
 0x103   : > { %v1646_v3 = vpop.f32.mrb[5].mxu0  ;;  %v1694_v7 = vpop.f32.mrb[5].mxu1 }
 0x104   : > { %v1647_v5 = vadd.f32 %v1646_v3, %v1645_v2  ;;  %v1648_v6 = vpop.f32.mrb[6].mxu0  ;;  %v2011_v9 = vadd.f32 %v1694_v7, %v1693_v4  ;;  %v1696_v10 = vpop.f32.mrb[6].mxu1 }
 0x105   : > { %v1649_v8 = vpop.f32.mrb[7].mxu0  ;;  %v1697_v14 = vpop.f32.mrb[7].mxu1 }
 0x106   : > { %v1123_v11 = vadd.f32 %v1647_v5, %v1122_v62  ;;  %v1162_v12 = vmul.f32 %v1647_v5, %v1647_v5  ;;  %v1650_v13 = vadd.f32 %v1649_v8, %v1648_v6  ;;  %v2013_v15 = vadd.f32 %v1697_v14, %v1696_v10 }
 0x108   : > { %v1193_v16 = vadd.f32 %v1192_v1, %v1162_v12  ;;  %v1536_v17 = vpack.c.bf16 %v1650_v13, %v1647_v5  ;;  %v1124_v18 = vadd.f32 %v1650_v13, %v1123_v11  ;;  %v1163_v19 = vmul.f32 %v1650_v13, %v1650_v13 }
 0x109   : > { %v1576_v20 = vpack.c.bf16 %v2013_v15, %v2011_v9 }
 0x10a   : > { %1608 = vst [vmem:[%s2003_s12 + $0x8] sm:$0xff] %v1536_v17   ;;  %v1194_v21 = vadd.f32 %v1193_v16, %v1163_v19  ;;  %v1651_v22 = vpop.f32.mrb[8].mxu0  ;;  %v1699_v24 = vpop.f32.mrb[8].mxu1 }
 0x10b   : > { %v1652_v23 = vpop.f32.mrb[9].mxu0  ;;  %1616 = vst [vmem:[%s2003_s12 + $0x48] sm:$0xff] %v1576_v20   ;;  %v1700_v27 = vpop.f32.mrb[9].mxu1 }
 0x10c   : > { %v1653_v25 = vadd.f32 %v1652_v23, %v1651_v22  ;;  %v1654_v26 = vpop.f32.mrb[10].mxu0  ;;  %v2019_v29 = vadd.f32 %v1700_v27, %v1699_v24  ;;  %v1702_v30 = vpop.f32.mrb[10].mxu1 }
 0x10d   : > { %v1655_v28 = vpop.f32.mrb[11].mxu0  ;;  %v1703_v34 = vpop.f32.mrb[11].mxu1 }
 0x10e   : > { %v1125_v31 = vadd.f32 %v1653_v25, %v1124_v18  ;;  %v1164_v32 = vmul.f32 %v1653_v25, %v1653_v25  ;;  %v1656_v33 = vadd.f32 %v1655_v28, %v1654_v26  ;;  %v2021_v35 = vadd.f32 %v1703_v34, %v1702_v30 }
 0x110   : > { %v1195_v36 = vadd.f32 %v1194_v21, %v1164_v32  ;;  %v1541_v37 = vpack.c.bf16 %v1656_v33, %v1653_v25  ;;  %v1126_v38 = vadd.f32 %v1656_v33, %v1125_v31  ;;  %v1165_v39 = vmul.f32 %v1656_v33, %v1656_v33 }
 0x111   : > { %v1581_v40 = vpack.c.bf16 %v2021_v35, %v2019_v29 }
 0x112   : > { %1609 = vst [vmem:[%s2003_s12 + $0x10] sm:$0xff] %v1541_v37   ;;  %v1196_v41 = vadd.f32 %v1195_v36, %v1165_v39  ;;  %v1657_v42 = vpop.f32.mrb[12].mxu0  ;;  %v1705_v44 = vpop.f32.mrb[12].mxu1 }
 0x113   : > { %v1658_v43 = vpop.f32.mrb[13].mxu0  ;;  %1617 = vst [vmem:[%s2003_s12 + $0x50] sm:$0xff] %v1581_v40   ;;  %v1706_v47 = vpop.f32.mrb[13].mxu1 }
 0x114   : > { %v1659_v45 = vadd.f32 %v1658_v43, %v1657_v42  ;;  %v1660_v46 = vpop.f32.mrb[14].mxu0  ;;  %v2027_v49 = vadd.f32 %v1706_v47, %v1705_v44  ;;  %v1708_v50 = vpop.f32.mrb[14].mxu1 }
 0x115   : > { %v1661_v48 = vpop.f32.mrb[15].mxu0  ;;  %v1709_v54 = vpop.f32.mrb[15].mxu1 }
 0x116   : > { %v1127_v51 = vadd.f32 %v1659_v45, %v1126_v38  ;;  %v1166_v52 = vmul.f32 %v1659_v45, %v1659_v45  ;;  %v1662_v53 = vadd.f32 %v1661_v48, %v1660_v46  ;;  %v2029_v56 = vadd.f32 %v1709_v54, %v1708_v50 }
 0x118   : > { %v1197_v57 = vadd.f32 %v1196_v41, %v1166_v52  ;;  %v1546_v58 = vpack.c.bf16 %v1662_v53, %v1659_v45  ;;  %v1128_v60 = vadd.f32 %v1662_v53, %v1127_v51  ;;  %v1167_v61 = vmul.f32 %v1662_v53, %v1662_v53 }
 0x119   : > { %v1586_v62 = vpack.c.bf16 %v2029_v56, %v2027_v49 }
 0x11a   : > { %1610 = vst [vmem:[%s2003_s12 + $0x18] sm:$0xff] %v1546_v58   ;;  %v1198_v63 = vadd.f32 %v1197_v57, %v1167_v61  ;;  %v1663_v0 = vpop.f32.mrb[16].mxu0  ;;  %v1711_v2 = vpop.f32.mrb[16].mxu1 }
 0x11b   : > { %v1664_v1 = vpop.f32.mrb[17].mxu0  ;;  %1618 = vst [vmem:[%s2003_s12 + $0x58] sm:$0xff] %v1586_v62   ;;  %v1712_v5 = vpop.f32.mrb[17].mxu1 }
 0x11c   : > { %v1665_v3 = vadd.f32 %v1664_v1, %v1663_v0  ;;  %v1666_v4 = vpop.f32.mrb[18].mxu0  ;;  %v2035_v7 = vadd.f32 %v1712_v5, %v1711_v2  ;;  %v1714_v8 = vpop.f32.mrb[18].mxu1 }
 0x11d   : > { %v1667_v6 = vpop.f32.mrb[19].mxu0  ;;  %v1715_v13 = vpop.f32.mrb[19].mxu1 }
 0x11e   : > { %v1129_v10 = vadd.f32 %v1665_v3, %v1128_v60  ;;  %v1168_v11 = vmul.f32 %v1665_v3, %v1665_v3  ;;  %v1668_v12 = vadd.f32 %v1667_v6, %v1666_v4  ;;  %v2037_v14 = vadd.f32 %v1715_v13, %v1714_v8 }
 0x120   : > { %v1199_v16 = vadd.f32 %v1198_v63, %v1168_v11  ;;  %v1551_v17 = vpack.c.bf16 %v1668_v12, %v1665_v3  ;;  %v1130_v18 = vadd.f32 %v1668_v12, %v1129_v10  ;;  %v1169_v19 = vmul.f32 %v1668_v12, %v1668_v12 }
 0x121   : > { %v1591_v20 = vpack.c.bf16 %v2037_v14, %v2035_v7 }
 0x122   : > { %1611 = vst [vmem:[%s2003_s12 + $0x20] sm:$0xff] %v1551_v17   ;;  %v1200_v21 = vadd.f32 %v1199_v16, %v1169_v19  ;;  %v1669_v22 = vpop.f32.mrb[20].mxu0  ;;  %v1717_v24 = vpop.f32.mrb[20].mxu1 }
 0x123   : > { %v1670_v23 = vpop.f32.mrb[21].mxu0  ;;  %1619 = vst [vmem:[%s2003_s12 + $0x60] sm:$0xff] %v1591_v20   ;;  %v1718_v27 = vpop.f32.mrb[21].mxu1 }
 0x124   : > { %v1671_v25 = vadd.f32 %v1670_v23, %v1669_v22  ;;  %v1672_v26 = vpop.f32.mrb[22].mxu0  ;;  %v2043_v30 = vadd.f32 %v1718_v27, %v1717_v24  ;;  %v1720_v31 = vpop.f32.mrb[22].mxu1  ;;  %v1176_v27 = vmul.f32 %v1998_v55, %v1998_v55 }
 0x125   : > { %v1673_v28 = vpop.f32.mrb[23].mxu0  ;;  %v1721_v36 = vpop.f32.mrb[23].mxu1 }
 0x126   : > { %v1131_v32 = vadd.f32 %v1671_v25, %v1130_v18  ;;  %v1170_v33 = vmul.f32 %v1671_v25, %v1671_v25  ;;  %v1674_v34 = vadd.f32 %v1673_v28, %v1672_v26  ;;  %v2045_v37 = vadd.f32 %v1721_v36, %v1720_v31 }
 0x127   : > { %v1178_v36 = vmul.f32 %v2011_v9, %v2011_v9 }
 0x128   : > { %v1201_v38 = vadd.f32 %v1200_v21, %v1170_v33  ;;  %v1556_v39 = vpack.c.bf16 %v1674_v34, %v1671_v25  ;;  %v1132_v40 = vadd.f32 %v1674_v34, %v1131_v32  ;;  %v1171_v41 = vmul.f32 %v1674_v34, %v1674_v34 }
 0x129   : > { %v1596_v42 = vpack.c.bf16 %v2045_v37, %v2043_v30  ;;  %v1177_v32 = vmul.f32 %v2005_v59, %v2005_v59 }
 0x12a   : > { %1612 = vst [vmem:[%s2003_s12 + $0x28] sm:$0xff] %v1556_v39   ;;  %v1202_v43 = vadd.f32 %v1201_v38, %v1171_v41  ;;  %v1675_v44 = vpop.f32.mrb[24].mxu0  ;;  %v1723_v46 = vpop.f32.mrb[24].mxu1 }
 0x12b   : > { %v1676_v45 = vpop.f32.mrb[25].mxu0  ;;  %1620 = vst [vmem:[%s2003_s12 + $0x68] sm:$0xff] %v1596_v42   ;;  %v1724_v50 = vpop.f32.mrb[25].mxu1  ;;  %v1180_v42 = vmul.f32 %v2019_v29, %v2019_v29 }
 0x12c   : > { %v1677_v47 = vadd.f32 %v1676_v45, %v1675_v44  ;;  %v1678_v48 = vpop.f32.mrb[26].mxu0  ;;  %v2051_v52 = vadd.f32 %v1724_v50, %v1723_v46  ;;  %v1726_v53 = vpop.f32.mrb[26].mxu1 }
 0x12d   : > { %v1679_v51 = vpop.f32.mrb[27].mxu0  ;;  %v1727_v60 = vpop.f32.mrb[27].mxu1 }
 0x12e   : > { %v1133_v54 = vadd.f32 %v1677_v47, %v1132_v40  ;;  %v1172_v57 = vmul.f32 %v1677_v47, %v1677_v47  ;;  %v1680_v58 = vadd.f32 %v1679_v51, %v1678_v48  ;;  %v2053_v61 = vadd.f32 %v1727_v60, %v1726_v53 }
 0x12f   : > { %v1179_v40 = vmul.f32 %v2013_v15, %v2013_v15  ;;  %v1184_v53 = vmul.f32 %v2035_v7, %v2035_v7 }
 0x130   : > { %v1203_v62 = vadd.f32 %v1202_v43, %v1172_v57  ;;  %v1561_v63 = vpack.c.bf16 %v1680_v58, %v1677_v47  ;;  %v1134_v0 = vadd.f32 %v1680_v58, %v1133_v54  ;;  %v1173_v1 = vmul.f32 %v1680_v58, %v1680_v58 }
 0x131   : > { %v1601_v2 = vpack.c.bf16 %v2053_v61, %v2051_v52  ;;  %v1185_v58 = vmul.f32 %v2037_v14, %v2037_v14 }
 0x132   : > { %1613 = vst [vmem:[%s2003_s12 + $0x30] sm:$0xff] %v1561_v63   ;;  %v1204_v3 = vadd.f32 %v1203_v62, %v1173_v1  ;;  %v1681_v4 = vpop.f32.mrb[28].mxu0  ;;  %v1729_v6 = vpop.f32.mrb[28].mxu1  ;;  %v1186_v62 = vmul.f32 %v2043_v30, %v2043_v30 }
 0x133   : > { %v1682_v5 = vpop.f32.mrb[29].mxu0  ;;  %1621 = vst [vmem:[%s2003_s12 + $0x70] sm:$0xff] %v1601_v2   ;;  %v1730_v11 = vpop.f32.mrb[29].mxu1  ;;  %v1188_v2 = vmul.f32 %v2051_v52, %v2051_v52 }
 0x134   : > { %v1683_v8 = vadd.f32 %v1682_v5, %v1681_v4  ;;  %v1684_v10 = vpop.f32.mrb[30].mxu0  ;;  %v1731_v13 = vadd.f32 %v1730_v11, %v1729_v6  ;;  %v1732_v16 = vpop.f32.mrb[30].mxu1 }
 0x135   : > { %v1685_v12 = vpop.f32.mrb[31].mxu0  ;;  %v1733_v20 = vpop.f32.mrb[31].mxu1 }
 0x136   : > { %v1135_v17 = vadd.f32 %v1683_v8, %v1134_v0  ;;  %v1174_v18 = vmul.f32 %v1683_v8, %v1683_v8  ;;  %v1686_v19 = vadd.f32 %v1685_v12, %v1684_v10  ;;  %v1734_v21 = vadd.f32 %v1733_v20, %v1732_v16 }
 0x137   : > { %v1190_v4 = vmul.f32 %v1731_v13, %v1731_v13 }
 0x138   : > { %v1205_v22 = vadd.f32 %v1204_v3, %v1174_v18  ;;  %v1566_v23 = vpack.c.bf16 %v1686_v19, %v1683_v8  ;;  %v1136_v24 = vadd.f32 %v1686_v19, %v1135_v17  ;;  %v1175_v25 = vmul.f32 %v1686_v19, %v1686_v19 }
 0x139   : > { %v1606_v26 = vpack.c.bf16 %v1734_v21, %v1731_v13  ;;  %v1191_v11 = vmul.f32 %v1734_v21, %v1734_v21 }
 0x13a   : > { %1614 = vst [vmem:[%s2003_s12 + $0x38] sm:$0xff] %v1566_v23   ;;  %v1137_v28 = vadd.f32 %v1998_v55, %v1136_v24  ;;  %v1206_v31 = vadd.f32 %v1205_v22, %v1175_v25 }
 0x13b   : > { %1622 = vst [vmem:[%s2003_s12 + $0x78] sm:$0xff] %v1606_v26  }
 0x13c   : > { %v1138_v33 = vadd.f32 %v2005_v59, %v1137_v28  ;;  %v1207_v34 = vadd.f32 %v1206_v31, %v1176_v27  ;;  %v1181_v59 = vmul.f32 %v2021_v35, %v2021_v35 }
 0x13e   : > { %v1139_v38 = vadd.f32 %v2011_v9, %v1138_v33  ;;  %v1208_v39 = vadd.f32 %v1207_v34, %v1177_v32  ;;  %v1182_v9 = vmul.f32 %v2027_v49, %v2027_v49 }
 0x140   : > { %v1140_v41 = vadd.f32 %v2013_v15, %v1139_v38  ;;  %v1209_v55 = vadd.f32 %v1208_v39, %v1178_v36  ;;  %v1183_v15 = vmul.f32 %v2029_v56, %v2029_v56 }
 0x142   : > { %v1210_v43 = vadd.f32 %v1209_v55, %v1179_v40  ;;  %v1141_v44 = vadd.f32 %v2019_v29, %v1140_v41 }
 0x144   : > { %v1142_v45 = vadd.f32 %v2021_v35, %v1141_v44  ;;  %v1211_v46 = vadd.f32 %v1210_v43, %v1180_v42 }
 0x146   : > { %v1143_v47 = vadd.f32 %v2027_v49, %v1142_v45  ;;  %v1212_v48 = vadd.f32 %v1211_v46, %v1181_v59 }
 0x148   : > { %v1144_v50 = vadd.f32 %v2029_v56, %v1143_v47  ;;  %v1213_v51 = vadd.f32 %v1212_v48, %v1182_v9 }
 0x14a   : > { %v1145_v29 = vadd.f32 %v2035_v7, %v1144_v50  ;;  %v1214_v54 = vadd.f32 %v1213_v51, %v1183_v15  ;;  %v1187_v7 = vmul.f32 %v2045_v37, %v2045_v37 }
 0x14c   : > { %v1215_v35 = vadd.f32 %v1214_v54, %v1184_v53  ;;  %v1146_v57 = vadd.f32 %v2037_v14, %v1145_v29 }
 0x14e   : > { %v1216_v49 = vadd.f32 %v1215_v35, %v1185_v58  ;;  %v1147_v60 = vadd.f32 %v2043_v30, %v1146_v57  ;;  %v1189_v30 = vmul.f32 %v2053_v61, %v2053_v61 }
 0x150   : > { %v1217_v56 = vadd.f32 %v1216_v49, %v1186_v62  ;;  %v1148_v63 = vadd.f32 %v2045_v37, %v1147_v60 }
 0x152   : > { %v1218_v0 = vadd.f32 %v1217_v56, %v1187_v7  ;;  %v1149_v1 = vadd.f32 %v2051_v52, %v1148_v63 }
 0x154   : > { %v1219_v14 = vadd.f32 %v1218_v0, %v1188_v2  ;;  %v1150_v3 = vadd.f32 %v2053_v61, %v1149_v1 }
 0x156   : > { %v1220_v5 = vadd.f32 %v1219_v14, %v1189_v30  ;;  %v1151_v6 = vadd.f32 %v1731_v13, %v1150_v3 }
 0x158   : > { %v1221_v8 = vadd.f32 %v1220_v5, %v1190_v4  ;;  %v1152_v10 = vadd.f32 %v1734_v21, %v1151_v6 }
 0x15a   : > { %v1153_v37 = vrot.slane %v1152_v10, 4  ;;  %v1222_v12 = vadd.f32 %v1221_v8, %v1191_v11 }
 0x15c   : > { %v1154_v16 = vadd.f32 %v1153_v37, %v1152_v10  ;;  %v1223_v17 = vrot.slane %v1222_v12, 4 }
 0x15e   : > { %v1155_v18 = vrot.slane %v1154_v16, 2  ;;  %v1224_v52 = vadd.f32 %v1223_v17, %v1222_v12 }
 0x160   : > { %v1156_v19 = vadd.f32 %v1155_v18, %v1154_v16  ;;  %v1225_v20 = vrot.slane %v1224_v52, 2 }
 0x162   : > { %v1157_v22 = vrot.slane %v1156_v19, 1  ;;  %v1226_v23 = vadd.f32 %v1225_v20, %v1224_v52 }
 0x164   : > { %v1158_v61 = vadd.f32 %v1157_v22, %v1156_v19  ;;  %v1227_v13 = vrot.slane %v1226_v23, 1 }
 0x166   : > { %1159 = vst [vmem:[%s306_s14] sm:$0x1] %v1158_v61  ;;  %v1228_v21 = vadd.f32 %v1227_v13, %v1226_v23 }
 0x168   : > { %1229 = vst [vmem:[%s312_s22] sm:$0x1] %v1228_v21 }
 0x169 PF: > { %s15_s17 = sadd.s32 1, %s1861_s17   ;;  %s2125_s15 = smov %s1857_s16 }
 0x16a   : > { %p12_p6 = scmp.ge.s32.totalorder %s15_s17, 4   ;;  %s2126_s16 = smov %s2128_s18 }
 0x16c   :  { %14 = sbr.rel (!%p12_p6) target bundleno = 2 (0x2), region = 93 }

// kernel: resnet18_forward.43
= control target key start
LH: loop header
LB: loop body
LE: loop exit
PB: predicated region body
PF: predicated region fallthrough
CT: control target
= control target key end

     0   :  { %s1502_s0 = inlined_call_operand.vmem [shape: bf16[512,128], index: 0, kind: input, shape index: {}]   ;;  %s1503_s1 = inlined_call_operand.vmem [shape: f32[1,128], index: 1, kind: input, shape index: {}]   ;;  %s1504_s2 = inlined_call_operand.vmem [shape: f32[1,128], index: 2, kind: input, shape index: {}]   ;;  %s1505_s3 = inlined_call_operand.vmem [shape: bf16[512,128], index: 3, kind: output, shape index: {}]  }
   0x1   :  { %v803_v0 = vld [vmem:[%s1502_s0] sm:$0xff]   ;;  %v1090_v4 = vld [vmem:[%s1502_s0 + $0x8] sm:$0xff]   ;;  %v1091_v5 = vld [vmem:[%s1502_s0 + $0x10] sm:$0xff]  }
   0x2   :  { %v1178_v1 = vld [vmem:[%s1503_s1] ss:$0 sm:$0xff]  ;;  %v804_v2 = vunpack.c.l.bf16 %v803_v0  ;;  %v805_v3 = vunpack.c.h.bf16 %v803_v0  ;;  %v1092_v6 = vld [vmem:[%s1502_s0 + $0x18] sm:$0xff]   ;;  %v808_v8 = vunpack.c.l.bf16 %v1090_v4  ;;  %v809_v9 = vunpack.c.h.bf16 %v1090_v4  ;;  %v1094_v33 = vld [vmem:[%s1502_s0 + $0x28] sm:$0xff]  }
   0x3   :  { %v1192_v7 = vld [vmem:[%s1504_s2] ss:$0 sm:$0xff]  ;;  %v812_v10 = vunpack.c.l.bf16 %v1091_v5  ;;  %v813_v11 = vunpack.c.h.bf16 %v1091_v5  ;;  %v816_v14 = vunpack.c.l.bf16 %v1092_v6  ;;  %v817_v15 = vunpack.c.h.bf16 %v1092_v6  ;;  %v1095_v38 = vld [vmem:[%s1502_s0 + $0x30] sm:$0xff]   ;;  %v1096_v43 = vld [vmem:[%s1502_s0 + $0x38] sm:$0xff]  }
   0x4   :  { %v149_v12 = vmul.f32 %v804_v2, %v1178_v1  ;;  %v150_v13 = vmul.f32 %v805_v3, %v1178_v1  ;;  %v151_v16 = vmul.f32 %v808_v8, %v1178_v1  ;;  %v152_v17 = vmul.f32 %v809_v9, %v1178_v1  ;;  %v1093_v28 = vld [vmem:[%s1502_s0 + $0x20] sm:$0xff]  }
   0x5   :  { %v153_v18 = vmul.f32 %v812_v10, %v1178_v1  ;;  %v154_v19 = vmul.f32 %v813_v11, %v1178_v1  ;;  %v155_v22 = vmul.f32 %v816_v14, %v1178_v1  ;;  %v156_v23 = vmul.f32 %v817_v15, %v1178_v1  ;;  %v1097_v0 = vld [vmem:[%s1502_s0 + $0x40] sm:$0xff]   ;;  %v1098_v11 = vld [vmem:[%s1502_s0 + $0x48] sm:$0xff]  }
   0x6   :  { %v220_v20 = vadd.f32 %v1192_v7, %v149_v12  ;;  %v221_v21 = vadd.f32 %v1192_v7, %v150_v13  ;;  %v222_v24 = vadd.f32 %v1192_v7, %v151_v16  ;;  %v223_v25 = vadd.f32 %v1192_v7, %v152_v17  ;;  %v1099_v16 = vld [vmem:[%s1502_s0 + $0x50] sm:$0xff]  }
   0x7   :  { %v224_v26 = vadd.f32 %v1192_v7, %v153_v18  ;;  %v225_v27 = vadd.f32 %v1192_v7, %v154_v19  ;;  %v226_v31 = vadd.f32 %v1192_v7, %v155_v22  ;;  %v227_v32 = vadd.f32 %v1192_v7, %v156_v23 }
   0x8   :  { %v284_v29 = vmax.f32 %v220_v20, 0.0  ;;  %v285_v30 = vmax.f32 %v221_v21, 0.0  ;;  %v286_v34 = vmax.f32 %v222_v24, 0.0  ;;  %v287_v35 = vmax.f32 %v223_v25, 0.0  ;;  %v1100_v25 = vld [vmem:[%s1502_s0 + $0x58] sm:$0xff]  }
   0x9   :  { %v288_v36 = vmax.f32 %v224_v26, 0.0  ;;  %v289_v37 = vmax.f32 %v225_v27, 0.0  ;;  %v290_v40 = vmax.f32 %v226_v31, 0.0  ;;  %v291_v41 = vmax.f32 %v227_v32, 0.0 }
   0xa   :  { %v933_v39 = vpack.c.bf16 %v285_v30, %v284_v29  ;;  %v820_v42 = vunpack.c.l.bf16 %v1093_v28  ;;  %v938_v44 = vpack.c.bf16 %v287_v35, %v286_v34  ;;  %v821_v46 = vunpack.c.h.bf16 %v1093_v28 }
   0xb   :  { %v943_v45 = vpack.c.bf16 %v289_v37, %v288_v36  ;;  %v824_v47 = vunpack.c.l.bf16 %v1094_v33  ;;  %v948_v48 = vpack.c.bf16 %v291_v41, %v290_v40  ;;  %v825_v50 = vunpack.c.h.bf16 %v1094_v33 }
   0xc   :  { %934 = vst [vmem:[%s1505_s3] sm:$0xff] %v933_v39   ;;  %v157_v49 = vmul.f32 %v820_v42, %v1178_v1  ;;  %v828_v51 = vunpack.c.l.bf16 %v1095_v38  ;;  %1121 = vst [vmem:[%s1505_s3 + $0x8] sm:$0xff] %v938_v44   ;;  %v158_v52 = vmul.f32 %v821_v46, %v1178_v1  ;;  %v829_v54 = vunpack.c.h.bf16 %v1095_v38  ;;  %v1101_v38 = vld [vmem:[%s1502_s0 + $0x60] sm:$0xff]  }
   0xd   :  { %1122 = vst [vmem:[%s1505_s3 + $0x10] sm:$0xff] %v943_v45   ;;  %v159_v53 = vmul.f32 %v824_v47, %v1178_v1  ;;  %v832_v55 = vunpack.c.l.bf16 %v1096_v43  ;;  %1123 = vst [vmem:[%s1505_s3 + $0x18] sm:$0xff] %v948_v48   ;;  %v160_v57 = vmul.f32 %v825_v50, %v1178_v1  ;;  %v833_v59 = vunpack.c.h.bf16 %v1096_v43 }
   0xe   :  { %v228_v56 = vadd.f32 %v1192_v7, %v157_v49  ;;  %v161_v58 = vmul.f32 %v828_v51, %v1178_v1  ;;  %v229_v60 = vadd.f32 %v1192_v7, %v158_v52  ;;  %v162_v62 = vmul.f32 %v829_v54, %v1178_v1  ;;  %v1102_v51 = vld [vmem:[%s1502_s0 + $0x68] sm:$0xff]  }
   0xf   :  { %v230_v61 = vadd.f32 %v1192_v7, %v159_v53  ;;  %v163_v63 = vmul.f32 %v832_v55, %v1178_v1  ;;  %v231_v3 = vadd.f32 %v1192_v7, %v160_v57  ;;  %v164_v5 = vmul.f32 %v833_v59, %v1178_v1 }
  0x10   :  { %v292_v2 = vmax.f32 %v228_v56, 0.0  ;;  %v232_v4 = vadd.f32 %v1192_v7, %v161_v58  ;;  %v293_v6 = vmax.f32 %v229_v60, 0.0  ;;  %v233_v9 = vadd.f32 %v1192_v7, %v162_v62  ;;  %v1103_v60 = vld [vmem:[%s1502_s0 + $0x70] sm:$0xff]  }
  0x11   :  { %v294_v8 = vmax.f32 %v230_v61, 0.0  ;;  %v234_v10 = vadd.f32 %v1192_v7, %v163_v63  ;;  %v295_v12 = vmax.f32 %v231_v3, 0.0  ;;  %v235_v14 = vadd.f32 %v1192_v7, %v164_v5 }
  0x12   :  { %v296_v13 = vmax.f32 %v232_v4, 0.0  ;;  %v836_v15 = vunpack.c.l.bf16 %v1097_v0  ;;  %v953_v17 = vpack.c.bf16 %v293_v6, %v292_v2  ;;  %v297_v18 = vmax.f32 %v233_v9, 0.0  ;;  %v1104_v2 = vld [vmem:[%s1502_s0 + $0x78] sm:$0xff]  }
  0x13   :  { %v298_v19 = vmax.f32 %v234_v10, 0.0  ;;  %v837_v20 = vunpack.c.h.bf16 %v1097_v0  ;;  %v958_v21 = vpack.c.bf16 %v295_v12, %v294_v8  ;;  %v299_v22 = vmax.f32 %v235_v14, 0.0  ;;  %v1105_v12 = vld [vmem:[%s1502_s0 + $0x80] sm:$0xff]  }
  0x14   :  { %v165_v23 = vmul.f32 %v836_v15, %v1178_v1  ;;  %v840_v24 = vunpack.c.l.bf16 %v1098_v11  ;;  %1124 = vst [vmem:[%s1505_s3 + $0x20] sm:$0xff] %v953_v17   ;;  %v963_v26 = vpack.c.bf16 %v297_v18, %v296_v13  ;;  %v841_v28 = vunpack.c.h.bf16 %v1098_v11 }
  0x15   :  { %v166_v27 = vmul.f32 %v837_v20, %v1178_v1  ;;  %v844_v29 = vunpack.c.l.bf16 %v1099_v16  ;;  %1125 = vst [vmem:[%s1505_s3 + $0x28] sm:$0xff] %v958_v21   ;;  %v968_v30 = vpack.c.bf16 %v299_v22, %v298_v19  ;;  %v845_v33 = vunpack.c.h.bf16 %v1099_v16 }
  0x16   :  { %v236_v31 = vadd.f32 %v1192_v7, %v165_v23  ;;  %v167_v32 = vmul.f32 %v840_v24, %v1178_v1  ;;  %1126 = vst [vmem:[%s1505_s3 + $0x30] sm:$0xff] %v963_v26   ;;  %v168_v35 = vmul.f32 %v841_v28, %v1178_v1  ;;  %v848_v37 = vunpack.c.l.bf16 %v1100_v25 }
  0x17   :  { %v237_v34 = vadd.f32 %v1192_v7, %v166_v27  ;;  %v169_v36 = vmul.f32 %v844_v29, %v1178_v1  ;;  %1127 = vst [vmem:[%s1505_s3 + $0x38] sm:$0xff] %v968_v30   ;;  %v170_v41 = vmul.f32 %v845_v33, %v1178_v1  ;;  %v849_v42 = vunpack.c.h.bf16 %v1100_v25  ;;  %v1106_v29 = vld [vmem:[%s1502_s0 + $0x88] sm:$0xff]  }
  0x18   :  { %v300_v39 = vmax.f32 %v236_v31, 0.0  ;;  %v238_v40 = vadd.f32 %v1192_v7, %v167_v32  ;;  %v239_v44 = vadd.f32 %v1192_v7, %v168_v35  ;;  %v171_v46 = vmul.f32 %v848_v37, %v1178_v1 }
  0x19   :  { %v301_v43 = vmax.f32 %v237_v34, 0.0  ;;  %v240_v45 = vadd.f32 %v1192_v7, %v169_v36  ;;  %v241_v48 = vadd.f32 %v1192_v7, %v170_v41  ;;  %v172_v49 = vmul.f32 %v849_v42, %v1178_v1  ;;  %v1107_v34 = vld [vmem:[%s1502_s0 + $0x90] sm:$0xff]  }
  0x1a   :  { %v302_v47 = vmax.f32 %v238_v40, 0.0  ;;  %v852_v50 = vunpack.c.l.bf16 %v1101_v38  ;;  %v303_v53 = vmax.f32 %v239_v44, 0.0  ;;  %v242_v55 = vadd.f32 %v1192_v7, %v171_v46 }
  0x1b   :  { %v973_v52 = vpack.c.bf16 %v301_v43, %v300_v39  ;;  %v304_v54 = vmax.f32 %v240_v45, 0.0  ;;  %v305_v56 = vmax.f32 %v241_v48, 0.0  ;;  %v243_v57 = vadd.f32 %v1192_v7, %v172_v49  ;;  %v1108_v43 = vld [vmem:[%s1502_s0 + $0x98] sm:$0xff]  }
  0x1c   :  { %v853_v58 = vunpack.c.h.bf16 %v1101_v38  ;;  %v173_v59 = vmul.f32 %v852_v50, %v1178_v1  ;;  %v978_v61 = vpack.c.bf16 %v303_v53, %v302_v47  ;;  %v306_v62 = vmax.f32 %v242_v55, 0.0 }
  0x1d   :  { %1128 = vst [vmem:[%s1505_s3 + $0x40] sm:$0xff] %v973_v52   ;;  %v856_v63 = vunpack.c.l.bf16 %v1102_v51  ;;  %v857_v0 = vunpack.c.h.bf16 %v1102_v51  ;;  %v983_v3 = vpack.c.bf16 %v305_v56, %v304_v54  ;;  %v307_v4 = vmax.f32 %v243_v57, 0.0  ;;  %v1109_v56 = vld [vmem:[%s1502_s0 + $0xa0] sm:$0xff]  }
  0x1e   :  { %v174_v5 = vmul.f32 %v853_v58, %v1178_v1  ;;  %v244_v6 = vadd.f32 %v1192_v7, %v173_v59  ;;  %1129 = vst [vmem:[%s1505_s3 + $0x48] sm:$0xff] %v978_v61   ;;  %v860_v10 = vunpack.c.l.bf16 %v1103_v60  ;;  %v861_v11 = vunpack.c.h.bf16 %v1103_v60 }
  0x1f   :  { %v175_v8 = vmul.f32 %v856_v63, %v1178_v1  ;;  %v176_v9 = vmul.f32 %v857_v0, %v1178_v1  ;;  %1130 = vst [vmem:[%s1505_s3 + $0x50] sm:$0xff] %v983_v3   ;;  %v988_v13 = vpack.c.bf16 %v307_v4, %v306_v62  ;;  %v864_v16 = vunpack.c.l.bf16 %v1104_v2 }
  0x20   :  { %v245_v14 = vadd.f32 %v1192_v7, %v174_v5  ;;  %v308_v15 = vmax.f32 %v244_v6, 0.0  ;;  %v177_v19 = vmul.f32 %v860_v10, %v1178_v1  ;;  %v178_v20 = vmul.f32 %v861_v11, %v1178_v1 }
  0x21   :  { %v246_v17 = vadd.f32 %v1192_v7, %v175_v8  ;;  %v247_v18 = vadd.f32 %v1192_v7, %v176_v9  ;;  %1131 = vst [vmem:[%s1505_s3 + $0x58] sm:$0xff] %v988_v13   ;;  %v865_v22 = vunpack.c.h.bf16 %v1104_v2  ;;  %v179_v23 = vmul.f32 %v864_v16, %v1178_v1  ;;  %v1110_v2 = vld [vmem:[%s1502_s0 + $0xa8] sm:$0xff]   ;;  %v1111_v16 = vld [vmem:[%s1502_s0 + $0xb0] sm:$0xff]  }
  0x22   :  { %v309_v21 = vmax.f32 %v245_v14, 0.0  ;;  %v868_v24 = vunpack.c.l.bf16 %v1105_v12  ;;  %v248_v27 = vadd.f32 %v1192_v7, %v177_v19  ;;  %v249_v28 = vadd.f32 %v1192_v7, %v178_v20 }
  0x23   :  { %v310_v25 = vmax.f32 %v246_v17, 0.0  ;;  %v311_v26 = vmax.f32 %v247_v18, 0.0  ;;  %v180_v31 = vmul.f32 %v865_v22, %v1178_v1  ;;  %v250_v32 = vadd.f32 %v1192_v7, %v179_v23 }
  0x24   :  { %v993_v30 = vpack.c.bf16 %v309_v21, %v308_v15  ;;  %v869_v33 = vunpack.c.h.bf16 %v1105_v12  ;;  %v312_v36 = vmax.f32 %v248_v27, 0.0  ;;  %v313_v37 = vmax.f32 %v249_v28, 0.0  ;;  %v1112_v21 = vld [vmem:[%s1502_s0 + $0xb8] sm:$0xff]  }
  0x25   :  { %v998_v35 = vpack.c.bf16 %v311_v26, %v310_v25  ;;  %v181_v38 = vmul.f32 %v868_v24, %v1178_v1  ;;  %v251_v39 = vadd.f32 %v1192_v7, %v180_v31  ;;  %v314_v40 = vmax.f32 %v250_v32, 0.0 }
  0x26   :  { %1132 = vst [vmem:[%s1505_s3 + $0x60] sm:$0xff] %v993_v30   ;;  %v182_v41 = vmul.f32 %v869_v33, %v1178_v1  ;;  %v872_v42 = vunpack.c.l.bf16 %v1106_v29  ;;  %v1003_v44 = vpack.c.bf16 %v313_v37, %v312_v36  ;;  %v873_v46 = vunpack.c.h.bf16 %v1106_v29 }
  0x27   :  { %1133 = vst [vmem:[%s1505_s3 + $0x68] sm:$0xff] %v998_v35   ;;  %v252_v45 = vadd.f32 %v1192_v7, %v181_v38  ;;  %v876_v47 = vunpack.c.l.bf16 %v1107_v34  ;;  %v315_v48 = vmax.f32 %v251_v39, 0.0  ;;  %v877_v51 = vunpack.c.h.bf16 %v1107_v34  ;;  %v1113_v34 = vld [vmem:[%s1502_s0 + $0xc0] sm:$0xff]  }
  0x28   :  { %v253_v49 = vadd.f32 %v1192_v7, %v182_v41  ;;  %v183_v50 = vmul.f32 %v872_v42, %v1178_v1  ;;  %1134 = vst [vmem:[%s1505_s3 + $0x70] sm:$0xff] %v1003_v44   ;;  %v184_v53 = vmul.f32 %v873_v46, %v1178_v1  ;;  %v880_v55 = vunpack.c.l.bf16 %v1108_v43 }
  0x29   :  { %v316_v52 = vmax.f32 %v252_v45, 0.0  ;;  %v185_v54 = vmul.f32 %v876_v47, %v1178_v1  ;;  %v1008_v57 = vpack.c.bf16 %v315_v48, %v314_v40  ;;  %v186_v60 = vmul.f32 %v877_v51, %v1178_v1  ;;  %v1114_v47 = vld [vmem:[%s1502_s0 + $0xc8] sm:$0xff]  }
  0x2a   :  { %v317_v58 = vmax.f32 %v253_v49, 0.0  ;;  %v254_v59 = vadd.f32 %v1192_v7, %v183_v50  ;;  %v255_v61 = vadd.f32 %v1192_v7, %v184_v53  ;;  %v881_v63 = vunpack.c.h.bf16 %v1108_v43 }
  0x2b   :  { %v256_v62 = vadd.f32 %v1192_v7, %v185_v54  ;;  %v187_v0 = vmul.f32 %v880_v55, %v1178_v1  ;;  %1135 = vst [vmem:[%s1505_s3 + $0x78] sm:$0xff] %v1008_v57   ;;  %v257_v5 = vadd.f32 %v1192_v7, %v186_v60  ;;  %v884_v6 = vunpack.c.l.bf16 %v1109_v56 }
  0x2c   :  { %v1013_v3 = vpack.c.bf16 %v317_v58, %v316_v52  ;;  %v318_v4 = vmax.f32 %v254_v59, 0.0  ;;  %v319_v8 = vmax.f32 %v255_v61, 0.0  ;;  %v188_v10 = vmul.f32 %v881_v63, %v1178_v1  ;;  %v1115_v52 = vld [vmem:[%s1502_s0 + $0xd0] sm:$0xff]   ;;  %v1116_v61 = vld [vmem:[%s1502_s0 + $0xd8] sm:$0xff]  }
  0x2d   :  { %v320_v9 = vmax.f32 %v256_v62, 0.0  ;;  %v258_v11 = vadd.f32 %v1192_v7, %v187_v0  ;;  %v321_v12 = vmax.f32 %v257_v5, 0.0  ;;  %v885_v13 = vunpack.c.h.bf16 %v1109_v56 }
  0x2e   :  { %1136 = vst [vmem:[%s1505_s3 + $0x80] sm:$0xff] %v1013_v3   ;;  %v189_v14 = vmul.f32 %v884_v6, %v1178_v1  ;;  %v888_v15 = vunpack.c.l.bf16 %v1110_v2  ;;  %v1018_v17 = vpack.c.bf16 %v319_v8, %v318_v4  ;;  %v259_v18 = vadd.f32 %v1192_v7, %v188_v10 }
  0x2f   :  { %v322_v19 = vmax.f32 %v258_v11, 0.0  ;;  %v889_v20 = vunpack.c.h.bf16 %v1110_v2  ;;  %v1023_v22 = vpack.c.bf16 %v321_v12, %v320_v9  ;;  %v190_v23 = vmul.f32 %v885_v13, %v1178_v1  ;;  %v1117_v12 = vld [vmem:[%s1502_s0 + $0xe0] sm:$0xff]  }
  0x30   :  { %v260_v24 = vadd.f32 %v1192_v7, %v189_v14  ;;  %v191_v25 = vmul.f32 %v888_v15, %v1178_v1  ;;  %1137 = vst [vmem:[%s1505_s3 + $0x88] sm:$0xff] %v1018_v17   ;;  %v323_v26 = vmax.f32 %v259_v18, 0.0  ;;  %v892_v28 = vunpack.c.l.bf16 %v1111_v16 }
  0x31   :  { %v192_v27 = vmul.f32 %v889_v20, %v1178_v1  ;;  %v893_v29 = vunpack.c.h.bf16 %v1111_v16  ;;  %1138 = vst [vmem:[%s1505_s3 + $0x90] sm:$0xff] %v1023_v22   ;;  %v261_v30 = vadd.f32 %v1192_v7, %v190_v23  ;;  %v896_v33 = vunpack.c.l.bf16 %v1112_v21 }
  0x32   :  { %v324_v31 = vmax.f32 %v260_v24, 0.0  ;;  %v262_v32 = vadd.f32 %v1192_v7, %v191_v25  ;;  %v1028_v35 = vpack.c.bf16 %v323_v26, %v322_v19  ;;  %v193_v37 = vmul.f32 %v892_v28, %v1178_v1 }
  0x33   :  { %v263_v36 = vadd.f32 %v1192_v7, %v192_v27  ;;  %v194_v38 = vmul.f32 %v893_v29, %v1178_v1  ;;  %v325_v39 = vmax.f32 %v261_v30, 0.0  ;;  %v897_v41 = vunpack.c.h.bf16 %v1112_v21  ;;  %v1118_v21 = vld [vmem:[%s1502_s0 + $0xe8] sm:$0xff]  }
  0x34   :  { %v326_v40 = vmax.f32 %v262_v32, 0.0  ;;  %v195_v42 = vmul.f32 %v896_v33, %v1178_v1  ;;  %1139 = vst [vmem:[%s1505_s3 + $0x98] sm:$0xff] %v1028_v35   ;;  %v264_v44 = vadd.f32 %v1192_v7, %v193_v37  ;;  %v900_v46 = vunpack.c.l.bf16 %v1113_v34 }
  0x35   :  { %v327_v43 = vmax.f32 %v263_v36, 0.0  ;;  %v265_v45 = vadd.f32 %v1192_v7, %v194_v38  ;;  %v1033_v48 = vpack.c.bf16 %v325_v39, %v324_v31  ;;  %v196_v49 = vmul.f32 %v897_v41, %v1178_v1  ;;  %v1120_v39 = vld [vmem:[%s1502_s0 + $0xf8] sm:$0xff]  }
  0x36   :  { %v266_v50 = vadd.f32 %v1192_v7, %v195_v42  ;;  %v901_v51 = vunpack.c.h.bf16 %v1113_v34  ;;  %v328_v54 = vmax.f32 %v264_v44, 0.0  ;;  %v197_v56 = vmul.f32 %v900_v46, %v1178_v1  ;;  %v1119_v34 = vld [vmem:[%s1502_s0 + $0xf0] sm:$0xff]  }
  0x37   :  { %v1038_v53 = vpack.c.bf16 %v327_v43, %v326_v40  ;;  %v329_v55 = vmax.f32 %v265_v45, 0.0  ;;  %1140 = vst [vmem:[%s1505_s3 + $0xa0] sm:$0xff] %v1033_v48   ;;  %v267_v57 = vadd.f32 %v1192_v7, %v196_v49  ;;  %v904_v60 = vunpack.c.l.bf16 %v1114_v47 }
  0x38   :  { %v330_v58 = vmax.f32 %v266_v50, 0.0  ;;  %v198_v59 = vmul.f32 %v901_v51, %v1178_v1  ;;  %v268_v63 = vadd.f32 %v1192_v7, %v197_v56  ;;  %v905_v0 = vunpack.c.h.bf16 %v1114_v47 }
  0x39   :  { %1141 = vst [vmem:[%s1505_s3 + $0xa8] sm:$0xff] %v1038_v53   ;;  %v1043_v62 = vpack.c.bf16 %v329_v55, %v328_v54  ;;  %v908_v2 = vunpack.c.l.bf16 %v1115_v52  ;;  %v331_v3 = vmax.f32 %v267_v57, 0.0  ;;  %v199_v5 = vmul.f32 %v904_v60, %v1178_v1 }
  0x3a   :  { %v269_v4 = vadd.f32 %v1192_v7, %v198_v59  ;;  %v909_v6 = vunpack.c.h.bf16 %v1115_v52  ;;  %v332_v8 = vmax.f32 %v268_v63, 0.0  ;;  %v200_v9 = vmul.f32 %v905_v0, %v1178_v1 }
  0x3b   :  { %1142 = vst [vmem:[%s1505_s3 + $0xb0] sm:$0xff] %v1043_v62   ;;  %v201_v10 = vmul.f32 %v908_v2, %v1178_v1  ;;  %v912_v11 = vunpack.c.l.bf16 %v1116_v61  ;;  %v1048_v13 = vpack.c.bf16 %v331_v3, %v330_v58  ;;  %v270_v15 = vadd.f32 %v1192_v7, %v199_v5 }
  0x3c   :  { %v333_v14 = vmax.f32 %v269_v4, 0.0  ;;  %v202_v16 = vmul.f32 %v909_v6, %v1178_v1  ;;  %v271_v17 = vadd.f32 %v1192_v7, %v200_v9  ;;  %v913_v19 = vunpack.c.h.bf16 %v1116_v61 }
  0x3d   :  { %v272_v18 = vadd.f32 %v1192_v7, %v201_v10  ;;  %v203_v20 = vmul.f32 %v912_v11, %v1178_v1  ;;  %1143 = vst [vmem:[%s1505_s3 + $0xb8] sm:$0xff] %v1048_v13   ;;  %v334_v23 = vmax.f32 %v270_v15, 0.0  ;;  %v916_v25 = vunpack.c.l.bf16 %v1117_v12 }
  0x3e   :  { %v1053_v22 = vpack.c.bf16 %v333_v14, %v332_v8  ;;  %v273_v24 = vadd.f32 %v1192_v7, %v202_v16  ;;  %v335_v26 = vmax.f32 %v271_v17, 0.0  ;;  %v204_v28 = vmul.f32 %v913_v19, %v1178_v1 }
  0x3f   :  { %v336_v27 = vmax.f32 %v272_v18, 0.0  ;;  %v274_v29 = vadd.f32 %v1192_v7, %v203_v20  ;;  %v917_v31 = vunpack.c.h.bf16 %v1117_v12  ;;  %v205_v32 = vmul.f32 %v916_v25, %v1178_v1 }
  0x40   :  { %1144 = vst [vmem:[%s1505_s3 + $0xc0] sm:$0xff] %v1053_v22   ;;  %v337_v30 = vmax.f32 %v273_v24, 0.0  ;;  %v920_v33 = vunpack.c.l.bf16 %v1118_v21  ;;  %v1058_v35 = vpack.c.bf16 %v335_v26, %v334_v23  ;;  %v275_v36 = vadd.f32 %v1192_v7, %v204_v28 }
  0x41   :  { %v338_v37 = vmax.f32 %v274_v29, 0.0  ;;  %v921_v38 = vunpack.c.h.bf16 %v1118_v21  ;;  %v206_v41 = vmul.f32 %v917_v31, %v1178_v1  ;;  %v276_v42 = vadd.f32 %v1192_v7, %v205_v32 }
  0x42   :  { %v1063_v40 = vpack.c.bf16 %v337_v30, %v336_v27  ;;  %v207_v43 = vmul.f32 %v920_v33, %v1178_v1  ;;  %1145 = vst [vmem:[%s1505_s3 + $0xc8] sm:$0xff] %v1058_v35   ;;  %v339_v44 = vmax.f32 %v275_v36, 0.0  ;;  %v924_v46 = vunpack.c.l.bf16 %v1119_v34 }
  0x43   :  { %v208_v45 = vmul.f32 %v921_v38, %v1178_v1  ;;  %v925_v47 = vunpack.c.h.bf16 %v1119_v34  ;;  %v277_v48 = vadd.f32 %v1192_v7, %v206_v41  ;;  %v340_v49 = vmax.f32 %v276_v42, 0.0 }
  0x44   :  { %1146 = vst [vmem:[%s1505_s3 + $0xd0] sm:$0xff] %v1063_v40   ;;  %v278_v50 = vadd.f32 %v1192_v7, %v207_v43  ;;  %v928_v51 = vunpack.c.l.bf16 %v1120_v39  ;;  %v1068_v52 = vpack.c.bf16 %v339_v44, %v338_v37  ;;  %v209_v54 = vmul.f32 %v924_v46, %v1178_v1 }
  0x45   :  { %v279_v53 = vadd.f32 %v1192_v7, %v208_v45  ;;  %v210_v55 = vmul.f32 %v925_v47, %v1178_v1  ;;  %v341_v56 = vmax.f32 %v277_v48, 0.0  ;;  %v929_v58 = vunpack.c.h.bf16 %v1120_v39 }
  0x46   :  { %v342_v57 = vmax.f32 %v278_v50, 0.0  ;;  %v211_v59 = vmul.f32 %v928_v51, %v1178_v1  ;;  %1147 = vst [vmem:[%s1505_s3 + $0xd8] sm:$0xff] %v1068_v52   ;;  %v280_v61 = vadd.f32 %v1192_v7, %v209_v54 }
  0x47   :  { %v343_v60 = vmax.f32 %v279_v53, 0.0  ;;  %v281_v62 = vadd.f32 %v1192_v7, %v210_v55  ;;  %v1073_v63 = vpack.c.bf16 %v341_v56, %v340_v49  ;;  %v212_v0 = vmul.f32 %v929_v58, %v1178_v1 }
  0x48   :  { %v282_v2 = vadd.f32 %v1192_v7, %v211_v59  ;;  %v344_v4 = vmax.f32 %v280_v61, 0.0 }
  0x49   :  { %v1078_v3 = vpack.c.bf16 %v343_v60, %v342_v57  ;;  %v345_v5 = vmax.f32 %v281_v62, 0.0  ;;  %1148 = vst [vmem:[%s1505_s3 + $0xe0] sm:$0xff] %v1073_v63   ;;  %v283_v6 = vadd.f32 %v1192_v7, %v212_v0 }
  0x4a   :  { %v346_v8 = vmax.f32 %v282_v2, 0.0 }
  0x4b   :  { %1149 = vst [vmem:[%s1505_s3 + $0xe8] sm:$0xff] %v1078_v3   ;;  %v1083_v9 = vpack.c.bf16 %v345_v5, %v344_v4  ;;  %v347_v10 = vmax.f32 %v283_v6, 0.0 }
  0x4d   :  { %1150 = vst [vmem:[%s1505_s3 + $0xf0] sm:$0xff] %v1083_v9   ;;  %v1088_v1 = vpack.c.bf16 %v347_v10, %v346_v8 }
  0x4f   :  { %1151 = vst [vmem:[%s1505_s3 + $0xf8] sm:$0xff] %v1088_v1  }

// kernel: resnet18_forward.44
= control target key start
LH: loop header
LB: loop body
LE: loop exit
PB: predicated region body
PF: predicated region fallthrough
CT: control target
= control target key end

     0   :  { %s1340_s0 = inlined_call_operand.vmem [shape: bf16[9,128,128], index: 0, kind: input, shape index: {}]   ;;  %s1341_s1 = inlined_call_operand.vmem [shape: bf16[128,128], index: 1, kind: output, shape index: {}]  }
   0x1   :  { %v677_v0 = vld [vmem:[%s1340_s0] sm:$0xff]   ;;  %v1004_v20 = vld [vmem:[%s1340_s0 + $0x8] sm:$0xff]   ;;  %v1005_v61 = vld [vmem:[%s1340_s0 + $0x10] sm:$0xff]  }
   0x2   :  { %v1011_v1 = vld [vmem:[%s1340_s0 + $0x40] sm:$0xff]   ;;  %v678_v3 = vunpack.c.l.bf16 %v677_v0  ;;  %v679_v4 = vunpack.c.h.bf16 %v677_v0  ;;  %v1012_v25 = vld [vmem:[%s1340_s0 + $0x48] sm:$0xff]   ;;  %v682_v34 = vunpack.c.l.bf16 %v1004_v20  ;;  %v683_v35 = vunpack.c.h.bf16 %v1004_v20 }
   0x3   :  { %v1019_v2 = vld [vmem:[%s1340_s0 + $0x80] sm:$0xff]   ;;  %v710_v5 = vunpack.c.l.bf16 %v1011_v1  ;;  %v711_v6 = vunpack.c.h.bf16 %v1011_v1  ;;  %v1020_v30 = vld [vmem:[%s1340_s0 + $0x88] sm:$0xff]   ;;  %v714_v38 = vunpack.c.l.bf16 %v1012_v25  ;;  %v715_v39 = vunpack.c.h.bf16 %v1012_v25  ;;  %v1037_v25 = vld [vmem:[%s1340_s0 + $0x110] sm:$0xff]  }
   0x4   :  { %v1027_v7 = vld [vmem:[%s1340_s0 + $0xc0] sm:$0xff]   ;;  %v742_v10 = vunpack.c.l.bf16 %v1019_v2  ;;  %v743_v11 = vunpack.c.h.bf16 %v1019_v2  ;;  %v1028_v31 = vld [vmem:[%s1340_s0 + $0xc8] sm:$0xff]   ;;  %v746_v42 = vunpack.c.l.bf16 %v1020_v30  ;;  %v747_v43 = vunpack.c.h.bf16 %v1020_v30  ;;  %v1045_v30 = vld [vmem:[%s1340_s0 + $0x150] sm:$0xff]  }
   0x5   :  { %v1035_v8 = vld [vmem:[%s1340_s0 + $0x100] sm:$0xff]   ;;  %v774_v12 = vunpack.c.l.bf16 %v1027_v7  ;;  %v73_v15 = vmax.f32 %v678_v3, %v710_v5  ;;  %v74_v16 = vmax.f32 %v679_v4, %v711_v6  ;;  %v775_v17 = vunpack.c.h.bf16 %v1027_v7  ;;  %v1036_v40 = vld [vmem:[%s1340_s0 + $0x108] sm:$0xff]   ;;  %v1013_v6 = vld [vmem:[%s1340_s0 + $0x50] sm:$0xff]  }
   0x6   :  { %v1043_v9 = vld [vmem:[%s1340_s0 + $0x140] sm:$0xff]   ;;  %v806_v18 = vunpack.c.l.bf16 %v1035_v8  ;;  %v807_v21 = vunpack.c.h.bf16 %v1035_v8  ;;  %v1044_v41 = vld [vmem:[%s1340_s0 + $0x148] sm:$0xff]   ;;  %v778_v44 = vunpack.c.l.bf16 %v1028_v31  ;;  %v779_v45 = vunpack.c.h.bf16 %v1028_v31  ;;  %v1021_v7 = vld [vmem:[%s1340_s0 + $0x90] sm:$0xff]  }
   0x7   :  { %v1051_v13 = vld [vmem:[%s1340_s0 + $0x180] sm:$0xff]   ;;  %v838_v22 = vunpack.c.l.bf16 %v1043_v9  ;;  %v839_v23 = vunpack.c.h.bf16 %v1043_v9  ;;  %v122_v26 = vmax.f32 %v73_v15, %v742_v10  ;;  %v123_v27 = vmax.f32 %v74_v16, %v743_v11  ;;  %v1052_v50 = vld [vmem:[%s1340_s0 + $0x188] sm:$0xff]   ;;  %v1029_v16 = vld [vmem:[%s1340_s0 + $0xd0] sm:$0xff]  }
   0x8   :  { %v1116_v14 = vld [vmem:[%s1340_s0 + $0x1c0] sm:$0xff]   ;;  %v870_v24 = vunpack.c.l.bf16 %v1051_v13  ;;  %v871_v28 = vunpack.c.h.bf16 %v1051_v13  ;;  %v75_v48 = vmax.f32 %v682_v34, %v714_v38  ;;  %v76_v49 = vmax.f32 %v683_v35, %v715_v39  ;;  %v1060_v51 = vld [vmem:[%s1340_s0 + $0x1c8] sm:$0xff]  }
   0x9   :  { %v1121_v19 = vld [vmem:[%s1340_s0 + $0x200] sm:$0xff]   ;;  %v902_v29 = vunpack.c.l.bf16 %v1116_v14  ;;  %v903_v32 = vunpack.c.h.bf16 %v1116_v14  ;;  %v171_v36 = vmax.f32 %v122_v26, %v774_v12  ;;  %v172_v37 = vmax.f32 %v123_v27, %v775_v17  ;;  %v1068_v60 = vld [vmem:[%s1340_s0 + $0x208] sm:$0xff]  }
   0xa   :  { %v934_v33 = vunpack.c.l.bf16 %v1121_v19  ;;  %v935_v52 = vunpack.c.h.bf16 %v1121_v19  ;;  %v810_v53 = vunpack.c.l.bf16 %v1036_v40  ;;  %v811_v54 = vunpack.c.h.bf16 %v1036_v40  ;;  %v1061_v40 = vld [vmem:[%s1340_s0 + $0x1d0] sm:$0xff]  }
   0xb   :  { %v220_v46 = vmax.f32 %v171_v36, %v806_v18  ;;  %v221_v47 = vmax.f32 %v172_v37, %v807_v21  ;;  %v842_v55 = vunpack.c.l.bf16 %v1044_v41  ;;  %v124_v58 = vmax.f32 %v75_v48, %v746_v42 }
   0xc   :  { %v125_v59 = vmax.f32 %v76_v49, %v747_v43  ;;  %v843_v62 = vunpack.c.h.bf16 %v1044_v41  ;;  %v874_v63 = vunpack.c.l.bf16 %v1052_v50  ;;  %v875_v0 = vunpack.c.h.bf16 %v1052_v50 }
   0xd   :  { %v269_v56 = vmax.f32 %v220_v46, %v838_v22  ;;  %v270_v57 = vmax.f32 %v221_v47, %v839_v23  ;;  %v906_v1 = vunpack.c.l.bf16 %v1060_v51  ;;  %v173_v4 = vmax.f32 %v124_v58, %v778_v44  ;;  %v1006_v46 = vld [vmem:[%s1340_s0 + $0x18] sm:$0xff]  }
   0xe   :  { %v174_v5 = vmax.f32 %v125_v59, %v779_v45  ;;  %v907_v8 = vunpack.c.h.bf16 %v1060_v51  ;;  %v938_v9 = vunpack.c.l.bf16 %v1068_v60  ;;  %v686_v10 = vunpack.c.l.bf16 %v1005_v61  ;;  %v1069_v45 = vld [vmem:[%s1340_s0 + $0x210] sm:$0xff]   ;;  %v1014_v51 = vld [vmem:[%s1340_s0 + $0x58] sm:$0xff]  }
   0xf   :  { %v318_v2 = vmax.f32 %v269_v56, %v870_v24  ;;  %v319_v3 = vmax.f32 %v270_v57, %v871_v28  ;;  %v687_v11 = vunpack.c.h.bf16 %v1005_v61  ;;  %v222_v14 = vmax.f32 %v173_v4, %v810_v53  ;;  %v1022_v56 = vld [vmem:[%s1340_s0 + $0x98] sm:$0xff]  }
  0x10   :  { %v223_v15 = vmax.f32 %v174_v5, %v811_v54  ;;  %v718_v17 = vunpack.c.l.bf16 %v1013_v6  ;;  %v719_v18 = vunpack.c.h.bf16 %v1013_v6  ;;  %v750_v19 = vunpack.c.l.bf16 %v1021_v7  ;;  %v1030_v61 = vld [vmem:[%s1340_s0 + $0xd8] sm:$0xff]  }
  0x11   :  { %v367_v12 = vmax.f32 %v318_v2, %v902_v29  ;;  %v368_v13 = vmax.f32 %v319_v3, %v903_v32  ;;  %v751_v20 = vunpack.c.h.bf16 %v1021_v7  ;;  %v271_v23 = vmax.f32 %v222_v14, %v842_v55  ;;  %v1038_v2 = vld [vmem:[%s1340_s0 + $0x118] sm:$0xff]  }
  0x12   :  { %v272_v24 = vmax.f32 %v223_v15, %v843_v62  ;;  %v77_v26 = vmax.f32 %v686_v10, %v718_v17  ;;  %v78_v27 = vmax.f32 %v687_v11, %v719_v18  ;;  %v782_v28 = vunpack.c.l.bf16 %v1029_v16  ;;  %v1046_v7 = vld [vmem:[%s1340_s0 + $0x158] sm:$0xff]  }
  0x13   :  { %v416_v21 = vmax.f32 %v367_v12, %v934_v33  ;;  %v417_v22 = vmax.f32 %v368_v13, %v935_v52  ;;  %v783_v29 = vunpack.c.h.bf16 %v1029_v16  ;;  %v320_v32 = vmax.f32 %v271_v23, %v874_v63  ;;  %v1053_v33 = vld [vmem:[%s1340_s0 + $0x190] sm:$0xff]   ;;  %v1054_v12 = vld [vmem:[%s1340_s0 + $0x198] sm:$0xff]  }
  0x14   :  { %v321_v34 = vmax.f32 %v272_v24, %v875_v0  ;;  %v939_v35 = vunpack.c.h.bf16 %v1068_v60  ;;  %v126_v36 = vmax.f32 %v77_v26, %v750_v19  ;;  %v127_v37 = vmax.f32 %v78_v27, %v751_v20  ;;  %v1062_v17 = vld [vmem:[%s1340_s0 + $0x1d8] sm:$0xff]   ;;  %v1007_v27 = vld [vmem:[%s1340_s0 + $0x20] sm:$0xff]  }
  0x15   :  { %v967_v31 = vpack.c.bf16 %v417_v22, %v416_v21  ;;  %v814_v38 = vunpack.c.l.bf16 %v1037_v25  ;;  %v815_v39 = vunpack.c.h.bf16 %v1037_v25  ;;  %v369_v41 = vmax.f32 %v320_v32, %v906_v1  ;;  %v1070_v22 = vld [vmem:[%s1340_s0 + $0x218] sm:$0xff]   ;;  %v1015_v32 = vld [vmem:[%s1340_s0 + $0x60] sm:$0xff]  }
  0x16   :  { %v370_v42 = vmax.f32 %v321_v34, %v907_v8  ;;  %v846_v43 = vunpack.c.l.bf16 %v1045_v30  ;;  %v847_v44 = vunpack.c.h.bf16 %v1045_v30  ;;  %v175_v47 = vmax.f32 %v126_v36, %v782_v28  ;;  %v1023_v34 = vld [vmem:[%s1340_s0 + $0xa0] sm:$0xff]  }
  0x17   :  { %968 = vst [vmem:[%s1341_s1] sm:$0xff] %v967_v31   ;;  %v176_v48 = vmax.f32 %v127_v37, %v783_v29  ;;  %v878_v49 = vunpack.c.l.bf16 %v1053_v33  ;;  %v879_v50 = vunpack.c.h.bf16 %v1053_v33  ;;  %v418_v52 = vmax.f32 %v369_v41, %v938_v9 }
  0x18   :  { %v419_v53 = vmax.f32 %v370_v42, %v939_v35  ;;  %v910_v54 = vunpack.c.l.bf16 %v1061_v40  ;;  %v911_v55 = vunpack.c.h.bf16 %v1061_v40  ;;  %v224_v57 = vmax.f32 %v175_v47, %v814_v38  ;;  %v1031_v42 = vld [vmem:[%s1340_s0 + $0xe0] sm:$0xff]  }
  0x19   :  { %v225_v58 = vmax.f32 %v176_v48, %v815_v39  ;;  %v942_v59 = vunpack.c.l.bf16 %v1069_v45  ;;  %v690_v60 = vunpack.c.l.bf16 %v1006_v46  ;;  %v691_v63 = vunpack.c.h.bf16 %v1006_v46  ;;  %v1039_v47 = vld [vmem:[%s1340_s0 + $0x120] sm:$0xff]  }
  0x1a   :  { %v972_v62 = vpack.c.bf16 %v419_v53, %v418_v52  ;;  %v722_v0 = vunpack.c.l.bf16 %v1014_v51  ;;  %v723_v1 = vunpack.c.h.bf16 %v1014_v51  ;;  %v273_v3 = vmax.f32 %v224_v57, %v846_v43  ;;  %v1047_v52 = vld [vmem:[%s1340_s0 + $0x160] sm:$0xff]  }
  0x1b   :  { %v274_v4 = vmax.f32 %v225_v58, %v847_v44  ;;  %v754_v5 = vunpack.c.l.bf16 %v1022_v56  ;;  %v755_v6 = vunpack.c.h.bf16 %v1022_v56  ;;  %v786_v10 = vunpack.c.l.bf16 %v1030_v61  ;;  %v1055_v57 = vld [vmem:[%s1340_s0 + $0x1a0] sm:$0xff]  }
  0x1c   :  { %1075 = vst [vmem:[%s1341_s1 + $0x8] sm:$0xff] %v972_v62   ;;  %v79_v8 = vmax.f32 %v690_v60, %v722_v0  ;;  %v80_v9 = vmax.f32 %v691_v63, %v723_v1  ;;  %v787_v11 = vunpack.c.h.bf16 %v1030_v61  ;;  %v322_v13 = vmax.f32 %v273_v3, %v878_v49  ;;  %v1063_v62 = vld [vmem:[%s1340_s0 + $0x1e0] sm:$0xff]  }
  0x1d   :  { %v323_v14 = vmax.f32 %v274_v4, %v879_v50  ;;  %v943_v15 = vunpack.c.h.bf16 %v1069_v45  ;;  %v818_v16 = vunpack.c.l.bf16 %v1038_v2  ;;  %v819_v20 = vunpack.c.h.bf16 %v1038_v2  ;;  %v1071_v3 = vld [vmem:[%s1340_s0 + $0x220] sm:$0xff]   ;;  %v1008_v4 = vld [vmem:[%s1340_s0 + $0x28] sm:$0xff]  }
  0x1e   :  { %v128_v18 = vmax.f32 %v79_v8, %v754_v5  ;;  %v129_v19 = vmax.f32 %v80_v9, %v755_v6  ;;  %v850_v21 = vunpack.c.l.bf16 %v1046_v7  ;;  %v371_v23 = vmax.f32 %v322_v13, %v910_v54  ;;  %v1016_v9 = vld [vmem:[%s1340_s0 + $0x68] sm:$0xff]  }
  0x1f   :  { %v372_v24 = vmax.f32 %v323_v14, %v911_v55  ;;  %v851_v25 = vunpack.c.h.bf16 %v1046_v7  ;;  %v882_v26 = vunpack.c.l.bf16 %v1054_v12  ;;  %v883_v30 = vunpack.c.h.bf16 %v1054_v12  ;;  %v1024_v14 = vld [vmem:[%s1340_s0 + $0xa8] sm:$0xff]  }
  0x20   :  { %v177_v28 = vmax.f32 %v128_v18, %v786_v10  ;;  %v178_v29 = vmax.f32 %v129_v19, %v787_v11  ;;  %v914_v31 = vunpack.c.l.bf16 %v1062_v17  ;;  %v420_v35 = vmax.f32 %v371_v23, %v942_v59  ;;  %v1032_v19 = vld [vmem:[%s1340_s0 + $0xe8] sm:$0xff]  }
  0x21   :  { %v421_v33 = vmax.f32 %v372_v24, %v943_v15  ;;  %v915_v36 = vunpack.c.h.bf16 %v1062_v17  ;;  %v946_v37 = vunpack.c.l.bf16 %v1070_v22  ;;  %v694_v40 = vunpack.c.l.bf16 %v1007_v27  ;;  %v1040_v24 = vld [vmem:[%s1340_s0 + $0x128] sm:$0xff]  }
  0x22   :  { %v226_v38 = vmax.f32 %v177_v28, %v818_v16  ;;  %v227_v39 = vmax.f32 %v178_v29, %v819_v20  ;;  %v695_v41 = vunpack.c.h.bf16 %v1007_v27  ;;  %v726_v44 = vunpack.c.l.bf16 %v1015_v32 }
  0x23   :  { %v977_v43 = vpack.c.bf16 %v421_v33, %v420_v35  ;;  %v727_v45 = vunpack.c.h.bf16 %v1015_v32  ;;  %v758_v46 = vunpack.c.l.bf16 %v1023_v34  ;;  %v947_v50 = vunpack.c.h.bf16 %v1070_v22  ;;  %v1056_v35 = vld [vmem:[%s1340_s0 + $0x1a8] sm:$0xff]  }
  0x24   :  { %v275_v48 = vmax.f32 %v226_v38, %v850_v21  ;;  %v276_v49 = vmax.f32 %v227_v39, %v851_v25  ;;  %v759_v51 = vunpack.c.h.bf16 %v1023_v34  ;;  %v81_v53 = vmax.f32 %v694_v40, %v726_v44  ;;  %v1048_v34 = vld [vmem:[%s1340_s0 + $0x168] sm:$0xff]  }
  0x25   :  { %1076 = vst [vmem:[%s1341_s1 + $0x10] sm:$0xff] %v977_v43   ;;  %v82_v54 = vmax.f32 %v695_v41, %v727_v45  ;;  %v790_v55 = vunpack.c.l.bf16 %v1031_v42  ;;  %v791_v56 = vunpack.c.h.bf16 %v1031_v42  ;;  %v822_v60 = vunpack.c.l.bf16 %v1039_v47  ;;  %v1064_v43 = vld [vmem:[%s1340_s0 + $0x1e8] sm:$0xff]  }
  0x26   :  { %v324_v58 = vmax.f32 %v275_v48, %v882_v26  ;;  %v325_v59 = vmax.f32 %v276_v49, %v883_v30  ;;  %v823_v61 = vunpack.c.h.bf16 %v1039_v47  ;;  %v130_v63 = vmax.f32 %v81_v53, %v758_v46  ;;  %v1072_v44 = vld [vmem:[%s1340_s0 + $0x228] sm:$0xff]   ;;  %v1009_v49 = vld [vmem:[%s1340_s0 + $0x30] sm:$0xff]  }
  0x27   :  { %v131_v0 = vmax.f32 %v82_v54, %v759_v51  ;;  %v854_v1 = vunpack.c.l.bf16 %v1047_v52  ;;  %v855_v2 = vunpack.c.h.bf16 %v1047_v52  ;;  %v886_v7 = vunpack.c.l.bf16 %v1055_v57  ;;  %v1017_v54 = vld [vmem:[%s1340_s0 + $0x70] sm:$0xff]  }
  0x28   :  { %v373_v5 = vmax.f32 %v324_v58, %v914_v31  ;;  %v374_v6 = vmax.f32 %v325_v59, %v915_v36  ;;  %v887_v8 = vunpack.c.h.bf16 %v1055_v57  ;;  %v179_v10 = vmax.f32 %v130_v63, %v790_v55  ;;  %v1025_v59 = vld [vmem:[%s1340_s0 + $0xb0] sm:$0xff]  }
  0x29   :  { %v180_v11 = vmax.f32 %v131_v0, %v791_v56  ;;  %v918_v12 = vunpack.c.l.bf16 %v1063_v62  ;;  %v919_v13 = vunpack.c.h.bf16 %v1063_v62  ;;  %v950_v17 = vunpack.c.l.bf16 %v1071_v3  ;;  %v1033_v0 = vld [vmem:[%s1340_s0 + $0xf0] sm:$0xff]  }
  0x2a   :  { %v422_v15 = vmax.f32 %v373_v5, %v946_v37  ;;  %v423_v16 = vmax.f32 %v374_v6, %v947_v50  ;;  %v698_v18 = vunpack.c.l.bf16 %v1008_v4  ;;  %v228_v20 = vmax.f32 %v179_v10, %v822_v60  ;;  %v1041_v5 = vld [vmem:[%s1340_s0 + $0x130] sm:$0xff]  }
  0x2b   :  { %v229_v21 = vmax.f32 %v180_v11, %v823_v61  ;;  %v699_v22 = vunpack.c.h.bf16 %v1008_v4  ;;  %v730_v23 = vunpack.c.l.bf16 %v1016_v9  ;;  %v731_v26 = vunpack.c.h.bf16 %v1016_v9 }
  0x2c   :  { %v982_v25 = vpack.c.bf16 %v423_v16, %v422_v15  ;;  %v762_v27 = vunpack.c.l.bf16 %v1024_v14  ;;  %v763_v28 = vunpack.c.h.bf16 %v1024_v14  ;;  %v277_v29 = vmax.f32 %v228_v20, %v854_v1  ;;  %v1049_v14 = vld [vmem:[%s1340_s0 + $0x170] sm:$0xff]  }
  0x2d   :  { %v278_v30 = vmax.f32 %v229_v21, %v855_v2  ;;  %v83_v31 = vmax.f32 %v698_v18, %v730_v23  ;;  %v794_v32 = vunpack.c.l.bf16 %v1032_v19  ;;  %v951_v33 = vunpack.c.h.bf16 %v1071_v3 }
  0x2e   :  { %1077 = vst [vmem:[%s1341_s1 + $0x18] sm:$0xff] %v982_v25   ;;  %v84_v36 = vmax.f32 %v699_v22, %v731_v26  ;;  %v795_v37 = vunpack.c.h.bf16 %v1032_v19  ;;  %v826_v38 = vunpack.c.l.bf16 %v1040_v24  ;;  %v326_v39 = vmax.f32 %v277_v29, %v886_v7  ;;  %v1057_v19 = vld [vmem:[%s1340_s0 + $0x1b0] sm:$0xff]  }
  0x2f   :  { %v327_v40 = vmax.f32 %v278_v30, %v887_v8  ;;  %v132_v41 = vmax.f32 %v83_v31, %v762_v27  ;;  %v827_v42 = vunpack.c.h.bf16 %v1040_v24  ;;  %v858_v46 = vunpack.c.l.bf16 %v1048_v34  ;;  %v1065_v24 = vld [vmem:[%s1340_s0 + $0x1f0] sm:$0xff]  }
  0x30   :  { %v133_v45 = vmax.f32 %v84_v36, %v763_v28  ;;  %v859_v47 = vunpack.c.h.bf16 %v1048_v34  ;;  %v890_v48 = vunpack.c.l.bf16 %v1056_v35  ;;  %v375_v50 = vmax.f32 %v326_v39, %v918_v12  ;;  %v1010_v28 = vld [vmem:[%s1340_s0 + $0x38] sm:$0xff]  }
  0x31   :  { %v376_v51 = vmax.f32 %v327_v40, %v919_v13  ;;  %v181_v52 = vmax.f32 %v132_v41, %v794_v32  ;;  %v891_v53 = vunpack.c.h.bf16 %v1056_v35  ;;  %v922_v56 = vunpack.c.l.bf16 %v1064_v43  ;;  %v1018_v34 = vld [vmem:[%s1340_s0 + $0x78] sm:$0xff]  }
  0x32   :  { %v182_v55 = vmax.f32 %v133_v45, %v795_v37  ;;  %v923_v57 = vunpack.c.h.bf16 %v1064_v43  ;;  %v954_v58 = vunpack.c.l.bf16 %v1072_v44  ;;  %v424_v60 = vmax.f32 %v375_v50, %v950_v17  ;;  %v1026_v35 = vld [vmem:[%s1340_s0 + $0xb8] sm:$0xff]  }
  0x33   :  { %v425_v61 = vmax.f32 %v376_v51, %v951_v33  ;;  %v230_v62 = vmax.f32 %v181_v52, %v826_v38  ;;  %v702_v63 = vunpack.c.l.bf16 %v1009_v49  ;;  %v703_v2 = vunpack.c.h.bf16 %v1009_v49  ;;  %v1034_v43 = vld [vmem:[%s1340_s0 + $0xf8] sm:$0xff]  }
  0x34   :  { %v231_v1 = vmax.f32 %v182_v55, %v827_v42  ;;  %v734_v3 = vunpack.c.l.bf16 %v1017_v54  ;;  %v735_v4 = vunpack.c.h.bf16 %v1017_v54  ;;  %v766_v8 = vunpack.c.l.bf16 %v1025_v59 }
  0x35   :  { %v987_v6 = vpack.c.bf16 %v425_v61, %v424_v60  ;;  %v279_v7 = vmax.f32 %v230_v62, %v858_v46  ;;  %v767_v9 = vunpack.c.h.bf16 %v1025_v59  ;;  %v798_v13 = vunpack.c.l.bf16 %v1033_v0  ;;  %v1050_v62 = vld [vmem:[%s1340_s0 + $0x178] sm:$0xff]  }
  0x36   :  { %v280_v10 = vmax.f32 %v231_v1, %v859_v47  ;;  %v85_v11 = vmax.f32 %v702_v63, %v734_v3  ;;  %v86_v12 = vmax.f32 %v703_v2, %v735_v4  ;;  %v955_v16 = vunpack.c.h.bf16 %v1072_v44  ;;  %v1073_v44 = vld [vmem:[%s1340_s0 + $0x230] sm:$0xff]  }
  0x37   :  { %1078 = vst [vmem:[%s1341_s1 + $0x20] sm:$0xff] %v987_v6   ;;  %v328_v15 = vmax.f32 %v279_v7, %v890_v48  ;;  %v799_v17 = vunpack.c.h.bf16 %v1033_v0  ;;  %v830_v18 = vunpack.c.l.bf16 %v1041_v5  ;;  %v831_v23 = vunpack.c.h.bf16 %v1041_v5  ;;  %v1058_v5 = vld [vmem:[%s1340_s0 + $0x1b8] sm:$0xff]  }
  0x38   :  { %v329_v20 = vmax.f32 %v280_v10, %v891_v53  ;;  %v134_v21 = vmax.f32 %v85_v11, %v766_v8  ;;  %v135_v22 = vmax.f32 %v86_v12, %v767_v9  ;;  %v862_v26 = vunpack.c.l.bf16 %v1049_v14  ;;  %v1042_v53 = vld [vmem:[%s1340_s0 + $0x138] sm:$0xff]  }
  0x39   :  { %v377_v25 = vmax.f32 %v328_v15, %v922_v56  ;;  %v863_v27 = vunpack.c.h.bf16 %v1049_v14  ;;  %v894_v32 = vunpack.c.l.bf16 %v1057_v19  ;;  %v895_v36 = vunpack.c.h.bf16 %v1057_v19  ;;  %v1066_v12 = vld [vmem:[%s1340_s0 + $0x1f8] sm:$0xff]  }
  0x3a   :  { %v378_v29 = vmax.f32 %v329_v20, %v923_v57  ;;  %v183_v30 = vmax.f32 %v134_v21, %v798_v13  ;;  %v184_v31 = vmax.f32 %v135_v22, %v799_v17  ;;  %v926_v37 = vunpack.c.l.bf16 %v1065_v24 }
  0x3b   :  { %v426_v33 = vmax.f32 %v377_v25, %v954_v58  ;;  %v927_v38 = vunpack.c.h.bf16 %v1065_v24  ;;  %v706_v42 = vunpack.c.l.bf16 %v1010_v28  ;;  %v707_v45 = vunpack.c.h.bf16 %v1010_v28 }
  0x3c   :  { %v427_v39 = vmax.f32 %v378_v29, %v955_v16  ;;  %v232_v40 = vmax.f32 %v183_v30, %v830_v18  ;;  %v233_v41 = vmax.f32 %v184_v31, %v831_v23  ;;  %v738_v46 = vunpack.c.l.bf16 %v1018_v34  ;;  %v1074_v18 = vld [vmem:[%s1340_s0 + $0x238] sm:$0xff]  }
  0x3d   :  { %v739_v47 = vunpack.c.h.bf16 %v1018_v34  ;;  %v770_v48 = vunpack.c.l.bf16 %v1026_v35  ;;  %v771_v52 = vunpack.c.h.bf16 %v1026_v35  ;;  %v802_v56 = vunpack.c.l.bf16 %v1034_v43 }
  0x3e   :  { %v992_v49 = vpack.c.bf16 %v427_v39, %v426_v33  ;;  %v281_v50 = vmax.f32 %v232_v40, %v862_v26  ;;  %v282_v51 = vmax.f32 %v233_v41, %v863_v27  ;;  %v87_v54 = vmax.f32 %v706_v42, %v738_v46 }
  0x3f   :  { %v88_v55 = vmax.f32 %v707_v45, %v739_v47  ;;  %v803_v57 = vunpack.c.h.bf16 %v1034_v43  ;;  %v958_v60 = vunpack.c.l.bf16 %v1073_v44  ;;  %v959_v61 = vunpack.c.h.bf16 %v1073_v44 }
  0x40   :  { %1079 = vst [vmem:[%s1341_s1 + $0x28] sm:$0xff] %v992_v49   ;;  %v330_v58 = vmax.f32 %v281_v50, %v894_v32  ;;  %v331_v59 = vmax.f32 %v282_v51, %v895_v36  ;;  %v136_v63 = vmax.f32 %v87_v54, %v770_v48  ;;  %v834_v1 = vunpack.c.l.bf16 %v1042_v53 }
  0x41   :  { %v137_v0 = vmax.f32 %v88_v55, %v771_v52  ;;  %v835_v2 = vunpack.c.h.bf16 %v1042_v53  ;;  %v866_v8 = vunpack.c.l.bf16 %v1050_v62  ;;  %v867_v9 = vunpack.c.h.bf16 %v1050_v62 }
  0x42   :  { %v379_v3 = vmax.f32 %v330_v58, %v926_v37  ;;  %v380_v4 = vmax.f32 %v331_v59, %v927_v38  ;;  %v185_v6 = vmax.f32 %v136_v63, %v802_v56  ;;  %v898_v15 = vunpack.c.l.bf16 %v1058_v5 }
  0x43   :  { %v186_v7 = vmax.f32 %v137_v0, %v803_v57  ;;  %v899_v16 = vunpack.c.h.bf16 %v1058_v5  ;;  %v930_v21 = vunpack.c.l.bf16 %v1066_v12  ;;  %v931_v22 = vunpack.c.h.bf16 %v1066_v12 }
  0x44   :  { %v428_v10 = vmax.f32 %v379_v3, %v958_v60  ;;  %v429_v11 = vmax.f32 %v380_v4, %v959_v61  ;;  %v234_v13 = vmax.f32 %v185_v6, %v834_v1  ;;  %v962_v25 = vunpack.c.l.bf16 %v1074_v18 }
  0x45   :  { %v235_v14 = vmax.f32 %v186_v7, %v835_v2  ;;  %v963_v26 = vunpack.c.h.bf16 %v1074_v18 }
  0x46   :  { %v997_v17 = vpack.c.bf16 %v429_v11, %v428_v10  ;;  %v283_v19 = vmax.f32 %v234_v13, %v866_v8 }
  0x47   :  { %v284_v20 = vmax.f32 %v235_v14, %v867_v9 }
  0x48   :  { %1080 = vst [vmem:[%s1341_s1 + $0x30] sm:$0xff] %v997_v17   ;;  %v332_v23 = vmax.f32 %v283_v19, %v898_v15 }
  0x49   :  { %v333_v24 = vmax.f32 %v284_v20, %v899_v16 }
  0x4a   :  { %v381_v27 = vmax.f32 %v332_v23, %v930_v21 }
  0x4b   :  { %v382_v28 = vmax.f32 %v333_v24, %v931_v22 }
  0x4c   :  { %v430_v29 = vmax.f32 %v381_v27, %v962_v25 }
  0x4d   :  { %v431_v30 = vmax.f32 %v382_v28, %v963_v26 }
  0x4f   :  { %v1002_v31 = vpack.c.bf16 %v431_v30, %v430_v29 }
  0x51   :  { %1081 = vst [vmem:[%s1341_s1 + $0x38] sm:$0xff] %v1002_v31  }

// kernel: resnet18_forward.45
= control target key start
LH: loop header
LB: loop body
LE: loop exit
PB: predicated region body
PF: predicated region fallthrough
CT: control target
= control target key end

     0   :  { %s1464_s15 = smov 0   ;;  %s1466_s16 = smov 0   ;;  %s1615_s0 = inlined_call_operand.vmem [shape: bf16[128,768], index: 0, kind: input, shape index: {}]   ;;  %s1616_s1 = inlined_call_operand.vmem [shape: bf16[768,128], index: 1, kind: input, shape index: {}]   ;;  %s1617_s2 = inlined_call_operand.vmem [shape: bf16[128,128], index: 2, kind: output, shape index: {0}]   ;;  %s1618_s3 = inlined_call_operand.vmem [shape: f32[1,1,128], index: 3, kind: output, shape index: {1}]   ;;  %s1619_s4 = inlined_call_operand.vmem [shape: f32[1,1,128], index: 4, kind: output, shape index: {2}]  }
   0x1   :  { %s1468_s17 = smov 0   ;;  %s1470_s18 = smov 0  }
   0x2   :  { %s1472_s19 = smov 0  }
   0x3 LB: > { %s27_s20 = sadd.s32 1, %s1432_s18  ;;  %p50_p1 = scmp.ne.s32.totalorder %s1424_s16, %s1420_s15  ;;  %s1436_s19 = sphi %s1472_s19, %s15_s19   ;;  %s1432_s18 = sphi %s1470_s18, %s1623_s18   ;;  %s1428_s17 = sphi %s1468_s17, %s1622_s17   ;;  %s1424_s16 = sphi %s1466_s16, %s1621_s16   ;;  %s1420_s15 = sphi %s1464_s15, %s1620_s15  }
   0x4   : > { %p28_p0 = scmp.ge.s32.totalorder %s27_s20, 3  ;;  %p51_p2 = scmp.eq.s32.totalorder %s1436_s19, 0 }
   0x5   : > { %s43_s22 = sadd.s32 1, %s1424_s16  ;;  %p1109_p5 = scmp.ge.s32.totalorder %s1436_s19, 3 }
   0x6   : > { %s1625_s20 = smov (%p28_p0, %s27_s20), 0  ;;  %p52_p3 = por %p51_p2, %p50_p1 }
   0x7   : > { %s39_s21 = ssub.s32 %s1432_s18, %s1625_s20  ;;  %188 = sbr.rel (%p1109_p5) target bundleno = 26 (0x1a), region = 16 }
   0x8   : > { %p41_p4 = scmp.eq.s32.totalorder %s39_s21, 0 }
   0xa   : > { %s1499_s23 = scalar_select %p41_p4, %s1424_s16, %s43_s22  }
   0xe   : > { %191 = sbr.rel (!%p52_p3) target bundleno = 26 (0x1a), region = 20  ;;  %s193_s24 = sand.u32 (%p52_p3), 1, %s1424_s16  }
   0xf   : > { %s1173_s25 = sshll.u32 (%p52_p3), %s1432_s18, 3  ;;  %s1110_s26 = sshll.u32 (%p52_p3), %s193_s24, 7 }
  0x10   : > { %s1507_s29 = scalar_lea.vmem (%p52_p3), %s1615_s0, %s1173_s25  ;;  %s195_s30 = scalar_lea.vmem (%p52_p3), [#allocation3], %s1110_s26 }
  0x11   : > { %v259_v0 = vld [vmem:[%s1507_s29] sm:$0xff] (%p52_p3)  ;;  %v261_v1 = vld [vmem:[%s1507_s29 + $0x18] sm:$0xff] (%p52_p3)  ;;  %v263_v2 = vld [vmem:[%s1507_s29 + $0x30] sm:$0xff] (%p52_p3) }
  0x12   : > { %260 = vst [vmem:[%s195_s30] sm:$0xff] (%p52_p3), %v259_v0  ;;  %262 = vst [vmem:[%s195_s30 + $0x8] sm:$0xff] (%p52_p3), %v261_v1  ;;  %v265_v3 = vld [vmem:[%s1507_s29 + $0x48] sm:$0xff] (%p52_p3)  ;;  %v267_v4 = vld [vmem:[%s1507_s29 + $0x60] sm:$0xff] (%p52_p3) }
  0x13   : > { %264 = vst [vmem:[%s195_s30 + $0x10] sm:$0xff] (%p52_p3), %v263_v2  ;;  %v269_v5 = vld [vmem:[%s1507_s29 + $0x78] sm:$0xff] (%p52_p3)  ;;  %266 = vst [vmem:[%s195_s30 + $0x18] sm:$0xff] (%p52_p3), %v265_v3  ;;  %v271_v6 = vld [vmem:[%s1507_s29 + $0x90] sm:$0xff] (%p52_p3) }
  0x14   : > { %268 = vst [vmem:[%s195_s30 + $0x20] sm:$0xff] (%p52_p3), %v267_v4  ;;  %270 = vst [vmem:[%s195_s30 + $0x28] sm:$0xff] (%p52_p3), %v269_v5  ;;  %v273_v7 = vld [vmem:[%s1507_s29 + $0xa8] sm:$0xff] (%p52_p3)  ;;  %v275_v8 = vld [vmem:[%s1507_s29 + $0xc0] sm:$0xff] (%p52_p3) }
  0x15   : > { %272 = vst [vmem:[%s195_s30 + $0x30] sm:$0xff] %v271_v6  ;;  %274 = vst [vmem:[%s195_s30 + $0x38] sm:$0xff] %v273_v7  ;;  %v277_v9 = vld [vmem:[%s1507_s29 + $0xd8] sm:$0xff]  ;;  %v279_v10 = vld [vmem:[%s1507_s29 + $0xf0] sm:$0xff] }
  0x16   : > { %276 = vst [vmem:[%s195_s30 + $0x40] sm:$0xff] %v275_v8  ;;  %v281_v11 = vld [vmem:[%s1507_s29 + $0x108] sm:$0xff]  ;;  %278 = vst [vmem:[%s195_s30 + $0x48] sm:$0xff] %v277_v9  ;;  %v283_v12 = vld [vmem:[%s1507_s29 + $0x120] sm:$0xff] }
  0x17   : > { %280 = vst [vmem:[%s195_s30 + $0x50] sm:$0xff] %v279_v10  ;;  %282 = vst [vmem:[%s195_s30 + $0x58] sm:$0xff] %v281_v11  ;;  %v285_v13 = vld [vmem:[%s1507_s29 + $0x138] sm:$0xff]  ;;  %v287_v14 = vld [vmem:[%s1507_s29 + $0x150] sm:$0xff] }
  0x18   : > { %284 = vst [vmem:[%s195_s30 + $0x60] sm:$0xff] %v283_v12  ;;  %286 = vst [vmem:[%s195_s30 + $0x68] sm:$0xff] %v285_v13  ;;  %v289_v15 = vld [vmem:[%s1507_s29 + $0x168] sm:$0xff] }
  0x19   : > { %288 = vst [vmem:[%s195_s30 + $0x70] sm:$0xff] %v287_v14  ;;  %290 = vst [vmem:[%s195_s30 + $0x78] sm:$0xff] %v289_v15 }
  0x1a PF: > { %p1113_p6 = scmp.ge.s32.totalorder %s1436_s19, 1  ;;  %p307_p7 = scmp.lt.s32.totalorder %s1436_s19, 4 }
  0x1c   : > { %p308_p8 = pnand %p1113_p6, %p307_p7 }
  0x1d   : > { %s314_s5 = sand.u32 (!%p308_p8), 1, %s1420_s15   ;;  %s1115_s6 = sshll.u32 (!%p308_p8), %s1428_s17, 5 }
  0x1e   : > { %311 = sbr.rel (%p308_p8) target bundleno = 364 (0x16c), region = 62  ;;  %s1114_s7 = sshll.u32 (!%p308_p8), %s314_s5, 7 }
  0x1f   : > { %p365_p9 = scmp.lt.s32.totalorder (!%p308_p8), %s1115_s6, 95  ;;  %s1534_s12 = scalar_lea.vmem (!%p308_p8), [#allocation3], %s1114_s7 }
  0x20   : > { %p1117_p10 = scmp.ne.s32.totalorder (!%p308_p8), %s1428_s17, 0 }
  0x25   : > { %s1627_s6 = smov (!%p365_p9, %s1115_s6), 95  ;;  %398 = sbr.rel (%p1117_p10) target bundleno = 47 (0x2f), region = 70 }
  0x26   : > { %s1116_s8 = sshll.u32 %s1627_s6, 2  ;;  %v1438_v16 = vmov (!%p1117_p10), 0.0  }
  0x27   : > { %s1532_s11 = scalar_lea.vmem %s1616_s1, %s1116_s8  ;;  %399 = vst [vmem:[#allocation2] sm:$0xff] (!%p1117_p10), %v1438_v16  ;;  %400 = vst [vmem:[#allocation2 + $0x8] sm:$0xff] (!%p1117_p10), %v1438_v16 }
  0x28   : > { %401 = vst [vmem:[#allocation2 + $0x10] sm:$0xff] (!%p1117_p10), %v1438_v16  ;;  %402 = vst [vmem:[#allocation2 + $0x18] sm:$0xff] (!%p1117_p10), %v1438_v16 }
  0x29   : > { %403 = vst [vmem:[#allocation2 + $0x20] sm:$0xff] (!%p1117_p10), %v1438_v16  ;;  %404 = vst [vmem:[#allocation2 + $0x28] sm:$0xff] (!%p1117_p10), %v1438_v16 }
  0x2a   : > { %405 = vst [vmem:[#allocation2 + $0x30] sm:$0xff] (!%p1117_p10), %v1438_v16  ;;  %406 = vst [vmem:[#allocation2 + $0x38] sm:$0xff] (!%p1117_p10), %v1438_v16 }
  0x2b   : > { %407 = vst [vmem:[#allocation2 + $0x40] sm:$0xff] (!%p1117_p10), %v1438_v16  ;;  %408 = vst [vmem:[#allocation2 + $0x48] sm:$0xff] (!%p1117_p10), %v1438_v16 }
  0x2c   : > { %409 = vst [vmem:[#allocation2 + $0x50] sm:$0xff] %v1438_v16  ;;  %410 = vst [vmem:[#allocation2 + $0x58] sm:$0xff] %v1438_v16 }
  0x2d   : > { %411 = vst [vmem:[#allocation2 + $0x60] sm:$0xff] %v1438_v16  ;;  %412 = vst [vmem:[#allocation2 + $0x68] sm:$0xff] %v1438_v16 }
  0x2e   : > { %413 = vst [vmem:[#allocation2 + $0x70] sm:$0xff] %v1438_v16  ;;  %414 = vst [vmem:[#allocation2 + $0x78] sm:$0xff] %v1438_v16 }
  0x2f PF: > { %v1358_v17 = vld [vmem:[%s1532_s11 + $0x40] sm:$0xff]   ;;  %v1360_v19 = vld [vmem:[%s1532_s11 + $0x48] sm:$0xff]   ;;  %v1362_v21 = vld [vmem:[%s1532_s11 + $0x50] sm:$0xff]   ;;  %p1150_p11 = scmp.ne.s32.totalorder %s1428_s17, 2 }
  0x30   : > { %v1359_v18 = vld [vmem:[%s1532_s11] sm:$0xff]   ;;  %1237 = vmatprep.subr.bf16.mxu0 %v1358_v17  ;;  %1301 = vmatprep.subr.bf16.mxu1 %v1358_v17  ;;  %v1361_v20 = vld [vmem:[%s1532_s11 + $0x8] sm:$0xff]   ;;  %v1363_v22 = vld [vmem:[%s1532_s11 + $0x10] sm:$0xff]  }
  0x31   : > { %1238 = vmatpush3.bf16.msra.mxu0 %v1359_v18  ;;  %1309 = vmatpush3.bf16.msra.mxu1 %v1359_v18  ;;  %v1364_v23 = vld [vmem:[%s1532_s11 + $0x58] sm:$0xff]   ;;  %v1366_v25 = vld [vmem:[%s1532_s11 + $0x60] sm:$0xff]   ;;  %v1368_v27 = vld [vmem:[%s1532_s11 + $0x68] sm:$0xff]  }
  0x32   : > { %1239 = vmatprep.subr.bf16.mxu0 %v1360_v19  ;;  %1302 = vmatprep.subr.bf16.mxu1 %v1360_v19  ;;  %v1365_v24 = vld [vmem:[%s1532_s11 + $0x18] sm:$0xff]   ;;  %v1367_v26 = vld [vmem:[%s1532_s11 + $0x20] sm:$0xff]   ;;  %v1369_v30 = vld [vmem:[%s1532_s11 + $0x28] sm:$0xff]  }
  0x33   : > { %v1376_v28 = vld [vmem:[%s1534_s12 + $0x4] ss:$8 sps:$4 sm:$0xff]   ;;  %v1370_v31 = vld [vmem:[%s1532_s11 + $0x70] sm:$0xff]   ;;  %v1372_v33 = vld [vmem:[%s1532_s11 + $0x78] sm:$0xff]  }
  0x34   : > { %v1379_v29 = vld [vmem:[%s1534_s12 + $0x44] ss:$8 sps:$4 sm:$0xff]   ;;  %687 = vmatprep.mubr.bf16.mxu0 %v1376_v28  ;;  %v1371_v32 = vld [vmem:[%s1532_s11 + $0x30] sm:$0xff]   ;;  %v1373_v34 = vld [vmem:[%s1532_s11 + $0x38] sm:$0xff]  }
  0x35   : > { %1240 = vmatpush3.bf16.msra.mxu0 %v1361_v20  ;;  %1310 = vmatpush3.bf16.msra.mxu1 %v1361_v20  ;;  %v1374_v35 = vld [vmem:[%s1534_s12] ss:$8 sps:$4 sm:$0xff]   ;;  %v1380_v37 = vld [vmem:[%s1534_s12 + $0x14] ss:$8 sps:$4 sm:$0xff]   ;;  %v1384_v39 = vld [vmem:[%s1534_s12 + $0x10] ss:$8 sps:$4 sm:$0xff]  }
  0x36   : > { %1241 = vmatprep.subr.bf16.mxu0 %v1362_v21  ;;  %1303 = vmatprep.subr.bf16.mxu1 %v1362_v21  ;;  %v1377_v36 = vld [vmem:[%s1534_s12 + $0x40] ss:$8 sps:$4 sm:$0xff]   ;;  %v1382_v38 = vld [vmem:[%s1534_s12 + $0x54] ss:$8 sps:$4 sm:$0xff]   ;;  %v1385_v40 = vld [vmem:[%s1534_s12 + $0x50] ss:$8 sps:$4 sm:$0xff]  }
  0x37   : > { %719 = vmatprep.mubr.bf16.mxu1 %v1379_v29  ;;  %v1386_v41 = vld [vmem:[%s1534_s12 + $0x24] ss:$8 sps:$4 sm:$0xff]   ;;  %v1390_v43 = vld [vmem:[%s1534_s12 + $0x20] ss:$8 sps:$4 sm:$0xff]   ;;  %v1392_v45 = vld [vmem:[%s1534_s12 + $0x34] ss:$8 sps:$4 sm:$0xff]  }
  0x38   : > { %v1388_v42 = vld [vmem:[%s1534_s12 + $0x64] ss:$8 sps:$4 sm:$0xff]   ;;  %v1391_v44 = vld [vmem:[%s1534_s12 + $0x60] ss:$8 sps:$4 sm:$0xff]   ;;  %v1394_v46 = vld [vmem:[%s1534_s12 + $0x74] ss:$8 sps:$4 sm:$0xff]  }
  0x39   : > { %1242 = vmatpush3.bf16.msra.mxu0 %v1363_v22  ;;  %1311 = vmatpush3.bf16.msra.mxu1 %v1363_v22  ;;  %v1396_v47 = vld [vmem:[%s1534_s12 + $0x30] ss:$8 sps:$4 sm:$0xff]   ;;  %v415_v51 = vld [vmem:[#allocation2] sm:$0xff]  ;;  %v416_v59 = vld [vmem:[#allocation2 + $0x8] sm:$0xff] }
  0x3a   : > { %1243 = vmatprep.subr.bf16.mxu0 %v1364_v23  ;;  %1304 = vmatprep.subr.bf16.mxu1 %v1364_v23  ;;  %v1397_v48 = vld [vmem:[%s1534_s12 + $0x70] ss:$8 sps:$4 sm:$0xff]   ;;  %v423_v53 = vld [vmem:[#allocation2 + $0x40] sm:$0xff]  ;;  %v424_v61 = vld [vmem:[#allocation2 + $0x48] sm:$0xff] }
  0x3b   : > { %v417_v7 = vld [vmem:[#allocation2 + $0x10] sm:$0xff]  ;;  %v418_v15 = vld [vmem:[#allocation2 + $0x18] sm:$0xff]  ;;  %v427_v29 = vld [vmem:[#allocation2 + $0x60] sm:$0xff] }
  0x3c   : > { %v425_v9 = vld [vmem:[#allocation2 + $0x50] sm:$0xff]  ;;  %v426_v17 = vld [vmem:[#allocation2 + $0x58] sm:$0xff] }
  0x3d   : > { %1244 = vmatpush3.bf16.msra.mxu0 %v1365_v24  ;;  %1312 = vmatpush3.bf16.msra.mxu1 %v1365_v24 }
  0x3e   : > { %1245 = vmatprep.subr.bf16.mxu0 %v1366_v25  ;;  %1305 = vmatprep.subr.bf16.mxu1 %v1366_v25 }
  0x41   : > { %1246 = vmatpush3.bf16.msra.mxu0 %v1367_v26  ;;  %1313 = vmatpush3.bf16.msra.mxu1 %v1367_v26 }
  0x42   : > { %1247 = vmatprep.subr.bf16.mxu0 %v1368_v27  ;;  %1306 = vmatprep.subr.bf16.mxu1 %v1368_v27  ;;  %v419_v27 = vld [vmem:[#allocation2 + $0x20] sm:$0xff] }
  0x45   : > { %1248 = vmatpush3.bf16.msra.mxu0 %v1369_v30  ;;  %1314 = vmatpush3.bf16.msra.mxu1 %v1369_v30 }
  0x46   : > { %1249 = vmatprep.subr.bf16.mxu0 %v1370_v31  ;;  %1307 = vmatprep.subr.bf16.mxu1 %v1370_v31 }
  0x49   : > { %1250 = vmatpush3.bf16.msra.mxu0 %v1371_v32  ;;  %1315 = vmatpush3.bf16.msra.mxu1 %v1371_v32 }
  0x4a   : > { %1251 = vmatprep.subr.bf16.mxu0 %v1372_v33  ;;  %1308 = vmatprep.subr.bf16.mxu1 %v1372_v33 }
  0x4d   : > { %1252 = vmatpush3.bf16.msra.mxu0 %v1373_v34  ;;  %1316 = vmatpush3.bf16.msra.mxu1 %v1373_v34 }
  0x50   : > { %688 = vmatmul.mubr.bf16.vlgmr.msra.gmra.mrb[0].mxu0 %v1374_v35  ;;  %720 = vmatmul.mubr.bf16.vlgmr.msra.gmra.mrb[0].mxu1 %v1377_v36  ;;  %v420_v35 = vld [vmem:[#allocation2 + $0x28] sm:$0xff] }
  0x51   : > { %695 = vmatprep.mubr.bf16.mxu0 %v1380_v37  ;;  %727 = vmatprep.mubr.bf16.mxu1 %v1382_v38  ;;  %v428_v37 = vld [vmem:[#allocation2 + $0x68] sm:$0xff] }
  0x58   : > { %696 = vmatmul.mubr.bf16.gmra.mrb[4].mxu0 %v1384_v39  ;;  %728 = vmatmul.mubr.bf16.gmra.mrb[4].mxu1 %v1385_v40 }
  0x59   : > { %703 = vmatprep.mubr.bf16.mxu0 %v1386_v41  ;;  %735 = vmatprep.mubr.bf16.mxu1 %v1388_v42 }
  0x60   : > { %704 = vmatmul.mubr.bf16.gmra.mrb[8].mxu0 %v1390_v43  ;;  %736 = vmatmul.mubr.bf16.gmra.mrb[8].mxu1 %v1391_v44 }
  0x61   : > { %711 = vmatprep.mubr.bf16.mxu0 %v1392_v45  ;;  %743 = vmatprep.mubr.bf16.mxu1 %v1394_v46 }
  0x68   : > { %712 = vmatmul.mubr.bf16.gmra.mrb[12].mxu0 %v1396_v47  ;;  %744 = vmatmul.mubr.bf16.gmra.mrb[12].mxu1 %v1397_v48  ;;  %v421_v47 = vld [vmem:[#allocation2 + $0x30] sm:$0xff] }
 0x123   : > { %v1253_v49 = vpop.f32.mrb[0].mxu0  ;;  %v1277_v50 = vpop.f32.mrb[0].mxu1 }
 0x124   : > { %v1254_v52 = vpop.f32.mrb[1].mxu0  ;;  %v1278_v54 = vpop.f32.mrb[1].mxu1 }
 0x125   : > { %v1255_v55 = vadd.f32 %v1254_v52, %v1253_v49  ;;  %v1279_v56 = vadd.f32 %v1278_v54, %v1277_v50  ;;  %v1256_v57 = vpop.f32.mrb[2].mxu0  ;;  %v1280_v58 = vpop.f32.mrb[2].mxu1  ;;  %v429_v49 = vld [vmem:[#allocation2 + $0x70] sm:$0xff] }
 0x126   : > { %v1257_v60 = vpop.f32.mrb[3].mxu0  ;;  %v1281_v62 = vpop.f32.mrb[3].mxu1 }
 0x127   : > { %v752_v63 = vadd.f32 %v1255_v55, %v415_v51  ;;  %v760_v0 = vadd.f32 %v1279_v56, %v423_v53  ;;  %v1258_v1 = vadd.f32 %v1257_v60, %v1256_v57  ;;  %v1282_v2 = vadd.f32 %v1281_v62, %v1280_v58  ;;  %v422_v55 = vld [vmem:[#allocation2 + $0x38] sm:$0xff] }
 0x128   : > { %v430_v57 = vld [vmem:[#allocation2 + $0x78] sm:$0xff] }
 0x129   : > { %768 = vst [vmem:[#allocation2] sm:$0xff] %v752_v63  ;;  %776 = vst [vmem:[#allocation2 + $0x40] sm:$0xff] %v760_v0  ;;  %v753_v3 = vadd.f32 %v1258_v1, %v416_v59  ;;  %v761_v4 = vadd.f32 %v1282_v2, %v424_v61 }
 0x12b   : > { %769 = vst [vmem:[#allocation2 + $0x8] sm:$0xff] %v753_v3  ;;  %777 = vst [vmem:[#allocation2 + $0x48] sm:$0xff] %v761_v4  ;;  %v1259_v5 = vpop.f32.mrb[4].mxu0  ;;  %v1283_v6 = vpop.f32.mrb[4].mxu1 }
 0x12c   : > { %v1260_v8 = vpop.f32.mrb[5].mxu0  ;;  %v1284_v10 = vpop.f32.mrb[5].mxu1 }
 0x12d   : > { %v1261_v11 = vadd.f32 %v1260_v8, %v1259_v5  ;;  %v1285_v12 = vadd.f32 %v1284_v10, %v1283_v6  ;;  %v1262_v13 = vpop.f32.mrb[6].mxu0  ;;  %v1286_v14 = vpop.f32.mrb[6].mxu1 }
 0x12e   : > { %v1263_v16 = vpop.f32.mrb[7].mxu0  ;;  %v1287_v18 = vpop.f32.mrb[7].mxu1 }
 0x12f   : > { %v754_v19 = vadd.f32 %v1261_v11, %v417_v7  ;;  %v762_v20 = vadd.f32 %v1285_v12, %v425_v9  ;;  %v1264_v21 = vadd.f32 %v1263_v16, %v1262_v13  ;;  %v1288_v22 = vadd.f32 %v1287_v18, %v1286_v14 }
 0x130   : > { %v788_v1 = vld [vmem:[#allocation2] sm:$0xff] (!%p1150_p11) }
 0x131   : > { %770 = vst [vmem:[#allocation2 + $0x10] sm:$0xff] %v754_v19  ;;  %778 = vst [vmem:[#allocation2 + $0x50] sm:$0xff] %v762_v20  ;;  %v755_v23 = vadd.f32 %v1264_v21, %v418_v15  ;;  %v763_v24 = vadd.f32 %v1288_v22, %v426_v17  ;;  %v906_v6 = vmul.f32 (!%p1150_p11), %v788_v1, %v788_v1  ;;  %v796_v19 = vld [vmem:[#allocation2 + $0x40] sm:$0xff] (!%p1150_p11) }
 0x132   : > { %v789_v2 = vld [vmem:[#allocation2 + $0x8] sm:$0xff] (!%p1150_p11) }
 0x133   : > { %771 = vst [vmem:[#allocation2 + $0x18] sm:$0xff] %v755_v23  ;;  %779 = vst [vmem:[#allocation2 + $0x58] sm:$0xff] %v763_v24  ;;  %v1265_v25 = vpop.f32.mrb[8].mxu0  ;;  %v1289_v26 = vpop.f32.mrb[8].mxu1  ;;  %v1193_v4 = vpack.c.bf16 (!%p1150_p11), %v789_v2, %v788_v1  ;;  %v884_v5 = vadd.f32 (!%p1150_p11), %v789_v2, %v788_v1  ;;  %v907_v7 = vmul.f32 (!%p1150_p11), %v789_v2, %v789_v2  ;;  %v797_v20 = vld [vmem:[#allocation2 + $0x48] sm:$0xff] (!%p1150_p11) }
 0x134   : > { %v1266_v28 = vpop.f32.mrb[9].mxu0  ;;  %v1290_v30 = vpop.f32.mrb[9].mxu1  ;;  %v1213_v22 = vpack.c.bf16 (!%p1150_p11), %v797_v20, %v796_v19 }
 0x135   : > { %v1267_v31 = vadd.f32 %v1266_v28, %v1265_v25  ;;  %v1291_v32 = vadd.f32 %v1290_v30, %v1289_v26  ;;  %v1268_v33 = vpop.f32.mrb[10].mxu0  ;;  %v1292_v34 = vpop.f32.mrb[10].mxu1  ;;  %1194 = vst [vmem:[%s1617_s2] sm:$0xff] (!%p1150_p11), %v1193_v4   ;;  %v922_v15 = vadd.f32 (!%p1150_p11), %v907_v7, %v906_v6 }
 0x136   : > { %v1269_v36 = vpop.f32.mrb[11].mxu0  ;;  %v1293_v38 = vpop.f32.mrb[11].mxu1  ;;  %1233 = vst [vmem:[%s1617_s2 + $0x20] sm:$0xff] (!%p1150_p11), %v1213_v22  }
 0x137   : > { %v756_v39 = vadd.f32 %v1267_v31, %v419_v27  ;;  %v764_v40 = vadd.f32 %v1291_v32, %v427_v29  ;;  %v1270_v41 = vadd.f32 %v1269_v36, %v1268_v33  ;;  %v1294_v42 = vadd.f32 %v1293_v38, %v1292_v34 }
 0x138   : > { %v790_v3 = vld [vmem:[#allocation2 + $0x10] sm:$0xff] (!%p1150_p11) }
 0x139   : > { %772 = vst [vmem:[#allocation2 + $0x20] sm:$0xff] %v756_v39  ;;  %780 = vst [vmem:[#allocation2 + $0x60] sm:$0xff] %v764_v40  ;;  %v757_v43 = vadd.f32 %v1270_v41, %v420_v35  ;;  %v765_v44 = vadd.f32 %v1294_v42, %v428_v37  ;;  %v908_v12 = vmul.f32 (!%p1150_p11), %v790_v3, %v790_v3  ;;  %v798_v23 = vld [vmem:[#allocation2 + $0x50] sm:$0xff] (!%p1150_p11) }
 0x13a   : > { %v791_v8 = vld [vmem:[#allocation2 + $0x18] sm:$0xff] (!%p1150_p11)  ;;  %v885_v16 = vadd.f32 (!%p1150_p11), %v884_v5, %v790_v3 }
 0x13b   : > { %773 = vst [vmem:[#allocation2 + $0x28] sm:$0xff] %v757_v43  ;;  %781 = vst [vmem:[#allocation2 + $0x68] sm:$0xff] %v765_v44  ;;  %v1271_v45 = vpop.f32.mrb[12].mxu0  ;;  %v1295_v46 = vpop.f32.mrb[12].mxu1  ;;  %v1198_v11 = vpack.c.bf16 (!%p1150_p11), %v791_v8, %v790_v3  ;;  %v909_v17 = vmul.f32 (!%p1150_p11), %v791_v8, %v791_v8  ;;  %v923_v25 = vadd.f32 (!%p1150_p11), %v922_v15, %v908_v12  ;;  %v799_v27 = vld [vmem:[#allocation2 + $0x58] sm:$0xff] (!%p1150_p11) }
 0x13c   : > { %v1272_v48 = vpop.f32.mrb[13].mxu0  ;;  %v1296_v50 = vpop.f32.mrb[13].mxu1  ;;  %v886_v24 = vadd.f32 (!%p1150_p11), %v885_v16, %v791_v8  ;;  %v1218_v30 = vpack.c.bf16 (!%p1150_p11), %v799_v27, %v798_v23 }
 0x13d   : > { %v1273_v51 = vadd.f32 %v1272_v48, %v1271_v45  ;;  %v1297_v52 = vadd.f32 %v1296_v50, %v1295_v46  ;;  %v1274_v53 = vpop.f32.mrb[14].mxu0  ;;  %v1298_v54 = vpop.f32.mrb[14].mxu1  ;;  %787 = sbr.rel (%p1150_p11) target bundleno = 364 (0x16c), region = 74  ;;  %1230 = vst [vmem:[%s1617_s2 + $0x8] sm:$0xff] (!%p1150_p11), %v1198_v11   ;;  %v924_v32 = vadd.f32 (!%p1150_p11), %v923_v25, %v909_v17  ;;  %v914_v46 = vmul.f32 (!%p1150_p11), %v796_v19, %v796_v19 }
 0x13e   : > { %v1275_v56 = vpop.f32.mrb[15].mxu0  ;;  %v1299_v58 = vpop.f32.mrb[15].mxu1  ;;  %1234 = vst [vmem:[%s1617_s2 + $0x28] sm:$0xff] (!%p1150_p11), %v1218_v30  }
 0x13f   : > { %v758_v59 = vadd.f32 %v1273_v51, %v421_v47  ;;  %v766_v60 = vadd.f32 %v1297_v52, %v429_v49  ;;  %v1276_v61 = vadd.f32 %v1275_v56, %v1274_v53  ;;  %v1300_v62 = vadd.f32 %v1299_v58, %v1298_v54 }
 0x140   : > { %v792_v9 = vld [vmem:[#allocation2 + $0x20] sm:$0xff] (!%p1150_p11)  ;;  %v915_v49 = vmul.f32 (!%p1150_p11), %v797_v20, %v797_v20  ;;  %v916_v52 = vmul.f32 (!%p1150_p11), %v798_v23, %v798_v23 }
 0x141   : > { %774 = vst [vmem:[#allocation2 + $0x30] sm:$0xff] %v758_v59  ;;  %782 = vst [vmem:[#allocation2 + $0x70] sm:$0xff] %v766_v60  ;;  %v759_v63 = vadd.f32 %v1276_v61, %v422_v55  ;;  %v767_v0 = vadd.f32 %v1300_v62, %v430_v57  ;;  %v910_v26 = vmul.f32 (!%p1150_p11), %v792_v9, %v792_v9  ;;  %v800_v28 = vld [vmem:[#allocation2 + $0x60] sm:$0xff] (!%p1150_p11) }
 0x142   : > { %v793_v10 = vld [vmem:[#allocation2 + $0x28] sm:$0xff] (!%p1150_p11)  ;;  %v887_v33 = vadd.f32 (!%p1150_p11), %v886_v24, %v792_v9  ;;  %v917_v55 = vmul.f32 (!%p1150_p11), %v799_v27, %v799_v27  ;;  %v918_v58 = vmul.f32 (!%p1150_p11), %v800_v28, %v800_v28 }
 0x143   : > { %775 = vst [vmem:[#allocation2 + $0x38] sm:$0xff] %v759_v63  ;;  %783 = vst [vmem:[#allocation2 + $0x78] sm:$0xff] %v767_v0  ;;  %v1203_v13 = vpack.c.bf16 (!%p1150_p11), %v793_v10, %v792_v9  ;;  %v801_v29 = vld [vmem:[#allocation2 + $0x68] sm:$0xff] (!%p1150_p11)  ;;  %v911_v34 = vmul.f32 (!%p1150_p11), %v793_v10, %v793_v10  ;;  %v925_v39 = vadd.f32 (!%p1150_p11), %v924_v32, %v910_v26 }
 0x144   : > { %v1223_v31 = vpack.c.bf16 %v801_v29, %v800_v28  ;;  %v888_v38 = vadd.f32 %v887_v33, %v793_v10  ;;  %v919_v61 = vmul.f32 %v801_v29, %v801_v29 }
 0x145   : > { %1231 = vst [vmem:[%s1617_s2 + $0x10] sm:$0xff] %v1203_v13   ;;  %v926_v41 = vadd.f32 %v925_v39, %v911_v34 }
 0x146   : > { %1235 = vst [vmem:[%s1617_s2 + $0x30] sm:$0xff] %v1223_v31  }
 0x148   : > { %v794_v14 = vld [vmem:[#allocation2 + $0x30] sm:$0xff] }
 0x149   : > { %v802_v35 = vld [vmem:[#allocation2 + $0x70] sm:$0xff]  ;;  %v912_v40 = vmul.f32 %v794_v14, %v794_v14  ;;  %v889_v42 = vadd.f32 %v888_v38, %v794_v14 }
 0x14a   : > { %v795_v18 = vld [vmem:[#allocation2 + $0x38] sm:$0xff]  ;;  %v920_v0 = vmul.f32 %v802_v35, %v802_v35 }
 0x14b   : > { %v1208_v21 = vpack.c.bf16 %v795_v18, %v794_v14  ;;  %v803_v36 = vld [vmem:[#allocation2 + $0x78] sm:$0xff]  ;;  %v913_v43 = vmul.f32 %v795_v18, %v795_v18  ;;  %v890_v44 = vadd.f32 %v889_v42, %v795_v18  ;;  %v927_v45 = vadd.f32 %v926_v41, %v912_v40 }
 0x14c   : > { %v1228_v37 = vpack.c.bf16 %v803_v36, %v802_v35  ;;  %v921_v3 = vmul.f32 %v803_v36, %v803_v36 }
 0x14d   : > { %1232 = vst [vmem:[%s1617_s2 + $0x18] sm:$0xff] %v1208_v21   ;;  %v928_v47 = vadd.f32 %v927_v45, %v913_v43  ;;  %v891_v48 = vadd.f32 %v890_v44, %v796_v19 }
 0x14e   : > { %1236 = vst [vmem:[%s1617_s2 + $0x38] sm:$0xff] %v1228_v37  }
 0x14f   : > { %v892_v50 = vadd.f32 %v891_v48, %v797_v20  ;;  %v929_v51 = vadd.f32 %v928_v47, %v914_v46 }
 0x151   : > { %v930_v53 = vadd.f32 %v929_v51, %v915_v49  ;;  %v893_v54 = vadd.f32 %v892_v50, %v798_v23 }
 0x153   : > { %v894_v56 = vadd.f32 %v893_v54, %v799_v27  ;;  %v931_v57 = vadd.f32 %v930_v53, %v916_v52 }
 0x155   : > { %v932_v59 = vadd.f32 %v931_v57, %v917_v55  ;;  %v895_v60 = vadd.f32 %v894_v56, %v800_v28 }
 0x157   : > { %v896_v62 = vadd.f32 %v895_v60, %v801_v29  ;;  %v933_v63 = vadd.f32 %v932_v59, %v918_v58 }
 0x159   : > { %v934_v1 = vadd.f32 %v933_v63, %v919_v61  ;;  %v897_v2 = vadd.f32 %v896_v62, %v802_v35 }
 0x15b   : > { %v898_v4 = vadd.f32 %v897_v2, %v803_v36  ;;  %v935_v5 = vadd.f32 %v934_v1, %v920_v0 }
 0x15d   : > { %v899_v6 = vrot.slane %v898_v4, 4  ;;  %v936_v7 = vadd.f32 %v935_v5, %v921_v3 }
 0x15f   : > { %v900_v8 = vadd.f32 %v899_v6, %v898_v4  ;;  %v937_v9 = vrot.slane %v936_v7, 4 }
 0x161   : > { %v901_v10 = vrot.slane %v900_v8, 2  ;;  %v938_v11 = vadd.f32 %v937_v9, %v936_v7 }
 0x163   : > { %v902_v12 = vadd.f32 %v901_v10, %v900_v8  ;;  %v939_v13 = vrot.slane %v938_v11, 2 }
 0x165   : > { %v903_v14 = vrot.slane %v902_v12, 1  ;;  %v940_v15 = vadd.f32 %v939_v13, %v938_v11 }
 0x167   : > { %v904_v16 = vadd.f32 %v903_v14, %v902_v12  ;;  %v941_v17 = vrot.slane %v940_v15, 1 }
 0x169   : > { %905 = vst [vmem:[%s1618_s3] sm:$0x1] %v904_v16  ;;  %v942_v18 = vadd.f32 %v941_v17, %v940_v15 }
 0x16b   : > { %943 = vst [vmem:[%s1619_s4] sm:$0x1] %v942_v18 }
 0x16c PF: > { %s15_s19 = sadd.s32 1, %s1436_s19   ;;  %s1620_s15 = smov %s1424_s16 }
 0x16d   : > { %p12_p12 = scmp.ge.s32.totalorder %s15_s19, 5   ;;  %s1621_s16 = smov %s1499_s23 }
 0x16e   : > { %s1622_s17 = smov %s1432_s18  ;;  %s1623_s18 = smov %s1625_s20 }
 0x16f   :  { %14 = sbr.rel (!%p12_p12) target bundleno = 3 (0x3), region = 136 }

// kernel: resnet18_forward.46
= control target key start
LH: loop header
LB: loop body
LE: loop exit
PB: predicated region body
PF: predicated region fallthrough
CT: control target
= control target key end

     0   :  { %s422_s0 = inlined_call_operand.vmem [shape: bf16[128,128], index: 0, kind: input, shape index: {}]   ;;  %s423_s1 = inlined_call_operand.vmem [shape: f32[1,128], index: 1, kind: input, shape index: {}]   ;;  %s424_s2 = inlined_call_operand.vmem [shape: f32[1,128], index: 2, kind: input, shape index: {}]   ;;  %s425_s3 = inlined_call_operand.vmem [shape: bf16[128,128], index: 3, kind: output, shape index: {}]  }
   0x1   :  { %v227_v0 = vld [vmem:[%s422_s0] sm:$0xff]   ;;  %v298_v4 = vld [vmem:[%s422_s0 + $0x8] sm:$0xff]   ;;  %v299_v5 = vld [vmem:[%s422_s0 + $0x10] sm:$0xff]  }
   0x2   :  { %v338_v1 = vld [vmem:[%s423_s1] ss:$0 sm:$0xff]  ;;  %v228_v2 = vunpack.c.l.bf16 %v227_v0  ;;  %v229_v3 = vunpack.c.h.bf16 %v227_v0  ;;  %v300_v6 = vld [vmem:[%s422_s0 + $0x18] sm:$0xff]   ;;  %v232_v8 = vunpack.c.l.bf16 %v298_v4  ;;  %v233_v9 = vunpack.c.h.bf16 %v298_v4  ;;  %v302_v33 = vld [vmem:[%s422_s0 + $0x28] sm:$0xff]  }
   0x3   :  { %v352_v7 = vld [vmem:[%s424_s2] ss:$0 sm:$0xff]  ;;  %v236_v10 = vunpack.c.l.bf16 %v299_v5  ;;  %v237_v11 = vunpack.c.h.bf16 %v299_v5  ;;  %v240_v14 = vunpack.c.l.bf16 %v300_v6  ;;  %v241_v15 = vunpack.c.h.bf16 %v300_v6  ;;  %v303_v38 = vld [vmem:[%s422_s0 + $0x30] sm:$0xff]   ;;  %v304_v43 = vld [vmem:[%s422_s0 + $0x38] sm:$0xff]  }
   0x4   :  { %v53_v12 = vmul.f32 %v228_v2, %v338_v1  ;;  %v54_v13 = vmul.f32 %v229_v3, %v338_v1  ;;  %v55_v16 = vmul.f32 %v232_v8, %v338_v1  ;;  %v56_v17 = vmul.f32 %v233_v9, %v338_v1  ;;  %v301_v28 = vld [vmem:[%s422_s0 + $0x20] sm:$0xff]  }
   0x5   :  { %v57_v18 = vmul.f32 %v236_v10, %v338_v1  ;;  %v58_v19 = vmul.f32 %v237_v11, %v338_v1  ;;  %v59_v22 = vmul.f32 %v240_v14, %v338_v1  ;;  %v60_v23 = vmul.f32 %v241_v15, %v338_v1 }
   0x6   :  { %v76_v20 = vadd.f32 %v352_v7, %v53_v12  ;;  %v77_v21 = vadd.f32 %v352_v7, %v54_v13  ;;  %v78_v24 = vadd.f32 %v352_v7, %v55_v16  ;;  %v79_v25 = vadd.f32 %v352_v7, %v56_v17 }
   0x7   :  { %v80_v26 = vadd.f32 %v352_v7, %v57_v18  ;;  %v81_v27 = vadd.f32 %v352_v7, %v58_v19  ;;  %v82_v31 = vadd.f32 %v352_v7, %v59_v22  ;;  %v83_v32 = vadd.f32 %v352_v7, %v60_v23 }
   0x8   :  { %v92_v29 = vmax.f32 %v76_v20, 0.0  ;;  %v93_v30 = vmax.f32 %v77_v21, 0.0  ;;  %v94_v34 = vmax.f32 %v78_v24, 0.0  ;;  %v95_v35 = vmax.f32 %v79_v25, 0.0 }
   0x9   :  { %v96_v36 = vmax.f32 %v80_v26, 0.0  ;;  %v97_v37 = vmax.f32 %v81_v27, 0.0  ;;  %v98_v40 = vmax.f32 %v82_v31, 0.0  ;;  %v99_v41 = vmax.f32 %v83_v32, 0.0 }
   0xa   :  { %v261_v39 = vpack.c.bf16 %v93_v30, %v92_v29  ;;  %v244_v42 = vunpack.c.l.bf16 %v301_v28  ;;  %v266_v44 = vpack.c.bf16 %v95_v35, %v94_v34  ;;  %v245_v46 = vunpack.c.h.bf16 %v301_v28 }
   0xb   :  { %v271_v45 = vpack.c.bf16 %v97_v37, %v96_v36  ;;  %v248_v47 = vunpack.c.l.bf16 %v302_v33  ;;  %v276_v48 = vpack.c.bf16 %v99_v41, %v98_v40  ;;  %v249_v50 = vunpack.c.h.bf16 %v302_v33 }
   0xc   :  { %262 = vst [vmem:[%s425_s3] sm:$0xff] %v261_v39   ;;  %v61_v49 = vmul.f32 %v244_v42, %v338_v1  ;;  %v252_v51 = vunpack.c.l.bf16 %v303_v38  ;;  %305 = vst [vmem:[%s425_s3 + $0x8] sm:$0xff] %v266_v44   ;;  %v62_v52 = vmul.f32 %v245_v46, %v338_v1  ;;  %v253_v54 = vunpack.c.h.bf16 %v303_v38 }
   0xd   :  { %306 = vst [vmem:[%s425_s3 + $0x10] sm:$0xff] %v271_v45   ;;  %v63_v53 = vmul.f32 %v248_v47, %v338_v1  ;;  %v256_v55 = vunpack.c.l.bf16 %v304_v43  ;;  %307 = vst [vmem:[%s425_s3 + $0x18] sm:$0xff] %v276_v48   ;;  %v64_v57 = vmul.f32 %v249_v50, %v338_v1  ;;  %v257_v59 = vunpack.c.h.bf16 %v304_v43 }
   0xe   :  { %v84_v56 = vadd.f32 %v352_v7, %v61_v49  ;;  %v65_v58 = vmul.f32 %v252_v51, %v338_v1  ;;  %v85_v60 = vadd.f32 %v352_v7, %v62_v52  ;;  %v66_v62 = vmul.f32 %v253_v54, %v338_v1 }
   0xf   :  { %v86_v61 = vadd.f32 %v352_v7, %v63_v53  ;;  %v67_v63 = vmul.f32 %v256_v55, %v338_v1  ;;  %v87_v2 = vadd.f32 %v352_v7, %v64_v57  ;;  %v68_v4 = vmul.f32 %v257_v59, %v338_v1 }
  0x10   :  { %v100_v0 = vmax.f32 %v84_v56, 0.0  ;;  %v88_v3 = vadd.f32 %v352_v7, %v65_v58  ;;  %v101_v5 = vmax.f32 %v85_v60, 0.0  ;;  %v89_v8 = vadd.f32 %v352_v7, %v66_v62 }
  0x11   :  { %v102_v6 = vmax.f32 %v86_v61, 0.0  ;;  %v90_v9 = vadd.f32 %v352_v7, %v67_v63  ;;  %v103_v10 = vmax.f32 %v87_v2, 0.0  ;;  %v91_v12 = vadd.f32 %v352_v7, %v68_v4 }
  0x12   :  { %v104_v11 = vmax.f32 %v88_v3, 0.0  ;;  %v281_v13 = vpack.c.bf16 %v101_v5, %v100_v0  ;;  %v105_v14 = vmax.f32 %v89_v8, 0.0 }
  0x13   :  { %v106_v15 = vmax.f32 %v90_v9, 0.0  ;;  %v286_v16 = vpack.c.bf16 %v103_v10, %v102_v6  ;;  %v107_v17 = vmax.f32 %v91_v12, 0.0 }
  0x14   :  { %308 = vst [vmem:[%s425_s3 + $0x20] sm:$0xff] %v281_v13   ;;  %v291_v1 = vpack.c.bf16 %v105_v14, %v104_v11 }
  0x15   :  { %309 = vst [vmem:[%s425_s3 + $0x28] sm:$0xff] %v286_v16   ;;  %v296_v18 = vpack.c.bf16 %v107_v17, %v106_v15 }
  0x16   :  { %310 = vst [vmem:[%s425_s3 + $0x30] sm:$0xff] %v291_v1  }
  0x17   :  { %311 = vst [vmem:[%s425_s3 + $0x38] sm:$0xff] %v296_v18  }

// kernel: resnet18_forward.48
= control target key start
LH: loop header
LB: loop body
LE: loop exit
PB: predicated region body
PF: predicated region fallthrough
CT: control target
= control target key end

     0   :  { %s541_s0 = inlined_call_operand.vmem [shape: bf16[128,128], index: 0, kind: input, shape index: {}]   ;;  %s542_s1 = inlined_call_operand.vmem [shape: f32[1,128], index: 1, kind: input, shape index: {}]   ;;  %s543_s2 = inlined_call_operand.vmem [shape: f32[1,128], index: 2, kind: input, shape index: {}]   ;;  %s544_s3 = inlined_call_operand.vmem [shape: bf16[128,128], index: 3, kind: input, shape index: {}]   ;;  %s545_s4 = inlined_call_operand.vmem [shape: bf16[128,128], index: 4, kind: output, shape index: {}]  }
   0x1   :  { %v278_v0 = vld [vmem:[%s541_s0] sm:$0xff]   ;;  %v381_v5 = vld [vmem:[%s541_s0 + $0x8] sm:$0xff]   ;;  %v382_v12 = vld [vmem:[%s541_s0 + $0x10] sm:$0xff]  }
   0x2   :  { %v433_v1 = vld [vmem:[%s542_s1] ss:$0 sm:$0xff]  ;;  %v279_v2 = vunpack.c.l.bf16 %v278_v0  ;;  %v280_v3 = vunpack.c.h.bf16 %v278_v0  ;;  %v388_v6 = vld [vmem:[%s544_s3 + $0x8] sm:$0xff]   ;;  %v283_v10 = vunpack.c.l.bf16 %v381_v5  ;;  %v284_v11 = vunpack.c.h.bf16 %v381_v5  ;;  %v389_v13 = vld [vmem:[%s544_s3 + $0x10] sm:$0xff]  }
   0x3   :  { %v310_v4 = vld [vmem:[%s544_s3] sm:$0xff]   ;;  %v315_v16 = vunpack.c.l.bf16 %v388_v6  ;;  %v316_v17 = vunpack.c.h.bf16 %v388_v6  ;;  %v287_v20 = vunpack.c.l.bf16 %v382_v12  ;;  %v288_v21 = vunpack.c.h.bf16 %v382_v12  ;;  %v383_v22 = vld [vmem:[%s541_s0 + $0x18] sm:$0xff]   ;;  %v385_v54 = vld [vmem:[%s541_s0 + $0x28] sm:$0xff]  }
   0x4   :  { %v447_v7 = vld [vmem:[%s543_s2] ss:$0 sm:$0xff]  ;;  %v311_v8 = vunpack.c.l.bf16 %v310_v4  ;;  %v312_v9 = vunpack.c.h.bf16 %v310_v4  ;;  %v56_v14 = vmul.f32 %v279_v2, %v433_v1  ;;  %v57_v15 = vmul.f32 %v280_v3, %v433_v1  ;;  %v390_v39 = vld [vmem:[%s544_s3 + $0x18] sm:$0xff]   ;;  %v392_v63 = vld [vmem:[%s544_s3 + $0x28] sm:$0xff]  }
   0x5   :  { %v58_v18 = vmul.f32 %v283_v10, %v433_v1  ;;  %v59_v19 = vmul.f32 %v284_v11, %v433_v1  ;;  %v319_v25 = vunpack.c.l.bf16 %v389_v13  ;;  %v320_v26 = vunpack.c.h.bf16 %v389_v13  ;;  %v384_v48 = vld [vmem:[%s541_s0 + $0x20] sm:$0xff]   ;;  %v386_v5 = vld [vmem:[%s541_s0 + $0x30] sm:$0xff]  }
   0x6   :  { %v79_v23 = vadd.f32 %v447_v7, %v56_v14  ;;  %v80_v24 = vadd.f32 %v447_v7, %v57_v15  ;;  %v60_v29 = vmul.f32 %v287_v20, %v433_v1  ;;  %v61_v30 = vmul.f32 %v288_v21, %v433_v1  ;;  %v391_v49 = vld [vmem:[%s544_s3 + $0x20] sm:$0xff]   ;;  %v393_v11 = vld [vmem:[%s544_s3 + $0x30] sm:$0xff]   ;;  %v387_v20 = vld [vmem:[%s541_s0 + $0x38] sm:$0xff]  }
   0x7   :  { %v81_v27 = vadd.f32 %v447_v7, %v58_v18  ;;  %v82_v28 = vadd.f32 %v447_v7, %v59_v19  ;;  %v291_v33 = vunpack.c.l.bf16 %v383_v22  ;;  %v292_v34 = vunpack.c.h.bf16 %v383_v22 }
   0x8   :  { %v127_v31 = vadd.f32 %v311_v8, %v79_v23  ;;  %v128_v32 = vadd.f32 %v312_v9, %v80_v24  ;;  %v83_v37 = vadd.f32 %v447_v7, %v60_v29  ;;  %v84_v38 = vadd.f32 %v447_v7, %v61_v30 }
   0x9   :  { %v129_v35 = vadd.f32 %v315_v16, %v81_v27  ;;  %v130_v36 = vadd.f32 %v316_v17, %v82_v28  ;;  %v62_v42 = vmul.f32 %v291_v33, %v433_v1  ;;  %v63_v43 = vmul.f32 %v292_v34, %v433_v1  ;;  %v394_v33 = vld [vmem:[%s544_s3 + $0x38] sm:$0xff]  }
   0xa   :  { %v143_v40 = vmax.f32 %v127_v31, 0.0  ;;  %v144_v41 = vmax.f32 %v128_v32, 0.0  ;;  %v131_v46 = vadd.f32 %v319_v25, %v83_v37  ;;  %v132_v47 = vadd.f32 %v320_v26, %v84_v38 }
   0xb   :  { %v145_v44 = vmax.f32 %v129_v35, 0.0  ;;  %v146_v45 = vmax.f32 %v130_v36, 0.0  ;;  %v85_v51 = vadd.f32 %v447_v7, %v62_v42  ;;  %v86_v52 = vadd.f32 %v447_v7, %v63_v43 }
   0xc   :  { %v344_v50 = vpack.c.bf16 %v144_v41, %v143_v40  ;;  %v323_v53 = vunpack.c.l.bf16 %v390_v39  ;;  %v147_v56 = vmax.f32 %v131_v46, 0.0  ;;  %v148_v57 = vmax.f32 %v132_v47, 0.0 }
   0xd   :  { %v349_v55 = vpack.c.bf16 %v146_v45, %v145_v44  ;;  %v324_v58 = vunpack.c.h.bf16 %v390_v39  ;;  %v295_v60 = vunpack.c.l.bf16 %v384_v48  ;;  %v296_v61 = vunpack.c.h.bf16 %v384_v48 }
   0xe   :  { %345 = vst [vmem:[%s545_s4] sm:$0xff] %v344_v50   ;;  %v133_v59 = vadd.f32 %v323_v53, %v85_v51  ;;  %v327_v62 = vunpack.c.l.bf16 %v391_v49  ;;  %v354_v0 = vpack.c.bf16 %v148_v57, %v147_v56  ;;  %v328_v3 = vunpack.c.h.bf16 %v391_v49 }
   0xf   :  { %395 = vst [vmem:[%s545_s4 + $0x8] sm:$0xff] %v349_v55   ;;  %v134_v2 = vadd.f32 %v324_v58, %v86_v52  ;;  %v299_v4 = vunpack.c.l.bf16 %v385_v54  ;;  %v64_v8 = vmul.f32 %v295_v60, %v433_v1  ;;  %v65_v9 = vmul.f32 %v296_v61, %v433_v1 }
  0x10   :  { %v149_v6 = vmax.f32 %v133_v59, 0.0  ;;  %v300_v10 = vunpack.c.h.bf16 %v385_v54  ;;  %396 = vst [vmem:[%s545_s4 + $0x10] sm:$0xff] %v354_v0   ;;  %v331_v14 = vunpack.c.l.bf16 %v392_v63  ;;  %v332_v15 = vunpack.c.h.bf16 %v392_v63 }
  0x11   :  { %v150_v12 = vmax.f32 %v134_v2, 0.0  ;;  %v66_v13 = vmul.f32 %v299_v4, %v433_v1  ;;  %v87_v16 = vadd.f32 %v447_v7, %v64_v8  ;;  %v88_v17 = vadd.f32 %v447_v7, %v65_v9 }
  0x12   :  { %v67_v18 = vmul.f32 %v300_v10, %v433_v1  ;;  %v303_v19 = vunpack.c.l.bf16 %v386_v5  ;;  %v304_v23 = vunpack.c.h.bf16 %v386_v5  ;;  %v335_v24 = vunpack.c.l.bf16 %v393_v11 }
  0x13   :  { %v359_v21 = vpack.c.bf16 %v150_v12, %v149_v6  ;;  %v89_v22 = vadd.f32 %v447_v7, %v66_v13  ;;  %v135_v25 = vadd.f32 %v327_v62, %v87_v16  ;;  %v136_v26 = vadd.f32 %v328_v3, %v88_v17 }
  0x14   :  { %v90_v27 = vadd.f32 %v447_v7, %v67_v18  ;;  %v68_v28 = vmul.f32 %v303_v19, %v433_v1  ;;  %v69_v30 = vmul.f32 %v304_v23, %v433_v1  ;;  %v336_v31 = vunpack.c.h.bf16 %v393_v11 }
  0x15   :  { %397 = vst [vmem:[%s545_s4 + $0x18] sm:$0xff] %v359_v21   ;;  %v137_v29 = vadd.f32 %v331_v14, %v89_v22  ;;  %v307_v32 = vunpack.c.l.bf16 %v387_v20  ;;  %v151_v34 = vmax.f32 %v135_v25, 0.0  ;;  %v152_v35 = vmax.f32 %v136_v26, 0.0 }
  0x16   :  { %v138_v36 = vadd.f32 %v332_v15, %v90_v27  ;;  %v91_v37 = vadd.f32 %v447_v7, %v68_v28  ;;  %v92_v39 = vadd.f32 %v447_v7, %v69_v30  ;;  %v308_v40 = vunpack.c.h.bf16 %v387_v20 }
  0x17   :  { %v153_v38 = vmax.f32 %v137_v29, 0.0  ;;  %v70_v41 = vmul.f32 %v307_v32, %v433_v1  ;;  %v364_v42 = vpack.c.bf16 %v152_v35, %v151_v34  ;;  %v339_v45 = vunpack.c.l.bf16 %v394_v33 }
  0x18   :  { %v154_v43 = vmax.f32 %v138_v36, 0.0  ;;  %v139_v44 = vadd.f32 %v335_v24, %v91_v37  ;;  %v140_v46 = vadd.f32 %v336_v31, %v92_v39  ;;  %v71_v47 = vmul.f32 %v308_v40, %v433_v1 }
  0x19   :  { %v93_v48 = vadd.f32 %v447_v7, %v70_v41  ;;  %v340_v49 = vunpack.c.h.bf16 %v394_v33  ;;  %398 = vst [vmem:[%s545_s4 + $0x20] sm:$0xff] %v364_v42  }
  0x1a   :  { %v369_v50 = vpack.c.bf16 %v154_v43, %v153_v38  ;;  %v155_v51 = vmax.f32 %v139_v44, 0.0  ;;  %v156_v52 = vmax.f32 %v140_v46, 0.0  ;;  %v94_v53 = vadd.f32 %v447_v7, %v71_v47 }
  0x1b   :  { %v141_v54 = vadd.f32 %v339_v45, %v93_v48 }
  0x1c   :  { %399 = vst [vmem:[%s545_s4 + $0x28] sm:$0xff] %v369_v50   ;;  %v374_v55 = vpack.c.bf16 %v156_v52, %v155_v51  ;;  %v142_v56 = vadd.f32 %v340_v49, %v94_v53 }
  0x1d   :  { %v157_v1 = vmax.f32 %v141_v54, 0.0 }
  0x1e   :  { %400 = vst [vmem:[%s545_s4 + $0x30] sm:$0xff] %v374_v55   ;;  %v158_v57 = vmax.f32 %v142_v56, 0.0 }
  0x20   :  { %v379_v58 = vpack.c.bf16 %v158_v57, %v157_v1 }
  0x22   :  { %401 = vst [vmem:[%s545_s4 + $0x38] sm:$0xff] %v379_v58  }

// kernel: resnet18_forward.53
= control target key start
LH: loop header
LB: loop body
LE: loop exit
PB: predicated region body
PF: predicated region fallthrough
CT: control target
= control target key end

     0   :  { %s363_s1 = inlined_call_operand.vmem [shape: bf16[128,128], index: 1, kind: input, shape index: {}]   ;;  %s364_s0 = inlined_call_operand.vmem [shape: bf16[32,128], index: 0, kind: input, shape index: {}]   ;;  %s365_s2 = inlined_call_operand.vmem [shape: bf16[32,128], index: 2, kind: output, shape index: {0}]   ;;  %s366_s3 = inlined_call_operand.vmem [shape: f32[1,1,128], index: 3, kind: output, shape index: {1}]   ;;  %s367_s4 = inlined_call_operand.vmem [shape: f32[1,1,128], index: 4, kind: output, shape index: {2}]  }
   0x1   :  { %v286_v0 = vld [vmem:[%s363_s1] sm:$0xff]   ;;  %v287_v1 = vld [vmem:[%s363_s1 + $0x8] sm:$0xff]   ;;  %v288_v2 = vld [vmem:[%s363_s1 + $0x10] sm:$0xff]  }
   0x2   :  { %266 = vmatprep.subr.bf16.mxu0 %v286_v0  ;;  %v289_v3 = vld [vmem:[%s363_s1 + $0x18] sm:$0xff]   ;;  %v294_v4 = vld [vmem:[%s364_s0] sm:$0xff]   ;;  %v291_v6 = vld [vmem:[%s363_s1 + $0x28] sm:$0xff]  }
   0x3   :  { %267 = vmatpush3.bf16.msra.mxu0 %v286_v0  ;;  %282 = vmatprep.mubr.bf16.mxu0 %v294_v4  ;;  %v290_v5 = vld [vmem:[%s363_s1 + $0x20] sm:$0xff]   ;;  %v292_v7 = vld [vmem:[%s363_s1 + $0x30] sm:$0xff]   ;;  %v293_v8 = vld [vmem:[%s363_s1 + $0x38] sm:$0xff]  }
   0x4   :  { %268 = vmatprep.subr.bf16.mxu0 %v287_v1  ;;  %v295_v9 = vld [vmem:[%s364_s0 + $0x8] sm:$0xff]  }
   0x7   :  { %269 = vmatpush3.bf16.msra.mxu0 %v287_v1 }
   0x8   :  { %270 = vmatprep.subr.bf16.mxu0 %v288_v2 }
   0xb   :  { %271 = vmatpush3.bf16.msra.mxu0 %v288_v2 }
   0xc   :  { %272 = vmatprep.subr.bf16.mxu0 %v289_v3 }
   0xf   :  { %273 = vmatpush3.bf16.msra.mxu0 %v289_v3 }
  0x10   :  { %274 = vmatprep.subr.bf16.mxu0 %v290_v5 }
  0x13   :  { %275 = vmatpush3.bf16.msra.mxu0 %v290_v5 }
  0x14   :  { %276 = vmatprep.subr.bf16.mxu0 %v291_v6 }
  0x17   :  { %277 = vmatpush3.bf16.msra.mxu0 %v291_v6 }
  0x18   :  { %278 = vmatprep.subr.bf16.mxu0 %v292_v7 }
  0x1b   :  { %279 = vmatpush3.bf16.msra.mxu0 %v292_v7 }
  0x1c   :  { %280 = vmatprep.subr.bf16.mxu0 %v293_v8 }
  0x1f   :  { %281 = vmatpush3.bf16.msra.mxu0 %v293_v8 }
  0x22   :  { %283 = vmatmul.mubr.bf16.vlgmr.msra.gmra.mrb[0].mxu0 %v295_v9 }
  0xf5   :  { %v284_v10 = vpop.f32.mrb[0].mxu0 }
  0xf6   :  { %v141_v11 = vpop.f32.mrb[1].mxu0  ;;  %v203_v19 = vmul.f32 %v284_v10, %v284_v10 }
  0xf7   :  { %v285_v12 = vpop.f32.mrb[2].mxu0  ;;  %v201_v15 = vmul.f32 %v141_v11, %v141_v11 }
  0xf8   :  { %v253_v13 = vpack.c.bf16 %v285_v12, %v284_v10  ;;  %v144_v14 = vpop.f32.mrb[3].mxu0  ;;  %v204_v22 = vmul.f32 %v285_v12, %v285_v12 }
  0xf9   :  { %v248_v16 = vpack.c.bf16 %v144_v14, %v141_v11  ;;  %v191_v17 = vadd.f32 %v144_v14, %v141_v11  ;;  %v202_v18 = vmul.f32 %v144_v14, %v144_v14 }
  0xfa   :  { %255 = vst [vmem:[%s365_s2 + $0x8] sm:$0xff] %v253_v13  }
  0xfb   :  { %249 = vst [vmem:[%s365_s2] sm:$0xff] %v248_v16   ;;  %v192_v20 = vadd.f32 %v284_v10, %v191_v17  ;;  %v205_v21 = vadd.f32 %v202_v18, %v201_v15 }
  0xfd   :  { %v193_v23 = vadd.f32 %v285_v12, %v192_v20  ;;  %v206_v24 = vadd.f32 %v205_v21, %v203_v19 }
  0xff   :  { %v194_v25 = vrot.slane %v193_v23, 4  ;;  %v207_v26 = vadd.f32 %v206_v24, %v204_v22 }
 0x101   :  { %v195_v27 = vadd.f32 %v194_v25, %v193_v23  ;;  %v208_v28 = vrot.slane %v207_v26, 4 }
 0x103   :  { %v196_v29 = vrot.slane %v195_v27, 2  ;;  %v209_v30 = vadd.f32 %v208_v28, %v207_v26 }
 0x105   :  { %v197_v31 = vadd.f32 %v196_v29, %v195_v27  ;;  %v210_v32 = vrot.slane %v209_v30, 2 }
 0x107   :  { %v198_v33 = vrot.slane %v197_v31, 1  ;;  %v211_v34 = vadd.f32 %v210_v32, %v209_v30 }
 0x109   :  { %v199_v35 = vadd.f32 %v198_v33, %v197_v31  ;;  %v212_v36 = vrot.slane %v211_v34, 1 }
 0x10b   :  { %200 = vst [vmem:[%s366_s3] sm:$0x1] %v199_v35  ;;  %v213_v37 = vadd.f32 %v212_v36, %v211_v34 }
 0x10d   :  { %214 = vst [vmem:[%s367_s4] sm:$0x1] %v213_v37 }

// kernel: resnet18_forward.54
= control target key start
LH: loop header
LB: loop body
LE: loop exit
PB: predicated region body
PF: predicated region fallthrough
CT: control target
= control target key end

     0   :  { %s136_s0 = inlined_call_operand.vmem [shape: bf16[32,128], index: 0, kind: input, shape index: {}]   ;;  %s137_s1 = inlined_call_operand.vmem [shape: f32[1,128], index: 1, kind: input, shape index: {}]   ;;  %s138_s2 = inlined_call_operand.vmem [shape: f32[1,128], index: 2, kind: input, shape index: {}]   ;;  %s139_s3 = inlined_call_operand.vmem [shape: bf16[32,128], index: 3, kind: output, shape index: {}]  }
   0x1   :  { %v79_v0 = vld [vmem:[%s136_s0] sm:$0xff]   ;;  %v96_v4 = vld [vmem:[%s136_s0 + $0x8] sm:$0xff]  }
   0x2   :  { %v68_v1 = vld [vmem:[%s137_s1] ss:$0 sm:$0xff]  ;;  %v80_v2 = vunpack.c.l.bf16 %v79_v0  ;;  %v81_v3 = vunpack.c.h.bf16 %v79_v0  ;;  %v84_v6 = vunpack.c.l.bf16 %v96_v4  ;;  %v85_v7 = vunpack.c.h.bf16 %v96_v4 }
   0x3   :  { %v69_v5 = vld [vmem:[%s138_s2] ss:$0 sm:$0xff] }
   0x4   :  { %v29_v8 = vmul.f32 %v80_v2, %v68_v1  ;;  %v30_v9 = vmul.f32 %v81_v3, %v68_v1  ;;  %v31_v10 = vmul.f32 %v84_v6, %v68_v1  ;;  %v32_v11 = vmul.f32 %v85_v7, %v68_v1 }
   0x6   :  { %v40_v12 = vadd.f32 %v69_v5, %v29_v8  ;;  %v41_v13 = vadd.f32 %v69_v5, %v30_v9  ;;  %v42_v14 = vadd.f32 %v69_v5, %v31_v10  ;;  %v43_v15 = vadd.f32 %v69_v5, %v32_v11 }
   0x8   :  { %v89_v16 = vpack.c.bf16 %v41_v13, %v40_v12  ;;  %v94_v17 = vpack.c.bf16 %v43_v15, %v42_v14 }
   0xa   :  { %90 = vst [vmem:[%s139_s3] sm:$0xff] %v89_v16   ;;  %97 = vst [vmem:[%s139_s3 + $0x8] sm:$0xff] %v94_v17  }

// kernel: resnet18_forward.56
= control target key start
LH: loop header
LB: loop body
LE: loop exit
PB: predicated region body
PF: predicated region fallthrough
CT: control target
= control target key end

     0   :  { %s140_s0 = inlined_call_operand.vmem [shape: bf16[32,128], index: 0, kind: input, shape index: {}]   ;;  %s141_s1 = inlined_call_operand.vmem [shape: f32[1,128], index: 1, kind: input, shape index: {}]   ;;  %s142_s2 = inlined_call_operand.vmem [shape: f32[1,128], index: 2, kind: input, shape index: {}]   ;;  %s143_s3 = inlined_call_operand.vmem [shape: bf16[32,128], index: 3, kind: output, shape index: {}]  }
   0x1   :  { %v83_v0 = vld [vmem:[%s140_s0] sm:$0xff]   ;;  %v100_v4 = vld [vmem:[%s140_s0 + $0x8] sm:$0xff]  }
   0x2   :  { %v72_v1 = vld [vmem:[%s141_s1] ss:$0 sm:$0xff]  ;;  %v84_v2 = vunpack.c.l.bf16 %v83_v0  ;;  %v85_v3 = vunpack.c.h.bf16 %v83_v0  ;;  %v88_v6 = vunpack.c.l.bf16 %v100_v4  ;;  %v89_v7 = vunpack.c.h.bf16 %v100_v4 }
   0x3   :  { %v73_v5 = vld [vmem:[%s142_s2] ss:$0 sm:$0xff] }
   0x4   :  { %v29_v8 = vmul.f32 %v84_v2, %v72_v1  ;;  %v30_v9 = vmul.f32 %v85_v3, %v72_v1  ;;  %v31_v10 = vmul.f32 %v88_v6, %v72_v1  ;;  %v32_v11 = vmul.f32 %v89_v7, %v72_v1 }
   0x6   :  { %v40_v12 = vadd.f32 %v73_v5, %v29_v8  ;;  %v41_v13 = vadd.f32 %v73_v5, %v30_v9  ;;  %v42_v14 = vadd.f32 %v73_v5, %v31_v10  ;;  %v43_v15 = vadd.f32 %v73_v5, %v32_v11 }
   0x8   :  { %v44_v16 = vmax.f32 %v40_v12, 0.0  ;;  %v45_v17 = vmax.f32 %v41_v13, 0.0  ;;  %v46_v18 = vmax.f32 %v42_v14, 0.0  ;;  %v47_v19 = vmax.f32 %v43_v15, 0.0 }
   0xa   :  { %v93_v20 = vpack.c.bf16 %v45_v17, %v44_v16  ;;  %v98_v21 = vpack.c.bf16 %v47_v19, %v46_v18 }
   0xc   :  { %94 = vst [vmem:[%s143_s3] sm:$0xff] %v93_v20   ;;  %101 = vst [vmem:[%s143_s3 + $0x8] sm:$0xff] %v98_v21  }

// kernel: resnet18_forward.55
= control target key start
LH: loop header
LB: loop body
LE: loop exit
PB: predicated region body
PF: predicated region fallthrough
CT: control target
= control target key end

     0   :  { %s1014_s15 = smov 0   ;;  %s1016_s16 = smov 0   ;;  %s1117_s0 = inlined_call_operand.vmem [shape: bf16[32,768], index: 0, kind: input, shape index: {}]   ;;  %s1118_s1 = inlined_call_operand.vmem [shape: bf16[768,128], index: 1, kind: input, shape index: {}]   ;;  %s1119_s2 = inlined_call_operand.vmem [shape: bf16[32,128], index: 2, kind: output, shape index: {0}]   ;;  %s1120_s3 = inlined_call_operand.vmem [shape: f32[1,1,128], index: 3, kind: output, shape index: {1}]   ;;  %s1121_s4 = inlined_call_operand.vmem [shape: f32[1,1,128], index: 4, kind: output, shape index: {2}]  }
   0x1   :  { %s1018_s17 = smov 0   ;;  %s1020_s18 = smov 0  }
   0x2   :  { %s1022_s19 = smov 0  }
   0x3 LB: > { %s27_s20 = sadd.s32 1, %s982_s18  ;;  %p50_p1 = scmp.ne.s32.totalorder %s974_s16, %s970_s15  ;;  %s986_s19 = sphi %s1022_s19, %s15_s19   ;;  %s982_s18 = sphi %s1020_s18, %s1125_s18   ;;  %s978_s17 = sphi %s1018_s17, %s1124_s17   ;;  %s974_s16 = sphi %s1016_s16, %s1123_s16   ;;  %s970_s15 = sphi %s1014_s15, %s1122_s15  }
   0x4   : > { %p28_p0 = scmp.ge.s32.totalorder %s27_s20, 3  ;;  %p51_p2 = scmp.eq.s32.totalorder %s986_s19, 0 }
   0x5   : > { %s43_s22 = sadd.s32 1, %s974_s16  ;;  %p785_p5 = scmp.ge.s32.totalorder %s986_s19, 3 }
   0x6   : > { %s1127_s20 = smov (%p28_p0, %s27_s20), 0  ;;  %p52_p3 = por %p51_p2, %p50_p1 }
   0x7   : > { %s39_s21 = ssub.s32 %s982_s18, %s1127_s20  ;;  %188 = sbr.rel (%p785_p5) target bundleno = 21 (0x15), region = 16 }
   0x8   : > { %p41_p4 = scmp.eq.s32.totalorder %s39_s21, 0 }
   0xa   : > { %s1049_s23 = scalar_select %p41_p4, %s974_s16, %s43_s22  }
   0xe   : > { %191 = sbr.rel (!%p52_p3) target bundleno = 21 (0x15), region = 20  ;;  %s193_s24 = sand.u32 (%p52_p3), 1, %s974_s16  }
   0xf   : > { %s825_s25 = sshll.u32 (%p52_p3), %s982_s18, 3  ;;  %s786_s26 = sshll.u32 (%p52_p3), %s193_s24, 5 }
  0x10   : > { %s201_s29 = scalar_lea.vmem (%p52_p3), %s1117_s0, %s825_s25  ;;  %s195_s30 = scalar_lea.vmem (%p52_p3), [#allocation3], %s786_s26 }
  0x11   : > { %v235_v0 = vld [vmem:[%s201_s29] sm:$0xff] (%p52_p3)  ;;  %v237_v1 = vld [vmem:[%s201_s29 + $0x18] sm:$0xff] (%p52_p3)  ;;  %v239_v2 = vld [vmem:[%s201_s29 + $0x30] sm:$0xff] (%p52_p3) }
  0x12   : > { %236 = vst [vmem:[%s195_s30] sm:$0xff] (%p52_p3), %v235_v0  ;;  %238 = vst [vmem:[%s195_s30 + $0x8] sm:$0xff] (%p52_p3), %v237_v1  ;;  %v241_v3 = vld [vmem:[%s201_s29 + $0x48] sm:$0xff] (%p52_p3) }
  0x13   : > { %240 = vst [vmem:[%s195_s30 + $0x10] sm:$0xff] (%p52_p3), %v239_v2  ;;  %242 = vst [vmem:[%s195_s30 + $0x18] sm:$0xff] (%p52_p3), %v241_v3 }
  0x15 PF: > { %p789_p6 = scmp.ge.s32.totalorder %s986_s19, 1  ;;  %p259_p7 = scmp.lt.s32.totalorder %s986_s19, 4 }
  0x17   : > { %p260_p8 = pnand %p789_p6, %p259_p7 }
  0x18   : > { %s266_s5 = sand.u32 (!%p260_p8), 1, %s970_s15   ;;  %s791_s6 = sshll.u32 (!%p260_p8), %s978_s17, 5 }
  0x19   : > { %263 = sbr.rel (%p260_p8) target bundleno = 320 (0x140), region = 62  ;;  %s790_s7 = sshll.u32 (!%p260_p8), %s266_s5, 5 }
  0x1a   : > { %p317_p9 = scmp.lt.s32.totalorder (!%p260_p8), %s791_s6, 95  ;;  %s1066_s12 = scalar_lea.vmem (!%p260_p8), [#allocation3], %s790_s7 }
  0x1b   : > { %p793_p10 = scmp.ne.s32.totalorder (!%p260_p8), %s978_s17, 0 }
  0x20   : > { %s1129_s6 = smov (!%p317_p9, %s791_s6), 95  ;;  %350 = sbr.rel (%p793_p10) target bundleno = 39 (0x27), region = 70 }
  0x21   : > { %s792_s8 = sshll.u32 %s1129_s6, 2  ;;  %v988_v4 = vmov (!%p793_p10), 0.0  }
  0x22   : > { %s1064_s11 = scalar_lea.vmem %s1118_s1, %s792_s8  ;;  %351 = vst [vmem:[#allocation2] sm:$0xff] (!%p793_p10), %v988_v4  ;;  %352 = vst [vmem:[#allocation2 + $0x8] sm:$0xff] (!%p793_p10), %v988_v4 }
  0x23   : > { %353 = vst [vmem:[#allocation2 + $0x10] sm:$0xff] (!%p793_p10), %v988_v4  ;;  %354 = vst [vmem:[#allocation2 + $0x18] sm:$0xff] (!%p793_p10), %v988_v4 }
  0x27 PF: > { %v926_v5 = vld [vmem:[%s1064_s11 + $0x40] sm:$0xff]   ;;  %v928_v7 = vld [vmem:[%s1064_s11 + $0x48] sm:$0xff]   ;;  %v930_v9 = vld [vmem:[%s1064_s11 + $0x50] sm:$0xff]   ;;  %p814_p11 = scmp.ne.s32.totalorder %s978_s17, 2 }
  0x28   : > { %v927_v6 = vld [vmem:[%s1064_s11] sm:$0xff]   ;;  %841 = vmatprep.subr.bf16.mxu0 %v926_v5  ;;  %869 = vmatprep.subr.bf16.mxu1 %v926_v5  ;;  %v929_v8 = vld [vmem:[%s1064_s11 + $0x8] sm:$0xff]   ;;  %v931_v10 = vld [vmem:[%s1064_s11 + $0x10] sm:$0xff]  }
  0x29   : > { %842 = vmatpush3.bf16.msra.mxu0 %v927_v6  ;;  %877 = vmatpush3.bf16.msra.mxu1 %v927_v6  ;;  %v932_v11 = vld [vmem:[%s1064_s11 + $0x58] sm:$0xff]   ;;  %v934_v13 = vld [vmem:[%s1064_s11 + $0x60] sm:$0xff]   ;;  %v936_v15 = vld [vmem:[%s1064_s11 + $0x68] sm:$0xff]  }
  0x2a   : > { %843 = vmatprep.subr.bf16.mxu0 %v928_v7  ;;  %870 = vmatprep.subr.bf16.mxu1 %v928_v7  ;;  %v933_v12 = vld [vmem:[%s1064_s11 + $0x18] sm:$0xff]   ;;  %v935_v14 = vld [vmem:[%s1064_s11 + $0x20] sm:$0xff]   ;;  %v937_v18 = vld [vmem:[%s1064_s11 + $0x28] sm:$0xff]  }
  0x2b   : > { %v944_v16 = vld [vmem:[%s1066_s12 + $0x4] ss:$8 sps:$4 sm:$0xff]   ;;  %v947_v17 = vld [vmem:[%s1066_s12 + $0x14] ss:$8 sps:$4 sm:$0xff]   ;;  %v942_v23 = vld [vmem:[%s1066_s12] ss:$8 sps:$4 sm:$0xff]  }
  0x2c   : > { %v938_v19 = vld [vmem:[%s1064_s11 + $0x70] sm:$0xff]   ;;  %543 = vmatprep.mubr.bf16.mxu0 %v944_v16  ;;  %551 = vmatprep.mubr.bf16.mxu1 %v947_v17  ;;  %v940_v21 = vld [vmem:[%s1064_s11 + $0x78] sm:$0xff]   ;;  %v355_v27 = vld [vmem:[#allocation2] sm:$0xff] }
  0x2d   : > { %844 = vmatpush3.bf16.msra.mxu0 %v929_v8  ;;  %878 = vmatpush3.bf16.msra.mxu1 %v929_v8  ;;  %v939_v20 = vld [vmem:[%s1064_s11 + $0x30] sm:$0xff]   ;;  %v941_v22 = vld [vmem:[%s1064_s11 + $0x38] sm:$0xff]   ;;  %v356_v35 = vld [vmem:[#allocation2 + $0x8] sm:$0xff] }
  0x2e   : > { %845 = vmatprep.subr.bf16.mxu0 %v930_v9  ;;  %871 = vmatprep.subr.bf16.mxu1 %v930_v9  ;;  %v945_v24 = vld [vmem:[%s1066_s12 + $0x10] ss:$8 sps:$4 sm:$0xff]  }
  0x2f   : > { %v357_v29 = vld [vmem:[#allocation2 + $0x10] sm:$0xff]  ;;  %v358_v37 = vld [vmem:[#allocation2 + $0x18] sm:$0xff] }
  0x31   : > { %846 = vmatpush3.bf16.msra.mxu0 %v931_v10  ;;  %879 = vmatpush3.bf16.msra.mxu1 %v931_v10 }
  0x32   : > { %847 = vmatprep.subr.bf16.mxu0 %v932_v11  ;;  %872 = vmatprep.subr.bf16.mxu1 %v932_v11 }
  0x35   : > { %848 = vmatpush3.bf16.msra.mxu0 %v933_v12  ;;  %880 = vmatpush3.bf16.msra.mxu1 %v933_v12 }
  0x36   : > { %849 = vmatprep.subr.bf16.mxu0 %v934_v13  ;;  %873 = vmatprep.subr.bf16.mxu1 %v934_v13 }
  0x39   : > { %850 = vmatpush3.bf16.msra.mxu0 %v935_v14  ;;  %881 = vmatpush3.bf16.msra.mxu1 %v935_v14 }
  0x3a   : > { %851 = vmatprep.subr.bf16.mxu0 %v936_v15  ;;  %874 = vmatprep.subr.bf16.mxu1 %v936_v15 }
  0x3d   : > { %852 = vmatpush3.bf16.msra.mxu0 %v937_v18  ;;  %882 = vmatpush3.bf16.msra.mxu1 %v937_v18 }
  0x3e   : > { %853 = vmatprep.subr.bf16.mxu0 %v938_v19  ;;  %875 = vmatprep.subr.bf16.mxu1 %v938_v19 }
  0x41   : > { %854 = vmatpush3.bf16.msra.mxu0 %v939_v20  ;;  %883 = vmatpush3.bf16.msra.mxu1 %v939_v20 }
  0x42   : > { %855 = vmatprep.subr.bf16.mxu0 %v940_v21  ;;  %876 = vmatprep.subr.bf16.mxu1 %v940_v21 }
  0x45   : > { %856 = vmatpush3.bf16.msra.mxu0 %v941_v22  ;;  %884 = vmatpush3.bf16.msra.mxu1 %v941_v22 }
  0x48   : > { %544 = vmatmul.mubr.bf16.vlgmr.msra.gmra.mrb[0].mxu0 %v942_v23  ;;  %552 = vmatmul.mubr.bf16.vlgmr.msra.gmra.mrb[0].mxu1 %v945_v24 }
 0x11b   : > { %v857_v25 = vpop.f32.mrb[0].mxu0  ;;  %v863_v26 = vpop.f32.mrb[0].mxu1 }
 0x11c   : > { %v858_v28 = vpop.f32.mrb[1].mxu0  ;;  %v864_v30 = vpop.f32.mrb[1].mxu1 }
 0x11d   : > { %v859_v31 = vadd.f32 %v858_v28, %v857_v25  ;;  %v865_v32 = vadd.f32 %v864_v30, %v863_v26  ;;  %v860_v33 = vpop.f32.mrb[2].mxu0  ;;  %v866_v34 = vpop.f32.mrb[2].mxu1  ;;  %571 = sbr.rel (%p814_p11) target bundleno = 320 (0x140), region = 74 }
 0x11e   : > { %v861_v36 = vpop.f32.mrb[3].mxu0  ;;  %v867_v38 = vpop.f32.mrb[3].mxu1 }
 0x11f   : > { %v560_v39 = vadd.f32 %v859_v31, %v355_v27  ;;  %v562_v40 = vadd.f32 %v865_v32, %v357_v29  ;;  %v862_v41 = vadd.f32 %v861_v36, %v860_v33  ;;  %v868_v42 = vadd.f32 %v867_v38, %v866_v34 }
 0x121   : > { %564 = vst [vmem:[#allocation2] sm:$0xff] %v560_v39  ;;  %566 = vst [vmem:[#allocation2 + $0x10] sm:$0xff] %v562_v40  ;;  %v561_v43 = vadd.f32 %v862_v41, %v356_v35  ;;  %v563_v44 = vadd.f32 %v868_v42, %v358_v37 }
 0x123   : > { %565 = vst [vmem:[#allocation2 + $0x8] sm:$0xff] %v561_v43  ;;  %567 = vst [vmem:[#allocation2 + $0x18] sm:$0xff] %v563_v44 }
 0x128   : > { %v572_v45 = vld [vmem:[#allocation2] sm:$0xff]  ;;  %v574_v47 = vld [vmem:[#allocation2 + $0x10] sm:$0xff] }
 0x129   : > { %v606_v50 = vmul.f32 %v572_v45, %v572_v45  ;;  %v608_v54 = vmul.f32 %v574_v47, %v574_v47 }
 0x12a   : > { %v573_v46 = vld [vmem:[#allocation2 + $0x8] sm:$0xff]  ;;  %v575_v52 = vld [vmem:[#allocation2 + $0x18] sm:$0xff] }
 0x12b   : > { %v833_v48 = vpack.c.bf16 %v573_v46, %v572_v45  ;;  %v596_v49 = vadd.f32 %v573_v46, %v572_v45  ;;  %v607_v51 = vmul.f32 %v573_v46, %v573_v46  ;;  %v838_v53 = vpack.c.bf16 %v575_v52, %v574_v47 }
 0x12c   : > { %v609_v57 = vmul.f32 %v575_v52, %v575_v52 }
 0x12d   : > { %834 = vst [vmem:[%s1119_s2] sm:$0xff] %v833_v48   ;;  %v610_v55 = vadd.f32 %v607_v51, %v606_v50  ;;  %v597_v56 = vadd.f32 %v596_v49, %v574_v47  ;;  %840 = vst [vmem:[%s1119_s2 + $0x8] sm:$0xff] %v838_v53  }
 0x12f   : > { %v598_v58 = vadd.f32 %v597_v56, %v575_v52  ;;  %v611_v59 = vadd.f32 %v610_v55, %v608_v54 }
 0x131   : > { %v599_v60 = vrot.slane %v598_v58, 4  ;;  %v612_v61 = vadd.f32 %v611_v59, %v609_v57 }
 0x133   : > { %v600_v62 = vadd.f32 %v599_v60, %v598_v58  ;;  %v613_v63 = vrot.slane %v612_v61, 4 }
 0x135   : > { %v601_v0 = vrot.slane %v600_v62, 2  ;;  %v614_v1 = vadd.f32 %v613_v63, %v612_v61 }
 0x137   : > { %v602_v2 = vadd.f32 %v601_v0, %v600_v62  ;;  %v615_v3 = vrot.slane %v614_v1, 2 }
 0x139   : > { %v603_v4 = vrot.slane %v602_v2, 1  ;;  %v616_v5 = vadd.f32 %v615_v3, %v614_v1 }
 0x13b   : > { %v604_v6 = vadd.f32 %v603_v4, %v602_v2  ;;  %v617_v7 = vrot.slane %v616_v5, 1 }
 0x13d   : > { %605 = vst [vmem:[%s1120_s3] sm:$0x1] %v604_v6  ;;  %v618_v8 = vadd.f32 %v617_v7, %v616_v5 }
 0x13f   : > { %619 = vst [vmem:[%s1121_s4] sm:$0x1] %v618_v8 }
 0x140 PF: > { %s15_s19 = sadd.s32 1, %s986_s19   ;;  %s1122_s15 = smov %s974_s16 }
 0x141   : > { %p12_p12 = scmp.ge.s32.totalorder %s15_s19, 5   ;;  %s1123_s16 = smov %s1049_s23 }
 0x142   : > { %s1124_s17 = smov %s982_s18  ;;  %s1125_s18 = smov %s1127_s20 }
 0x143   :  { %14 = sbr.rel (!%p12_p12) target bundleno = 3 (0x3), region = 136 }

// kernel: resnet18_forward.58
= control target key start
LH: loop header
LB: loop body
LE: loop exit
PB: predicated region body
PF: predicated region fallthrough
CT: control target
= control target key end

     0   :  { %s175_s0 = inlined_call_operand.vmem [shape: bf16[32,128], index: 0, kind: input, shape index: {}]   ;;  %s176_s1 = inlined_call_operand.vmem [shape: f32[1,128], index: 1, kind: input, shape index: {}]   ;;  %s177_s2 = inlined_call_operand.vmem [shape: f32[1,128], index: 2, kind: input, shape index: {}]   ;;  %s178_s3 = inlined_call_operand.vmem [shape: bf16[32,128], index: 3, kind: input, shape index: {}]   ;;  %s179_s4 = inlined_call_operand.vmem [shape: bf16[32,128], index: 4, kind: output, shape index: {}]  }
   0x1   :  { %v98_v0 = vld [vmem:[%s175_s0] sm:$0xff]   ;;  %v123_v5 = vld [vmem:[%s175_s0 + $0x8] sm:$0xff]  }
   0x2   :  { %v87_v1 = vld [vmem:[%s176_s1] ss:$0 sm:$0xff]  ;;  %v99_v2 = vunpack.c.l.bf16 %v98_v0  ;;  %v100_v3 = vunpack.c.h.bf16 %v98_v0  ;;  %v124_v6 = vld [vmem:[%s178_s3 + $0x8] sm:$0xff]   ;;  %v103_v8 = vunpack.c.l.bf16 %v123_v5  ;;  %v104_v9 = vunpack.c.h.bf16 %v123_v5 }
   0x3   :  { %v106_v4 = vld [vmem:[%s178_s3] sm:$0xff]   ;;  %v111_v16 = vunpack.c.l.bf16 %v124_v6  ;;  %v112_v17 = vunpack.c.h.bf16 %v124_v6 }
   0x4   :  { %v88_v7 = vld [vmem:[%s177_s2] ss:$0 sm:$0xff]  ;;  %v32_v10 = vmul.f32 %v99_v2, %v87_v1  ;;  %v33_v11 = vmul.f32 %v100_v3, %v87_v1  ;;  %v107_v12 = vunpack.c.l.bf16 %v106_v4  ;;  %v108_v13 = vunpack.c.h.bf16 %v106_v4 }
   0x5   :  { %v34_v14 = vmul.f32 %v103_v8, %v87_v1  ;;  %v35_v15 = vmul.f32 %v104_v9, %v87_v1 }
   0x6   :  { %v43_v18 = vadd.f32 %v88_v7, %v32_v10  ;;  %v44_v19 = vadd.f32 %v88_v7, %v33_v11 }
   0x7   :  { %v45_v20 = vadd.f32 %v88_v7, %v34_v14  ;;  %v46_v21 = vadd.f32 %v88_v7, %v35_v15 }
   0x8   :  { %v55_v22 = vadd.f32 %v107_v12, %v43_v18  ;;  %v56_v23 = vadd.f32 %v108_v13, %v44_v19 }
   0x9   :  { %v57_v24 = vadd.f32 %v111_v16, %v45_v20  ;;  %v58_v25 = vadd.f32 %v112_v17, %v46_v21 }
   0xa   :  { %v59_v26 = vmax.f32 %v55_v22, 0.0  ;;  %v60_v27 = vmax.f32 %v56_v23, 0.0 }
   0xb   :  { %v61_v28 = vmax.f32 %v57_v24, 0.0  ;;  %v62_v29 = vmax.f32 %v58_v25, 0.0 }
   0xc   :  { %v116_v30 = vpack.c.bf16 %v60_v27, %v59_v26 }
   0xd   :  { %v121_v31 = vpack.c.bf16 %v62_v29, %v61_v28 }
   0xe   :  { %117 = vst [vmem:[%s179_s4] sm:$0xff] %v116_v30  }
   0xf   :  { %125 = vst [vmem:[%s179_s4 + $0x8] sm:$0xff] %v121_v31  }

// kernel: resnet18_forward.57
= control target key start
LH: loop header
LB: loop body
LE: loop exit
PB: predicated region body
PF: predicated region fallthrough
CT: control target
= control target key end

     0   :  { %s1014_s15 = smov 0   ;;  %s1016_s16 = smov 0   ;;  %s1117_s0 = inlined_call_operand.vmem [shape: bf16[32,1280], index: 0, kind: input, shape index: {}]   ;;  %s1118_s1 = inlined_call_operand.vmem [shape: bf16[1280,128], index: 1, kind: input, shape index: {}]   ;;  %s1119_s2 = inlined_call_operand.vmem [shape: bf16[32,128], index: 2, kind: output, shape index: {0}]   ;;  %s1120_s3 = inlined_call_operand.vmem [shape: f32[1,1,128], index: 3, kind: output, shape index: {1}]   ;;  %s1121_s4 = inlined_call_operand.vmem [shape: f32[1,1,128], index: 4, kind: output, shape index: {2}]  }
   0x1   :  { %s1018_s17 = smov 0   ;;  %s1020_s18 = smov 0  }
   0x2   :  { %s1022_s19 = smov 0  }
   0x3 LB: > { %s27_s20 = sadd.s32 1, %s982_s18  ;;  %p50_p1 = scmp.ne.s32.totalorder %s974_s16, %s970_s15  ;;  %s986_s19 = sphi %s1022_s19, %s15_s19   ;;  %s982_s18 = sphi %s1020_s18, %s1125_s18   ;;  %s978_s17 = sphi %s1018_s17, %s1124_s17   ;;  %s974_s16 = sphi %s1016_s16, %s1123_s16   ;;  %s970_s15 = sphi %s1014_s15, %s1122_s15  }
   0x4   : > { %p28_p0 = scmp.ge.s32.totalorder %s27_s20, 5  ;;  %p51_p2 = scmp.eq.s32.totalorder %s986_s19, 0 }
   0x5   : > { %s43_s22 = sadd.s32 1, %s974_s16  ;;  %p785_p5 = scmp.ge.s32.totalorder %s986_s19, 5 }
   0x6   : > { %s1127_s20 = smov (%p28_p0, %s27_s20), 0  ;;  %p52_p3 = por %p51_p2, %p50_p1 }
   0x7   : > { %s39_s21 = ssub.s32 %s982_s18, %s1127_s20  ;;  %188 = sbr.rel (%p785_p5) target bundleno = 21 (0x15), region = 16 }
   0x8   : > { %p41_p4 = scmp.eq.s32.totalorder %s39_s21, 0 }
   0xa   : > { %s1049_s23 = scalar_select %p41_p4, %s974_s16, %s43_s22  }
   0xe   : > { %191 = sbr.rel (!%p52_p3) target bundleno = 21 (0x15), region = 20  ;;  %s193_s24 = sand.u32 (%p52_p3), 1, %s974_s16  }
   0xf   : > { %s825_s25 = sshll.u32 (%p52_p3), %s982_s18, 3  ;;  %s786_s26 = sshll.u32 (%p52_p3), %s193_s24, 5 }
  0x10   : > { %s201_s29 = scalar_lea.vmem (%p52_p3), %s1117_s0, %s825_s25  ;;  %s195_s30 = scalar_lea.vmem (%p52_p3), [#allocation3], %s786_s26 }
  0x11   : > { %v235_v0 = vld [vmem:[%s201_s29] sm:$0xff] (%p52_p3)  ;;  %v237_v1 = vld [vmem:[%s201_s29 + $0x28] sm:$0xff] (%p52_p3)  ;;  %v239_v2 = vld [vmem:[%s201_s29 + $0x50] sm:$0xff] (%p52_p3) }
  0x12   : > { %236 = vst [vmem:[%s195_s30] sm:$0xff] (%p52_p3), %v235_v0  ;;  %238 = vst [vmem:[%s195_s30 + $0x8] sm:$0xff] (%p52_p3), %v237_v1  ;;  %v241_v3 = vld [vmem:[%s201_s29 + $0x78] sm:$0xff] (%p52_p3) }
  0x13   : > { %240 = vst [vmem:[%s195_s30 + $0x10] sm:$0xff] (%p52_p3), %v239_v2  ;;  %242 = vst [vmem:[%s195_s30 + $0x18] sm:$0xff] (%p52_p3), %v241_v3 }
  0x15 PF: > { %p789_p6 = scmp.ge.s32.totalorder %s986_s19, 1  ;;  %p259_p7 = scmp.lt.s32.totalorder %s986_s19, 6 }
  0x17   : > { %p260_p8 = pnand %p789_p6, %p259_p7 }
  0x18   : > { %s266_s5 = sand.u32 (!%p260_p8), 1, %s970_s15   ;;  %s791_s6 = sshll.u32 (!%p260_p8), %s978_s17, 5 }
  0x19   : > { %263 = sbr.rel (%p260_p8) target bundleno = 320 (0x140), region = 62  ;;  %s790_s7 = sshll.u32 (!%p260_p8), %s266_s5, 5 }
  0x1a   : > { %p317_p9 = scmp.lt.s32.totalorder (!%p260_p8), %s791_s6, 159  ;;  %s1066_s12 = scalar_lea.vmem (!%p260_p8), [#allocation3], %s790_s7 }
  0x1b   : > { %p793_p10 = scmp.ne.s32.totalorder (!%p260_p8), %s978_s17, 0 }
  0x20   : > { %s1129_s6 = smov (!%p317_p9, %s791_s6), 159  ;;  %350 = sbr.rel (%p793_p10) target bundleno = 39 (0x27), region = 70 }
  0x21   : > { %s792_s8 = sshll.u32 %s1129_s6, 2  ;;  %v988_v4 = vmov (!%p793_p10), 0.0  }
  0x22   : > { %s1064_s11 = scalar_lea.vmem %s1118_s1, %s792_s8  ;;  %351 = vst [vmem:[#allocation2] sm:$0xff] (!%p793_p10), %v988_v4  ;;  %352 = vst [vmem:[#allocation2 + $0x8] sm:$0xff] (!%p793_p10), %v988_v4 }
  0x23   : > { %353 = vst [vmem:[#allocation2 + $0x10] sm:$0xff] (!%p793_p10), %v988_v4  ;;  %354 = vst [vmem:[#allocation2 + $0x18] sm:$0xff] (!%p793_p10), %v988_v4 }
  0x27 PF: > { %v926_v5 = vld [vmem:[%s1064_s11 + $0x40] sm:$0xff]   ;;  %v928_v7 = vld [vmem:[%s1064_s11 + $0x48] sm:$0xff]   ;;  %v930_v9 = vld [vmem:[%s1064_s11 + $0x50] sm:$0xff]   ;;  %p814_p11 = scmp.ne.s32.totalorder %s978_s17, 4 }
  0x28   : > { %v927_v6 = vld [vmem:[%s1064_s11] sm:$0xff]   ;;  %841 = vmatprep.subr.bf16.mxu0 %v926_v5  ;;  %869 = vmatprep.subr.bf16.mxu1 %v926_v5  ;;  %v929_v8 = vld [vmem:[%s1064_s11 + $0x8] sm:$0xff]   ;;  %v931_v10 = vld [vmem:[%s1064_s11 + $0x10] sm:$0xff]  }
  0x29   : > { %842 = vmatpush3.bf16.msra.mxu0 %v927_v6  ;;  %877 = vmatpush3.bf16.msra.mxu1 %v927_v6  ;;  %v932_v11 = vld [vmem:[%s1064_s11 + $0x58] sm:$0xff]   ;;  %v934_v13 = vld [vmem:[%s1064_s11 + $0x60] sm:$0xff]   ;;  %v936_v15 = vld [vmem:[%s1064_s11 + $0x68] sm:$0xff]  }
  0x2a   : > { %843 = vmatprep.subr.bf16.mxu0 %v928_v7  ;;  %870 = vmatprep.subr.bf16.mxu1 %v928_v7  ;;  %v933_v12 = vld [vmem:[%s1064_s11 + $0x18] sm:$0xff]   ;;  %v935_v14 = vld [vmem:[%s1064_s11 + $0x20] sm:$0xff]   ;;  %v937_v18 = vld [vmem:[%s1064_s11 + $0x28] sm:$0xff]  }
  0x2b   : > { %v944_v16 = vld [vmem:[%s1066_s12 + $0x4] ss:$8 sps:$4 sm:$0xff]   ;;  %v947_v17 = vld [vmem:[%s1066_s12 + $0x14] ss:$8 sps:$4 sm:$0xff]   ;;  %v942_v23 = vld [vmem:[%s1066_s12] ss:$8 sps:$4 sm:$0xff]  }
  0x2c   : > { %v938_v19 = vld [vmem:[%s1064_s11 + $0x70] sm:$0xff]   ;;  %543 = vmatprep.mubr.bf16.mxu0 %v944_v16  ;;  %551 = vmatprep.mubr.bf16.mxu1 %v947_v17  ;;  %v940_v21 = vld [vmem:[%s1064_s11 + $0x78] sm:$0xff]   ;;  %v355_v27 = vld [vmem:[#allocation2] sm:$0xff] }
  0x2d   : > { %844 = vmatpush3.bf16.msra.mxu0 %v929_v8  ;;  %878 = vmatpush3.bf16.msra.mxu1 %v929_v8  ;;  %v939_v20 = vld [vmem:[%s1064_s11 + $0x30] sm:$0xff]   ;;  %v941_v22 = vld [vmem:[%s1064_s11 + $0x38] sm:$0xff]   ;;  %v356_v35 = vld [vmem:[#allocation2 + $0x8] sm:$0xff] }
  0x2e   : > { %845 = vmatprep.subr.bf16.mxu0 %v930_v9  ;;  %871 = vmatprep.subr.bf16.mxu1 %v930_v9  ;;  %v945_v24 = vld [vmem:[%s1066_s12 + $0x10] ss:$8 sps:$4 sm:$0xff]  }
  0x2f   : > { %v357_v29 = vld [vmem:[#allocation2 + $0x10] sm:$0xff]  ;;  %v358_v37 = vld [vmem:[#allocation2 + $0x18] sm:$0xff] }
  0x31   : > { %846 = vmatpush3.bf16.msra.mxu0 %v931_v10  ;;  %879 = vmatpush3.bf16.msra.mxu1 %v931_v10 }
  0x32   : > { %847 = vmatprep.subr.bf16.mxu0 %v932_v11  ;;  %872 = vmatprep.subr.bf16.mxu1 %v932_v11 }
  0x35   : > { %848 = vmatpush3.bf16.msra.mxu0 %v933_v12  ;;  %880 = vmatpush3.bf16.msra.mxu1 %v933_v12 }
  0x36   : > { %849 = vmatprep.subr.bf16.mxu0 %v934_v13  ;;  %873 = vmatprep.subr.bf16.mxu1 %v934_v13 }
  0x39   : > { %850 = vmatpush3.bf16.msra.mxu0 %v935_v14  ;;  %881 = vmatpush3.bf16.msra.mxu1 %v935_v14 }
  0x3a   : > { %851 = vmatprep.subr.bf16.mxu0 %v936_v15  ;;  %874 = vmatprep.subr.bf16.mxu1 %v936_v15 }
  0x3d   : > { %852 = vmatpush3.bf16.msra.mxu0 %v937_v18  ;;  %882 = vmatpush3.bf16.msra.mxu1 %v937_v18 }
  0x3e   : > { %853 = vmatprep.subr.bf16.mxu0 %v938_v19  ;;  %875 = vmatprep.subr.bf16.mxu1 %v938_v19 }
  0x41   : > { %854 = vmatpush3.bf16.msra.mxu0 %v939_v20  ;;  %883 = vmatpush3.bf16.msra.mxu1 %v939_v20 }
  0x42   : > { %855 = vmatprep.subr.bf16.mxu0 %v940_v21  ;;  %876 = vmatprep.subr.bf16.mxu1 %v940_v21 }
  0x45   : > { %856 = vmatpush3.bf16.msra.mxu0 %v941_v22  ;;  %884 = vmatpush3.bf16.msra.mxu1 %v941_v22 }
  0x48   : > { %544 = vmatmul.mubr.bf16.vlgmr.msra.gmra.mrb[0].mxu0 %v942_v23  ;;  %552 = vmatmul.mubr.bf16.vlgmr.msra.gmra.mrb[0].mxu1 %v945_v24 }
 0x11b   : > { %v857_v25 = vpop.f32.mrb[0].mxu0  ;;  %v863_v26 = vpop.f32.mrb[0].mxu1 }
 0x11c   : > { %v858_v28 = vpop.f32.mrb[1].mxu0  ;;  %v864_v30 = vpop.f32.mrb[1].mxu1 }
 0x11d   : > { %v859_v31 = vadd.f32 %v858_v28, %v857_v25  ;;  %v865_v32 = vadd.f32 %v864_v30, %v863_v26  ;;  %v860_v33 = vpop.f32.mrb[2].mxu0  ;;  %v866_v34 = vpop.f32.mrb[2].mxu1  ;;  %571 = sbr.rel (%p814_p11) target bundleno = 320 (0x140), region = 74 }
 0x11e   : > { %v861_v36 = vpop.f32.mrb[3].mxu0  ;;  %v867_v38 = vpop.f32.mrb[3].mxu1 }
 0x11f   : > { %v560_v39 = vadd.f32 %v859_v31, %v355_v27  ;;  %v562_v40 = vadd.f32 %v865_v32, %v357_v29  ;;  %v862_v41 = vadd.f32 %v861_v36, %v860_v33  ;;  %v868_v42 = vadd.f32 %v867_v38, %v866_v34 }
 0x121   : > { %564 = vst [vmem:[#allocation2] sm:$0xff] %v560_v39  ;;  %566 = vst [vmem:[#allocation2 + $0x10] sm:$0xff] %v562_v40  ;;  %v561_v43 = vadd.f32 %v862_v41, %v356_v35  ;;  %v563_v44 = vadd.f32 %v868_v42, %v358_v37 }
 0x123   : > { %565 = vst [vmem:[#allocation2 + $0x8] sm:$0xff] %v561_v43  ;;  %567 = vst [vmem:[#allocation2 + $0x18] sm:$0xff] %v563_v44 }
 0x128   : > { %v572_v45 = vld [vmem:[#allocation2] sm:$0xff]  ;;  %v574_v47 = vld [vmem:[#allocation2 + $0x10] sm:$0xff] }
 0x129   : > { %v606_v50 = vmul.f32 %v572_v45, %v572_v45  ;;  %v608_v54 = vmul.f32 %v574_v47, %v574_v47 }
 0x12a   : > { %v573_v46 = vld [vmem:[#allocation2 + $0x8] sm:$0xff]  ;;  %v575_v52 = vld [vmem:[#allocation2 + $0x18] sm:$0xff] }
 0x12b   : > { %v833_v48 = vpack.c.bf16 %v573_v46, %v572_v45  ;;  %v596_v49 = vadd.f32 %v573_v46, %v572_v45  ;;  %v607_v51 = vmul.f32 %v573_v46, %v573_v46  ;;  %v838_v53 = vpack.c.bf16 %v575_v52, %v574_v47 }
 0x12c   : > { %v609_v57 = vmul.f32 %v575_v52, %v575_v52 }
 0x12d   : > { %834 = vst [vmem:[%s1119_s2] sm:$0xff] %v833_v48   ;;  %v610_v55 = vadd.f32 %v607_v51, %v606_v50  ;;  %v597_v56 = vadd.f32 %v596_v49, %v574_v47  ;;  %840 = vst [vmem:[%s1119_s2 + $0x8] sm:$0xff] %v838_v53  }
 0x12f   : > { %v598_v58 = vadd.f32 %v597_v56, %v575_v52  ;;  %v611_v59 = vadd.f32 %v610_v55, %v608_v54 }
 0x131   : > { %v599_v60 = vrot.slane %v598_v58, 4  ;;  %v612_v61 = vadd.f32 %v611_v59, %v609_v57 }
 0x133   : > { %v600_v62 = vadd.f32 %v599_v60, %v598_v58  ;;  %v613_v63 = vrot.slane %v612_v61, 4 }
 0x135   : > { %v601_v0 = vrot.slane %v600_v62, 2  ;;  %v614_v1 = vadd.f32 %v613_v63, %v612_v61 }
 0x137   : > { %v602_v2 = vadd.f32 %v601_v0, %v600_v62  ;;  %v615_v3 = vrot.slane %v614_v1, 2 }
 0x139   : > { %v603_v4 = vrot.slane %v602_v2, 1  ;;  %v616_v5 = vadd.f32 %v615_v3, %v614_v1 }
 0x13b   : > { %v604_v6 = vadd.f32 %v603_v4, %v602_v2  ;;  %v617_v7 = vrot.slane %v616_v5, 1 }
 0x13d   : > { %605 = vst [vmem:[%s1120_s3] sm:$0x1] %v604_v6  ;;  %v618_v8 = vadd.f32 %v617_v7, %v616_v5 }
 0x13f   : > { %619 = vst [vmem:[%s1121_s4] sm:$0x1] %v618_v8 }
 0x140 PF: > { %s15_s19 = sadd.s32 1, %s986_s19   ;;  %s1122_s15 = smov %s974_s16 }
 0x141   : > { %p12_p12 = scmp.ge.s32.totalorder %s15_s19, 7   ;;  %s1123_s16 = smov %s1049_s23 }
 0x142   : > { %s1124_s17 = smov %s982_s18  ;;  %s1125_s18 = smov %s1127_s20 }
 0x143   :  { %14 = sbr.rel (!%p12_p12) target bundleno = 3 (0x3), region = 136 }

// kernel: resnet18_forward.64
= control target key start
LH: loop header
LB: loop body
LE: loop exit
PB: predicated region body
PF: predicated region fallthrough
CT: control target
= control target key end

     0   :  { %v22_v0 = vlaneseq  ;;  %s112_s0 = inlined_call_operand.vmem [shape: bf16[16,256], index: 0, kind: input, shape index: {}]   ;;  %s113_s1 = inlined_call_operand.vmem [shape: f32[1,256], index: 1, kind: input, shape index: {}]   ;;  %s114_s2 = inlined_call_operand.vmem [shape: f32[1,256], index: 2, kind: input, shape index: {}]   ;;  %s115_s3 = inlined_call_operand.vmem [shape: bf16[16,256], index: 3, kind: output, shape index: {}]  }
   0x1   :  { %v14_v1 = vld [vmem:[%s112_s0] sm:$0xff]  ;;  %v15_v3 = vld [vmem:[%s112_s0 + $0x8] sm:$0xff] }
   0x2   :  { %v23_v2 = vshrl.u32 %v22_v0, 7  ;;  %v16_v4 = vunpack.c.l.bf16 %v14_v1  ;;  %v17_v5 = vunpack.c.h.bf16 %v14_v1  ;;  %v20_v6 = vld [vmem:[%s113_s1] sm:$0x3]  ;;  %v18_v10 = vunpack.c.l.bf16 %v15_v3 }
   0x3   :  { %v36_v7 = vld [vmem:[%s114_s2] sm:$0x3]  ;;  %v19_v11 = vunpack.c.h.bf16 %v15_v3 }
   0x4   :  { %v24_v8 = vsub.s32 0, %v23_v2  ;;  %v28_v9 = vsub.s32 1, %v23_v2 }
   0x6   :  { %v25_v12 = vrot.slane %v20_v6, %v24_v8  ;;  %v29_v13 = vrot.slane %v20_v6, %v28_v9  ;;  %v41_v14 = vrot.slane %v36_v7, %v24_v8  ;;  %v45_v15 = vrot.slane %v36_v7, %v28_v9 }
   0x8   :  { %v32_v16 = vmul.f32 %v25_v12, %v16_v4  ;;  %v33_v17 = vmul.f32 %v29_v13, %v17_v5  ;;  %v34_v18 = vmul.f32 %v25_v12, %v18_v10  ;;  %v35_v19 = vmul.f32 %v29_v13, %v19_v11 }
   0xa   :  { %v48_v20 = vadd.f32 %v41_v14, %v32_v16  ;;  %v49_v21 = vadd.f32 %v45_v15, %v33_v17  ;;  %v50_v22 = vadd.f32 %v41_v14, %v34_v18  ;;  %v51_v23 = vadd.f32 %v45_v15, %v35_v19 }
   0xc   :  { %v72_v24 = vpack.c.bf16 %v49_v21, %v48_v20  ;;  %v73_v25 = vpack.c.bf16 %v51_v23, %v50_v22 }
   0xe   :  { %64 = vst [vmem:[%s115_s3] sm:$0xff] %v72_v24  ;;  %65 = vst [vmem:[%s115_s3 + $0x8] sm:$0xff] %v73_v25 }

// kernel: resnet18_forward.63
= control target key start
LH: loop header
LB: loop body
LE: loop exit
PB: predicated region body
PF: predicated region fallthrough
CT: control target
= control target key end

     0   :  { %v337_v1 = vmov 0   ;;  %v338_v37 = vmov 1966171168   ;;  %v223_v39 = vlaneseq  ;;  %s427_s1 = inlined_call_operand.vmem [shape: bf16[128,256], index: 1, kind: input, shape index: {}]   ;;  %s428_s0 = inlined_call_operand.vmem [shape: bf16[16,128], index: 0, kind: input, shape index: {}]   ;;  %s429_s2 = inlined_call_operand.vmem [shape: bf16[16,256], index: 2, kind: output, shape index: {0}]   ;;  %s430_s3 = inlined_call_operand.vmem [shape: f32[1,1,256], index: 3, kind: output, shape index: {1}]   ;;  %s431_s4 = inlined_call_operand.vmem [shape: f32[1,1,256], index: 4, kind: output, shape index: {2}]  }
   0x1   :  { %v312_v0 = vld [vmem:[%s427_s1 + $0x4] ss:$8 sps:$4 sm:$0xff]   ;;  %163 = vmatprep.mubr.bf16.mxu0 %v337_v1  ;;  %v314_v2 = vld [vmem:[%s427_s1] ss:$8 sps:$4 sm:$0xff]   ;;  %v315_v3 = vld [vmem:[%s427_s1 + $0x14] ss:$8 sps:$4 sm:$0xff]   ;;  %v221_v38 = vunpack.c.l.s4 %v338_v37 }
   0x2   :  { %131 = vmatprep.subr.bf16.mxu0 %v312_v0  ;;  %v317_v4 = vld [vmem:[%s427_s1 + $0x10] ss:$8 sps:$4 sm:$0xff]   ;;  %v318_v5 = vld [vmem:[%s427_s1 + $0x24] ss:$8 sps:$4 sm:$0xff]   ;;  %v320_v6 = vld [vmem:[%s427_s1 + $0x20] ss:$8 sps:$4 sm:$0xff]  }
   0x3   :  { %132 = vmatpush1.bf16.msra.mxu0 %v314_v2  ;;  %v321_v7 = vld [vmem:[%s427_s1 + $0x34] ss:$8 sps:$4 sm:$0xff]   ;;  %v323_v8 = vld [vmem:[%s427_s1 + $0x30] ss:$8 sps:$4 sm:$0xff]   ;;  %v324_v9 = vld [vmem:[%s427_s1 + $0x44] ss:$8 sps:$4 sm:$0xff]   ;;  %v222_v48 = vunpack.c.0.s8 %v221_v38 }
   0x4   :  { %133 = vmatprep.subr.bf16.mxu0 %v315_v3  ;;  %v326_v10 = vld [vmem:[%s427_s1 + $0x40] ss:$8 sps:$4 sm:$0xff]   ;;  %v327_v11 = vld [vmem:[%s427_s1 + $0x54] ss:$8 sps:$4 sm:$0xff]   ;;  %v329_v12 = vld [vmem:[%s427_s1 + $0x50] ss:$8 sps:$4 sm:$0xff]  }
   0x5   :  { %v330_v13 = vld [vmem:[%s427_s1 + $0x64] ss:$8 sps:$4 sm:$0xff]   ;;  %v332_v14 = vld [vmem:[%s427_s1 + $0x60] ss:$8 sps:$4 sm:$0xff]   ;;  %v333_v15 = vld [vmem:[%s427_s1 + $0x74] ss:$8 sps:$4 sm:$0xff]  }
   0x6   :  { %v335_v16 = vld [vmem:[%s427_s1 + $0x70] ss:$8 sps:$4 sm:$0xff]   ;;  %v336_v17 = vld [vmem:[%s428_s0] sm:$0xff]   ;;  %v224_v49 = vshrl.u32 %v223_v39, 7  ;;  %vm237_vm0 = vcmp.lt.s32.totalorder %v223_v39, 256 }
   0x7   :  { %134 = vmatpush1.bf16.msra.mxu0 %v317_v4 }
   0x8   :  { %135 = vmatprep.subr.bf16.mxu0 %v318_v5  ;;  %v225_v58 = vsub.s32 %v222_v48, %v224_v49 }
   0xb   :  { %136 = vmatpush1.bf16.msra.mxu0 %v320_v6 }
   0xc   :  { %137 = vmatprep.subr.bf16.mxu0 %v321_v7 }
   0xf   :  { %138 = vmatpush1.bf16.msra.mxu0 %v323_v8 }
  0x10   :  { %139 = vmatprep.subr.bf16.mxu0 %v324_v9 }
  0x13   :  { %140 = vmatpush1.bf16.msra.mxu0 %v326_v10 }
  0x14   :  { %141 = vmatprep.subr.bf16.mxu0 %v327_v11 }
  0x17   :  { %142 = vmatpush1.bf16.msra.mxu0 %v329_v12 }
  0x18   :  { %143 = vmatprep.subr.bf16.mxu0 %v330_v13 }
  0x1b   :  { %144 = vmatpush1.bf16.msra.mxu0 %v332_v14 }
  0x1c   :  { %145 = vmatprep.subr.bf16.mxu0 %v333_v15 }
  0x1f   :  { %146 = vmatpush1.bf16.msra.mxu0 %v335_v16 }
  0x22   :  { %164 = vmatmul.mubr.bf16.vlgmr.msra.gmra.mrb[0].mxu0 %v336_v17 }
  0xf5   :  { %v165_v18 = vpop.f32.mrb[0].mxu0 }
  0xf6   :  { %v167_v19 = vpop.f32.mrb[1].mxu0  ;;  %v240_v22 = vmul.f32 %v165_v18, %v165_v18 }
  0xf7   :  { %v308_v20 = vpack.c.bf16 %v167_v19, %v165_v18  ;;  %v169_v21 = vpop.f32.mrb[2].mxu0  ;;  %v241_v26 = vmul.f32 %v167_v19, %v167_v19 }
  0xf8   :  { %v203_v23 = vadd.f32 %v169_v21, %v165_v18  ;;  %v242_v24 = vmul.f32 %v169_v21, %v169_v21  ;;  %v171_v25 = vpop.f32.mrb[3].mxu0 }
  0xf9   :  { %v309_v27 = vpack.c.bf16 %v171_v25, %v169_v21  ;;  %201 = vst [vmem:[%s429_s2] sm:$0xff] %v308_v20  ;;  %v210_v28 = vadd.f32 %v171_v25, %v167_v19  ;;  %v243_v29 = vmul.f32 %v171_v25, %v171_v25 }
  0xfa   :  { %v204_v30 = vrot.slane %v203_v23, 4  ;;  %v244_v31 = vadd.f32 %v242_v24, %v240_v22 }
  0xfb   :  { %202 = vst [vmem:[%s429_s2 + $0x8] sm:$0xff] %v309_v27  ;;  %v211_v32 = vrot.slane %v210_v28, 4  ;;  %v251_v33 = vadd.f32 %v243_v29, %v241_v26 }
  0xfc   :  { %v205_v34 = vadd.f32 %v204_v30, %v203_v23  ;;  %v245_v35 = vrot.slane %v244_v31, 4 }
  0xfd   :  { %v212_v36 = vadd.f32 %v211_v32, %v210_v28  ;;  %v252_v40 = vrot.slane %v251_v33, 4 }
  0xfe   :  { %v206_v41 = vrot.slane %v205_v34, 2  ;;  %v246_v42 = vadd.f32 %v245_v35, %v244_v31 }
  0xff   :  { %v213_v43 = vrot.slane %v212_v36, 2  ;;  %v253_v44 = vadd.f32 %v252_v40, %v251_v33 }
 0x100   :  { %v207_v45 = vadd.f32 %v206_v41, %v205_v34  ;;  %v247_v46 = vrot.slane %v246_v42, 2 }
 0x101   :  { %v214_v47 = vadd.f32 %v213_v43, %v212_v36  ;;  %v254_v50 = vrot.slane %v253_v44, 2 }
 0x102   :  { %v208_v51 = vrot.slane %v207_v45, 1  ;;  %v248_v52 = vadd.f32 %v247_v46, %v246_v42 }
 0x103   :  { %v215_v53 = vrot.slane %v214_v47, 1  ;;  %v255_v54 = vadd.f32 %v254_v50, %v253_v44 }
 0x104   :  { %v209_v55 = vadd.f32 %v208_v51, %v207_v45  ;;  %v249_v56 = vrot.slane %v248_v52, 1 }
 0x105   :  { %v216_v57 = vadd.f32 %v215_v53, %v214_v47  ;;  %v256_v59 = vrot.slane %v255_v54, 1 }
 0x106   :  { %v250_v60 = vadd.f32 %v249_v56, %v248_v52 }
 0x107   :  { %v219_v61 = vcombine.low %v209_v55, %v216_v57  ;;  %v257_v62 = vadd.f32 %v256_v59, %v255_v54 }
 0x109   :  { %v226_v63 = vrot.slane %v219_v61, %v225_v58  ;;  %v260_v0 = vcombine.low %v250_v60, %v257_v62 }
 0x10b   :  { %v233_v1 = vrot.slane %v226_v63, %v225_v58  ;;  %v267_v2 = vrot.slane %v260_v0, %v225_v58 }
 0x10d   :  { %239 = vst.msk [vmem:[%s430_s3] sm:$0x3] %vm237_vm0, %v233_v1  ;;  %v274_v3 = vrot.slane %v267_v2, %v225_v58 }
 0x10f   :  { %276 = vst.msk [vmem:[%s431_s4] sm:$0x3] %vm237_vm0, %v274_v3 }

// kernel: resnet18_forward.66
= control target key start
LH: loop header
LB: loop body
LE: loop exit
PB: predicated region body
PF: predicated region fallthrough
CT: control target
= control target key end

     0   :  { %v22_v0 = vlaneseq  ;;  %s116_s0 = inlined_call_operand.vmem [shape: bf16[16,256], index: 0, kind: input, shape index: {}]   ;;  %s117_s1 = inlined_call_operand.vmem [shape: f32[1,256], index: 1, kind: input, shape index: {}]   ;;  %s118_s2 = inlined_call_operand.vmem [shape: f32[1,256], index: 2, kind: input, shape index: {}]   ;;  %s119_s3 = inlined_call_operand.vmem [shape: bf16[16,256], index: 3, kind: output, shape index: {}]  }
   0x1   :  { %v14_v1 = vld [vmem:[%s116_s0] sm:$0xff]  ;;  %v15_v3 = vld [vmem:[%s116_s0 + $0x8] sm:$0xff] }
   0x2   :  { %v23_v2 = vshrl.u32 %v22_v0, 7  ;;  %v16_v4 = vunpack.c.l.bf16 %v14_v1  ;;  %v17_v5 = vunpack.c.h.bf16 %v14_v1  ;;  %v20_v6 = vld [vmem:[%s117_s1] sm:$0x3]  ;;  %v18_v10 = vunpack.c.l.bf16 %v15_v3 }
   0x3   :  { %v36_v7 = vld [vmem:[%s118_s2] sm:$0x3]  ;;  %v19_v11 = vunpack.c.h.bf16 %v15_v3 }
   0x4   :  { %v24_v8 = vsub.s32 0, %v23_v2  ;;  %v28_v9 = vsub.s32 1, %v23_v2 }
   0x6   :  { %v25_v12 = vrot.slane %v20_v6, %v24_v8  ;;  %v29_v13 = vrot.slane %v20_v6, %v28_v9  ;;  %v41_v14 = vrot.slane %v36_v7, %v24_v8  ;;  %v45_v15 = vrot.slane %v36_v7, %v28_v9 }
   0x8   :  { %v32_v16 = vmul.f32 %v25_v12, %v16_v4  ;;  %v33_v17 = vmul.f32 %v29_v13, %v17_v5  ;;  %v34_v18 = vmul.f32 %v25_v12, %v18_v10  ;;  %v35_v19 = vmul.f32 %v29_v13, %v19_v11 }
   0xa   :  { %v48_v20 = vadd.f32 %v41_v14, %v32_v16  ;;  %v49_v21 = vadd.f32 %v45_v15, %v33_v17  ;;  %v50_v22 = vadd.f32 %v41_v14, %v34_v18  ;;  %v51_v23 = vadd.f32 %v45_v15, %v35_v19 }
   0xc   :  { %v52_v24 = vmax.f32 %v48_v20, 0.0  ;;  %v53_v25 = vmax.f32 %v49_v21, 0.0  ;;  %v54_v26 = vmax.f32 %v50_v22, 0.0  ;;  %v55_v27 = vmax.f32 %v51_v23, 0.0 }
   0xe   :  { %v76_v28 = vpack.c.bf16 %v53_v25, %v52_v24  ;;  %v77_v29 = vpack.c.bf16 %v55_v27, %v54_v26 }
  0x10   :  { %68 = vst [vmem:[%s119_s3] sm:$0xff] %v76_v28  ;;  %69 = vst [vmem:[%s119_s3 + $0x8] sm:$0xff] %v77_v29 }

// kernel: resnet18_forward.65
= control target key start
LH: loop header
LB: loop body
LE: loop exit
PB: predicated region body
PF: predicated region fallthrough
CT: control target
= control target key end

     0   :  { %s1138_s15 = smov 0   ;;  %s1140_s16 = smov 0   ;;  %s1258_s0 = inlined_call_operand.vmem [shape: bf16[16,1280], index: 0, kind: input, shape index: {}]   ;;  %s1259_s1 = inlined_call_operand.vmem [shape: bf16[1280,256], index: 1, kind: input, shape index: {}]   ;;  %s1260_s2 = inlined_call_operand.vmem [shape: bf16[16,256], index: 2, kind: output, shape index: {0}]   ;;  %s1261_s3 = inlined_call_operand.vmem [shape: f32[1,1,256], index: 3, kind: output, shape index: {1}]   ;;  %s1262_s4 = inlined_call_operand.vmem [shape: f32[1,1,256], index: 4, kind: output, shape index: {2}]  }
   0x1   :  { %s1142_s17 = smov 0   ;;  %s1144_s18 = smov 0  }
   0x2   :  { %s1146_s19 = smov 0  }
   0x3 LB: > { %s27_s20 = sadd.s32 1, %s1105_s18  ;;  %p50_p1 = scmp.ne.s32.totalorder %s1097_s16, %s1093_s15  ;;  %s1109_s19 = sphi %s1146_s19, %s15_s19   ;;  %s1105_s18 = sphi %s1144_s18, %s1266_s18   ;;  %s1101_s17 = sphi %s1142_s17, %s1265_s17   ;;  %s1097_s16 = sphi %s1140_s16, %s1264_s16   ;;  %s1093_s15 = sphi %s1138_s15, %s1263_s15  }
   0x4   : > { %p28_p0 = scmp.ge.s32.totalorder %s27_s20, 5  ;;  %p51_p2 = scmp.eq.s32.totalorder %s1109_s19, 0 }
   0x5   : > { %s43_s22 = sadd.s32 1, %s1097_s16  ;;  %p919_p5 = scmp.ge.s32.totalorder %s1109_s19, 5 }
   0x6   : > { %s1268_s20 = smov (%p28_p0, %s27_s20), 0  ;;  %p52_p3 = por %p51_p2, %p50_p1 }
   0x7   : > { %s39_s21 = ssub.s32 %s1105_s18, %s1268_s20  ;;  %188 = sbr.rel (%p919_p5) target bundleno = 21 (0x15), region = 16 }
   0x8   : > { %p41_p4 = scmp.eq.s32.totalorder %s39_s21, 0 }
   0xa   : > { %s1173_s23 = scalar_select %p41_p4, %s1097_s16, %s43_s22  }
   0xe   : > { %191 = sbr.rel (!%p52_p3) target bundleno = 21 (0x15), region = 20  ;;  %s193_s24 = sand.u32 (%p52_p3), 1, %s1097_s16  }
   0xf   : > { %s974_s25 = sshll.u32 (%p52_p3), %s1105_s18, 3  ;;  %s920_s26 = sshll.u32 (%p52_p3), %s193_s24, 4 }
  0x10   : > { %s201_s29 = scalar_lea.vmem (%p52_p3), %s1258_s0, %s974_s25  ;;  %s195_s30 = scalar_lea.vmem (%p52_p3), [#allocation3], %s920_s26 }
  0x11   : > { %v231_v0 = vld [vmem:[%s201_s29] sm:$0xff] (%p52_p3)  ;;  %v233_v1 = vld [vmem:[%s201_s29 + $0x28] sm:$0xff] (%p52_p3) }
  0x12   : > { %232 = vst [vmem:[%s195_s30] sm:$0xff] (%p52_p3), %v231_v0  ;;  %234 = vst [vmem:[%s195_s30 + $0x8] sm:$0xff] (%p52_p3), %v233_v1 }
  0x15 PF: > { %p923_p6 = scmp.ge.s32.totalorder %s1109_s19, 1  ;;  %p254_p7 = scmp.lt.s32.totalorder %s1109_s19, 6 }
  0x17   : > { %p255_p8 = pnand %p923_p6, %p254_p7 }
  0x18   : > { %s261_s5 = sand.u32 (!%p255_p8), 1, %s1093_s15   ;;  %s925_s6 = sshll.u32 (!%p255_p8), %s1101_s17, 5 }
  0x19   : > { %258 = sbr.rel (%p255_p8) target bundleno = 352 (0x160), region = 62  ;;  %s1185_s7 = sshll.u32 (!%p255_p8), %s261_s5, 4 }
  0x1a   : > { %p321_p9 = scmp.lt.s32.totalorder (!%p255_p8), %s925_s6, 159  ;;  %s263_s12 = scalar_lea.vmem (!%p255_p8), [#allocation3], %s1185_s7 }
  0x1b   : > { %p928_p10 = scmp.ne.s32.totalorder (!%p255_p8), %s1101_s17, 0 }
  0x20   : > { %s1270_s6 = smov (!%p321_p9, %s925_s6), 159  ;;  %364 = sbr.rel (%p928_p10) target bundleno = 39 (0x27), region = 70 }
  0x21   : > { %s975_s8 = sshll.u32 %s1270_s6, 3  ;;  %v1111_v2 = vmov (!%p928_p10), 0.0  }
  0x22   : > { %s1190_s11 = scalar_lea.vmem %s1259_s1, %s975_s8  ;;  %365 = vst [vmem:[#allocation2] sm:$0xff] (!%p928_p10), %v1111_v2  ;;  %366 = vst [vmem:[#allocation2 + $0x8] sm:$0xff] (!%p928_p10), %v1111_v2 }
  0x23   : > { %367 = vst [vmem:[#allocation2 + $0x10] sm:$0xff] (!%p928_p10), %v1111_v2  ;;  %368 = vst [vmem:[#allocation2 + $0x18] sm:$0xff] (!%p928_p10), %v1111_v2 }
  0x27 PF: > { %v1020_v3 = vld [vmem:[%s1190_s11 + $0x4] ss:$8 sps:$4 sm:$0xff]   ;;  %v1022_v4 = vld [vmem:[%s1190_s11] ss:$8 sps:$4 sm:$0xff]   ;;  %v1023_v5 = vld [vmem:[%s1190_s11 + $0x14] ss:$8 sps:$4 sm:$0xff]  }
  0x28   : > { %577 = vmatprep.subr.bf16.mxu0 %v1020_v3  ;;  %v1025_v6 = vld [vmem:[%s1190_s11 + $0x10] ss:$8 sps:$4 sm:$0xff]   ;;  %v1026_v7 = vld [vmem:[%s1190_s11 + $0x24] ss:$8 sps:$4 sm:$0xff]   ;;  %v1028_v8 = vld [vmem:[%s1190_s11 + $0x20] ss:$8 sps:$4 sm:$0xff]  }
  0x29   : > { %578 = vmatpush1.bf16.msra.mxu0 %v1022_v4  ;;  %v1029_v9 = vld [vmem:[%s1190_s11 + $0x34] ss:$8 sps:$4 sm:$0xff]   ;;  %v1031_v10 = vld [vmem:[%s1190_s11 + $0x30] ss:$8 sps:$4 sm:$0xff]   ;;  %v1032_v11 = vld [vmem:[%s1190_s11 + $0x44] ss:$8 sps:$4 sm:$0xff]  }
  0x2a   : > { %579 = vmatprep.subr.bf16.mxu0 %v1023_v5  ;;  %v1034_v12 = vld [vmem:[%s1190_s11 + $0x40] ss:$8 sps:$4 sm:$0xff]   ;;  %v1035_v13 = vld [vmem:[%s1190_s11 + $0x54] ss:$8 sps:$4 sm:$0xff]   ;;  %v1037_v14 = vld [vmem:[%s1190_s11 + $0x50] ss:$8 sps:$4 sm:$0xff]  }
  0x2b   : > { %v1038_v15 = vld [vmem:[%s1190_s11 + $0x64] ss:$8 sps:$4 sm:$0xff]   ;;  %v1040_v17 = vld [vmem:[%s1190_s11 + $0x60] ss:$8 sps:$4 sm:$0xff]   ;;  %v1041_v18 = vld [vmem:[%s1190_s11 + $0x74] ss:$8 sps:$4 sm:$0xff]  }
  0x2c   : > { %v1070_v16 = vld [vmem:[%s263_s12 + $0x4] ss:$8 sps:$4 sm:$0xff]   ;;  %v1043_v19 = vld [vmem:[%s1190_s11 + $0x70] ss:$8 sps:$4 sm:$0xff]   ;;  %v1046_v21 = vld [vmem:[%s1190_s11 + $0x80] ss:$8 sps:$4 sm:$0xff]  }
  0x2d   : > { %580 = vmatpush1.bf16.msra.mxu0 %v1025_v6  ;;  %609 = vmatprep.mubr.bf16.mxu0 %v1070_v16  ;;  %v1044_v20 = vld [vmem:[%s1190_s11 + $0x84] ss:$8 sps:$4 sm:$0xff]   ;;  %v1047_v22 = vld [vmem:[%s1190_s11 + $0x94] ss:$8 sps:$4 sm:$0xff]   ;;  %v1049_v23 = vld [vmem:[%s1190_s11 + $0x90] ss:$8 sps:$4 sm:$0xff]  }
  0x2e   : > { %581 = vmatprep.subr.bf16.mxu0 %v1026_v7  ;;  %v1050_v24 = vld [vmem:[%s1190_s11 + $0xa4] ss:$8 sps:$4 sm:$0xff]   ;;  %v1052_v25 = vld [vmem:[%s1190_s11 + $0xa0] ss:$8 sps:$4 sm:$0xff]   ;;  %v1053_v26 = vld [vmem:[%s1190_s11 + $0xb4] ss:$8 sps:$4 sm:$0xff]  }
  0x2f   : > { %v1055_v27 = vld [vmem:[%s1190_s11 + $0xb0] ss:$8 sps:$4 sm:$0xff]   ;;  %v1056_v28 = vld [vmem:[%s1190_s11 + $0xc4] ss:$8 sps:$4 sm:$0xff]   ;;  %v1058_v29 = vld [vmem:[%s1190_s11 + $0xc0] ss:$8 sps:$4 sm:$0xff]  }
  0x30   : > { %v1059_v30 = vld [vmem:[%s1190_s11 + $0xd4] ss:$8 sps:$4 sm:$0xff]   ;;  %v1061_v31 = vld [vmem:[%s1190_s11 + $0xd0] ss:$8 sps:$4 sm:$0xff]   ;;  %v1062_v32 = vld [vmem:[%s1190_s11 + $0xe4] ss:$8 sps:$4 sm:$0xff]  }
  0x31   : > { %582 = vmatpush1.bf16.msra.mxu0 %v1028_v8  ;;  %v1064_v33 = vld [vmem:[%s1190_s11 + $0xe0] ss:$8 sps:$4 sm:$0xff]   ;;  %v1065_v34 = vld [vmem:[%s1190_s11 + $0xf4] ss:$8 sps:$4 sm:$0xff]   ;;  %v1067_v35 = vld [vmem:[%s1190_s11 + $0xf0] ss:$8 sps:$4 sm:$0xff]  }
  0x32   : > { %583 = vmatprep.subr.bf16.mxu0 %v1029_v9  ;;  %v1068_v36 = vld [vmem:[%s263_s12] ss:$8 sps:$4 sm:$0xff]   ;;  %p963_p11 = scmp.ne.s32.totalorder %s1101_s17, 4 }
  0x33   : > { %v369_v37 = vld [vmem:[#allocation2] sm:$0xff]  ;;  %v370_v38 = vld [vmem:[#allocation2 + $0x8] sm:$0xff]  ;;  %v371_v40 = vld [vmem:[#allocation2 + $0x10] sm:$0xff]  ;;  %v670_v2 = vlaneseq (!%p963_p11)  ;;  %v1112_v6 = vmov (!%p963_p11), 1966171168  }
  0x34   : > { %v372_v43 = vld [vmem:[#allocation2 + $0x18] sm:$0xff]  ;;  %v668_v7 = vunpack.c.l.s4 (!%p963_p11), %v1112_v6 }
  0x35   : > { %584 = vmatpush1.bf16.msra.mxu0 %v1031_v10  ;;  %vm684_vm0 = vcmp.lt.s32.totalorder (!%p963_p11), %v670_v2, 256 }
  0x36   : > { %585 = vmatprep.subr.bf16.mxu0 %v1032_v11 }
  0x39   : > { %586 = vmatpush1.bf16.msra.mxu0 %v1034_v12 }
  0x3a   : > { %587 = vmatprep.subr.bf16.mxu0 %v1035_v13  ;;  %v671_v13 = vshrl.u32 (!%p963_p11), %v670_v2, 7 }
  0x3d   : > { %588 = vmatpush1.bf16.msra.mxu0 %v1037_v14 }
  0x3e   : > { %589 = vmatprep.subr.bf16.mxu0 %v1038_v15 }
  0x41   : > { %590 = vmatpush1.bf16.msra.mxu0 %v1040_v17  ;;  %v669_v17 = vunpack.c.0.s8 (!%p963_p11), %v668_v7 }
  0x42   : > { %591 = vmatprep.subr.bf16.mxu0 %v1041_v18 }
  0x45   : > { %592 = vmatpush1.bf16.msra.mxu0 %v1043_v19 }
  0x46   : > { %593 = vmatprep.subr.bf16.mxu0 %v1044_v20 }
  0x49   : > { %594 = vmatpush1.bf16.msra.mxu0 %v1046_v21 }
  0x4a   : > { %595 = vmatprep.subr.bf16.mxu0 %v1047_v22 }
  0x4d   : > { %596 = vmatpush1.bf16.msra.mxu0 %v1049_v23 }
  0x4e   : > { %597 = vmatprep.subr.bf16.mxu0 %v1050_v24  ;;  %v672_v24 = vsub.s32 (!%p963_p11), %v669_v17, %v671_v13 }
  0x51   : > { %598 = vmatpush1.bf16.msra.mxu0 %v1052_v25 }
  0x52   : > { %599 = vmatprep.subr.bf16.mxu0 %v1053_v26 }
  0x55   : > { %600 = vmatpush1.bf16.msra.mxu0 %v1055_v27 }
  0x56   : > { %601 = vmatprep.subr.bf16.mxu0 %v1056_v28 }
  0x59   : > { %602 = vmatpush1.bf16.msra.mxu0 %v1058_v29 }
  0x5a   : > { %603 = vmatprep.subr.bf16.mxu0 %v1059_v30 }
  0x5d   : > { %604 = vmatpush1.bf16.msra.mxu0 %v1061_v31 }
  0x5e   : > { %605 = vmatprep.subr.bf16.mxu0 %v1062_v32 }
  0x61   : > { %606 = vmatpush1.bf16.msra.mxu0 %v1064_v33 }
  0x62   : > { %607 = vmatprep.subr.bf16.mxu0 %v1065_v34 }
  0x65   : > { %608 = vmatpush1.bf16.msra.mxu0 %v1067_v35 }
  0x68   : > { %610 = vmatmul.mubr.bf16.vlgmr.msra.gmra.mrb[0].mxu0 %v1068_v36 }
 0x13b   : > { %v611_v39 = vpop.f32.mrb[0].mxu0  ;;  %631 = sbr.rel (%p963_p11) target bundleno = 352 (0x160), region = 74 }
 0x13c   : > { %v620_v41 = vadd.f32 %v611_v39, %v369_v37  ;;  %v613_v42 = vpop.f32.mrb[1].mxu0 }
 0x13d   : > { %v621_v44 = vadd.f32 %v613_v42, %v370_v38  ;;  %v615_v45 = vpop.f32.mrb[2].mxu0 }
 0x13e   : > { %624 = vst [vmem:[#allocation2] sm:$0xff] %v620_v41  ;;  %v622_v46 = vadd.f32 %v615_v45, %v371_v40  ;;  %v617_v47 = vpop.f32.mrb[3].mxu0 }
 0x13f   : > { %625 = vst [vmem:[#allocation2 + $0x8] sm:$0xff] %v621_v44  ;;  %v623_v48 = vadd.f32 %v617_v47, %v372_v43 }
 0x140   : > { %626 = vst [vmem:[#allocation2 + $0x10] sm:$0xff] %v622_v46 }
 0x141   : > { %627 = vst [vmem:[#allocation2 + $0x18] sm:$0xff] %v623_v48 }
 0x145   : > { %v632_v49 = vld [vmem:[#allocation2] sm:$0xff] }
 0x146   : > { %v633_v50 = vld [vmem:[#allocation2 + $0x8] sm:$0xff]  ;;  %v687_v53 = vmul.f32 %v632_v49, %v632_v49 }
 0x147   : > { %v634_v51 = vld [vmem:[#allocation2 + $0x10] sm:$0xff]  ;;  %v976_v52 = vpack.c.bf16 %v633_v50, %v632_v49  ;;  %v688_v54 = vmul.f32 %v633_v50, %v633_v50 }
 0x148   : > { %v635_v55 = vld [vmem:[#allocation2 + $0x18] sm:$0xff]  ;;  %v650_v56 = vadd.f32 %v634_v51, %v632_v49  ;;  %v689_v59 = vmul.f32 %v634_v51, %v634_v51 }
 0x149   : > { %v977_v57 = vpack.c.bf16 %v635_v55, %v634_v51  ;;  %v657_v58 = vadd.f32 %v635_v55, %v633_v50  ;;  %v690_v60 = vmul.f32 %v635_v55, %v635_v55  ;;  %648 = vst [vmem:[%s1260_s2] sm:$0xff] %v976_v52 }
 0x14a   : > { %v651_v61 = vrot.slane %v650_v56, 4  ;;  %v691_v63 = vadd.f32 %v689_v59, %v687_v53 }
 0x14b   : > { %649 = vst [vmem:[%s1260_s2 + $0x8] sm:$0xff] %v977_v57  ;;  %v658_v62 = vrot.slane %v657_v58, 4  ;;  %v698_v0 = vadd.f32 %v690_v60, %v688_v54 }
 0x14c   : > { %v652_v1 = vadd.f32 %v651_v61, %v650_v56  ;;  %v692_v4 = vrot.slane %v691_v63, 4 }
 0x14d   : > { %v659_v3 = vadd.f32 %v658_v62, %v657_v58  ;;  %v699_v5 = vrot.slane %v698_v0, 4 }
 0x14e   : > { %v653_v8 = vrot.slane %v652_v1, 2  ;;  %v693_v10 = vadd.f32 %v692_v4, %v691_v63 }
 0x14f   : > { %v660_v9 = vrot.slane %v659_v3, 2  ;;  %v700_v11 = vadd.f32 %v699_v5, %v698_v0 }
 0x150   : > { %v654_v12 = vadd.f32 %v653_v8, %v652_v1  ;;  %v694_v15 = vrot.slane %v693_v10, 2 }
 0x151   : > { %v661_v14 = vadd.f32 %v660_v9, %v659_v3  ;;  %v701_v16 = vrot.slane %v700_v11, 2 }
 0x152   : > { %v655_v18 = vrot.slane %v654_v12, 1  ;;  %v695_v20 = vadd.f32 %v694_v15, %v693_v10 }
 0x153   : > { %v662_v19 = vrot.slane %v661_v14, 1  ;;  %v702_v21 = vadd.f32 %v701_v16, %v700_v11 }
 0x154   : > { %v656_v22 = vadd.f32 %v655_v18, %v654_v12  ;;  %v696_v25 = vrot.slane %v695_v20, 1 }
 0x155   : > { %v663_v23 = vadd.f32 %v662_v19, %v661_v14  ;;  %v703_v26 = vrot.slane %v702_v21, 1 }
 0x156   : > { %v697_v28 = vadd.f32 %v696_v25, %v695_v20 }
 0x157   : > { %v666_v27 = vcombine.low %v656_v22, %v663_v23  ;;  %v704_v29 = vadd.f32 %v703_v26, %v702_v21 }
 0x159   : > { %v673_v30 = vrot.slane %v666_v27, %v672_v24  ;;  %v707_v31 = vcombine.low %v697_v28, %v704_v29 }
 0x15b   : > { %v680_v32 = vrot.slane %v673_v30, %v672_v24  ;;  %v714_v33 = vrot.slane %v707_v31, %v672_v24 }
 0x15d   : > { %686 = vst.msk [vmem:[%s1261_s3] sm:$0x3] %vm684_vm0, %v680_v32  ;;  %v721_v34 = vrot.slane %v714_v33, %v672_v24 }
 0x15f   : > { %723 = vst.msk [vmem:[%s1262_s4] sm:$0x3] %vm684_vm0, %v721_v34 }
 0x160 PF: > { %s15_s19 = sadd.s32 1, %s1109_s19   ;;  %s1263_s15 = smov %s1097_s16 }
 0x161   : > { %p12_p12 = scmp.ge.s32.totalorder %s15_s19, 7   ;;  %s1264_s16 = smov %s1173_s23 }
 0x162   : > { %s1265_s17 = smov %s1105_s18  ;;  %s1266_s18 = smov %s1268_s20 }
 0x163   :  { %14 = sbr.rel (!%p12_p12) target bundleno = 3 (0x3), region = 136 }

// kernel: resnet18_forward.67
= control target key start
LH: loop header
LB: loop body
LE: loop exit
PB: predicated region body
PF: predicated region fallthrough
CT: control target
= control target key end

     0   :  { %s1138_s15 = smov 0   ;;  %s1140_s16 = smov 0   ;;  %s1258_s0 = inlined_call_operand.vmem [shape: bf16[16,2304], index: 0, kind: input, shape index: {}]   ;;  %s1259_s1 = inlined_call_operand.vmem [shape: bf16[2304,256], index: 1, kind: input, shape index: {}]   ;;  %s1260_s2 = inlined_call_operand.vmem [shape: bf16[16,256], index: 2, kind: output, shape index: {0}]   ;;  %s1261_s3 = inlined_call_operand.vmem [shape: f32[1,1,256], index: 3, kind: output, shape index: {1}]   ;;  %s1262_s4 = inlined_call_operand.vmem [shape: f32[1,1,256], index: 4, kind: output, shape index: {2}]  }
   0x1   :  { %s1142_s17 = smov 0   ;;  %s1144_s18 = smov 0  }
   0x2   :  { %s1146_s19 = smov 0  }
   0x3 LB: > { %s27_s20 = sadd.s32 1, %s1105_s18  ;;  %p50_p1 = scmp.ne.s32.totalorder %s1097_s16, %s1093_s15  ;;  %s1109_s19 = sphi %s1146_s19, %s15_s19   ;;  %s1105_s18 = sphi %s1144_s18, %s1266_s18   ;;  %s1101_s17 = sphi %s1142_s17, %s1265_s17   ;;  %s1097_s16 = sphi %s1140_s16, %s1264_s16   ;;  %s1093_s15 = sphi %s1138_s15, %s1263_s15  }
   0x4   : > { %p28_p0 = scmp.ge.s32.totalorder %s27_s20, 9  ;;  %p51_p2 = scmp.eq.s32.totalorder %s1109_s19, 0 }
   0x5   : > { %s43_s22 = sadd.s32 1, %s1097_s16  ;;  %p919_p5 = scmp.ge.s32.totalorder %s1109_s19, 9 }
   0x6   : > { %s1268_s20 = smov (%p28_p0, %s27_s20), 0  ;;  %p52_p3 = por %p51_p2, %p50_p1 }
   0x7   : > { %s39_s21 = ssub.s32 %s1105_s18, %s1268_s20  ;;  %188 = sbr.rel (%p919_p5) target bundleno = 21 (0x15), region = 16 }
   0x8   : > { %p41_p4 = scmp.eq.s32.totalorder %s39_s21, 0 }
   0xa   : > { %s1173_s23 = scalar_select %p41_p4, %s1097_s16, %s43_s22  }
   0xe   : > { %191 = sbr.rel (!%p52_p3) target bundleno = 21 (0x15), region = 20  ;;  %s193_s24 = sand.u32 (%p52_p3), 1, %s1097_s16  }
   0xf   : > { %s974_s25 = sshll.u32 (%p52_p3), %s1105_s18, 3  ;;  %s920_s26 = sshll.u32 (%p52_p3), %s193_s24, 4 }
  0x10   : > { %s201_s29 = scalar_lea.vmem (%p52_p3), %s1258_s0, %s974_s25  ;;  %s195_s30 = scalar_lea.vmem (%p52_p3), [#allocation3], %s920_s26 }
  0x11   : > { %v231_v0 = vld [vmem:[%s201_s29] sm:$0xff] (%p52_p3)  ;;  %v233_v1 = vld [vmem:[%s201_s29 + $0x48] sm:$0xff] (%p52_p3) }
  0x12   : > { %232 = vst [vmem:[%s195_s30] sm:$0xff] (%p52_p3), %v231_v0  ;;  %234 = vst [vmem:[%s195_s30 + $0x8] sm:$0xff] (%p52_p3), %v233_v1 }
  0x15 PF: > { %p923_p6 = scmp.ge.s32.totalorder %s1109_s19, 1  ;;  %p254_p7 = scmp.lt.s32.totalorder %s1109_s19, 10 }
  0x17   : > { %p255_p8 = pnand %p923_p6, %p254_p7 }
  0x18   : > { %s261_s5 = sand.u32 (!%p255_p8), 1, %s1093_s15   ;;  %s925_s6 = sshll.u32 (!%p255_p8), %s1101_s17, 5 }
  0x19   : > { %258 = sbr.rel (%p255_p8) target bundleno = 352 (0x160), region = 62  ;;  %s1185_s7 = sshll.u32 (!%p255_p8), %s261_s5, 4 }
  0x1a   : > { %p321_p9 = scmp.lt.s32.totalorder (!%p255_p8), %s925_s6, 287  ;;  %s263_s12 = scalar_lea.vmem (!%p255_p8), [#allocation3], %s1185_s7 }
  0x1b   : > { %p928_p10 = scmp.ne.s32.totalorder (!%p255_p8), %s1101_s17, 0 }
  0x20   : > { %s1270_s6 = smov (!%p321_p9, %s925_s6), 287  ;;  %364 = sbr.rel (%p928_p10) target bundleno = 39 (0x27), region = 70 }
  0x21   : > { %s975_s8 = sshll.u32 %s1270_s6, 3  ;;  %v1111_v2 = vmov (!%p928_p10), 0.0  }
  0x22   : > { %s1190_s11 = scalar_lea.vmem %s1259_s1, %s975_s8  ;;  %365 = vst [vmem:[#allocation2] sm:$0xff] (!%p928_p10), %v1111_v2  ;;  %366 = vst [vmem:[#allocation2 + $0x8] sm:$0xff] (!%p928_p10), %v1111_v2 }
  0x23   : > { %367 = vst [vmem:[#allocation2 + $0x10] sm:$0xff] (!%p928_p10), %v1111_v2  ;;  %368 = vst [vmem:[#allocation2 + $0x18] sm:$0xff] (!%p928_p10), %v1111_v2 }
  0x27 PF: > { %v1020_v3 = vld [vmem:[%s1190_s11 + $0x4] ss:$8 sps:$4 sm:$0xff]   ;;  %v1022_v4 = vld [vmem:[%s1190_s11] ss:$8 sps:$4 sm:$0xff]   ;;  %v1023_v5 = vld [vmem:[%s1190_s11 + $0x14] ss:$8 sps:$4 sm:$0xff]  }
  0x28   : > { %577 = vmatprep.subr.bf16.mxu0 %v1020_v3  ;;  %v1025_v6 = vld [vmem:[%s1190_s11 + $0x10] ss:$8 sps:$4 sm:$0xff]   ;;  %v1026_v7 = vld [vmem:[%s1190_s11 + $0x24] ss:$8 sps:$4 sm:$0xff]   ;;  %v1028_v8 = vld [vmem:[%s1190_s11 + $0x20] ss:$8 sps:$4 sm:$0xff]  }
  0x29   : > { %578 = vmatpush1.bf16.msra.mxu0 %v1022_v4  ;;  %v1029_v9 = vld [vmem:[%s1190_s11 + $0x34] ss:$8 sps:$4 sm:$0xff]   ;;  %v1031_v10 = vld [vmem:[%s1190_s11 + $0x30] ss:$8 sps:$4 sm:$0xff]   ;;  %v1032_v11 = vld [vmem:[%s1190_s11 + $0x44] ss:$8 sps:$4 sm:$0xff]  }
  0x2a   : > { %579 = vmatprep.subr.bf16.mxu0 %v1023_v5  ;;  %v1034_v12 = vld [vmem:[%s1190_s11 + $0x40] ss:$8 sps:$4 sm:$0xff]   ;;  %v1035_v13 = vld [vmem:[%s1190_s11 + $0x54] ss:$8 sps:$4 sm:$0xff]   ;;  %v1037_v14 = vld [vmem:[%s1190_s11 + $0x50] ss:$8 sps:$4 sm:$0xff]  }
  0x2b   : > { %v1038_v15 = vld [vmem:[%s1190_s11 + $0x64] ss:$8 sps:$4 sm:$0xff]   ;;  %v1040_v17 = vld [vmem:[%s1190_s11 + $0x60] ss:$8 sps:$4 sm:$0xff]   ;;  %v1041_v18 = vld [vmem:[%s1190_s11 + $0x74] ss:$8 sps:$4 sm:$0xff]  }
  0x2c   : > { %v1070_v16 = vld [vmem:[%s263_s12 + $0x4] ss:$8 sps:$4 sm:$0xff]   ;;  %v1043_v19 = vld [vmem:[%s1190_s11 + $0x70] ss:$8 sps:$4 sm:$0xff]   ;;  %v1046_v21 = vld [vmem:[%s1190_s11 + $0x80] ss:$8 sps:$4 sm:$0xff]  }
  0x2d   : > { %580 = vmatpush1.bf16.msra.mxu0 %v1025_v6  ;;  %609 = vmatprep.mubr.bf16.mxu0 %v1070_v16  ;;  %v1044_v20 = vld [vmem:[%s1190_s11 + $0x84] ss:$8 sps:$4 sm:$0xff]   ;;  %v1047_v22 = vld [vmem:[%s1190_s11 + $0x94] ss:$8 sps:$4 sm:$0xff]   ;;  %v1049_v23 = vld [vmem:[%s1190_s11 + $0x90] ss:$8 sps:$4 sm:$0xff]  }
  0x2e   : > { %581 = vmatprep.subr.bf16.mxu0 %v1026_v7  ;;  %v1050_v24 = vld [vmem:[%s1190_s11 + $0xa4] ss:$8 sps:$4 sm:$0xff]   ;;  %v1052_v25 = vld [vmem:[%s1190_s11 + $0xa0] ss:$8 sps:$4 sm:$0xff]   ;;  %v1053_v26 = vld [vmem:[%s1190_s11 + $0xb4] ss:$8 sps:$4 sm:$0xff]  }
  0x2f   : > { %v1055_v27 = vld [vmem:[%s1190_s11 + $0xb0] ss:$8 sps:$4 sm:$0xff]   ;;  %v1056_v28 = vld [vmem:[%s1190_s11 + $0xc4] ss:$8 sps:$4 sm:$0xff]   ;;  %v1058_v29 = vld [vmem:[%s1190_s11 + $0xc0] ss:$8 sps:$4 sm:$0xff]  }
  0x30   : > { %v1059_v30 = vld [vmem:[%s1190_s11 + $0xd4] ss:$8 sps:$4 sm:$0xff]   ;;  %v1061_v31 = vld [vmem:[%s1190_s11 + $0xd0] ss:$8 sps:$4 sm:$0xff]   ;;  %v1062_v32 = vld [vmem:[%s1190_s11 + $0xe4] ss:$8 sps:$4 sm:$0xff]  }
  0x31   : > { %582 = vmatpush1.bf16.msra.mxu0 %v1028_v8  ;;  %v1064_v33 = vld [vmem:[%s1190_s11 + $0xe0] ss:$8 sps:$4 sm:$0xff]   ;;  %v1065_v34 = vld [vmem:[%s1190_s11 + $0xf4] ss:$8 sps:$4 sm:$0xff]   ;;  %v1067_v35 = vld [vmem:[%s1190_s11 + $0xf0] ss:$8 sps:$4 sm:$0xff]  }
  0x32   : > { %583 = vmatprep.subr.bf16.mxu0 %v1029_v9  ;;  %v1068_v36 = vld [vmem:[%s263_s12] ss:$8 sps:$4 sm:$0xff]   ;;  %p963_p11 = scmp.ne.s32.totalorder %s1101_s17, 8 }
  0x33   : > { %v369_v37 = vld [vmem:[#allocation2] sm:$0xff]  ;;  %v370_v38 = vld [vmem:[#allocation2 + $0x8] sm:$0xff]  ;;  %v371_v40 = vld [vmem:[#allocation2 + $0x10] sm:$0xff]  ;;  %v670_v2 = vlaneseq (!%p963_p11)  ;;  %v1112_v6 = vmov (!%p963_p11), 1966171168  }
  0x34   : > { %v372_v43 = vld [vmem:[#allocation2 + $0x18] sm:$0xff]  ;;  %v668_v7 = vunpack.c.l.s4 (!%p963_p11), %v1112_v6 }
  0x35   : > { %584 = vmatpush1.bf16.msra.mxu0 %v1031_v10  ;;  %vm684_vm0 = vcmp.lt.s32.totalorder (!%p963_p11), %v670_v2, 256 }
  0x36   : > { %585 = vmatprep.subr.bf16.mxu0 %v1032_v11 }
  0x39   : > { %586 = vmatpush1.bf16.msra.mxu0 %v1034_v12 }
  0x3a   : > { %587 = vmatprep.subr.bf16.mxu0 %v1035_v13  ;;  %v671_v13 = vshrl.u32 (!%p963_p11), %v670_v2, 7 }
  0x3d   : > { %588 = vmatpush1.bf16.msra.mxu0 %v1037_v14 }
  0x3e   : > { %589 = vmatprep.subr.bf16.mxu0 %v1038_v15 }
  0x41   : > { %590 = vmatpush1.bf16.msra.mxu0 %v1040_v17  ;;  %v669_v17 = vunpack.c.0.s8 (!%p963_p11), %v668_v7 }
  0x42   : > { %591 = vmatprep.subr.bf16.mxu0 %v1041_v18 }
  0x45   : > { %592 = vmatpush1.bf16.msra.mxu0 %v1043_v19 }
  0x46   : > { %593 = vmatprep.subr.bf16.mxu0 %v1044_v20 }
  0x49   : > { %594 = vmatpush1.bf16.msra.mxu0 %v1046_v21 }
  0x4a   : > { %595 = vmatprep.subr.bf16.mxu0 %v1047_v22 }
  0x4d   : > { %596 = vmatpush1.bf16.msra.mxu0 %v1049_v23 }
  0x4e   : > { %597 = vmatprep.subr.bf16.mxu0 %v1050_v24  ;;  %v672_v24 = vsub.s32 (!%p963_p11), %v669_v17, %v671_v13 }
  0x51   : > { %598 = vmatpush1.bf16.msra.mxu0 %v1052_v25 }
  0x52   : > { %599 = vmatprep.subr.bf16.mxu0 %v1053_v26 }
  0x55   : > { %600 = vmatpush1.bf16.msra.mxu0 %v1055_v27 }
  0x56   : > { %601 = vmatprep.subr.bf16.mxu0 %v1056_v28 }
  0x59   : > { %602 = vmatpush1.bf16.msra.mxu0 %v1058_v29 }
  0x5a   : > { %603 = vmatprep.subr.bf16.mxu0 %v1059_v30 }
  0x5d   : > { %604 = vmatpush1.bf16.msra.mxu0 %v1061_v31 }
  0x5e   : > { %605 = vmatprep.subr.bf16.mxu0 %v1062_v32 }
  0x61   : > { %606 = vmatpush1.bf16.msra.mxu0 %v1064_v33 }
  0x62   : > { %607 = vmatprep.subr.bf16.mxu0 %v1065_v34 }
  0x65   : > { %608 = vmatpush1.bf16.msra.mxu0 %v1067_v35 }
  0x68   : > { %610 = vmatmul.mubr.bf16.vlgmr.msra.gmra.mrb[0].mxu0 %v1068_v36 }
 0x13b   : > { %v611_v39 = vpop.f32.mrb[0].mxu0  ;;  %631 = sbr.rel (%p963_p11) target bundleno = 352 (0x160), region = 74 }
 0x13c   : > { %v620_v41 = vadd.f32 %v611_v39, %v369_v37  ;;  %v613_v42 = vpop.f32.mrb[1].mxu0 }
 0x13d   : > { %v621_v44 = vadd.f32 %v613_v42, %v370_v38  ;;  %v615_v45 = vpop.f32.mrb[2].mxu0 }
 0x13e   : > { %624 = vst [vmem:[#allocation2] sm:$0xff] %v620_v41  ;;  %v622_v46 = vadd.f32 %v615_v45, %v371_v40  ;;  %v617_v47 = vpop.f32.mrb[3].mxu0 }
 0x13f   : > { %625 = vst [vmem:[#allocation2 + $0x8] sm:$0xff] %v621_v44  ;;  %v623_v48 = vadd.f32 %v617_v47, %v372_v43 }
 0x140   : > { %626 = vst [vmem:[#allocation2 + $0x10] sm:$0xff] %v622_v46 }
 0x141   : > { %627 = vst [vmem:[#allocation2 + $0x18] sm:$0xff] %v623_v48 }
 0x145   : > { %v632_v49 = vld [vmem:[#allocation2] sm:$0xff] }
 0x146   : > { %v633_v50 = vld [vmem:[#allocation2 + $0x8] sm:$0xff]  ;;  %v687_v53 = vmul.f32 %v632_v49, %v632_v49 }
 0x147   : > { %v634_v51 = vld [vmem:[#allocation2 + $0x10] sm:$0xff]  ;;  %v976_v52 = vpack.c.bf16 %v633_v50, %v632_v49  ;;  %v688_v54 = vmul.f32 %v633_v50, %v633_v50 }
 0x148   : > { %v635_v55 = vld [vmem:[#allocation2 + $0x18] sm:$0xff]  ;;  %v650_v56 = vadd.f32 %v634_v51, %v632_v49  ;;  %v689_v59 = vmul.f32 %v634_v51, %v634_v51 }
 0x149   : > { %v977_v57 = vpack.c.bf16 %v635_v55, %v634_v51  ;;  %v657_v58 = vadd.f32 %v635_v55, %v633_v50  ;;  %v690_v60 = vmul.f32 %v635_v55, %v635_v55  ;;  %648 = vst [vmem:[%s1260_s2] sm:$0xff] %v976_v52 }
 0x14a   : > { %v651_v61 = vrot.slane %v650_v56, 4  ;;  %v691_v63 = vadd.f32 %v689_v59, %v687_v53 }
 0x14b   : > { %649 = vst [vmem:[%s1260_s2 + $0x8] sm:$0xff] %v977_v57  ;;  %v658_v62 = vrot.slane %v657_v58, 4  ;;  %v698_v0 = vadd.f32 %v690_v60, %v688_v54 }
 0x14c   : > { %v652_v1 = vadd.f32 %v651_v61, %v650_v56  ;;  %v692_v4 = vrot.slane %v691_v63, 4 }
 0x14d   : > { %v659_v3 = vadd.f32 %v658_v62, %v657_v58  ;;  %v699_v5 = vrot.slane %v698_v0, 4 }
 0x14e   : > { %v653_v8 = vrot.slane %v652_v1, 2  ;;  %v693_v10 = vadd.f32 %v692_v4, %v691_v63 }
 0x14f   : > { %v660_v9 = vrot.slane %v659_v3, 2  ;;  %v700_v11 = vadd.f32 %v699_v5, %v698_v0 }
 0x150   : > { %v654_v12 = vadd.f32 %v653_v8, %v652_v1  ;;  %v694_v15 = vrot.slane %v693_v10, 2 }
 0x151   : > { %v661_v14 = vadd.f32 %v660_v9, %v659_v3  ;;  %v701_v16 = vrot.slane %v700_v11, 2 }
 0x152   : > { %v655_v18 = vrot.slane %v654_v12, 1  ;;  %v695_v20 = vadd.f32 %v694_v15, %v693_v10 }
 0x153   : > { %v662_v19 = vrot.slane %v661_v14, 1  ;;  %v702_v21 = vadd.f32 %v701_v16, %v700_v11 }
 0x154   : > { %v656_v22 = vadd.f32 %v655_v18, %v654_v12  ;;  %v696_v25 = vrot.slane %v695_v20, 1 }
 0x155   : > { %v663_v23 = vadd.f32 %v662_v19, %v661_v14  ;;  %v703_v26 = vrot.slane %v702_v21, 1 }
 0x156   : > { %v697_v28 = vadd.f32 %v696_v25, %v695_v20 }
 0x157   : > { %v666_v27 = vcombine.low %v656_v22, %v663_v23  ;;  %v704_v29 = vadd.f32 %v703_v26, %v702_v21 }
 0x159   : > { %v673_v30 = vrot.slane %v666_v27, %v672_v24  ;;  %v707_v31 = vcombine.low %v697_v28, %v704_v29 }
 0x15b   : > { %v680_v32 = vrot.slane %v673_v30, %v672_v24  ;;  %v714_v33 = vrot.slane %v707_v31, %v672_v24 }
 0x15d   : > { %686 = vst.msk [vmem:[%s1261_s3] sm:$0x3] %vm684_vm0, %v680_v32  ;;  %v721_v34 = vrot.slane %v714_v33, %v672_v24 }
 0x15f   : > { %723 = vst.msk [vmem:[%s1262_s4] sm:$0x3] %vm684_vm0, %v721_v34 }
 0x160 PF: > { %s15_s19 = sadd.s32 1, %s1109_s19   ;;  %s1263_s15 = smov %s1097_s16 }
 0x161   : > { %p12_p12 = scmp.ge.s32.totalorder %s15_s19, 11   ;;  %s1264_s16 = smov %s1173_s23 }
 0x162   : > { %s1265_s17 = smov %s1105_s18  ;;  %s1266_s18 = smov %s1268_s20 }
 0x163   :  { %14 = sbr.rel (!%p12_p12) target bundleno = 3 (0x3), region = 136 }

// kernel: resnet18_forward.68
= control target key start
LH: loop header
LB: loop body
LE: loop exit
PB: predicated region body
PF: predicated region fallthrough
CT: control target
= control target key end

     0   :  { %v25_v0 = vlaneseq  ;;  %s140_s0 = inlined_call_operand.vmem [shape: bf16[16,256], index: 0, kind: input, shape index: {}]   ;;  %s141_s1 = inlined_call_operand.vmem [shape: f32[1,256], index: 1, kind: input, shape index: {}]   ;;  %s142_s2 = inlined_call_operand.vmem [shape: f32[1,256], index: 2, kind: input, shape index: {}]   ;;  %s143_s3 = inlined_call_operand.vmem [shape: bf16[16,256], index: 3, kind: input, shape index: {}]   ;;  %s144_s4 = inlined_call_operand.vmem [shape: bf16[16,256], index: 4, kind: output, shape index: {}]  }
   0x1   :  { %v17_v1 = vld [vmem:[%s140_s0] sm:$0xff]  ;;  %v18_v3 = vld [vmem:[%s140_s0 + $0x8] sm:$0xff] }
   0x2   :  { %v26_v2 = vshrl.u32 %v25_v0, 7  ;;  %v19_v4 = vunpack.c.l.bf16 %v17_v1  ;;  %v20_v5 = vunpack.c.h.bf16 %v17_v1  ;;  %v23_v6 = vld [vmem:[%s141_s1] sm:$0x3]  ;;  %v21_v11 = vunpack.c.l.bf16 %v18_v3  ;;  %v56_v13 = vld [vmem:[%s143_s3 + $0x8] sm:$0xff] }
   0x3   :  { %v39_v7 = vld [vmem:[%s142_s2] sm:$0x3]  ;;  %v22_v12 = vunpack.c.h.bf16 %v18_v3  ;;  %v59_v20 = vunpack.c.l.bf16 %v56_v13  ;;  %v60_v21 = vunpack.c.h.bf16 %v56_v13 }
   0x4   :  { %v27_v8 = vsub.s32 0, %v26_v2  ;;  %v31_v9 = vsub.s32 1, %v26_v2  ;;  %v55_v10 = vld [vmem:[%s143_s3] sm:$0xff] }
   0x5   :  { %v57_v18 = vunpack.c.l.bf16 %v55_v10  ;;  %v58_v19 = vunpack.c.h.bf16 %v55_v10 }
   0x6   :  { %v28_v14 = vrot.slane %v23_v6, %v27_v8  ;;  %v32_v15 = vrot.slane %v23_v6, %v31_v9  ;;  %v44_v16 = vrot.slane %v39_v7, %v27_v8  ;;  %v48_v17 = vrot.slane %v39_v7, %v31_v9 }
   0x8   :  { %v35_v22 = vmul.f32 %v28_v14, %v19_v4  ;;  %v36_v23 = vmul.f32 %v32_v15, %v20_v5  ;;  %v37_v24 = vmul.f32 %v28_v14, %v21_v11  ;;  %v38_v25 = vmul.f32 %v32_v15, %v22_v12 }
   0xa   :  { %v51_v26 = vadd.f32 %v44_v16, %v35_v22  ;;  %v52_v27 = vadd.f32 %v48_v17, %v36_v23  ;;  %v53_v28 = vadd.f32 %v44_v16, %v37_v24  ;;  %v54_v29 = vadd.f32 %v48_v17, %v38_v25 }
   0xc   :  { %v61_v30 = vadd.f32 %v57_v18, %v51_v26  ;;  %v62_v31 = vadd.f32 %v58_v19, %v52_v27  ;;  %v63_v32 = vadd.f32 %v59_v20, %v53_v28  ;;  %v64_v33 = vadd.f32 %v60_v21, %v54_v29 }
   0xe   :  { %v65_v34 = vmax.f32 %v61_v30, 0.0  ;;  %v66_v35 = vmax.f32 %v62_v31, 0.0  ;;  %v67_v36 = vmax.f32 %v63_v32, 0.0  ;;  %v68_v37 = vmax.f32 %v64_v33, 0.0 }
  0x10   :  { %v89_v38 = vpack.c.bf16 %v66_v35, %v65_v34  ;;  %v90_v39 = vpack.c.bf16 %v68_v37, %v67_v36 }
  0x12   :  { %81 = vst [vmem:[%s144_s4] sm:$0xff] %v89_v38  ;;  %82 = vst [vmem:[%s144_s4 + $0x8] sm:$0xff] %v90_v39 }

// kernel: resnet18_forward.73
= control target key start
LH: loop header
LB: loop body
LE: loop exit
PB: predicated region body
PF: predicated region fallthrough
CT: control target
= control target key end

     0   :  { %s1275_s15 = smov 0   ;;  %s1277_s16 = smov 0   ;;  %s1472_s0 = inlined_call_operand.vmem [shape: bf16[16,256], index: 0, kind: input, shape index: {}]   ;;  %s1473_s1 = inlined_call_operand.vmem [shape: bf16[256,512], index: 1, kind: input, shape index: {}]   ;;  %s1474_s2 = inlined_call_operand.vmem [shape: bf16[16,512], index: 2, kind: output, shape index: {0}]   ;;  %s1475_s3 = inlined_call_operand.vmem [shape: f32[1,1,512], index: 3, kind: output, shape index: {1}]   ;;  %s1476_s4 = inlined_call_operand.vmem [shape: f32[1,1,512], index: 4, kind: output, shape index: {2}]  }
   0x1   :  { %s1279_s17 = smov 0   ;;  %s1281_s18 = smov 0  }
   0x2   :  { %s1283_s19 = smov 0  }
   0x3 LB: > { %s30_s20 = sadd.s32 1, %s1243_s18  ;;  %s1059_s21 = sadd.s32 4294967295, %s1247_s19   ;;  %s1247_s19 = sphi %s1283_s19, %s15_s19   ;;  %s1243_s18 = sphi %s1281_s18, %s1481_s18   ;;  %s1239_s17 = sphi %s1279_s17, %s1480_s17   ;;  %s1235_s16 = sphi %s1277_s16, %s1479_s16   ;;  %s1231_s15 = sphi %s1275_s15, %s1478_s15  }
   0x4   : > { %p32_p0 = scmp.ge.s32.totalorder %s30_s20, 2  ;;  %p78_p1 = scmp.ne.s32.totalorder %s1235_s16, %s1231_s15 }
   0x5   : > { %p79_p2 = scmp.eq.s32.totalorder %s1247_s19, 0  ;;  %p110_p4 = scmp.eq.s32.totalorder %s1059_s21, 1 }
   0x6   : > { %s1483_s20 = smov (%p32_p0, %s30_s20), 0  ;;  %s71_s23 = sadd.s32 1, %s1235_s16 }
   0x7   : > { %p80_p3 = por %p79_p2, %p78_p1  ;;  %s67_s22 = ssub.s32 %s1243_s18, %s1483_s20 }
   0x8   : > { %p69_p5 = scmp.eq.s32.totalorder %s67_s22, 0  ;;  %p1310_p6 = por %p110_p4, %p78_p1 }
   0x9   : > { %p1063_p7 = scmp.ge.s32.totalorder %s1247_s19, 2 }
   0xa   : > { %s1315_s25 = scalar_select %p69_p5, %s1235_s16, %s71_s23  }
   0xb   : > { %203 = sbr.rel (%p1063_p7) target bundleno = 38 (0x26), region = 20 }
  0x12   : > { %206 = sbr.rel (!%p80_p3) target bundleno = 38 (0x26), region = 24  ;;  %s208_s26 = sand.u32 (%p80_p3), 1, %s1235_s16  }
  0x13   : > { %s1113_s27 = sshll.u32 (%p80_p3), %s1243_s18, 3  ;;  %s1064_s28 = sshll.u32 (%p80_p3), %s208_s26, 8 }
  0x14   : > { %s1323_s5 = scalar_lea.vmem (%p80_p3), %s1473_s1, %s1113_s27  ;;  %s1328_s6 = scalar_lea.vmem (%p80_p3), [#allocation3], %s1064_s28 }
  0x15   : > { %v306_v0 = vld [vmem:[%s1323_s5] sm:$0xff] (%p80_p3)  ;;  %v308_v1 = vld [vmem:[%s1323_s5 + $0x10] sm:$0xff] (%p80_p3) }
  0x16   : > { %v310_v2 = vld [vmem:[%s1323_s5 + $0x20] sm:$0xff] (%p80_p3)  ;;  %307 = vst [vmem:[%s1328_s6] sm:$0xff] (%p80_p3), %v306_v0  ;;  %309 = vst [vmem:[%s1328_s6 + $0x8] sm:$0xff] (%p80_p3), %v308_v1  ;;  %v312_v3 = vld [vmem:[%s1323_s5 + $0x30] sm:$0xff] (%p80_p3) }
  0x17   : > { %311 = vst [vmem:[%s1328_s6 + $0x10] sm:$0xff] (%p80_p3), %v310_v2  ;;  %v314_v4 = vld [vmem:[%s1323_s5 + $0x40] sm:$0xff] (%p80_p3)  ;;  %v316_v5 = vld [vmem:[%s1323_s5 + $0x50] sm:$0xff] (%p80_p3)  ;;  %313 = vst [vmem:[%s1328_s6 + $0x18] sm:$0xff] (%p80_p3), %v312_v3 }
  0x18   : > { %315 = vst [vmem:[%s1328_s6 + $0x20] sm:$0xff] (%p80_p3), %v314_v4  ;;  %317 = vst [vmem:[%s1328_s6 + $0x28] sm:$0xff] (%p80_p3), %v316_v5  ;;  %v318_v6 = vld [vmem:[%s1323_s5 + $0x60] sm:$0xff] (%p80_p3)  ;;  %v320_v7 = vld [vmem:[%s1323_s5 + $0x70] sm:$0xff] (%p80_p3) }
  0x19   : > { %v322_v8 = vld [vmem:[%s1323_s5 + $0x80] sm:$0xff]  ;;  %319 = vst [vmem:[%s1328_s6 + $0x30] sm:$0xff] %v318_v6  ;;  %321 = vst [vmem:[%s1328_s6 + $0x38] sm:$0xff] %v320_v7  ;;  %v324_v9 = vld [vmem:[%s1323_s5 + $0x90] sm:$0xff] }
  0x1a   : > { %323 = vst [vmem:[%s1328_s6 + $0x40] sm:$0xff] %v322_v8  ;;  %v326_v10 = vld [vmem:[%s1323_s5 + $0xa0] sm:$0xff]  ;;  %v328_v11 = vld [vmem:[%s1323_s5 + $0xb0] sm:$0xff]  ;;  %325 = vst [vmem:[%s1328_s6 + $0x48] sm:$0xff] %v324_v9 }
  0x1b   : > { %327 = vst [vmem:[%s1328_s6 + $0x50] sm:$0xff] %v326_v10  ;;  %329 = vst [vmem:[%s1328_s6 + $0x58] sm:$0xff] %v328_v11  ;;  %v330_v12 = vld [vmem:[%s1323_s5 + $0xc0] sm:$0xff]  ;;  %v332_v13 = vld [vmem:[%s1323_s5 + $0xd0] sm:$0xff] }
  0x1c   : > { %v334_v14 = vld [vmem:[%s1323_s5 + $0xe0] sm:$0xff]  ;;  %331 = vst [vmem:[%s1328_s6 + $0x60] sm:$0xff] %v330_v12  ;;  %333 = vst [vmem:[%s1328_s6 + $0x68] sm:$0xff] %v332_v13  ;;  %v336_v15 = vld [vmem:[%s1323_s5 + $0xf0] sm:$0xff] }
  0x1d   : > { %335 = vst [vmem:[%s1328_s6 + $0x70] sm:$0xff] %v334_v14  ;;  %v338_v16 = vld [vmem:[%s1323_s5 + $0x100] sm:$0xff]  ;;  %v340_v17 = vld [vmem:[%s1323_s5 + $0x110] sm:$0xff]  ;;  %337 = vst [vmem:[%s1328_s6 + $0x78] sm:$0xff] %v336_v15 }
  0x1e   : > { %339 = vst [vmem:[%s1328_s6 + $0x80] sm:$0xff] %v338_v16  ;;  %341 = vst [vmem:[%s1328_s6 + $0x88] sm:$0xff] %v340_v17  ;;  %v342_v18 = vld [vmem:[%s1323_s5 + $0x120] sm:$0xff]  ;;  %v344_v19 = vld [vmem:[%s1323_s5 + $0x130] sm:$0xff] }
  0x1f   : > { %v346_v20 = vld [vmem:[%s1323_s5 + $0x140] sm:$0xff]  ;;  %343 = vst [vmem:[%s1328_s6 + $0x90] sm:$0xff] %v342_v18  ;;  %345 = vst [vmem:[%s1328_s6 + $0x98] sm:$0xff] %v344_v19  ;;  %v348_v21 = vld [vmem:[%s1323_s5 + $0x150] sm:$0xff] }
  0x20   : > { %347 = vst [vmem:[%s1328_s6 + $0xa0] sm:$0xff] %v346_v20  ;;  %v350_v22 = vld [vmem:[%s1323_s5 + $0x160] sm:$0xff]  ;;  %v352_v23 = vld [vmem:[%s1323_s5 + $0x170] sm:$0xff]  ;;  %349 = vst [vmem:[%s1328_s6 + $0xa8] sm:$0xff] %v348_v21 }
  0x21   : > { %351 = vst [vmem:[%s1328_s6 + $0xb0] sm:$0xff] %v350_v22  ;;  %353 = vst [vmem:[%s1328_s6 + $0xb8] sm:$0xff] %v352_v23  ;;  %v354_v24 = vld [vmem:[%s1323_s5 + $0x180] sm:$0xff]  ;;  %v356_v25 = vld [vmem:[%s1323_s5 + $0x190] sm:$0xff] }
  0x22   : > { %v358_v26 = vld [vmem:[%s1323_s5 + $0x1a0] sm:$0xff]  ;;  %355 = vst [vmem:[%s1328_s6 + $0xc0] sm:$0xff] %v354_v24  ;;  %357 = vst [vmem:[%s1328_s6 + $0xc8] sm:$0xff] %v356_v25  ;;  %v360_v27 = vld [vmem:[%s1323_s5 + $0x1b0] sm:$0xff] }
  0x23   : > { %359 = vst [vmem:[%s1328_s6 + $0xd0] sm:$0xff] %v358_v26  ;;  %v362_v28 = vld [vmem:[%s1323_s5 + $0x1c0] sm:$0xff]  ;;  %v364_v29 = vld [vmem:[%s1323_s5 + $0x1d0] sm:$0xff]  ;;  %361 = vst [vmem:[%s1328_s6 + $0xd8] sm:$0xff] %v360_v27 }
  0x24   : > { %363 = vst [vmem:[%s1328_s6 + $0xe0] sm:$0xff] %v362_v28  ;;  %365 = vst [vmem:[%s1328_s6 + $0xe8] sm:$0xff] %v364_v29  ;;  %v366_v30 = vld [vmem:[%s1323_s5 + $0x1e0] sm:$0xff]  ;;  %v368_v31 = vld [vmem:[%s1323_s5 + $0x1f0] sm:$0xff] }
  0x25   : > { %367 = vst [vmem:[%s1328_s6 + $0xf0] sm:$0xff] %v366_v30  ;;  %369 = vst [vmem:[%s1328_s6 + $0xf8] sm:$0xff] %v368_v31 }
  0x26 PF: > { %p1067_p8 = scmp.ge.s32.totalorder %s1247_s19, 1  ;;  %p374_p9 = scmp.lt.s32.totalorder %s1247_s19, 3 }
  0x28   : > { %p375_p10 = pnand %p1067_p8, %p374_p9 }
  0x29   : > { %s381_s7 = sand.u32 (!%p375_p10), 1, %s1231_s15   ;;  %v1208_v32 = vld [vmem:[%s1472_s0 + $0x4] ss:$8 sps:$4 sm:$0xff] (!%p375_p10)   ;;  %v1206_v1 = vld [vmem:[%s1472_s0] ss:$8 sps:$4 sm:$0xff] (!%p375_p10)   ;;  %v773_v23 = vlaneseq (!%p375_p10)  ;;  %s1070_s15 = sshll.u32 (!%p375_p10), %s1239_s17, 1 }
  0x2a   : > { %378 = sbr.rel (%p375_p10) target bundleno = 347 (0x15b), region = 62  ;;  %s1068_s8 = sshll.u32 (!%p375_p10), %s381_s7, 8  ;;  %713 = vmatprep.mubr.bf16.mxu0 (!%p375_p10), %v1208_v32  ;;  %v1249_v21 = vmov (!%p375_p10), 1966171168  }
  0x2b   : > { %s1399_s11 = scalar_lea.vmem (!%p375_p10), [#allocation3], %s1068_s8  ;;  %s1069_s14 = sshll.u32 (!%p375_p10), %s381_s7, 4  ;;  %v771_v22 = vunpack.c.l.s4 (!%p375_p10), %v1249_v21  ;;  %vm787_vm0 = vcmp.lt.s32.totalorder (!%p375_p10), %v773_v23, 256 }
  0x2c   : > { %v1158_v33 = vld [vmem:[%s1399_s11 + $0x4] ss:$8 sps:$4 sm:$0xff] (!%p375_p10)   ;;  %v1160_v34 = vld [vmem:[%s1399_s11] ss:$8 sps:$4 sm:$0xff] (!%p375_p10)   ;;  %v1161_v35 = vld [vmem:[%s1399_s11 + $0x14] ss:$8 sps:$4 sm:$0xff] (!%p375_p10)  }
  0x2d   : > { %681 = vmatprep.subr.bf16.mxu0 (!%p375_p10), %v1158_v33  ;;  %v1163_v36 = vld [vmem:[%s1399_s11 + $0x10] ss:$8 sps:$4 sm:$0xff] (!%p375_p10)   ;;  %v1164_v37 = vld [vmem:[%s1399_s11 + $0x24] ss:$8 sps:$4 sm:$0xff] (!%p375_p10)   ;;  %v1166_v38 = vld [vmem:[%s1399_s11 + $0x20] ss:$8 sps:$4 sm:$0xff] (!%p375_p10)   ;;  %v772_v32 = vunpack.c.0.s8 (!%p375_p10), %v771_v22 }
  0x2e   : > { %682 = vmatpush1.bf16.msra.mxu0 (!%p375_p10), %v1160_v34  ;;  %v1167_v39 = vld [vmem:[%s1399_s11 + $0x34] ss:$8 sps:$4 sm:$0xff] (!%p375_p10)   ;;  %v1169_v40 = vld [vmem:[%s1399_s11 + $0x30] ss:$8 sps:$4 sm:$0xff] (!%p375_p10)   ;;  %v1170_v41 = vld [vmem:[%s1399_s11 + $0x44] ss:$8 sps:$4 sm:$0xff] (!%p375_p10)  }
  0x2f   : > { %683 = vmatprep.subr.bf16.mxu0 (!%p375_p10), %v1161_v35  ;;  %v1172_v42 = vld [vmem:[%s1399_s11 + $0x40] ss:$8 sps:$4 sm:$0xff] (!%p375_p10)   ;;  %v1173_v43 = vld [vmem:[%s1399_s11 + $0x54] ss:$8 sps:$4 sm:$0xff] (!%p375_p10)   ;;  %v1175_v44 = vld [vmem:[%s1399_s11 + $0x50] ss:$8 sps:$4 sm:$0xff] (!%p375_p10)  }
  0x30   : > { %v1176_v45 = vld [vmem:[%s1399_s11 + $0x64] ss:$8 sps:$4 sm:$0xff] (!%p375_p10)   ;;  %v1178_v46 = vld [vmem:[%s1399_s11 + $0x60] ss:$8 sps:$4 sm:$0xff] (!%p375_p10)   ;;  %v1179_v47 = vld [vmem:[%s1399_s11 + $0x74] ss:$8 sps:$4 sm:$0xff] (!%p375_p10)  }
  0x31   : > { %v1181_v48 = vld [vmem:[%s1399_s11 + $0x70] ss:$8 sps:$4 sm:$0xff]   ;;  %v1182_v49 = vld [vmem:[%s1399_s11 + $0x84] ss:$8 sps:$4 sm:$0xff]   ;;  %v1184_v50 = vld [vmem:[%s1399_s11 + $0x80] ss:$8 sps:$4 sm:$0xff]  }
  0x32   : > { %684 = vmatpush1.bf16.msra.mxu0 %v1163_v36  ;;  %v1185_v51 = vld [vmem:[%s1399_s11 + $0x94] ss:$8 sps:$4 sm:$0xff]   ;;  %v1187_v52 = vld [vmem:[%s1399_s11 + $0x90] ss:$8 sps:$4 sm:$0xff]   ;;  %v1188_v53 = vld [vmem:[%s1399_s11 + $0xa4] ss:$8 sps:$4 sm:$0xff]  }
  0x33   : > { %685 = vmatprep.subr.bf16.mxu0 %v1164_v37  ;;  %v1190_v54 = vld [vmem:[%s1399_s11 + $0xa0] ss:$8 sps:$4 sm:$0xff]   ;;  %v1191_v55 = vld [vmem:[%s1399_s11 + $0xb4] ss:$8 sps:$4 sm:$0xff]   ;;  %v1193_v56 = vld [vmem:[%s1399_s11 + $0xb0] ss:$8 sps:$4 sm:$0xff]  }
  0x34   : > { %v1194_v57 = vld [vmem:[%s1399_s11 + $0xc4] ss:$8 sps:$4 sm:$0xff]   ;;  %v1196_v58 = vld [vmem:[%s1399_s11 + $0xc0] ss:$8 sps:$4 sm:$0xff]   ;;  %v1197_v59 = vld [vmem:[%s1399_s11 + $0xd4] ss:$8 sps:$4 sm:$0xff]  }
  0x35   : > { %v1199_v60 = vld [vmem:[%s1399_s11 + $0xd0] ss:$8 sps:$4 sm:$0xff]   ;;  %v1200_v61 = vld [vmem:[%s1399_s11 + $0xe4] ss:$8 sps:$4 sm:$0xff]   ;;  %v1202_v62 = vld [vmem:[%s1399_s11 + $0xe0] ss:$8 sps:$4 sm:$0xff]  }
  0x36   : > { %686 = vmatpush1.bf16.msra.mxu0 %v1166_v38  ;;  %v1203_v63 = vld [vmem:[%s1399_s11 + $0xf4] ss:$8 sps:$4 sm:$0xff]   ;;  %v1205_v0 = vld [vmem:[%s1399_s11 + $0xf0] ss:$8 sps:$4 sm:$0xff]   ;;  %s1438_s21 = scalar_lea.vmem [#allocation4], %s1069_s14  ;;  %v774_v33 = vshrl.u32 %v773_v23, 7 }
  0x37   : > { %687 = vmatprep.subr.bf16.mxu0 %v1167_v39  ;;  %p450_p11 = scmp.lt.s32.totalorder %s1070_s15, 3  ;;  %s1116_s30 = sshll.u32 (%p1310_p6), %s1239_s17, 3 }
  0x38   : > { %s855_s7 = scalar_lea.vmem (%p1310_p6), %s1474_s2, %s1116_s30 }
  0x39   : > { %s1485_s15 = smov (!%p450_p11, %s1070_s15), 3 }
  0x3a   : > { %688 = vmatpush1.bf16.msra.mxu0 %v1169_v40  ;;  %s454_s26 = scalar_lea.vmem %s1475_s3, %s1485_s15  ;;  %s463_s29 = scalar_lea.vmem %s1476_s4, %s1485_s15 }
  0x3b   : > { %689 = vmatprep.subr.bf16.mxu0 %v1170_v41 }
  0x3e   : > { %690 = vmatpush1.bf16.msra.mxu0 %v1172_v42  ;;  %v775_v42 = vsub.s32 %v772_v32, %v774_v33 }
  0x3f   : > { %691 = vmatprep.subr.bf16.mxu0 %v1173_v43 }
  0x42   : > { %692 = vmatpush1.bf16.msra.mxu0 %v1175_v44 }
  0x43   : > { %693 = vmatprep.subr.bf16.mxu0 %v1176_v45 }
  0x46   : > { %694 = vmatpush1.bf16.msra.mxu0 %v1178_v46 }
  0x47   : > { %695 = vmatprep.subr.bf16.mxu0 %v1179_v47 }
  0x4a   : > { %696 = vmatpush1.bf16.msra.mxu0 %v1181_v48 }
  0x4b   : > { %697 = vmatprep.subr.bf16.mxu0 %v1182_v49 }
  0x4e   : > { %698 = vmatpush1.bf16.msra.mxu0 %v1184_v50 }
  0x4f   : > { %699 = vmatprep.subr.bf16.mxu0 %v1185_v51 }
  0x52   : > { %700 = vmatpush1.bf16.msra.mxu0 %v1187_v52 }
  0x53   : > { %701 = vmatprep.subr.bf16.mxu0 %v1188_v53 }
  0x56   : > { %702 = vmatpush1.bf16.msra.mxu0 %v1190_v54 }
  0x57   : > { %703 = vmatprep.subr.bf16.mxu0 %v1191_v55 }
  0x5a   : > { %704 = vmatpush1.bf16.msra.mxu0 %v1193_v56 }
  0x5b   : > { %705 = vmatprep.subr.bf16.mxu0 %v1194_v57 }
  0x5e   : > { %706 = vmatpush1.bf16.msra.mxu0 %v1196_v58 }
  0x5f   : > { %707 = vmatprep.subr.bf16.mxu0 %v1197_v59 }
  0x62   : > { %708 = vmatpush1.bf16.msra.mxu0 %v1199_v60 }
  0x63   : > { %709 = vmatprep.subr.bf16.mxu0 %v1200_v61 }
  0x66   : > { %710 = vmatpush1.bf16.msra.mxu0 %v1202_v62 }
  0x67   : > { %711 = vmatprep.subr.bf16.mxu0 %v1203_v63 }
  0x6a   : > { %712 = vmatpush1.bf16.msra.mxu0 %v1205_v0 }
  0x6d   : > { %714 = vmatmul.mubr.bf16.vlgmr.msra.gmra.mrb[0].mxu0 %v1206_v1 }
 0x140   : > { %v715_v2 = vpop.f32.mrb[0].mxu0 }
 0x141   : > { %v717_v3 = vpop.f32.mrb[1].mxu0  ;;  %v790_v6 = vmul.f32 %v715_v2, %v715_v2 }
 0x142   : > { %v1114_v4 = vpack.c.bf16 %v717_v3, %v715_v2  ;;  %v719_v5 = vpop.f32.mrb[2].mxu0  ;;  %v791_v10 = vmul.f32 %v717_v3, %v717_v3 }
 0x143   : > { %v753_v7 = vadd.f32 %v719_v5, %v715_v2  ;;  %v792_v8 = vmul.f32 %v719_v5, %v719_v5  ;;  %v721_v9 = vpop.f32.mrb[3].mxu0 }
 0x144   : > { %v1115_v11 = vpack.c.bf16 %v721_v9, %v719_v5  ;;  %751 = vst [vmem:[%s1438_s21] sm:$0xff] %v1114_v4  ;;  %v760_v12 = vadd.f32 %v721_v9, %v717_v3  ;;  %v793_v13 = vmul.f32 %v721_v9, %v721_v9 }
 0x145   : > { %v754_v14 = vrot.slane %v753_v7, 4  ;;  %v794_v15 = vadd.f32 %v792_v8, %v790_v6 }
 0x146   : > { %752 = vst [vmem:[%s1438_s21 + $0x8] sm:$0xff] %v1115_v11  ;;  %v761_v16 = vrot.slane %v760_v12, 4  ;;  %v801_v17 = vadd.f32 %v793_v13, %v791_v10 }
 0x147   : > { %v755_v18 = vadd.f32 %v754_v14, %v753_v7  ;;  %v795_v19 = vrot.slane %v794_v15, 4 }
 0x148   : > { %v762_v20 = vadd.f32 %v761_v16, %v760_v12  ;;  %v802_v24 = vrot.slane %v801_v17, 4 }
 0x149   : > { %v756_v25 = vrot.slane %v755_v18, 2  ;;  %v796_v26 = vadd.f32 %v795_v19, %v794_v15 }
 0x14a   : > { %v763_v27 = vrot.slane %v762_v20, 2  ;;  %v803_v28 = vadd.f32 %v802_v24, %v801_v17 }
 0x14b   : > { %v757_v29 = vadd.f32 %v756_v25, %v755_v18  ;;  %v797_v30 = vrot.slane %v796_v26, 2  ;;  %v885_v52 = vld [vmem:[%s1438_s21] sm:$0xff] (%p1310_p6) }
 0x14c   : > { %v764_v31 = vadd.f32 %v763_v27, %v762_v20  ;;  %v804_v34 = vrot.slane %v803_v28, 2  ;;  %886 = vst [vmem:[%s855_s7] sm:$0xff] (%p1310_p6), %v885_v52 }
 0x14d   : > { %v758_v35 = vrot.slane %v757_v29, 1  ;;  %v798_v36 = vadd.f32 %v797_v30, %v796_v26  ;;  %v887_v53 = vld [vmem:[%s1438_s21 + $0x8] sm:$0xff] (%p1310_p6) }
 0x14e   : > { %v765_v37 = vrot.slane %v764_v31, 1  ;;  %v805_v38 = vadd.f32 %v804_v34, %v803_v28  ;;  %888 = vst [vmem:[%s855_s7 + $0x10] sm:$0xff] (%p1310_p6), %v887_v53 }
 0x14f   : > { %v759_v39 = vadd.f32 %v758_v35, %v757_v29  ;;  %v799_v40 = vrot.slane %v798_v36, 1 }
 0x150   : > { %v766_v41 = vadd.f32 %v765_v37, %v764_v31  ;;  %v806_v43 = vrot.slane %v805_v38, 1 }
 0x151   : > { %v800_v44 = vadd.f32 %v799_v40, %v798_v36 }
 0x152   : > { %v769_v45 = vcombine.low %v759_v39, %v766_v41  ;;  %v807_v46 = vadd.f32 %v806_v43, %v805_v38 }
 0x154   : > { %v776_v47 = vrot.slane %v769_v45, %v775_v42  ;;  %v810_v48 = vcombine.low %v800_v44, %v807_v46  ;;  %849 = sbr.rel (!%p1310_p6) target bundleno = 347 (0x15b), region = 78 }
 0x156   : > { %v783_v49 = vrot.slane %v776_v47, %v775_v42  ;;  %v817_v50 = vrot.slane %v810_v48, %v775_v42 }
 0x158   : > { %789 = vst.msk [vmem:[%s454_s26] sm:$0x3] %vm787_vm0, %v783_v49  ;;  %v824_v51 = vrot.slane %v817_v50, %v775_v42 }
 0x15a   : > { %826 = vst.msk [vmem:[%s463_s29] sm:$0x3] %vm787_vm0, %v824_v51 }
 0x15b PF: > { %s15_s19 = sadd.s32 1, %s1247_s19   ;;  %s1478_s15 = smov %s1235_s16 }
 0x15c   : > { %p12_p12 = scmp.ge.s32.totalorder %s15_s19, 4   ;;  %s1479_s16 = smov %s1315_s25 }
 0x15d   : > { %s1480_s17 = smov %s1243_s18  ;;  %s1481_s18 = smov %s1483_s20 }
 0x15e   :  { %14 = sbr.rel (!%p12_p12) target bundleno = 3 (0x3), region = 174 }

// kernel: resnet18_forward.74
= control target key start
LH: loop header
LB: loop body
LE: loop exit
PB: predicated region body
PF: predicated region fallthrough
CT: control target
= control target key end

     0   :  { %v28_v0 = vlaneseq  ;;  %s176_s0 = inlined_call_operand.vmem [shape: bf16[16,512], index: 0, kind: input, shape index: {}]   ;;  %s177_s1 = inlined_call_operand.vmem [shape: f32[1,512], index: 1, kind: input, shape index: {}]   ;;  %s178_s2 = inlined_call_operand.vmem [shape: f32[1,512], index: 2, kind: input, shape index: {}]   ;;  %s179_s3 = inlined_call_operand.vmem [shape: bf16[16,512], index: 3, kind: output, shape index: {}]  }
   0x1   :  { %v14_v1 = vld [vmem:[%s176_s0] sm:$0xff]  ;;  %v15_v3 = vld [vmem:[%s176_s0 + $0x8] sm:$0xff]  ;;  %v16_v4 = vld [vmem:[%s176_s0 + $0x10] sm:$0xff] }
   0x2   :  { %v29_v2 = vshrl.u32 %v28_v0, 7  ;;  %v17_v5 = vld [vmem:[%s176_s0 + $0x18] sm:$0xff]  ;;  %v18_v6 = vunpack.c.l.bf16 %v14_v1  ;;  %v19_v7 = vunpack.c.h.bf16 %v14_v1  ;;  %v26_v8 = vld [vmem:[%s177_s1] sm:$0xf]  ;;  %v22_v10 = vunpack.c.l.bf16 %v16_v4 }
   0x3   :  { %v56_v9 = vld [vmem:[%s178_s2] sm:$0xf]  ;;  %v23_v11 = vunpack.c.h.bf16 %v16_v4  ;;  %v20_v16 = vunpack.c.l.bf16 %v15_v3  ;;  %v21_v17 = vunpack.c.h.bf16 %v15_v3  ;;  %v24_v18 = vunpack.c.l.bf16 %v17_v5 }
   0x4   :  { %v30_v12 = vsub.s32 0, %v29_v2  ;;  %v34_v13 = vsub.s32 1, %v29_v2  ;;  %v38_v14 = vsub.s32 2, %v29_v2  ;;  %v42_v15 = vsub.s32 3, %v29_v2 }
   0x5   :  { %v25_v19 = vunpack.c.h.bf16 %v17_v5 }
   0x6   :  { %v31_v20 = vrot.slane %v26_v8, %v30_v12  ;;  %v35_v21 = vrot.slane %v26_v8, %v34_v13  ;;  %v61_v22 = vrot.slane %v56_v9, %v30_v12  ;;  %v65_v23 = vrot.slane %v56_v9, %v34_v13 }
   0x7   :  { %v39_v24 = vrot.slane %v26_v8, %v38_v14  ;;  %v43_v25 = vrot.slane %v26_v8, %v42_v15  ;;  %v69_v26 = vrot.slane %v56_v9, %v38_v14  ;;  %v73_v27 = vrot.slane %v56_v9, %v42_v15 }
   0x8   :  { %v48_v28 = vmul.f32 %v31_v20, %v18_v6  ;;  %v49_v29 = vmul.f32 %v35_v21, %v19_v7  ;;  %v52_v30 = vmul.f32 %v31_v20, %v22_v10  ;;  %v53_v31 = vmul.f32 %v35_v21, %v23_v11 }
   0x9   :  { %v50_v32 = vmul.f32 %v39_v24, %v20_v16  ;;  %v51_v33 = vmul.f32 %v43_v25, %v21_v17  ;;  %v54_v34 = vmul.f32 %v39_v24, %v24_v18  ;;  %v55_v35 = vmul.f32 %v43_v25, %v25_v19 }
   0xa   :  { %v78_v36 = vadd.f32 %v61_v22, %v48_v28  ;;  %v79_v37 = vadd.f32 %v65_v23, %v49_v29  ;;  %v82_v38 = vadd.f32 %v61_v22, %v52_v30  ;;  %v83_v39 = vadd.f32 %v65_v23, %v53_v31 }
   0xb   :  { %v80_v40 = vadd.f32 %v69_v26, %v50_v32  ;;  %v81_v41 = vadd.f32 %v73_v27, %v51_v33  ;;  %v84_v42 = vadd.f32 %v69_v26, %v54_v34  ;;  %v85_v43 = vadd.f32 %v73_v27, %v55_v35 }
   0xc   :  { %v122_v44 = vpack.c.bf16 %v79_v37, %v78_v36  ;;  %v124_v45 = vpack.c.bf16 %v83_v39, %v82_v38 }
   0xd   :  { %v123_v46 = vpack.c.bf16 %v81_v41, %v80_v40  ;;  %v125_v47 = vpack.c.bf16 %v85_v43, %v84_v42 }
   0xe   :  { %110 = vst [vmem:[%s179_s3] sm:$0xff] %v122_v44  ;;  %112 = vst [vmem:[%s179_s3 + $0x10] sm:$0xff] %v124_v45 }
   0xf   :  { %111 = vst [vmem:[%s179_s3 + $0x8] sm:$0xff] %v123_v46  ;;  %113 = vst [vmem:[%s179_s3 + $0x18] sm:$0xff] %v125_v47 }

// kernel: resnet18_forward.75
= control target key start
LH: loop header
LB: loop body
LE: loop exit
PB: predicated region body
PF: predicated region fallthrough
CT: control target
= control target key end

     0   :  { %s1410_s15 = smov 0   ;;  %s1412_s16 = smov 0   ;;  %s1706_s0 = inlined_call_operand.vmem [shape: bf16[16,2304], index: 0, kind: input, shape index: {}]   ;;  %s1707_s1 = inlined_call_operand.vmem [shape: bf16[2304,512], index: 1, kind: input, shape index: {}]   ;;  %s1708_s2 = inlined_call_operand.vmem [shape: bf16[16,512], index: 2, kind: output, shape index: {0}]   ;;  %s1709_s3 = inlined_call_operand.vmem [shape: f32[1,1,512], index: 3, kind: output, shape index: {1}]   ;;  %s1710_s4 = inlined_call_operand.vmem [shape: f32[1,1,512], index: 4, kind: output, shape index: {2}]  }
   0x1   :  { %s1414_s17 = smov 0   ;;  %s1416_s18 = smov 0  }
   0x2   :  { %s1418_s19 = smov 0   ;;  %s1420_s20 = smov 0  }
   0x3   :  { %s1422_s21 = smov 0   ;;  %s1424_s22 = smov 0  }
   0x4   :  { %s1426_s23 = smov 0   ;;  %s1428_s24 = smov 0  }
   0x5   :  { %s1430_s25 = smov 0  }
   0x6 LB: > { %1714 = sst [smem:[#allocation6_spill]] %s1361_s20  ;;  %s1088_s26 = sadd.s32 4294967295, %s1381_s25   ;;  %s1381_s25 = sphi %s1430_s25, %s15_s25   ;;  %s1377_s24 = sphi %s1428_s24, %s1732_s24   ;;  %s1373_s23 = sphi %s1426_s23, %s1731_s23   ;;  %s1369_s22 = sphi %s1424_s22, %s1730_s22   ;;  %s1365_s21 = sphi %s1422_s21, %s1729_s21   ;;  %s1361_s20 = sphi %s1420_s20, %s1722_s20   ;;  %s1357_s19 = sphi %s1418_s19, %s1721_s19   ;;  %s1353_s18 = sphi %s1416_s18, %s1728_s18   ;;  %s1349_s17 = sphi %s1414_s17, %s1727_s17   ;;  %s1345_s16 = sphi %s1412_s16, %s1726_s16   ;;  %s1341_s15 = sphi %s1410_s15, %s1725_s15  }
   0x7   : > { %s27_s27 = sadd.s32 1, %s1373_s23  ;;  %s30_s28 = sadd.s32 1, %s1377_s24 }
   0x8   : > { %p28_p0 = scmp.ge.s32.totalorder %s27_s27, 9  ;;  %s43_s29 = sadd.s32 1, %s1361_s20 }
   0x9   : > { %p50_p1 = scmp.ne.s32.totalorder %s1361_s20, %s1357_s19  ;;  %p51_p2 = scmp.eq.s32.totalorder %s1381_s25, 0 }
   0xa   : > { %s1734_s27 = smov (%p28_p0, %s27_s27), 0  ;;  %s1736_s28 = smov (!%p28_p0, %s30_s28), %s1377_s24 }
   0xb   : > { %1715 = sst [smem:[#allocation7_spill]] %s1734_s27  ;;  %s39_s30 = ssub.s32 %s1373_s23, %s1734_s27 }
   0xc   : > { %p32_p3 = scmp.ge.s32.totalorder %s1736_s28, 2  ;;  %p41_p4 = scmp.eq.s32.totalorder %s39_s30, 0 }
   0xd   : > { %p1477_p5 = por %p51_p2, %p50_p1  ;;  %s71_s6 = sadd.s32 1, %s1353_s18 }
   0xe   : > { %s1738_s28 = smov (%p32_p3, %s1736_s28), 0  ;;  %p78_p6 = scmp.ne.s32.totalorder %s1353_s18, %s1349_s17 }
   0xf   : > { %1717 = sst [smem:[#allocation8_spill]] %s1738_s28  ;;  %s67_s8 = ssub.s32 %s1377_s24, %s1738_s28 }
  0x10   : > { %s1485_s7 = scalar_select %p41_p4, %s1361_s20, %s43_s29  }
  0x11   : > { %s68_s9 = sor.u32 %s67_s8, %s39_s30  ;;  %p97_p7 = scmp.eq.s32.totalorder %s67_s8, 0 }
  0x12   : > { %1718 = sst [smem:[#allocation9_spill]] %s1485_s7  ;;  %p69_p8 = scmp.eq.s32.totalorder %s68_s9, 0 }
  0x13   : > { %p1491_p9 = por %p78_p6, %p51_p2  ;;  %s99_s11 = sadd.s32 1, %s1345_s16 }
  0x14   : > { %p109_p10 = scmp.ne.s32.totalorder %s1345_s16, %s1341_s15  ;;  %p110_p11 = scmp.eq.s32.totalorder %s1088_s26, 17 }
  0x15   : > { %s1499_s12 = scalar_select %p69_p8, %s1353_s18, %s71_s6  }
  0x16   : > { %s1502_s13 = scalar_select %p97_p7, %s1345_s16, %s99_s11  }
  0x17   : > { %p1504_p12 = por %p110_p11, %p109_p10  ;;  %p1091_p13 = scmp.ge.s32.totalorder %s1381_s25, 18 }
  0x19   : > { %188 = sbr.rel (%p1091_p13) target bundleno = 62 (0x3e), region = 16 }
  0x20   : > { %191 = sbr.rel (!%p1477_p5) target bundleno = 39 (0x27), region = 20  ;;  %s193_s29 = sand.u32 (%p1477_p5), 1, %s1361_s20  }
  0x21   : > { %s1149_s30 = sshll.u32 (%p1477_p5), %s1373_s23, 3  ;;  %s1092_s8 = sshll.u32 (%p1477_p5), %s193_s29, 4 }
  0x22   : > { %s201_s11 = scalar_lea.vmem (%p1477_p5), %s1706_s0, %s1149_s30  ;;  %s195_s26 = scalar_lea.vmem (%p1477_p5), [#allocation3], %s1092_s8 }
  0x23   : > { %v231_v0 = vld [vmem:[%s201_s11] sm:$0xff] (%p1477_p5)  ;;  %v233_v1 = vld [vmem:[%s201_s11 + $0x48] sm:$0xff] (%p1477_p5) }
  0x24   : > { %232 = vst [vmem:[%s195_s26] sm:$0xff] (%p1477_p5), %v231_v0  ;;  %234 = vst [vmem:[%s195_s26 + $0x8] sm:$0xff] (%p1477_p5), %v233_v1 }
  0x27 PF: > { %240 = sbr.rel (!%p1491_p9) target bundleno = 62 (0x3e), region = 58  ;;  %s242_s5 = sand.u32 (%p1491_p9), 1, %s1353_s18  }
  0x28   : > { %s1097_s28 = sshll.u32 (%p1491_p9), %s1377_s24, 1  ;;  %s1095_s27 = sshll.u32 (%p1491_p9), %s242_s5, 8 }
  0x29   : > { %s1150_s29 = sshll.u32 (%p1491_p9), %s1373_s23, 7  ;;  %s1529_s10 = scalar_lea.vmem (%p1491_p9), [#allocation4], %s1095_s27 }
  0x2a   : > { %s248_s7 = sadd.s32 (%p1491_p9), %s1150_s29, %s1097_s28 }
  0x2b   : > { %s1099_s20 = sshll.u32 (%p1491_p9), %s248_s7, 2 }
  0x2c   : > { %s1524_s9 = scalar_lea.vmem (%p1491_p9), %s1707_s1, %s1099_s20 }
  0x2d   : > { %v340_v2 = vld [vmem:[%s1524_s9] sm:$0xff] (%p1491_p9)  ;;  %v342_v3 = vld [vmem:[%s1524_s9 + $0x10] sm:$0xff] (%p1491_p9) }
  0x2e   : > { %v344_v4 = vld [vmem:[%s1524_s9 + $0x20] sm:$0xff]  ;;  %341 = vst [vmem:[%s1529_s10] sm:$0xff] %v340_v2  ;;  %343 = vst [vmem:[%s1529_s10 + $0x8] sm:$0xff] %v342_v3  ;;  %v346_v5 = vld [vmem:[%s1524_s9 + $0x30] sm:$0xff] }
  0x2f   : > { %345 = vst [vmem:[%s1529_s10 + $0x10] sm:$0xff] %v344_v4  ;;  %v348_v6 = vld [vmem:[%s1524_s9 + $0x40] sm:$0xff]  ;;  %v350_v7 = vld [vmem:[%s1524_s9 + $0x50] sm:$0xff]  ;;  %347 = vst [vmem:[%s1529_s10 + $0x18] sm:$0xff] %v346_v5 }
  0x30   : > { %349 = vst [vmem:[%s1529_s10 + $0x20] sm:$0xff] %v348_v6  ;;  %351 = vst [vmem:[%s1529_s10 + $0x28] sm:$0xff] %v350_v7  ;;  %v352_v8 = vld [vmem:[%s1524_s9 + $0x60] sm:$0xff]  ;;  %v354_v9 = vld [vmem:[%s1524_s9 + $0x70] sm:$0xff] }
  0x31   : > { %v356_v10 = vld [vmem:[%s1524_s9 + $0x80] sm:$0xff]  ;;  %353 = vst [vmem:[%s1529_s10 + $0x30] sm:$0xff] %v352_v8  ;;  %355 = vst [vmem:[%s1529_s10 + $0x38] sm:$0xff] %v354_v9  ;;  %v358_v11 = vld [vmem:[%s1524_s9 + $0x90] sm:$0xff] }
  0x32   : > { %357 = vst [vmem:[%s1529_s10 + $0x40] sm:$0xff] %v356_v10  ;;  %v360_v12 = vld [vmem:[%s1524_s9 + $0xa0] sm:$0xff]  ;;  %v362_v13 = vld [vmem:[%s1524_s9 + $0xb0] sm:$0xff]  ;;  %359 = vst [vmem:[%s1529_s10 + $0x48] sm:$0xff] %v358_v11 }
  0x33   : > { %361 = vst [vmem:[%s1529_s10 + $0x50] sm:$0xff] %v360_v12  ;;  %363 = vst [vmem:[%s1529_s10 + $0x58] sm:$0xff] %v362_v13  ;;  %v364_v14 = vld [vmem:[%s1524_s9 + $0xc0] sm:$0xff]  ;;  %v366_v15 = vld [vmem:[%s1524_s9 + $0xd0] sm:$0xff] }
  0x34   : > { %v368_v16 = vld [vmem:[%s1524_s9 + $0xe0] sm:$0xff]  ;;  %365 = vst [vmem:[%s1529_s10 + $0x60] sm:$0xff] %v364_v14  ;;  %367 = vst [vmem:[%s1529_s10 + $0x68] sm:$0xff] %v366_v15  ;;  %v370_v17 = vld [vmem:[%s1524_s9 + $0xf0] sm:$0xff] }
  0x35   : > { %369 = vst [vmem:[%s1529_s10 + $0x70] sm:$0xff] %v368_v16  ;;  %v372_v18 = vld [vmem:[%s1524_s9 + $0x100] sm:$0xff]  ;;  %v374_v19 = vld [vmem:[%s1524_s9 + $0x110] sm:$0xff]  ;;  %371 = vst [vmem:[%s1529_s10 + $0x78] sm:$0xff] %v370_v17 }
  0x36   : > { %373 = vst [vmem:[%s1529_s10 + $0x80] sm:$0xff] %v372_v18  ;;  %375 = vst [vmem:[%s1529_s10 + $0x88] sm:$0xff] %v374_v19  ;;  %v376_v20 = vld [vmem:[%s1524_s9 + $0x120] sm:$0xff]  ;;  %v378_v21 = vld [vmem:[%s1524_s9 + $0x130] sm:$0xff] }
  0x37   : > { %v380_v22 = vld [vmem:[%s1524_s9 + $0x140] sm:$0xff]  ;;  %377 = vst [vmem:[%s1529_s10 + $0x90] sm:$0xff] %v376_v20  ;;  %379 = vst [vmem:[%s1529_s10 + $0x98] sm:$0xff] %v378_v21  ;;  %v382_v23 = vld [vmem:[%s1524_s9 + $0x150] sm:$0xff] }
  0x38   : > { %381 = vst [vmem:[%s1529_s10 + $0xa0] sm:$0xff] %v380_v22  ;;  %v384_v24 = vld [vmem:[%s1524_s9 + $0x160] sm:$0xff]  ;;  %v386_v25 = vld [vmem:[%s1524_s9 + $0x170] sm:$0xff]  ;;  %383 = vst [vmem:[%s1529_s10 + $0xa8] sm:$0xff] %v382_v23 }
  0x39   : > { %385 = vst [vmem:[%s1529_s10 + $0xb0] sm:$0xff] %v384_v24  ;;  %387 = vst [vmem:[%s1529_s10 + $0xb8] sm:$0xff] %v386_v25  ;;  %v388_v26 = vld [vmem:[%s1524_s9 + $0x180] sm:$0xff]  ;;  %v390_v27 = vld [vmem:[%s1524_s9 + $0x190] sm:$0xff] }
  0x3a   : > { %v392_v28 = vld [vmem:[%s1524_s9 + $0x1a0] sm:$0xff]  ;;  %389 = vst [vmem:[%s1529_s10 + $0xc0] sm:$0xff] %v388_v26  ;;  %391 = vst [vmem:[%s1529_s10 + $0xc8] sm:$0xff] %v390_v27  ;;  %v394_v29 = vld [vmem:[%s1524_s9 + $0x1b0] sm:$0xff] }
  0x3b   : > { %393 = vst [vmem:[%s1529_s10 + $0xd0] sm:$0xff] %v392_v28  ;;  %v396_v30 = vld [vmem:[%s1524_s9 + $0x1c0] sm:$0xff]  ;;  %v398_v31 = vld [vmem:[%s1524_s9 + $0x1d0] sm:$0xff]  ;;  %395 = vst [vmem:[%s1529_s10 + $0xd8] sm:$0xff] %v394_v29 }
  0x3c   : > { %397 = vst [vmem:[%s1529_s10 + $0xe0] sm:$0xff] %v396_v30  ;;  %399 = vst [vmem:[%s1529_s10 + $0xe8] sm:$0xff] %v398_v31  ;;  %v400_v32 = vld [vmem:[%s1524_s9 + $0x1e0] sm:$0xff]  ;;  %v402_v33 = vld [vmem:[%s1524_s9 + $0x1f0] sm:$0xff] }
  0x3d   : > { %401 = vst [vmem:[%s1529_s10 + $0xf0] sm:$0xff] %v400_v32  ;;  %403 = vst [vmem:[%s1529_s10 + $0xf8] sm:$0xff] %v402_v33 }
  0x3e PF: > { %p1100_p0 = scmp.ge.s32.totalorder %s1381_s25, 1  ;;  %p408_p1 = scmp.lt.s32.totalorder %s1381_s25, 19 }
  0x40   : > { %p409_p2 = pnand %p1100_p0, %p408_p1 }
  0x41   : > { %s415_s20 = sand.u32 (!%p409_p2), 1, %s1357_s19   ;;  %s422_s27 = sand.u32 (!%p409_p2), 1, %s1349_s17  }
  0x42   : > { %412 = sbr.rel (%p409_p2) target bundleno = 400 (0x190), region = 96  ;;  %s1596_s28 = sshll.u32 (!%p409_p2), %s415_s20, 4 }
  0x43   : > { %s1102_s7 = sshll.u32 (!%p409_p2), %s422_s27, 8  ;;  %s443_s8 = sand.u32 (!%p409_p2), 1, %s1341_s15  }
  0x44   : > { %s1104_s11 = sshll.u32 (!%p409_p2), %s1369_s22, 1  ;;  %s1103_s26 = sshll.u32 (!%p409_p2), %s443_s8, 4 }
  0x45   : > { %p475_p3 = scmp.lt.s32.totalorder (!%p409_p2), %s1104_s11, 3  ;;  %s417_s19 = scalar_lea.vmem (!%p409_p2), [#allocation3], %s1596_s28 }
  0x46   : > { %s1611_s10 = scalar_lea.vmem (!%p409_p2), [#allocation4], %s1102_s7  ;;  %s1613_s20 = scalar_lea.vmem (!%p409_p2), [#allocation5], %s1103_s26 }
  0x47   : > { %p1106_p4 = scmp.ne.s32.totalorder (!%p409_p2), %s1365_s21, 0 }
  0x49   : > { %s1740_s11 = smov (!%p475_p3, %s1104_s11), 3  ;;  %493 = sbr.rel (%p1106_p4) target bundleno = 80 (0x50), region = 108 }
  0x4a   : > { %s479_s6 = scalar_lea.vmem %s1709_s3, %s1740_s11  ;;  %s488_s17 = scalar_lea.vmem %s1710_s4, %s1740_s11  ;;  %v1383_v34 = vmov (!%p1106_p4), 0.0  }
  0x4b   : > { %494 = vst [vmem:[#allocation2] sm:$0xff] (!%p1106_p4), %v1383_v34  ;;  %495 = vst [vmem:[#allocation2 + $0x8] sm:$0xff] (!%p1106_p4), %v1383_v34 }
  0x4c   : > { %496 = vst [vmem:[#allocation2 + $0x10] sm:$0xff] (!%p1106_p4), %v1383_v34  ;;  %497 = vst [vmem:[#allocation2 + $0x18] sm:$0xff] (!%p1106_p4), %v1383_v34 }
  0x50 PF: > { %v1244_v35 = vld [vmem:[%s1611_s10 + $0x4] ss:$8 sps:$4 sm:$0xff]   ;;  %v1246_v36 = vld [vmem:[%s1611_s10] ss:$8 sps:$4 sm:$0xff]   ;;  %v1247_v37 = vld [vmem:[%s1611_s10 + $0x14] ss:$8 sps:$4 sm:$0xff]  }
  0x51   : > { %706 = vmatprep.subr.bf16.mxu0 %v1244_v35  ;;  %v1249_v38 = vld [vmem:[%s1611_s10 + $0x10] ss:$8 sps:$4 sm:$0xff]   ;;  %v1250_v39 = vld [vmem:[%s1611_s10 + $0x24] ss:$8 sps:$4 sm:$0xff]   ;;  %v1252_v40 = vld [vmem:[%s1611_s10 + $0x20] ss:$8 sps:$4 sm:$0xff]  }
  0x52   : > { %707 = vmatpush1.bf16.msra.mxu0 %v1246_v36  ;;  %v1253_v41 = vld [vmem:[%s1611_s10 + $0x34] ss:$8 sps:$4 sm:$0xff]   ;;  %v1255_v42 = vld [vmem:[%s1611_s10 + $0x30] ss:$8 sps:$4 sm:$0xff]   ;;  %v1256_v43 = vld [vmem:[%s1611_s10 + $0x44] ss:$8 sps:$4 sm:$0xff]  }
  0x53   : > { %708 = vmatprep.subr.bf16.mxu0 %v1247_v37  ;;  %v1258_v44 = vld [vmem:[%s1611_s10 + $0x40] ss:$8 sps:$4 sm:$0xff]   ;;  %v1259_v45 = vld [vmem:[%s1611_s10 + $0x54] ss:$8 sps:$4 sm:$0xff]   ;;  %v1261_v46 = vld [vmem:[%s1611_s10 + $0x50] ss:$8 sps:$4 sm:$0xff]  }
  0x54   : > { %v1262_v47 = vld [vmem:[%s1611_s10 + $0x64] ss:$8 sps:$4 sm:$0xff]   ;;  %v1264_v49 = vld [vmem:[%s1611_s10 + $0x60] ss:$8 sps:$4 sm:$0xff]   ;;  %v1265_v50 = vld [vmem:[%s1611_s10 + $0x74] ss:$8 sps:$4 sm:$0xff]  }
  0x55   : > { %v1294_v48 = vld [vmem:[%s417_s19 + $0x4] ss:$8 sps:$4 sm:$0xff]   ;;  %v1267_v51 = vld [vmem:[%s1611_s10 + $0x70] ss:$8 sps:$4 sm:$0xff]   ;;  %v1270_v53 = vld [vmem:[%s1611_s10 + $0x80] ss:$8 sps:$4 sm:$0xff]  }
  0x56   : > { %709 = vmatpush1.bf16.msra.mxu0 %v1249_v38  ;;  %738 = vmatprep.mubr.bf16.mxu0 %v1294_v48  ;;  %v1268_v52 = vld [vmem:[%s1611_s10 + $0x84] ss:$8 sps:$4 sm:$0xff]   ;;  %v1271_v54 = vld [vmem:[%s1611_s10 + $0x94] ss:$8 sps:$4 sm:$0xff]   ;;  %v1273_v55 = vld [vmem:[%s1611_s10 + $0x90] ss:$8 sps:$4 sm:$0xff]  }
  0x57   : > { %710 = vmatprep.subr.bf16.mxu0 %v1250_v39  ;;  %v1274_v56 = vld [vmem:[%s1611_s10 + $0xa4] ss:$8 sps:$4 sm:$0xff]   ;;  %v1276_v57 = vld [vmem:[%s1611_s10 + $0xa0] ss:$8 sps:$4 sm:$0xff]   ;;  %v1277_v58 = vld [vmem:[%s1611_s10 + $0xb4] ss:$8 sps:$4 sm:$0xff]  }
  0x58   : > { %v1279_v59 = vld [vmem:[%s1611_s10 + $0xb0] ss:$8 sps:$4 sm:$0xff]   ;;  %v1280_v60 = vld [vmem:[%s1611_s10 + $0xc4] ss:$8 sps:$4 sm:$0xff]   ;;  %v1282_v61 = vld [vmem:[%s1611_s10 + $0xc0] ss:$8 sps:$4 sm:$0xff]  }
  0x59   : > { %v1283_v62 = vld [vmem:[%s1611_s10 + $0xd4] ss:$8 sps:$4 sm:$0xff]   ;;  %v1285_v63 = vld [vmem:[%s1611_s10 + $0xd0] ss:$8 sps:$4 sm:$0xff]   ;;  %v1286_v0 = vld [vmem:[%s1611_s10 + $0xe4] ss:$8 sps:$4 sm:$0xff]  }
  0x5a   : > { %711 = vmatpush1.bf16.msra.mxu0 %v1252_v40  ;;  %v1288_v1 = vld [vmem:[%s1611_s10 + $0xe0] ss:$8 sps:$4 sm:$0xff]   ;;  %v1289_v2 = vld [vmem:[%s1611_s10 + $0xf4] ss:$8 sps:$4 sm:$0xff]   ;;  %v1291_v3 = vld [vmem:[%s1611_s10 + $0xf0] ss:$8 sps:$4 sm:$0xff]  }
  0x5b   : > { %712 = vmatprep.subr.bf16.mxu0 %v1253_v41  ;;  %v1292_v4 = vld [vmem:[%s417_s19] ss:$8 sps:$4 sm:$0xff]   ;;  %p1141_p5 = scmp.ne.s32.totalorder %s1365_s21, 8 }
  0x5c   : > { %v498_v5 = vld [vmem:[#allocation2] sm:$0xff]  ;;  %v499_v6 = vld [vmem:[#allocation2 + $0x8] sm:$0xff]  ;;  %v500_v8 = vld [vmem:[#allocation2 + $0x10] sm:$0xff]  ;;  %v799_v34 = vlaneseq (!%p1141_p5)  ;;  %v1384_v38 = vmov (!%p1141_p5), 1966171168  }
  0x5d   : > { %v501_v11 = vld [vmem:[#allocation2 + $0x18] sm:$0xff]  ;;  %v797_v39 = vunpack.c.l.s4 (!%p1141_p5), %v1384_v38 }
  0x5e   : > { %713 = vmatpush1.bf16.msra.mxu0 %v1255_v42  ;;  %vm813_vm0 = vcmp.lt.s32.totalorder (!%p1141_p5), %v799_v34, 256 }
  0x5f   : > { %714 = vmatprep.subr.bf16.mxu0 %v1256_v43 }
  0x62   : > { %715 = vmatpush1.bf16.msra.mxu0 %v1258_v44 }
  0x63   : > { %716 = vmatprep.subr.bf16.mxu0 %v1259_v45  ;;  %v800_v45 = vshrl.u32 (!%p1141_p5), %v799_v34, 7 }
  0x66   : > { %717 = vmatpush1.bf16.msra.mxu0 %v1261_v46 }
  0x67   : > { %718 = vmatprep.subr.bf16.mxu0 %v1262_v47 }
  0x6a   : > { %719 = vmatpush1.bf16.msra.mxu0 %v1264_v49  ;;  %v798_v49 = vunpack.c.0.s8 (!%p1141_p5), %v797_v39 }
  0x6b   : > { %720 = vmatprep.subr.bf16.mxu0 %v1265_v50 }
  0x6e   : > { %721 = vmatpush1.bf16.msra.mxu0 %v1267_v51 }
  0x6f   : > { %722 = vmatprep.subr.bf16.mxu0 %v1268_v52 }
  0x72   : > { %723 = vmatpush1.bf16.msra.mxu0 %v1270_v53 }
  0x73   : > { %724 = vmatprep.subr.bf16.mxu0 %v1271_v54 }
  0x76   : > { %725 = vmatpush1.bf16.msra.mxu0 %v1273_v55 }
  0x77   : > { %726 = vmatprep.subr.bf16.mxu0 %v1274_v56  ;;  %v801_v56 = vsub.s32 (!%p1141_p5), %v798_v49, %v800_v45 }
  0x7a   : > { %727 = vmatpush1.bf16.msra.mxu0 %v1276_v57 }
  0x7b   : > { %728 = vmatprep.subr.bf16.mxu0 %v1277_v58 }
  0x7e   : > { %729 = vmatpush1.bf16.msra.mxu0 %v1279_v59 }
  0x7f   : > { %730 = vmatprep.subr.bf16.mxu0 %v1280_v60 }
  0x82   : > { %731 = vmatpush1.bf16.msra.mxu0 %v1282_v61 }
  0x83   : > { %732 = vmatprep.subr.bf16.mxu0 %v1283_v62 }
  0x86   : > { %733 = vmatpush1.bf16.msra.mxu0 %v1285_v63 }
  0x87   : > { %734 = vmatprep.subr.bf16.mxu0 %v1286_v0 }
  0x8a   : > { %735 = vmatpush1.bf16.msra.mxu0 %v1288_v1 }
  0x8b   : > { %736 = vmatprep.subr.bf16.mxu0 %v1289_v2 }
  0x8e   : > { %737 = vmatpush1.bf16.msra.mxu0 %v1291_v3 }
  0x91   : > { %739 = vmatmul.mubr.bf16.vlgmr.msra.gmra.mrb[0].mxu0 %v1292_v4 }
 0x164   : > { %v740_v7 = vpop.f32.mrb[0].mxu0  ;;  %760 = sbr.rel (%p1141_p5) target bundleno = 393 (0x189), region = 112 }
 0x165   : > { %v749_v9 = vadd.f32 %v740_v7, %v498_v5  ;;  %v742_v10 = vpop.f32.mrb[1].mxu0 }
 0x166   : > { %v750_v12 = vadd.f32 %v742_v10, %v499_v6  ;;  %v744_v13 = vpop.f32.mrb[2].mxu0 }
 0x167   : > { %753 = vst [vmem:[#allocation2] sm:$0xff] %v749_v9  ;;  %v751_v14 = vadd.f32 %v744_v13, %v500_v8  ;;  %v746_v15 = vpop.f32.mrb[3].mxu0 }
 0x168   : > { %754 = vst [vmem:[#allocation2 + $0x8] sm:$0xff] %v750_v12  ;;  %v752_v16 = vadd.f32 %v746_v15, %v501_v11 }
 0x169   : > { %755 = vst [vmem:[#allocation2 + $0x10] sm:$0xff] %v751_v14 }
 0x16a   : > { %756 = vst [vmem:[#allocation2 + $0x18] sm:$0xff] %v752_v16 }
 0x16e   : > { %v761_v17 = vld [vmem:[#allocation2] sm:$0xff] }
 0x16f   : > { %v762_v18 = vld [vmem:[#allocation2 + $0x8] sm:$0xff]  ;;  %v816_v21 = vmul.f32 %v761_v17, %v761_v17 }
 0x170   : > { %v763_v19 = vld [vmem:[#allocation2 + $0x10] sm:$0xff]  ;;  %v1151_v20 = vpack.c.bf16 %v762_v18, %v761_v17  ;;  %v817_v22 = vmul.f32 %v762_v18, %v762_v18 }
 0x171   : > { %v764_v23 = vld [vmem:[#allocation2 + $0x18] sm:$0xff]  ;;  %v779_v24 = vadd.f32 %v763_v19, %v761_v17  ;;  %v818_v27 = vmul.f32 %v763_v19, %v763_v19 }
 0x172   : > { %v1152_v25 = vpack.c.bf16 %v764_v23, %v763_v19  ;;  %v786_v26 = vadd.f32 %v764_v23, %v762_v18  ;;  %v819_v28 = vmul.f32 %v764_v23, %v764_v23  ;;  %777 = vst [vmem:[%s1613_s20] sm:$0xff] %v1151_v20 }
 0x173   : > { %v780_v29 = vrot.slane %v779_v24, 4  ;;  %v820_v31 = vadd.f32 %v818_v27, %v816_v21 }
 0x174   : > { %778 = vst [vmem:[%s1613_s20 + $0x8] sm:$0xff] %v1152_v25  ;;  %v787_v30 = vrot.slane %v786_v26, 4  ;;  %v827_v32 = vadd.f32 %v819_v28, %v817_v22 }
 0x175   : > { %v781_v33 = vadd.f32 %v780_v29, %v779_v24  ;;  %v821_v36 = vrot.slane %v820_v31, 4 }
 0x176   : > { %v788_v35 = vadd.f32 %v787_v30, %v786_v26  ;;  %v828_v37 = vrot.slane %v827_v32, 4 }
 0x177   : > { %v782_v40 = vrot.slane %v781_v33, 2  ;;  %v822_v42 = vadd.f32 %v821_v36, %v820_v31 }
 0x178   : > { %v789_v41 = vrot.slane %v788_v35, 2  ;;  %v829_v43 = vadd.f32 %v828_v37, %v827_v32 }
 0x179   : > { %v783_v44 = vadd.f32 %v782_v40, %v781_v33  ;;  %v823_v47 = vrot.slane %v822_v42, 2 }
 0x17a   : > { %v790_v46 = vadd.f32 %v789_v41, %v788_v35  ;;  %v830_v48 = vrot.slane %v829_v43, 2 }
 0x17b   : > { %v784_v50 = vrot.slane %v783_v44, 1  ;;  %v824_v52 = vadd.f32 %v823_v47, %v822_v42 }
 0x17c   : > { %v791_v51 = vrot.slane %v790_v46, 1  ;;  %v831_v53 = vadd.f32 %v830_v48, %v829_v43 }
 0x17d   : > { %v785_v54 = vadd.f32 %v784_v50, %v783_v44  ;;  %v825_v57 = vrot.slane %v824_v52, 1 }
 0x17e   : > { %v792_v55 = vadd.f32 %v791_v51, %v790_v46  ;;  %v832_v58 = vrot.slane %v831_v53, 1 }
 0x17f   : > { %v826_v60 = vadd.f32 %v825_v57, %v824_v52 }
 0x180   : > { %v795_v59 = vcombine.low %v785_v54, %v792_v55  ;;  %v833_v61 = vadd.f32 %v832_v58, %v831_v53 }
 0x182   : > { %v802_v62 = vrot.slane %v795_v59, %v801_v56  ;;  %v836_v63 = vcombine.low %v826_v60, %v833_v61 }
 0x184   : > { %v809_v0 = vrot.slane %v802_v62, %v801_v56  ;;  %v843_v1 = vrot.slane %v836_v63, %v801_v56 }
 0x186   : > { %815 = vst.msk [vmem:[%s479_s6] sm:$0x3] %vm813_vm0, %v809_v0  ;;  %v850_v2 = vrot.slane %v843_v1, %v801_v56 }
 0x188   : > { %852 = vst.msk [vmem:[%s488_s17] sm:$0x3] %vm813_vm0, %v850_v2 }
 0x189 PF: > { %875 = sbr.rel (!%p1504_p12) target bundleno = 400 (0x190), region = 116  ;;  %s1153_s7 = sshll.u32 (%p1504_p12), %s1369_s22, 3  ;;  %v911_v3 = vld [vmem:[%s1613_s20] sm:$0xff] (%p1504_p12)  ;;  %v913_v4 = vld [vmem:[%s1613_s20 + $0x8] sm:$0xff] (%p1504_p12) }
 0x18a   : > { %s881_s5 = scalar_lea.vmem (%p1504_p12), %s1708_s2, %s1153_s7 }
 0x18b   : > { %912 = vst [vmem:[%s881_s5] sm:$0xff] (%p1504_p12), %v911_v3  ;;  %914 = vst [vmem:[%s881_s5 + $0x10] sm:$0xff] (%p1504_p12), %v913_v4 }
 0x190 PF: > { %s15_s25 = sadd.s32 1, %s1381_s25   ;;  %s1721_s19 = sld [smem:[#allocation6_spill]] }
 0x191   : > { %p12_p6 = scmp.ge.s32.totalorder %s15_s25, 20   ;;  %s1722_s20 = sld [smem:[#allocation9_spill]] }
 0x192   : > { %s1723_s14 = sld [smem:[#allocation7_spill]]  ;;  %s1724_s11 = sld [smem:[#allocation8_spill]] }
 0x193   : > { %s1725_s15 = smov %s1345_s16  ;;  %s1726_s16 = smov %s1502_s13 }
 0x194   : > { %s1727_s17 = smov %s1353_s18  ;;  %s1728_s18 = smov %s1499_s12 }
 0x195   : > { %s1729_s21 = smov %s1373_s23  ;;  %s1730_s22 = smov %s1377_s24 }
 0x196   :  { %14 = sbr.rel (!%p12_p6) target bundleno = 6 (0x6), region = 217 }
 0x198   : > { %s1731_s23 = smov %s1723_s14  ;;  %s1732_s24 = smov %s1724_s11 }

// kernel: resnet18_forward.76
= control target key start
LH: loop header
LB: loop body
LE: loop exit
PB: predicated region body
PF: predicated region fallthrough
CT: control target
= control target key end

     0   :  { %v28_v0 = vlaneseq  ;;  %s184_s0 = inlined_call_operand.vmem [shape: bf16[16,512], index: 0, kind: input, shape index: {}]   ;;  %s185_s1 = inlined_call_operand.vmem [shape: f32[1,512], index: 1, kind: input, shape index: {}]   ;;  %s186_s2 = inlined_call_operand.vmem [shape: f32[1,512], index: 2, kind: input, shape index: {}]   ;;  %s187_s3 = inlined_call_operand.vmem [shape: bf16[16,512], index: 3, kind: output, shape index: {}]  }
   0x1   :  { %v14_v1 = vld [vmem:[%s184_s0] sm:$0xff]  ;;  %v15_v3 = vld [vmem:[%s184_s0 + $0x8] sm:$0xff]  ;;  %v16_v4 = vld [vmem:[%s184_s0 + $0x10] sm:$0xff] }
   0x2   :  { %v29_v2 = vshrl.u32 %v28_v0, 7  ;;  %v17_v5 = vld [vmem:[%s184_s0 + $0x18] sm:$0xff]  ;;  %v18_v6 = vunpack.c.l.bf16 %v14_v1  ;;  %v19_v7 = vunpack.c.h.bf16 %v14_v1  ;;  %v26_v8 = vld [vmem:[%s185_s1] sm:$0xf]  ;;  %v22_v10 = vunpack.c.l.bf16 %v16_v4 }
   0x3   :  { %v56_v9 = vld [vmem:[%s186_s2] sm:$0xf]  ;;  %v23_v11 = vunpack.c.h.bf16 %v16_v4  ;;  %v20_v16 = vunpack.c.l.bf16 %v15_v3  ;;  %v21_v17 = vunpack.c.h.bf16 %v15_v3  ;;  %v24_v18 = vunpack.c.l.bf16 %v17_v5 }
   0x4   :  { %v30_v12 = vsub.s32 0, %v29_v2  ;;  %v34_v13 = vsub.s32 1, %v29_v2  ;;  %v38_v14 = vsub.s32 2, %v29_v2  ;;  %v42_v15 = vsub.s32 3, %v29_v2 }
   0x5   :  { %v25_v19 = vunpack.c.h.bf16 %v17_v5 }
   0x6   :  { %v31_v20 = vrot.slane %v26_v8, %v30_v12  ;;  %v35_v21 = vrot.slane %v26_v8, %v34_v13  ;;  %v61_v22 = vrot.slane %v56_v9, %v30_v12  ;;  %v65_v23 = vrot.slane %v56_v9, %v34_v13 }
   0x7   :  { %v39_v24 = vrot.slane %v26_v8, %v38_v14  ;;  %v43_v25 = vrot.slane %v26_v8, %v42_v15  ;;  %v69_v26 = vrot.slane %v56_v9, %v38_v14  ;;  %v73_v27 = vrot.slane %v56_v9, %v42_v15 }
   0x8   :  { %v48_v28 = vmul.f32 %v31_v20, %v18_v6  ;;  %v49_v29 = vmul.f32 %v35_v21, %v19_v7  ;;  %v52_v30 = vmul.f32 %v31_v20, %v22_v10  ;;  %v53_v31 = vmul.f32 %v35_v21, %v23_v11 }
   0x9   :  { %v50_v32 = vmul.f32 %v39_v24, %v20_v16  ;;  %v51_v33 = vmul.f32 %v43_v25, %v21_v17  ;;  %v54_v34 = vmul.f32 %v39_v24, %v24_v18  ;;  %v55_v35 = vmul.f32 %v43_v25, %v25_v19 }
   0xa   :  { %v78_v36 = vadd.f32 %v61_v22, %v48_v28  ;;  %v79_v37 = vadd.f32 %v65_v23, %v49_v29  ;;  %v82_v38 = vadd.f32 %v61_v22, %v52_v30  ;;  %v83_v39 = vadd.f32 %v65_v23, %v53_v31 }
   0xb   :  { %v80_v40 = vadd.f32 %v69_v26, %v50_v32  ;;  %v81_v41 = vadd.f32 %v73_v27, %v51_v33  ;;  %v84_v42 = vadd.f32 %v69_v26, %v54_v34  ;;  %v85_v43 = vadd.f32 %v73_v27, %v55_v35 }
   0xc   :  { %v86_v44 = vmax.f32 %v78_v36, 0.0  ;;  %v87_v45 = vmax.f32 %v79_v37, 0.0  ;;  %v90_v46 = vmax.f32 %v82_v38, 0.0  ;;  %v91_v47 = vmax.f32 %v83_v39, 0.0 }
   0xd   :  { %v88_v48 = vmax.f32 %v80_v40, 0.0  ;;  %v89_v49 = vmax.f32 %v81_v41, 0.0  ;;  %v92_v50 = vmax.f32 %v84_v42, 0.0  ;;  %v93_v51 = vmax.f32 %v85_v43, 0.0 }
   0xe   :  { %v130_v52 = vpack.c.bf16 %v87_v45, %v86_v44  ;;  %v132_v53 = vpack.c.bf16 %v91_v47, %v90_v46 }
   0xf   :  { %v131_v54 = vpack.c.bf16 %v89_v49, %v88_v48  ;;  %v133_v55 = vpack.c.bf16 %v93_v51, %v92_v50 }
  0x10   :  { %118 = vst [vmem:[%s187_s3] sm:$0xff] %v130_v52  ;;  %120 = vst [vmem:[%s187_s3 + $0x10] sm:$0xff] %v132_v53 }
  0x11   :  { %119 = vst [vmem:[%s187_s3 + $0x8] sm:$0xff] %v131_v54  ;;  %121 = vst [vmem:[%s187_s3 + $0x18] sm:$0xff] %v133_v55 }

// kernel: resnet18_forward.77
= control target key start
LH: loop header
LB: loop body
LE: loop exit
PB: predicated region body
PF: predicated region fallthrough
CT: control target
= control target key end

     0   :  { %s1410_s15 = smov 0   ;;  %s1412_s16 = smov 0   ;;  %s1706_s0 = inlined_call_operand.vmem [shape: bf16[16,4608], index: 0, kind: input, shape index: {}]   ;;  %s1707_s1 = inlined_call_operand.vmem [shape: bf16[4608,512], index: 1, kind: input, shape index: {}]   ;;  %s1708_s2 = inlined_call_operand.vmem [shape: bf16[16,512], index: 2, kind: output, shape index: {0}]   ;;  %s1709_s3 = inlined_call_operand.vmem [shape: f32[1,1,512], index: 3, kind: output, shape index: {1}]   ;;  %s1710_s4 = inlined_call_operand.vmem [shape: f32[1,1,512], index: 4, kind: output, shape index: {2}]  }
   0x1   :  { %s1414_s17 = smov 0   ;;  %s1416_s18 = smov 0  }
   0x2   :  { %s1418_s19 = smov 0   ;;  %s1420_s20 = smov 0  }
   0x3   :  { %s1422_s21 = smov 0   ;;  %s1424_s22 = smov 0  }
   0x4   :  { %s1426_s23 = smov 0   ;;  %s1428_s24 = smov 0  }
   0x5   :  { %s1430_s25 = smov 0  }
   0x6 LB: > { %1714 = sst [smem:[#allocation6_spill]] %s1361_s20  ;;  %s1088_s26 = sadd.s32 4294967295, %s1381_s25   ;;  %s1381_s25 = sphi %s1430_s25, %s15_s25   ;;  %s1377_s24 = sphi %s1428_s24, %s1732_s24   ;;  %s1373_s23 = sphi %s1426_s23, %s1731_s23   ;;  %s1369_s22 = sphi %s1424_s22, %s1730_s22   ;;  %s1365_s21 = sphi %s1422_s21, %s1729_s21   ;;  %s1361_s20 = sphi %s1420_s20, %s1722_s20   ;;  %s1357_s19 = sphi %s1418_s19, %s1721_s19   ;;  %s1353_s18 = sphi %s1416_s18, %s1728_s18   ;;  %s1349_s17 = sphi %s1414_s17, %s1727_s17   ;;  %s1345_s16 = sphi %s1412_s16, %s1726_s16   ;;  %s1341_s15 = sphi %s1410_s15, %s1725_s15  }
   0x7   : > { %s27_s27 = sadd.s32 1, %s1373_s23  ;;  %s30_s28 = sadd.s32 1, %s1377_s24 }
   0x8   : > { %p28_p0 = scmp.ge.s32.totalorder %s27_s27, 18  ;;  %s43_s29 = sadd.s32 1, %s1361_s20 }
   0x9   : > { %p50_p1 = scmp.ne.s32.totalorder %s1361_s20, %s1357_s19  ;;  %p51_p2 = scmp.eq.s32.totalorder %s1381_s25, 0 }
   0xa   : > { %s1734_s27 = smov (%p28_p0, %s27_s27), 0  ;;  %s1736_s28 = smov (!%p28_p0, %s30_s28), %s1377_s24 }
   0xb   : > { %1715 = sst [smem:[#allocation7_spill]] %s1734_s27  ;;  %s39_s30 = ssub.s32 %s1373_s23, %s1734_s27 }
   0xc   : > { %p32_p3 = scmp.ge.s32.totalorder %s1736_s28, 2  ;;  %p41_p4 = scmp.eq.s32.totalorder %s39_s30, 0 }
   0xd   : > { %p1477_p5 = por %p51_p2, %p50_p1  ;;  %s71_s6 = sadd.s32 1, %s1353_s18 }
   0xe   : > { %s1738_s28 = smov (%p32_p3, %s1736_s28), 0  ;;  %p78_p6 = scmp.ne.s32.totalorder %s1353_s18, %s1349_s17 }
   0xf   : > { %1717 = sst [smem:[#allocation8_spill]] %s1738_s28  ;;  %s67_s8 = ssub.s32 %s1377_s24, %s1738_s28 }
  0x10   : > { %s1485_s7 = scalar_select %p41_p4, %s1361_s20, %s43_s29  }
  0x11   : > { %s68_s9 = sor.u32 %s67_s8, %s39_s30  ;;  %p97_p7 = scmp.eq.s32.totalorder %s67_s8, 0 }
  0x12   : > { %1718 = sst [smem:[#allocation9_spill]] %s1485_s7  ;;  %p69_p8 = scmp.eq.s32.totalorder %s68_s9, 0 }
  0x13   : > { %p1491_p9 = por %p78_p6, %p51_p2  ;;  %s99_s11 = sadd.s32 1, %s1345_s16 }
  0x14   : > { %p109_p10 = scmp.ne.s32.totalorder %s1345_s16, %s1341_s15  ;;  %p110_p11 = scmp.eq.s32.totalorder %s1088_s26, 35 }
  0x15   : > { %s1499_s12 = scalar_select %p69_p8, %s1353_s18, %s71_s6  }
  0x16   : > { %s1502_s13 = scalar_select %p97_p7, %s1345_s16, %s99_s11  }
  0x17   : > { %p1504_p12 = por %p110_p11, %p109_p10  ;;  %p1091_p13 = scmp.ge.s32.totalorder %s1381_s25, 36 }
  0x19   : > { %188 = sbr.rel (%p1091_p13) target bundleno = 62 (0x3e), region = 16 }
  0x20   : > { %191 = sbr.rel (!%p1477_p5) target bundleno = 39 (0x27), region = 20  ;;  %s193_s29 = sand.u32 (%p1477_p5), 1, %s1361_s20  }
  0x21   : > { %s1149_s30 = sshll.u32 (%p1477_p5), %s1373_s23, 3  ;;  %s1092_s8 = sshll.u32 (%p1477_p5), %s193_s29, 4 }
  0x22   : > { %s201_s11 = scalar_lea.vmem (%p1477_p5), %s1706_s0, %s1149_s30  ;;  %s195_s26 = scalar_lea.vmem (%p1477_p5), [#allocation3], %s1092_s8 }
  0x23   : > { %v231_v0 = vld [vmem:[%s201_s11] sm:$0xff] (%p1477_p5)  ;;  %v233_v1 = vld [vmem:[%s201_s11 + $0x90] sm:$0xff] (%p1477_p5) }
  0x24   : > { %232 = vst [vmem:[%s195_s26] sm:$0xff] (%p1477_p5), %v231_v0  ;;  %234 = vst [vmem:[%s195_s26 + $0x8] sm:$0xff] (%p1477_p5), %v233_v1 }
  0x27 PF: > { %240 = sbr.rel (!%p1491_p9) target bundleno = 62 (0x3e), region = 58  ;;  %s242_s5 = sand.u32 (%p1491_p9), 1, %s1353_s18  }
  0x28   : > { %s1097_s28 = sshll.u32 (%p1491_p9), %s1377_s24, 1  ;;  %s1095_s27 = sshll.u32 (%p1491_p9), %s242_s5, 8 }
  0x29   : > { %s1150_s29 = sshll.u32 (%p1491_p9), %s1373_s23, 7  ;;  %s1529_s10 = scalar_lea.vmem (%p1491_p9), [#allocation4], %s1095_s27 }
  0x2a   : > { %s248_s7 = sadd.s32 (%p1491_p9), %s1150_s29, %s1097_s28 }
  0x2b   : > { %s1099_s20 = sshll.u32 (%p1491_p9), %s248_s7, 2 }
  0x2c   : > { %s1524_s9 = scalar_lea.vmem (%p1491_p9), %s1707_s1, %s1099_s20 }
  0x2d   : > { %v340_v2 = vld [vmem:[%s1524_s9] sm:$0xff] (%p1491_p9)  ;;  %v342_v3 = vld [vmem:[%s1524_s9 + $0x10] sm:$0xff] (%p1491_p9) }
  0x2e   : > { %v344_v4 = vld [vmem:[%s1524_s9 + $0x20] sm:$0xff]  ;;  %341 = vst [vmem:[%s1529_s10] sm:$0xff] %v340_v2  ;;  %343 = vst [vmem:[%s1529_s10 + $0x8] sm:$0xff] %v342_v3  ;;  %v346_v5 = vld [vmem:[%s1524_s9 + $0x30] sm:$0xff] }
  0x2f   : > { %345 = vst [vmem:[%s1529_s10 + $0x10] sm:$0xff] %v344_v4  ;;  %v348_v6 = vld [vmem:[%s1524_s9 + $0x40] sm:$0xff]  ;;  %v350_v7 = vld [vmem:[%s1524_s9 + $0x50] sm:$0xff]  ;;  %347 = vst [vmem:[%s1529_s10 + $0x18] sm:$0xff] %v346_v5 }
  0x30   : > { %349 = vst [vmem:[%s1529_s10 + $0x20] sm:$0xff] %v348_v6  ;;  %351 = vst [vmem:[%s1529_s10 + $0x28] sm:$0xff] %v350_v7  ;;  %v352_v8 = vld [vmem:[%s1524_s9 + $0x60] sm:$0xff]  ;;  %v354_v9 = vld [vmem:[%s1524_s9 + $0x70] sm:$0xff] }
  0x31   : > { %v356_v10 = vld [vmem:[%s1524_s9 + $0x80] sm:$0xff]  ;;  %353 = vst [vmem:[%s1529_s10 + $0x30] sm:$0xff] %v352_v8  ;;  %355 = vst [vmem:[%s1529_s10 + $0x38] sm:$0xff] %v354_v9  ;;  %v358_v11 = vld [vmem:[%s1524_s9 + $0x90] sm:$0xff] }
  0x32   : > { %357 = vst [vmem:[%s1529_s10 + $0x40] sm:$0xff] %v356_v10  ;;  %v360_v12 = vld [vmem:[%s1524_s9 + $0xa0] sm:$0xff]  ;;  %v362_v13 = vld [vmem:[%s1524_s9 + $0xb0] sm:$0xff]  ;;  %359 = vst [vmem:[%s1529_s10 + $0x48] sm:$0xff] %v358_v11 }
  0x33   : > { %361 = vst [vmem:[%s1529_s10 + $0x50] sm:$0xff] %v360_v12  ;;  %363 = vst [vmem:[%s1529_s10 + $0x58] sm:$0xff] %v362_v13  ;;  %v364_v14 = vld [vmem:[%s1524_s9 + $0xc0] sm:$0xff]  ;;  %v366_v15 = vld [vmem:[%s1524_s9 + $0xd0] sm:$0xff] }
  0x34   : > { %v368_v16 = vld [vmem:[%s1524_s9 + $0xe0] sm:$0xff]  ;;  %365 = vst [vmem:[%s1529_s10 + $0x60] sm:$0xff] %v364_v14  ;;  %367 = vst [vmem:[%s1529_s10 + $0x68] sm:$0xff] %v366_v15  ;;  %v370_v17 = vld [vmem:[%s1524_s9 + $0xf0] sm:$0xff] }
  0x35   : > { %369 = vst [vmem:[%s1529_s10 + $0x70] sm:$0xff] %v368_v16  ;;  %v372_v18 = vld [vmem:[%s1524_s9 + $0x100] sm:$0xff]  ;;  %v374_v19 = vld [vmem:[%s1524_s9 + $0x110] sm:$0xff]  ;;  %371 = vst [vmem:[%s1529_s10 + $0x78] sm:$0xff] %v370_v17 }
  0x36   : > { %373 = vst [vmem:[%s1529_s10 + $0x80] sm:$0xff] %v372_v18  ;;  %375 = vst [vmem:[%s1529_s10 + $0x88] sm:$0xff] %v374_v19  ;;  %v376_v20 = vld [vmem:[%s1524_s9 + $0x120] sm:$0xff]  ;;  %v378_v21 = vld [vmem:[%s1524_s9 + $0x130] sm:$0xff] }
  0x37   : > { %v380_v22 = vld [vmem:[%s1524_s9 + $0x140] sm:$0xff]  ;;  %377 = vst [vmem:[%s1529_s10 + $0x90] sm:$0xff] %v376_v20  ;;  %379 = vst [vmem:[%s1529_s10 + $0x98] sm:$0xff] %v378_v21  ;;  %v382_v23 = vld [vmem:[%s1524_s9 + $0x150] sm:$0xff] }
  0x38   : > { %381 = vst [vmem:[%s1529_s10 + $0xa0] sm:$0xff] %v380_v22  ;;  %v384_v24 = vld [vmem:[%s1524_s9 + $0x160] sm:$0xff]  ;;  %v386_v25 = vld [vmem:[%s1524_s9 + $0x170] sm:$0xff]  ;;  %383 = vst [vmem:[%s1529_s10 + $0xa8] sm:$0xff] %v382_v23 }
  0x39   : > { %385 = vst [vmem:[%s1529_s10 + $0xb0] sm:$0xff] %v384_v24  ;;  %387 = vst [vmem:[%s1529_s10 + $0xb8] sm:$0xff] %v386_v25  ;;  %v388_v26 = vld [vmem:[%s1524_s9 + $0x180] sm:$0xff]  ;;  %v390_v27 = vld [vmem:[%s1524_s9 + $0x190] sm:$0xff] }
  0x3a   : > { %v392_v28 = vld [vmem:[%s1524_s9 + $0x1a0] sm:$0xff]  ;;  %389 = vst [vmem:[%s1529_s10 + $0xc0] sm:$0xff] %v388_v26  ;;  %391 = vst [vmem:[%s1529_s10 + $0xc8] sm:$0xff] %v390_v27  ;;  %v394_v29 = vld [vmem:[%s1524_s9 + $0x1b0] sm:$0xff] }
  0x3b   : > { %393 = vst [vmem:[%s1529_s10 + $0xd0] sm:$0xff] %v392_v28  ;;  %v396_v30 = vld [vmem:[%s1524_s9 + $0x1c0] sm:$0xff]  ;;  %v398_v31 = vld [vmem:[%s1524_s9 + $0x1d0] sm:$0xff]  ;;  %395 = vst [vmem:[%s1529_s10 + $0xd8] sm:$0xff] %v394_v29 }
  0x3c   : > { %397 = vst [vmem:[%s1529_s10 + $0xe0] sm:$0xff] %v396_v30  ;;  %399 = vst [vmem:[%s1529_s10 + $0xe8] sm:$0xff] %v398_v31  ;;  %v400_v32 = vld [vmem:[%s1524_s9 + $0x1e0] sm:$0xff]  ;;  %v402_v33 = vld [vmem:[%s1524_s9 + $0x1f0] sm:$0xff] }
  0x3d   : > { %401 = vst [vmem:[%s1529_s10 + $0xf0] sm:$0xff] %v400_v32  ;;  %403 = vst [vmem:[%s1529_s10 + $0xf8] sm:$0xff] %v402_v33 }
  0x3e PF: > { %p1100_p0 = scmp.ge.s32.totalorder %s1381_s25, 1  ;;  %p408_p1 = scmp.lt.s32.totalorder %s1381_s25, 37 }
  0x40   : > { %p409_p2 = pnand %p1100_p0, %p408_p1 }
  0x41   : > { %s415_s20 = sand.u32 (!%p409_p2), 1, %s1357_s19   ;;  %s422_s27 = sand.u32 (!%p409_p2), 1, %s1349_s17  }
  0x42   : > { %412 = sbr.rel (%p409_p2) target bundleno = 400 (0x190), region = 96  ;;  %s1596_s28 = sshll.u32 (!%p409_p2), %s415_s20, 4 }
  0x43   : > { %s1102_s7 = sshll.u32 (!%p409_p2), %s422_s27, 8  ;;  %s443_s8 = sand.u32 (!%p409_p2), 1, %s1341_s15  }
  0x44   : > { %s1104_s11 = sshll.u32 (!%p409_p2), %s1369_s22, 1  ;;  %s1103_s26 = sshll.u32 (!%p409_p2), %s443_s8, 4 }
  0x45   : > { %p475_p3 = scmp.lt.s32.totalorder (!%p409_p2), %s1104_s11, 3  ;;  %s417_s19 = scalar_lea.vmem (!%p409_p2), [#allocation3], %s1596_s28 }
  0x46   : > { %s1611_s10 = scalar_lea.vmem (!%p409_p2), [#allocation4], %s1102_s7  ;;  %s1613_s20 = scalar_lea.vmem (!%p409_p2), [#allocation5], %s1103_s26 }
  0x47   : > { %p1106_p4 = scmp.ne.s32.totalorder (!%p409_p2), %s1365_s21, 0 }
  0x49   : > { %s1740_s11 = smov (!%p475_p3, %s1104_s11), 3  ;;  %493 = sbr.rel (%p1106_p4) target bundleno = 80 (0x50), region = 108 }
  0x4a   : > { %s479_s6 = scalar_lea.vmem %s1709_s3, %s1740_s11  ;;  %s488_s17 = scalar_lea.vmem %s1710_s4, %s1740_s11  ;;  %v1383_v34 = vmov (!%p1106_p4), 0.0  }
  0x4b   : > { %494 = vst [vmem:[#allocation2] sm:$0xff] (!%p1106_p4), %v1383_v34  ;;  %495 = vst [vmem:[#allocation2 + $0x8] sm:$0xff] (!%p1106_p4), %v1383_v34 }
  0x4c   : > { %496 = vst [vmem:[#allocation2 + $0x10] sm:$0xff] (!%p1106_p4), %v1383_v34  ;;  %497 = vst [vmem:[#allocation2 + $0x18] sm:$0xff] (!%p1106_p4), %v1383_v34 }
  0x50 PF: > { %v1244_v35 = vld [vmem:[%s1611_s10 + $0x4] ss:$8 sps:$4 sm:$0xff]   ;;  %v1246_v36 = vld [vmem:[%s1611_s10] ss:$8 sps:$4 sm:$0xff]   ;;  %v1247_v37 = vld [vmem:[%s1611_s10 + $0x14] ss:$8 sps:$4 sm:$0xff]  }
  0x51   : > { %706 = vmatprep.subr.bf16.mxu0 %v1244_v35  ;;  %v1249_v38 = vld [vmem:[%s1611_s10 + $0x10] ss:$8 sps:$4 sm:$0xff]   ;;  %v1250_v39 = vld [vmem:[%s1611_s10 + $0x24] ss:$8 sps:$4 sm:$0xff]   ;;  %v1252_v40 = vld [vmem:[%s1611_s10 + $0x20] ss:$8 sps:$4 sm:$0xff]  }
  0x52   : > { %707 = vmatpush1.bf16.msra.mxu0 %v1246_v36  ;;  %v1253_v41 = vld [vmem:[%s1611_s10 + $0x34] ss:$8 sps:$4 sm:$0xff]   ;;  %v1255_v42 = vld [vmem:[%s1611_s10 + $0x30] ss:$8 sps:$4 sm:$0xff]   ;;  %v1256_v43 = vld [vmem:[%s1611_s10 + $0x44] ss:$8 sps:$4 sm:$0xff]  }
  0x53   : > { %708 = vmatprep.subr.bf16.mxu0 %v1247_v37  ;;  %v1258_v44 = vld [vmem:[%s1611_s10 + $0x40] ss:$8 sps:$4 sm:$0xff]   ;;  %v1259_v45 = vld [vmem:[%s1611_s10 + $0x54] ss:$8 sps:$4 sm:$0xff]   ;;  %v1261_v46 = vld [vmem:[%s1611_s10 + $0x50] ss:$8 sps:$4 sm:$0xff]  }
  0x54   : > { %v1262_v47 = vld [vmem:[%s1611_s10 + $0x64] ss:$8 sps:$4 sm:$0xff]   ;;  %v1264_v49 = vld [vmem:[%s1611_s10 + $0x60] ss:$8 sps:$4 sm:$0xff]   ;;  %v1265_v50 = vld [vmem:[%s1611_s10 + $0x74] ss:$8 sps:$4 sm:$0xff]  }
  0x55   : > { %v1294_v48 = vld [vmem:[%s417_s19 + $0x4] ss:$8 sps:$4 sm:$0xff]   ;;  %v1267_v51 = vld [vmem:[%s1611_s10 + $0x70] ss:$8 sps:$4 sm:$0xff]   ;;  %v1270_v53 = vld [vmem:[%s1611_s10 + $0x80] ss:$8 sps:$4 sm:$0xff]  }
  0x56   : > { %709 = vmatpush1.bf16.msra.mxu0 %v1249_v38  ;;  %738 = vmatprep.mubr.bf16.mxu0 %v1294_v48  ;;  %v1268_v52 = vld [vmem:[%s1611_s10 + $0x84] ss:$8 sps:$4 sm:$0xff]   ;;  %v1271_v54 = vld [vmem:[%s1611_s10 + $0x94] ss:$8 sps:$4 sm:$0xff]   ;;  %v1273_v55 = vld [vmem:[%s1611_s10 + $0x90] ss:$8 sps:$4 sm:$0xff]  }
  0x57   : > { %710 = vmatprep.subr.bf16.mxu0 %v1250_v39  ;;  %v1274_v56 = vld [vmem:[%s1611_s10 + $0xa4] ss:$8 sps:$4 sm:$0xff]   ;;  %v1276_v57 = vld [vmem:[%s1611_s10 + $0xa0] ss:$8 sps:$4 sm:$0xff]   ;;  %v1277_v58 = vld [vmem:[%s1611_s10 + $0xb4] ss:$8 sps:$4 sm:$0xff]  }
  0x58   : > { %v1279_v59 = vld [vmem:[%s1611_s10 + $0xb0] ss:$8 sps:$4 sm:$0xff]   ;;  %v1280_v60 = vld [vmem:[%s1611_s10 + $0xc4] ss:$8 sps:$4 sm:$0xff]   ;;  %v1282_v61 = vld [vmem:[%s1611_s10 + $0xc0] ss:$8 sps:$4 sm:$0xff]  }
  0x59   : > { %v1283_v62 = vld [vmem:[%s1611_s10 + $0xd4] ss:$8 sps:$4 sm:$0xff]   ;;  %v1285_v63 = vld [vmem:[%s1611_s10 + $0xd0] ss:$8 sps:$4 sm:$0xff]   ;;  %v1286_v0 = vld [vmem:[%s1611_s10 + $0xe4] ss:$8 sps:$4 sm:$0xff]  }
  0x5a   : > { %711 = vmatpush1.bf16.msra.mxu0 %v1252_v40  ;;  %v1288_v1 = vld [vmem:[%s1611_s10 + $0xe0] ss:$8 sps:$4 sm:$0xff]   ;;  %v1289_v2 = vld [vmem:[%s1611_s10 + $0xf4] ss:$8 sps:$4 sm:$0xff]   ;;  %v1291_v3 = vld [vmem:[%s1611_s10 + $0xf0] ss:$8 sps:$4 sm:$0xff]  }
  0x5b   : > { %712 = vmatprep.subr.bf16.mxu0 %v1253_v41  ;;  %v1292_v4 = vld [vmem:[%s417_s19] ss:$8 sps:$4 sm:$0xff]   ;;  %p1141_p5 = scmp.ne.s32.totalorder %s1365_s21, 17 }
  0x5c   : > { %v498_v5 = vld [vmem:[#allocation2] sm:$0xff]  ;;  %v499_v6 = vld [vmem:[#allocation2 + $0x8] sm:$0xff]  ;;  %v500_v8 = vld [vmem:[#allocation2 + $0x10] sm:$0xff]  ;;  %v799_v34 = vlaneseq (!%p1141_p5)  ;;  %v1384_v38 = vmov (!%p1141_p5), 1966171168  }
  0x5d   : > { %v501_v11 = vld [vmem:[#allocation2 + $0x18] sm:$0xff]  ;;  %v797_v39 = vunpack.c.l.s4 (!%p1141_p5), %v1384_v38 }
  0x5e   : > { %713 = vmatpush1.bf16.msra.mxu0 %v1255_v42  ;;  %vm813_vm0 = vcmp.lt.s32.totalorder (!%p1141_p5), %v799_v34, 256 }
  0x5f   : > { %714 = vmatprep.subr.bf16.mxu0 %v1256_v43 }
  0x62   : > { %715 = vmatpush1.bf16.msra.mxu0 %v1258_v44 }
  0x63   : > { %716 = vmatprep.subr.bf16.mxu0 %v1259_v45  ;;  %v800_v45 = vshrl.u32 (!%p1141_p5), %v799_v34, 7 }
  0x66   : > { %717 = vmatpush1.bf16.msra.mxu0 %v1261_v46 }
  0x67   : > { %718 = vmatprep.subr.bf16.mxu0 %v1262_v47 }
  0x6a   : > { %719 = vmatpush1.bf16.msra.mxu0 %v1264_v49  ;;  %v798_v49 = vunpack.c.0.s8 (!%p1141_p5), %v797_v39 }
  0x6b   : > { %720 = vmatprep.subr.bf16.mxu0 %v1265_v50 }
  0x6e   : > { %721 = vmatpush1.bf16.msra.mxu0 %v1267_v51 }
  0x6f   : > { %722 = vmatprep.subr.bf16.mxu0 %v1268_v52 }
  0x72   : > { %723 = vmatpush1.bf16.msra.mxu0 %v1270_v53 }
  0x73   : > { %724 = vmatprep.subr.bf16.mxu0 %v1271_v54 }
  0x76   : > { %725 = vmatpush1.bf16.msra.mxu0 %v1273_v55 }
  0x77   : > { %726 = vmatprep.subr.bf16.mxu0 %v1274_v56  ;;  %v801_v56 = vsub.s32 (!%p1141_p5), %v798_v49, %v800_v45 }
  0x7a   : > { %727 = vmatpush1.bf16.msra.mxu0 %v1276_v57 }
  0x7b   : > { %728 = vmatprep.subr.bf16.mxu0 %v1277_v58 }
  0x7e   : > { %729 = vmatpush1.bf16.msra.mxu0 %v1279_v59 }
  0x7f   : > { %730 = vmatprep.subr.bf16.mxu0 %v1280_v60 }
  0x82   : > { %731 = vmatpush1.bf16.msra.mxu0 %v1282_v61 }
  0x83   : > { %732 = vmatprep.subr.bf16.mxu0 %v1283_v62 }
  0x86   : > { %733 = vmatpush1.bf16.msra.mxu0 %v1285_v63 }
  0x87   : > { %734 = vmatprep.subr.bf16.mxu0 %v1286_v0 }
  0x8a   : > { %735 = vmatpush1.bf16.msra.mxu0 %v1288_v1 }
  0x8b   : > { %736 = vmatprep.subr.bf16.mxu0 %v1289_v2 }
  0x8e   : > { %737 = vmatpush1.bf16.msra.mxu0 %v1291_v3 }
  0x91   : > { %739 = vmatmul.mubr.bf16.vlgmr.msra.gmra.mrb[0].mxu0 %v1292_v4 }
 0x164   : > { %v740_v7 = vpop.f32.mrb[0].mxu0  ;;  %760 = sbr.rel (%p1141_p5) target bundleno = 393 (0x189), region = 112 }
 0x165   : > { %v749_v9 = vadd.f32 %v740_v7, %v498_v5  ;;  %v742_v10 = vpop.f32.mrb[1].mxu0 }
 0x166   : > { %v750_v12 = vadd.f32 %v742_v10, %v499_v6  ;;  %v744_v13 = vpop.f32.mrb[2].mxu0 }
 0x167   : > { %753 = vst [vmem:[#allocation2] sm:$0xff] %v749_v9  ;;  %v751_v14 = vadd.f32 %v744_v13, %v500_v8  ;;  %v746_v15 = vpop.f32.mrb[3].mxu0 }
 0x168   : > { %754 = vst [vmem:[#allocation2 + $0x8] sm:$0xff] %v750_v12  ;;  %v752_v16 = vadd.f32 %v746_v15, %v501_v11 }
 0x169   : > { %755 = vst [vmem:[#allocation2 + $0x10] sm:$0xff] %v751_v14 }
 0x16a   : > { %756 = vst [vmem:[#allocation2 + $0x18] sm:$0xff] %v752_v16 }
 0x16e   : > { %v761_v17 = vld [vmem:[#allocation2] sm:$0xff] }
 0x16f   : > { %v762_v18 = vld [vmem:[#allocation2 + $0x8] sm:$0xff]  ;;  %v816_v21 = vmul.f32 %v761_v17, %v761_v17 }
 0x170   : > { %v763_v19 = vld [vmem:[#allocation2 + $0x10] sm:$0xff]  ;;  %v1151_v20 = vpack.c.bf16 %v762_v18, %v761_v17  ;;  %v817_v22 = vmul.f32 %v762_v18, %v762_v18 }
 0x171   : > { %v764_v23 = vld [vmem:[#allocation2 + $0x18] sm:$0xff]  ;;  %v779_v24 = vadd.f32 %v763_v19, %v761_v17  ;;  %v818_v27 = vmul.f32 %v763_v19, %v763_v19 }
 0x172   : > { %v1152_v25 = vpack.c.bf16 %v764_v23, %v763_v19  ;;  %v786_v26 = vadd.f32 %v764_v23, %v762_v18  ;;  %v819_v28 = vmul.f32 %v764_v23, %v764_v23  ;;  %777 = vst [vmem:[%s1613_s20] sm:$0xff] %v1151_v20 }
 0x173   : > { %v780_v29 = vrot.slane %v779_v24, 4  ;;  %v820_v31 = vadd.f32 %v818_v27, %v816_v21 }
 0x174   : > { %778 = vst [vmem:[%s1613_s20 + $0x8] sm:$0xff] %v1152_v25  ;;  %v787_v30 = vrot.slane %v786_v26, 4  ;;  %v827_v32 = vadd.f32 %v819_v28, %v817_v22 }
 0x175   : > { %v781_v33 = vadd.f32 %v780_v29, %v779_v24  ;;  %v821_v36 = vrot.slane %v820_v31, 4 }
 0x176   : > { %v788_v35 = vadd.f32 %v787_v30, %v786_v26  ;;  %v828_v37 = vrot.slane %v827_v32, 4 }
 0x177   : > { %v782_v40 = vrot.slane %v781_v33, 2  ;;  %v822_v42 = vadd.f32 %v821_v36, %v820_v31 }
 0x178   : > { %v789_v41 = vrot.slane %v788_v35, 2  ;;  %v829_v43 = vadd.f32 %v828_v37, %v827_v32 }
 0x179   : > { %v783_v44 = vadd.f32 %v782_v40, %v781_v33  ;;  %v823_v47 = vrot.slane %v822_v42, 2 }
 0x17a   : > { %v790_v46 = vadd.f32 %v789_v41, %v788_v35  ;;  %v830_v48 = vrot.slane %v829_v43, 2 }
 0x17b   : > { %v784_v50 = vrot.slane %v783_v44, 1  ;;  %v824_v52 = vadd.f32 %v823_v47, %v822_v42 }
 0x17c   : > { %v791_v51 = vrot.slane %v790_v46, 1  ;;  %v831_v53 = vadd.f32 %v830_v48, %v829_v43 }
 0x17d   : > { %v785_v54 = vadd.f32 %v784_v50, %v783_v44  ;;  %v825_v57 = vrot.slane %v824_v52, 1 }
 0x17e   : > { %v792_v55 = vadd.f32 %v791_v51, %v790_v46  ;;  %v832_v58 = vrot.slane %v831_v53, 1 }
 0x17f   : > { %v826_v60 = vadd.f32 %v825_v57, %v824_v52 }
 0x180   : > { %v795_v59 = vcombine.low %v785_v54, %v792_v55  ;;  %v833_v61 = vadd.f32 %v832_v58, %v831_v53 }
 0x182   : > { %v802_v62 = vrot.slane %v795_v59, %v801_v56  ;;  %v836_v63 = vcombine.low %v826_v60, %v833_v61 }
 0x184   : > { %v809_v0 = vrot.slane %v802_v62, %v801_v56  ;;  %v843_v1 = vrot.slane %v836_v63, %v801_v56 }
 0x186   : > { %815 = vst.msk [vmem:[%s479_s6] sm:$0x3] %vm813_vm0, %v809_v0  ;;  %v850_v2 = vrot.slane %v843_v1, %v801_v56 }
 0x188   : > { %852 = vst.msk [vmem:[%s488_s17] sm:$0x3] %vm813_vm0, %v850_v2 }
 0x189 PF: > { %875 = sbr.rel (!%p1504_p12) target bundleno = 400 (0x190), region = 116  ;;  %s1153_s7 = sshll.u32 (%p1504_p12), %s1369_s22, 3  ;;  %v911_v3 = vld [vmem:[%s1613_s20] sm:$0xff] (%p1504_p12)  ;;  %v913_v4 = vld [vmem:[%s1613_s20 + $0x8] sm:$0xff] (%p1504_p12) }
 0x18a   : > { %s881_s5 = scalar_lea.vmem (%p1504_p12), %s1708_s2, %s1153_s7 }
 0x18b   : > { %912 = vst [vmem:[%s881_s5] sm:$0xff] (%p1504_p12), %v911_v3  ;;  %914 = vst [vmem:[%s881_s5 + $0x10] sm:$0xff] (%p1504_p12), %v913_v4 }
 0x190 PF: > { %s15_s25 = sadd.s32 1, %s1381_s25   ;;  %s1721_s19 = sld [smem:[#allocation6_spill]] }
 0x191   : > { %p12_p6 = scmp.ge.s32.totalorder %s15_s25, 38   ;;  %s1722_s20 = sld [smem:[#allocation9_spill]] }
 0x192   : > { %s1723_s14 = sld [smem:[#allocation7_spill]]  ;;  %s1724_s11 = sld [smem:[#allocation8_spill]] }
 0x193   : > { %s1725_s15 = smov %s1345_s16  ;;  %s1726_s16 = smov %s1502_s13 }
 0x194   : > { %s1727_s17 = smov %s1353_s18  ;;  %s1728_s18 = smov %s1499_s12 }
 0x195   : > { %s1729_s21 = smov %s1373_s23  ;;  %s1730_s22 = smov %s1377_s24 }
 0x196   :  { %14 = sbr.rel (!%p12_p6) target bundleno = 6 (0x6), region = 217 }
 0x198   : > { %s1731_s23 = smov %s1723_s14  ;;  %s1732_s24 = smov %s1724_s11 }

// kernel: resnet18_forward.78
= control target key start
LH: loop header
LB: loop body
LE: loop exit
PB: predicated region body
PF: predicated region fallthrough
CT: control target
= control target key end

     0   :  { %v31_v0 = vlaneseq  ;;  %s224_s0 = inlined_call_operand.vmem [shape: bf16[16,512], index: 0, kind: input, shape index: {}]   ;;  %s225_s1 = inlined_call_operand.vmem [shape: f32[1,512], index: 1, kind: input, shape index: {}]   ;;  %s226_s2 = inlined_call_operand.vmem [shape: f32[1,512], index: 2, kind: input, shape index: {}]   ;;  %s227_s3 = inlined_call_operand.vmem [shape: bf16[16,512], index: 3, kind: input, shape index: {}]   ;;  %s228_s4 = inlined_call_operand.vmem [shape: bf16[16,512], index: 4, kind: output, shape index: {}]  }
   0x1   :  { %v17_v1 = vld [vmem:[%s224_s0] sm:$0xff]  ;;  %v18_v6 = vld [vmem:[%s224_s0 + $0x8] sm:$0xff]  ;;  %v19_v14 = vld [vmem:[%s224_s0 + $0x10] sm:$0xff] }
   0x2   :  { %v21_v2 = vunpack.c.l.bf16 %v17_v1  ;;  %v22_v3 = vunpack.c.h.bf16 %v17_v1  ;;  %v32_v4 = vshrl.u32 %v31_v0, 7  ;;  %v89_v5 = vld [vmem:[%s227_s3] sm:$0xff]  ;;  %v90_v7 = vld [vmem:[%s227_s3 + $0x8] sm:$0xff]  ;;  %v23_v12 = vunpack.c.l.bf16 %v18_v6  ;;  %v91_v27 = vld [vmem:[%s227_s3 + $0x10] sm:$0xff] }
   0x3   :  { %v29_v8 = vld [vmem:[%s225_s1] sm:$0xf]  ;;  %v93_v10 = vunpack.c.l.bf16 %v89_v5  ;;  %v94_v11 = vunpack.c.h.bf16 %v89_v5  ;;  %v24_v13 = vunpack.c.h.bf16 %v18_v6  ;;  %v95_v19 = vunpack.c.l.bf16 %v90_v7  ;;  %v20_v36 = vld [vmem:[%s224_s0 + $0x18] sm:$0xff] }
   0x4   :  { %v59_v9 = vld [vmem:[%s226_s2] sm:$0xf]  ;;  %v33_v15 = vsub.s32 0, %v32_v4  ;;  %v37_v16 = vsub.s32 1, %v32_v4  ;;  %v41_v17 = vsub.s32 2, %v32_v4  ;;  %v45_v18 = vsub.s32 3, %v32_v4 }
   0x5   :  { %v96_v20 = vunpack.c.h.bf16 %v90_v7  ;;  %v25_v21 = vunpack.c.l.bf16 %v19_v14  ;;  %v26_v22 = vunpack.c.h.bf16 %v19_v14  ;;  %v97_v39 = vunpack.c.l.bf16 %v91_v27  ;;  %v92_v57 = vld [vmem:[%s227_s3 + $0x18] sm:$0xff] }
   0x6   :  { %v34_v23 = vrot.slane %v29_v8, %v33_v15  ;;  %v38_v24 = vrot.slane %v29_v8, %v37_v16  ;;  %v64_v25 = vrot.slane %v59_v9, %v33_v15  ;;  %v68_v26 = vrot.slane %v59_v9, %v37_v16 }
   0x7   :  { %v42_v28 = vrot.slane %v29_v8, %v41_v17  ;;  %v46_v29 = vrot.slane %v29_v8, %v45_v18  ;;  %v72_v30 = vrot.slane %v59_v9, %v41_v17  ;;  %v76_v31 = vrot.slane %v59_v9, %v45_v18 }
   0x8   :  { %v51_v32 = vmul.f32 %v34_v23, %v21_v2  ;;  %v52_v33 = vmul.f32 %v38_v24, %v22_v3  ;;  %v55_v34 = vmul.f32 %v34_v23, %v25_v21  ;;  %v56_v35 = vmul.f32 %v38_v24, %v26_v22 }
   0x9   :  { %v53_v37 = vmul.f32 %v42_v28, %v23_v12  ;;  %v54_v38 = vmul.f32 %v46_v29, %v24_v13  ;;  %v98_v40 = vunpack.c.h.bf16 %v91_v27  ;;  %v27_v47 = vunpack.c.l.bf16 %v20_v36 }
   0xa   :  { %v81_v41 = vadd.f32 %v64_v25, %v51_v32  ;;  %v82_v42 = vadd.f32 %v68_v26, %v52_v33  ;;  %v85_v43 = vadd.f32 %v64_v25, %v55_v34  ;;  %v86_v44 = vadd.f32 %v68_v26, %v56_v35 }
   0xb   :  { %v83_v45 = vadd.f32 %v72_v30, %v53_v37  ;;  %v84_v46 = vadd.f32 %v76_v31, %v54_v38  ;;  %v28_v48 = vunpack.c.h.bf16 %v20_v36  ;;  %v57_v55 = vmul.f32 %v42_v28, %v27_v47 }
   0xc   :  { %v101_v49 = vadd.f32 %v93_v10, %v81_v41  ;;  %v102_v50 = vadd.f32 %v94_v11, %v82_v42  ;;  %v105_v51 = vadd.f32 %v97_v39, %v85_v43  ;;  %v106_v52 = vadd.f32 %v98_v40, %v86_v44 }
   0xd   :  { %v103_v53 = vadd.f32 %v95_v19, %v83_v45  ;;  %v104_v54 = vadd.f32 %v96_v20, %v84_v46  ;;  %v58_v56 = vmul.f32 %v46_v29, %v28_v48  ;;  %v87_v0 = vadd.f32 %v72_v30, %v57_v55 }
   0xe   :  { %v109_v58 = vmax.f32 %v101_v49, 0.0  ;;  %v110_v59 = vmax.f32 %v102_v50, 0.0  ;;  %v113_v60 = vmax.f32 %v105_v51, 0.0  ;;  %v114_v61 = vmax.f32 %v106_v52, 0.0 }
   0xf   :  { %v111_v62 = vmax.f32 %v103_v53, 0.0  ;;  %v112_v63 = vmax.f32 %v104_v54, 0.0  ;;  %v88_v1 = vadd.f32 %v76_v31, %v58_v56  ;;  %v99_v4 = vunpack.c.l.bf16 %v92_v57 }
  0x10   :  { %v153_v2 = vpack.c.bf16 %v110_v59, %v109_v58  ;;  %v155_v3 = vpack.c.bf16 %v114_v61, %v113_v60  ;;  %v100_v5 = vunpack.c.h.bf16 %v92_v57 }
  0x11   :  { %v154_v6 = vpack.c.bf16 %v112_v63, %v111_v62  ;;  %v107_v7 = vadd.f32 %v99_v4, %v87_v0 }
  0x12   :  { %141 = vst [vmem:[%s228_s4] sm:$0xff] %v153_v2  ;;  %143 = vst [vmem:[%s228_s4 + $0x10] sm:$0xff] %v155_v3  ;;  %v108_v8 = vadd.f32 %v100_v5, %v88_v1 }
  0x13   :  { %142 = vst [vmem:[%s228_s4 + $0x8] sm:$0xff] %v154_v6  ;;  %v115_v9 = vmax.f32 %v107_v7, 0.0 }
  0x14   :  { %v116_v10 = vmax.f32 %v108_v8, 0.0 }
  0x16   :  { %v156_v11 = vpack.c.bf16 %v116_v10, %v115_v9 }
  0x18   :  { %144 = vst [vmem:[%s228_s4 + $0x18] sm:$0xff] %v156_v11 }

// kernel: resnet18_forward.83
= control target key start
LH: loop header
LB: loop body
LE: loop exit
PB: predicated region body
PF: predicated region fallthrough
CT: control target
= control target key end

     0   :  { %s204_s6 = smov 0   ;;  %s225_s0 = inlined_call_operand.vmem [shape: bf16[2,1,512], index: 0, kind: input, shape index: {}]   ;;  %s226_s1 = inlined_call_operand.vmem [shape: f32[2,1,512], index: 1, kind: output, shape index: {}]  }
   0x1 LB: > { %s182_s7 = sadd.s32 4294967295, %s206_s6   ;;  %p186_p0 = scmp.ge.s32.totalorder %s206_s6, 1  ;;  %s206_s6 = sphi %s204_s6, %s11_s6  }
   0x2   : > { %p86_p1 = scmp.lt.s32.totalorder %s206_s6, 3 }
   0x4   : > { %p87_p2 = pnand %p186_p0, %p86_p1 }
   0x5   : > { %p104_p3 = scmp.lt.s32.totalorder (!%p87_p2), %s182_s7, 1  ;;  %v119_v0 = vlaneseq (!%p87_p2)  ;;  %v208_v1 = vmov (!%p87_p2), 1966171168  }
   0x6   : > { %90 = sbr.rel (%p87_p2) target bundleno = 22 (0x16), region = 24  ;;  %v117_v2 = vunpack.c.l.s4 (!%p87_p2), %v208_v1 }
   0x7   : > { %v120_v3 = vshrl.u32 (!%p87_p2), %v119_v0, 7  ;;  %vm126_vm0 = vcmp.lt.s32.totalorder (!%p87_p2), %v119_v0, 512 }
   0x8   : > { %v118_v4 = vunpack.c.0.s8 (!%p87_p2), %v117_v2 }
   0xa   : > { %v121_v5 = vsub.s32 (!%p87_p2), %v118_v4, %v120_v3 }
   0xd   : > { %s228_s7 = smov (!%p104_p3, %s182_s7), 1 }
   0xe   : > { %s187_s8 = sshll.u32 %s228_s7, 2 }
   0xf   : > { %s107_s11 = scalar_lea.vmem %s225_s0, %s187_s8  ;;  %s111_s14 = scalar_lea.vmem %s226_s1, %s187_s8 }
  0x10   : > { %v112_v6 = vld [vmem:[%s107_s11] sm:$0xf] }
  0x11   : > { %v113_v7 = vunpack.c.l.bf16 %v112_v6 }
  0x13   : > { %v122_v8 = vrot.slane %v113_v7, %v121_v5 }
  0x15   : > { %128 = vst.msk [vmem:[%s111_s14] sm:$0xf] %vm126_vm0, %v122_v8 }
  0x16 PF: > { %s11_s6 = sadd.s32 1, %s206_s6  }
  0x17   : > { %p8_p4 = scmp.ge.s32.totalorder %s11_s6, 4  }
  0x19   :  { %10 = sbr.rel (!%p8_p4) target bundleno = 1 (0x1), region = 54 }

</bundles_post_ra>
